<compile_context>
chip_gen: v6e
topology: v6e:2x2x1
jax: 0.10.0
libtpu: 0.0.40
codegen_flags: <defaults>
</compile_context>

<pallas_src>
import jax
import jax.numpy as jnp
from jax.experimental import pallas as pl
from jax.experimental.pallas import tpu as pltpu

EPS = 1e-5
DIMS = (512, 1024, 512, 256, 512, 1024, 512)          # feat_size = 512
OUTS = DIMS[1:]                                       # per-layer output dims
OFFS = tuple(int(sum(OUTS[:i])) for i in range(6))    # (0,1024,1536,1792,2304,3328)
PTOT = int(sum(OUTS))                                 # 3840 = 30 * 128 (lane-dense)


def _autoencoder_kernel(
    # VMEM inputs
    x_ref,          # (B, 512) bf16
    p_ref,          # (4, PTOT) f32: rows = [gamma; beta; dequant scale; final bias]
    # HBM inputs (manual DMA)
    w0, w1, w2, w3, w4, w5,     # int8 weights, (fin, fout)
    # output
    o_ref,          # (B, 512) f32
    # scratch
    v0, v1, v2, v3, v4, v5,     # int8 VMEM weight buffers
    sems,                       # DMA semaphores, shape (6,)
):
    w_hbm = (w0, w1, w2, w3, w4, w5)
    w_vmem = (v0, v1, v2, v3, v4, v5)

    # Kick off all six weight DMAs; layer-k compute overlaps DMAs k+1..5.
    copies = [
        pltpu.make_async_copy(w_hbm[i], w_vmem[i], sems.at[i]) for i in range(6)
    ]
    for cp in copies:
        cp.start()

    h = x_ref[...]                          # bf16 activations
    inv_b = 1.0 / x_ref.shape[0]

    for i in range(6):
        off, fout = OFFS[i], OUTS[i]
        copies[i].wait()
        # Exact int8 -> bf16 cast; per-output-channel scale applied to the
        # f32 accumulator (cheap (B, fout) multiply) instead of dequantizing
        # the whole (fin, fout) weight in the VPU.
        w_bf = w_vmem[i][...].astype(jnp.bfloat16)
        scale = p_ref[2:3, off:off + fout]
        y = jnp.dot(h, w_bf, preferred_element_type=jnp.float32) * scale
        if i < 5:
            # Training-mode BatchNorm1d (biased var) + ReLU, folded affine.
            gamma = p_ref[0:1, off:off + fout]
            beta = p_ref[1:2, off:off + fout]
            mean = jnp.sum(y, axis=0, keepdims=True) * inv_b
            c = y - mean
            var = jnp.sum(c * c, axis=0, keepdims=True) * inv_b
            s = gamma * jax.lax.rsqrt(var + EPS)
            h = jnp.maximum(c * s + beta, 0.0).astype(jnp.bfloat16)
        else:
            bias = p_ref[3:4, off:off + fout]
            o_ref[...] = (y + bias).astype(o_ref.dtype)


def init_params(key):
    """Random f32 params matching the PyTorch module's shapes."""
    keys = iter(jax.random.split(key, 32))
    ws, bs, gammas, betas = [], [], [], []
    for layer in range(6):
        fin, fout = DIMS[layer], DIMS[layer + 1]
        bound = 1.0 / float(fin) ** 0.5
        ws.append(jax.random.uniform(next(keys), (fin, fout), jnp.float32, -bound, bound))
        bs.append(jax.random.uniform(next(keys), (1, fout), jnp.float32, -bound, bound))
        if layer < 5:  # BatchNorm1d after every Linear except the last
            gammas.append(1.0 + 0.1 * jax.random.normal(next(keys), (1, fout), jnp.float32))
            betas.append(0.1 * jax.random.normal(next(keys), (1, fout), jnp.float32))
    return ws, bs, gammas, betas


def quantize_and_pack(ws, bs, gammas, betas):
    """int8 per-output-channel weight quantization + one (4, PTOT) param slab."""
    w_q = []
    packed = jnp.zeros((4, PTOT), jnp.float32)
    for i, w in enumerate(ws):
        off, fout = OFFS[i], OUTS[i]
        amax = jnp.maximum(jnp.max(jnp.abs(w), axis=0, keepdims=True), 1e-12)
        scale = amax / 127.0
        q = jnp.clip(jnp.round(w / scale), -127, 127).astype(jnp.int8)
        w_q.append(q)
        packed = packed.at[2, off:off + fout].set(scale[0])
        if i < 5:
            packed = packed.at[0, off:off + fout].set(gammas[i][0])
            packed = packed.at[1, off:off + fout].set(betas[i][0])
        else:
            packed = packed.at[3, off:off + fout].set(bs[i][0])
    return w_q, packed


@jax.jit
def autoencoder_forward(x, w_q, packed):
    B = x.shape[0]
    vmem = pl.BlockSpec(memory_space=pltpu.MemorySpace.VMEM)
    hbm = pl.BlockSpec(memory_space=pl.ANY)
    return pl.pallas_call(
        _autoencoder_kernel,
        out_shape=jax.ShapeDtypeStruct((B, DIMS[-1]), jnp.float32),
        in_specs=[vmem, vmem] + [hbm] * 6,
        out_specs=vmem,
        scratch_shapes=[pltpu.VMEM((DIMS[i], DIMS[i + 1]), jnp.int8) for i in range(6)]
        + [pltpu.SemaphoreType.DMA((6,))],
        compiler_params=pltpu.CompilerParams(vmem_limit_bytes=32 << 20),
    )(x.astype(jnp.bfloat16), packed, *w_q)


def _reference_forward(x, w_q, packed, bs):
    """Pure-JAX reference with the same precision recipe (int8-quantized
    weights, bf16 matmul inputs, f32 accumulation) and full PyTorch
    semantics: all Linear biases + two-pass training-mode BatchNorm1d.
    (The kernel's pre-BN bias drop and folded affine are mathematically
    equivalent.)"""
    h = x.astype(jnp.float32)
    for i in range(6):
        off, fout = OFFS[i], OUTS[i]
        scale = packed[2:3, off:off + fout]
        y = (
            jnp.dot(
                h.astype(jnp.bfloat16),
                w_q[i].astype(jnp.bfloat16),
                preferred_element_type=jnp.float32,
            )
            * scale
            + bs[i]
        )
        if i < 5:
            gamma = packed[0:1, off:off + fout]
            beta = packed[1:2, off:off + fout]
            mean = jnp.mean(y, axis=0, keepdims=True)
            var = jnp.mean((y - mean) ** 2, axis=0, keepdims=True)
            y = (y - mean) / jnp.sqrt(var + EPS) * gamma + beta
            y = jnp.maximum(y, 0.0)
        h = y
    return h


if __name__ == "__main__":
    batch = 8

    key = jax.random.PRNGKey(0)
    k_x, k_p = jax.random.split(key)
    x = jax.random.normal(k_x, (batch, DIMS[0]), jnp.float32)

    ws, bs, gammas, betas = init_params(k_p)
    w_q, packed = quantize_and_pack(ws, bs, gammas, betas)

    out = jax.block_until_ready(autoencoder_forward(x, w_q, packed))
    ref = _reference_forward(x, w_q, packed, bs)

    assert out.shape == (batch, DIMS[-1]), out.shape
    assert bool(jnp.all(jnp.isfinite(out)))
    max_err = float(jnp.max(jnp.abs(out - ref)))
    assert jnp.allclose(out, ref, atol=1e-2, rtol=1e-2), max_err

    print("KERNEL_OK")
</pallas_src>

<mosaic_0001>
module attributes {stable_mosaic.version = 11 : i64} {
  func.func @_autoencoder_kernel(%arg0: memref<8x512xbf16, #tpu.memory_space<vmem>>, %arg1: memref<4x3840xf32, #tpu.memory_space<vmem>>, %arg2: memref<512x1024xi8, #tpu.memory_space<any>>, %arg3: memref<1024x512xi8, #tpu.memory_space<any>>, %arg4: memref<512x256xi8, #tpu.memory_space<any>>, %arg5: memref<256x512xi8, #tpu.memory_space<any>>, %arg6: memref<512x1024xi8, #tpu.memory_space<any>>, %arg7: memref<1024x512xi8, #tpu.memory_space<any>>, %arg8: memref<8x512xf32, #tpu.memory_space<vmem>>, %arg9: memref<512x1024xi8, #tpu.memory_space<vmem>>, %arg10: memref<1024x512xi8, #tpu.memory_space<vmem>>, %arg11: memref<512x256xi8, #tpu.memory_space<vmem>>, %arg12: memref<256x512xi8, #tpu.memory_space<vmem>>, %arg13: memref<512x1024xi8, #tpu.memory_space<vmem>>, %arg14: memref<1024x512xi8, #tpu.memory_space<vmem>>, %arg15: memref<6x!tpu.dma_semaphore, #tpu.memory_space<semaphore_mem>>) attributes {dimension_semantics = [], scalar_prefetch = 0 : i64, scratch_operands = 7 : i64, tpu.core_type = #tpu.core_type<tc>} {
    %c0_i32 = arith.constant 0 : i32
    %0 = tpu.memref_slice %arg15[%c0_i32] : memref<6x!tpu.dma_semaphore, #tpu.memory_space<semaphore_mem>> -> memref<1x!tpu.dma_semaphore, #tpu.memory_space<semaphore_mem>>
    %1 = tpu.memref_squeeze %0 : memref<1x!tpu.dma_semaphore, #tpu.memory_space<semaphore_mem>> -> memref<!tpu.dma_semaphore, #tpu.memory_space<semaphore_mem>>
    tpu.enqueue_dma source(%arg2 : memref<512x1024xi8, #tpu.memory_space<any>>) target(%arg9 : memref<512x1024xi8, #tpu.memory_space<vmem>>) target_semaphore(%1 : memref<!tpu.dma_semaphore, #tpu.memory_space<semaphore_mem>>)
    %c1_i32 = arith.constant 1 : i32
    %2 = tpu.memref_slice %arg15[%c1_i32] : memref<6x!tpu.dma_semaphore, #tpu.memory_space<semaphore_mem>> -> memref<1x!tpu.dma_semaphore, #tpu.memory_space<semaphore_mem>>
    %3 = tpu.memref_squeeze %2 : memref<1x!tpu.dma_semaphore, #tpu.memory_space<semaphore_mem>> -> memref<!tpu.dma_semaphore, #tpu.memory_space<semaphore_mem>>
    tpu.enqueue_dma source(%arg3 : memref<1024x512xi8, #tpu.memory_space<any>>) target(%arg10 : memref<1024x512xi8, #tpu.memory_space<vmem>>) target_semaphore(%3 : memref<!tpu.dma_semaphore, #tpu.memory_space<semaphore_mem>>)
    %c2_i32 = arith.constant 2 : i32
    %4 = tpu.memref_slice %arg15[%c2_i32] : memref<6x!tpu.dma_semaphore, #tpu.memory_space<semaphore_mem>> -> memref<1x!tpu.dma_semaphore, #tpu.memory_space<semaphore_mem>>
    %5 = tpu.memref_squeeze %4 : memref<1x!tpu.dma_semaphore, #tpu.memory_space<semaphore_mem>> -> memref<!tpu.dma_semaphore, #tpu.memory_space<semaphore_mem>>
    tpu.enqueue_dma source(%arg4 : memref<512x256xi8, #tpu.memory_space<any>>) target(%arg11 : memref<512x256xi8, #tpu.memory_space<vmem>>) target_semaphore(%5 : memref<!tpu.dma_semaphore, #tpu.memory_space<semaphore_mem>>)
    %c3_i32 = arith.constant 3 : i32
    %6 = tpu.memref_slice %arg15[%c3_i32] : memref<6x!tpu.dma_semaphore, #tpu.memory_space<semaphore_mem>> -> memref<1x!tpu.dma_semaphore, #tpu.memory_space<semaphore_mem>>
    %7 = tpu.memref_squeeze %6 : memref<1x!tpu.dma_semaphore, #tpu.memory_space<semaphore_mem>> -> memref<!tpu.dma_semaphore, #tpu.memory_space<semaphore_mem>>
    tpu.enqueue_dma source(%arg5 : memref<256x512xi8, #tpu.memory_space<any>>) target(%arg12 : memref<256x512xi8, #tpu.memory_space<vmem>>) target_semaphore(%7 : memref<!tpu.dma_semaphore, #tpu.memory_space<semaphore_mem>>)
    %c4_i32 = arith.constant 4 : i32
    %8 = tpu.memref_slice %arg15[%c4_i32] : memref<6x!tpu.dma_semaphore, #tpu.memory_space<semaphore_mem>> -> memref<1x!tpu.dma_semaphore, #tpu.memory_space<semaphore_mem>>
    %9 = tpu.memref_squeeze %8 : memref<1x!tpu.dma_semaphore, #tpu.memory_space<semaphore_mem>> -> memref<!tpu.dma_semaphore, #tpu.memory_space<semaphore_mem>>
    tpu.enqueue_dma source(%arg6 : memref<512x1024xi8, #tpu.memory_space<any>>) target(%arg13 : memref<512x1024xi8, #tpu.memory_space<vmem>>) target_semaphore(%9 : memref<!tpu.dma_semaphore, #tpu.memory_space<semaphore_mem>>)
    %c5_i32 = arith.constant 5 : i32
    %10 = tpu.memref_slice %arg15[%c5_i32] : memref<6x!tpu.dma_semaphore, #tpu.memory_space<semaphore_mem>> -> memref<1x!tpu.dma_semaphore, #tpu.memory_space<semaphore_mem>>
    %11 = tpu.memref_squeeze %10 : memref<1x!tpu.dma_semaphore, #tpu.memory_space<semaphore_mem>> -> memref<!tpu.dma_semaphore, #tpu.memory_space<semaphore_mem>>
    tpu.enqueue_dma source(%arg7 : memref<1024x512xi8, #tpu.memory_space<any>>) target(%arg14 : memref<1024x512xi8, #tpu.memory_space<vmem>>) target_semaphore(%11 : memref<!tpu.dma_semaphore, #tpu.memory_space<semaphore_mem>>)
    %c0 = arith.constant 0 : index
    %c0_0 = arith.constant 0 : index
    %12 = vector.load %arg0[%c0, %c0_0] : memref<8x512xbf16, #tpu.memory_space<vmem>>, vector<8x512xbf16>
    %c0_i32_1 = arith.constant 0 : i32
    %13 = tpu.memref_slice %arg15[%c0_i32_1] : memref<6x!tpu.dma_semaphore, #tpu.memory_space<semaphore_mem>> -> memref<1x!tpu.dma_semaphore, #tpu.memory_space<semaphore_mem>>
    %14 = tpu.memref_squeeze %13 : memref<1x!tpu.dma_semaphore, #tpu.memory_space<semaphore_mem>> -> memref<!tpu.dma_semaphore, #tpu.memory_space<semaphore_mem>>
    tpu.wait_dma2 semaphore(%14 : memref<!tpu.dma_semaphore, #tpu.memory_space<semaphore_mem>>) src(%arg2 : memref<512x1024xi8, #tpu.memory_space<any>>) dst(%arg9 : memref<512x1024xi8, #tpu.memory_space<vmem>>)
    %c0_2 = arith.constant 0 : index
    %c0_3 = arith.constant 0 : index
    %15 = vector.load %arg9[%c0_2, %c0_3] : memref<512x1024xi8, #tpu.memory_space<vmem>>, vector<512x1024xi8>
    %16 = arith.sitofp %15 : vector<512x1024xi8> to vector<512x1024xbf16>
    %c2 = arith.constant 2 : index
    %c0_4 = arith.constant 0 : index
    %17 = vector.load %arg1[%c2, %c0_4] : memref<4x3840xf32, #tpu.memory_space<vmem>>, vector<1x1024xf32>
    %cst = arith.constant dense<0.000000e+00> : vector<8x1024xf32>
    %18 = tpu.matmul %12, %16, %cst {dimension_numbers = #tpu.dot_dimension_numbers<[1], [0], [0], [1], [0, 0, 1, 1], [], []>} : vector<8x512xbf16>, vector<512x1024xbf16>, vector<8x1024xf32> -> vector<8x1024xf32>
    %19 = vector.broadcast %17 : vector<1x1024xf32> to vector<8x1024xf32>
    %20 = arith.mulf %18, %19 : vector<8x1024xf32>
    %c0_5 = arith.constant 0 : index
    %c0_6 = arith.constant 0 : index
    %21 = vector.load %arg1[%c0_5, %c0_6] : memref<4x3840xf32, #tpu.memory_space<vmem>>, vector<1x1024xf32>
    %c1 = arith.constant 1 : index
    %c0_7 = arith.constant 0 : index
    %22 = vector.load %arg1[%c1, %c0_7] : memref<4x3840xf32, #tpu.memory_space<vmem>>, vector<1x1024xf32>
    %cst_8 = arith.constant dense<0.000000e+00> : vector<1024xf32>
    %23 = vector.multi_reduction <add>, %20, %cst_8 [0] : vector<8x1024xf32> to vector<1024xf32>
    %24 = vector.shape_cast %23 : vector<1024xf32> to vector<1x1024xf32>
    %cst_9 = arith.constant 1.250000e-01 : f32
    %25 = vector.broadcast %cst_9 : f32 to vector<1x1024xf32>
    %26 = arith.mulf %24, %25 : vector<1x1024xf32>
    %27 = vector.broadcast %26 : vector<1x1024xf32> to vector<8x1024xf32>
    %28 = arith.subf %20, %27 : vector<8x1024xf32>
    %29 = arith.mulf %28, %28 : vector<8x1024xf32>
    %cst_10 = arith.constant dense<0.000000e+00> : vector<1024xf32>
    %30 = vector.multi_reduction <add>, %29, %cst_10 [0] : vector<8x1024xf32> to vector<1024xf32>
    %31 = vector.shape_cast %30 : vector<1024xf32> to vector<1x1024xf32>
    %cst_11 = arith.constant 1.250000e-01 : f32
    %32 = vector.broadcast %cst_11 : f32 to vector<1x1024xf32>
    %33 = arith.mulf %31, %32 : vector<1x1024xf32>
    %cst_12 = arith.constant 9.99999974E-6 : f32
    %34 = vector.broadcast %cst_12 : f32 to vector<1x1024xf32>
    %35 = arith.addf %33, %34 : vector<1x1024xf32>
    %36 = math.rsqrt %35 : vector<1x1024xf32>
    %37 = arith.mulf %21, %36 : vector<1x1024xf32>
    %38 = vector.broadcast %37 : vector<1x1024xf32> to vector<8x1024xf32>
    %39 = arith.mulf %28, %38 : vector<8x1024xf32>
    %40 = vector.broadcast %22 : vector<1x1024xf32> to vector<8x1024xf32>
    %41 = arith.addf %39, %40 : vector<8x1024xf32>
    %cst_13 = arith.constant 0.000000e+00 : f32
    %42 = vector.broadcast %cst_13 : f32 to vector<8x1024xf32>
    %43 = arith.maximumf %41, %42 : vector<8x1024xf32>
    %44 = arith.truncf %43 : vector<8x1024xf32> to vector<8x1024xbf16>
    %c1_i32_14 = arith.constant 1 : i32
    %45 = tpu.memref_slice %arg15[%c1_i32_14] : memref<6x!tpu.dma_semaphore, #tpu.memory_space<semaphore_mem>> -> memref<1x!tpu.dma_semaphore, #tpu.memory_space<semaphore_mem>>
    %46 = tpu.memref_squeeze %45 : memref<1x!tpu.dma_semaphore, #tpu.memory_space<semaphore_mem>> -> memref<!tpu.dma_semaphore, #tpu.memory_space<semaphore_mem>>
    tpu.wait_dma2 semaphore(%46 : memref<!tpu.dma_semaphore, #tpu.memory_space<semaphore_mem>>) src(%arg3 : memref<1024x512xi8, #tpu.memory_space<any>>) dst(%arg10 : memref<1024x512xi8, #tpu.memory_space<vmem>>)
    %c0_15 = arith.constant 0 : index
    %c0_16 = arith.constant 0 : index
    %47 = vector.load %arg10[%c0_15, %c0_16] : memref<1024x512xi8, #tpu.memory_space<vmem>>, vector<1024x512xi8>
    %48 = arith.sitofp %47 : vector<1024x512xi8> to vector<1024x512xbf16>
    %c2_17 = arith.constant 2 : index
    %c1024 = arith.constant 1024 : index
    %49 = vector.load %arg1[%c2_17, %c1024] : memref<4x3840xf32, #tpu.memory_space<vmem>>, vector<1x512xf32>
    %cst_18 = arith.constant dense<0.000000e+00> : vector<8x512xf32>
    %50 = tpu.matmul %44, %48, %cst_18 {dimension_numbers = #tpu.dot_dimension_numbers<[1], [0], [0], [1], [0, 0, 1, 1], [], []>} : vector<8x1024xbf16>, vector<1024x512xbf16>, vector<8x512xf32> -> vector<8x512xf32>
    %51 = vector.broadcast %49 : vector<1x512xf32> to vector<8x512xf32>
    %52 = arith.mulf %50, %51 : vector<8x512xf32>
    %c0_19 = arith.constant 0 : index
    %c1024_20 = arith.constant 1024 : index
    %53 = vector.load %arg1[%c0_19, %c1024_20] : memref<4x3840xf32, #tpu.memory_space<vmem>>, vector<1x512xf32>
    %c1_21 = arith.constant 1 : index
    %c1024_22 = arith.constant 1024 : index
    %54 = vector.load %arg1[%c1_21, %c1024_22] : memref<4x3840xf32, #tpu.memory_space<vmem>>, vector<1x512xf32>
    %cst_23 = arith.constant dense<0.000000e+00> : vector<512xf32>
    %55 = vector.multi_reduction <add>, %52, %cst_23 [0] : vector<8x512xf32> to vector<512xf32>
    %56 = vector.shape_cast %55 : vector<512xf32> to vector<1x512xf32>
    %cst_24 = arith.constant 1.250000e-01 : f32
    %57 = vector.broadcast %cst_24 : f32 to vector<1x512xf32>
    %58 = arith.mulf %56, %57 : vector<1x512xf32>
    %59 = vector.broadcast %58 : vector<1x512xf32> to vector<8x512xf32>
    %60 = arith.subf %52, %59 : vector<8x512xf32>
    %61 = arith.mulf %60, %60 : vector<8x512xf32>
    %cst_25 = arith.constant dense<0.000000e+00> : vector<512xf32>
    %62 = vector.multi_reduction <add>, %61, %cst_25 [0] : vector<8x512xf32> to vector<512xf32>
    %63 = vector.shape_cast %62 : vector<512xf32> to vector<1x512xf32>
    %cst_26 = arith.constant 1.250000e-01 : f32
    %64 = vector.broadcast %cst_26 : f32 to vector<1x512xf32>
    %65 = arith.mulf %63, %64 : vector<1x512xf32>
    %cst_27 = arith.constant 9.99999974E-6 : f32
    %66 = vector.broadcast %cst_27 : f32 to vector<1x512xf32>
    %67 = arith.addf %65, %66 : vector<1x512xf32>
    %68 = math.rsqrt %67 : vector<1x512xf32>
    %69 = arith.mulf %53, %68 : vector<1x512xf32>
    %70 = vector.broadcast %69 : vector<1x512xf32> to vector<8x512xf32>
    %71 = arith.mulf %60, %70 : vector<8x512xf32>
    %72 = vector.broadcast %54 : vector<1x512xf32> to vector<8x512xf32>
    %73 = arith.addf %71, %72 : vector<8x512xf32>
    %cst_28 = arith.constant 0.000000e+00 : f32
    %74 = vector.broadcast %cst_28 : f32 to vector<8x512xf32>
    %75 = arith.maximumf %73, %74 : vector<8x512xf32>
    %76 = arith.truncf %75 : vector<8x512xf32> to vector<8x512xbf16>
    %c2_i32_29 = arith.constant 2 : i32
    %77 = tpu.memref_slice %arg15[%c2_i32_29] : memref<6x!tpu.dma_semaphore, #tpu.memory_space<semaphore_mem>> -> memref<1x!tpu.dma_semaphore, #tpu.memory_space<semaphore_mem>>
    %78 = tpu.memref_squeeze %77 : memref<1x!tpu.dma_semaphore, #tpu.memory_space<semaphore_mem>> -> memref<!tpu.dma_semaphore, #tpu.memory_space<semaphore_mem>>
    tpu.wait_dma2 semaphore(%78 : memref<!tpu.dma_semaphore, #tpu.memory_space<semaphore_mem>>) src(%arg4 : memref<512x256xi8, #tpu.memory_space<any>>) dst(%arg11 : memref<512x256xi8, #tpu.memory_space<vmem>>)
    %c0_30 = arith.constant 0 : index
    %c0_31 = arith.constant 0 : index
    %79 = vector.load %arg11[%c0_30, %c0_31] : memref<512x256xi8, #tpu.memory_space<vmem>>, vector<512x256xi8>
    %80 = arith.sitofp %79 : vector<512x256xi8> to vector<512x256xbf16>
    %c2_32 = arith.constant 2 : index
    %c1536 = arith.constant 1536 : index
    %81 = vector.load %arg1[%c2_32, %c1536] : memref<4x3840xf32, #tpu.memory_space<vmem>>, vector<1x256xf32>
    %cst_33 = arith.constant dense<0.000000e+00> : vector<8x256xf32>
    %82 = tpu.matmul %76, %80, %cst_33 {dimension_numbers = #tpu.dot_dimension_numbers<[1], [0], [0], [1], [0, 0, 1, 1], [], []>} : vector<8x512xbf16>, vector<512x256xbf16>, vector<8x256xf32> -> vector<8x256xf32>
    %83 = vector.broadcast %81 : vector<1x256xf32> to vector<8x256xf32>
    %84 = arith.mulf %82, %83 : vector<8x256xf32>
    %c0_34 = arith.constant 0 : index
    %c1536_35 = arith.constant 1536 : index
    %85 = vector.load %arg1[%c0_34, %c1536_35] : memref<4x3840xf32, #tpu.memory_space<vmem>>, vector<1x256xf32>
    %c1_36 = arith.constant 1 : index
    %c1536_37 = arith.constant 1536 : index
    %86 = vector.load %arg1[%c1_36, %c1536_37] : memref<4x3840xf32, #tpu.memory_space<vmem>>, vector<1x256xf32>
    %cst_38 = arith.constant dense<0.000000e+00> : vector<256xf32>
    %87 = vector.multi_reduction <add>, %84, %cst_38 [0] : vector<8x256xf32> to vector<256xf32>
    %88 = vector.shape_cast %87 : vector<256xf32> to vector<1x256xf32>
    %cst_39 = arith.constant 1.250000e-01 : f32
    %89 = vector.broadcast %cst_39 : f32 to vector<1x256xf32>
    %90 = arith.mulf %88, %89 : vector<1x256xf32>
    %91 = vector.broadcast %90 : vector<1x256xf32> to vector<8x256xf32>
    %92 = arith.subf %84, %91 : vector<8x256xf32>
    %93 = arith.mulf %92, %92 : vector<8x256xf32>
    %cst_40 = arith.constant dense<0.000000e+00> : vector<256xf32>
    %94 = vector.multi_reduction <add>, %93, %cst_40 [0] : vector<8x256xf32> to vector<256xf32>
    %95 = vector.shape_cast %94 : vector<256xf32> to vector<1x256xf32>
    %cst_41 = arith.constant 1.250000e-01 : f32
    %96 = vector.broadcast %cst_41 : f32 to vector<1x256xf32>
    %97 = arith.mulf %95, %96 : vector<1x256xf32>
    %cst_42 = arith.constant 9.99999974E-6 : f32
    %98 = vector.broadcast %cst_42 : f32 to vector<1x256xf32>
    %99 = arith.addf %97, %98 : vector<1x256xf32>
    %100 = math.rsqrt %99 : vector<1x256xf32>
    %101 = arith.mulf %85, %100 : vector<1x256xf32>
    %102 = vector.broadcast %101 : vector<1x256xf32> to vector<8x256xf32>
    %103 = arith.mulf %92, %102 : vector<8x256xf32>
    %104 = vector.broadcast %86 : vector<1x256xf32> to vector<8x256xf32>
    %105 = arith.addf %103, %104 : vector<8x256xf32>
    %cst_43 = arith.constant 0.000000e+00 : f32
    %106 = vector.broadcast %cst_43 : f32 to vector<8x256xf32>
    %107 = arith.maximumf %105, %106 : vector<8x256xf32>
    %108 = arith.truncf %107 : vector<8x256xf32> to vector<8x256xbf16>
    %c3_i32_44 = arith.constant 3 : i32
    %109 = tpu.memref_slice %arg15[%c3_i32_44] : memref<6x!tpu.dma_semaphore, #tpu.memory_space<semaphore_mem>> -> memref<1x!tpu.dma_semaphore, #tpu.memory_space<semaphore_mem>>
    %110 = tpu.memref_squeeze %109 : memref<1x!tpu.dma_semaphore, #tpu.memory_space<semaphore_mem>> -> memref<!tpu.dma_semaphore, #tpu.memory_space<semaphore_mem>>
    tpu.wait_dma2 semaphore(%110 : memref<!tpu.dma_semaphore, #tpu.memory_space<semaphore_mem>>) src(%arg5 : memref<256x512xi8, #tpu.memory_space<any>>) dst(%arg12 : memref<256x512xi8, #tpu.memory_space<vmem>>)
    %c0_45 = arith.constant 0 : index
    %c0_46 = arith.constant 0 : index
    %111 = vector.load %arg12[%c0_45, %c0_46] : memref<256x512xi8, #tpu.memory_space<vmem>>, vector<256x512xi8>
    %112 = arith.sitofp %111 : vector<256x512xi8> to vector<256x512xbf16>
    %c2_47 = arith.constant 2 : index
    %c1792 = arith.constant 1792 : index
    %113 = vector.load %arg1[%c2_47, %c1792] : memref<4x3840xf32, #tpu.memory_space<vmem>>, vector<1x512xf32>
    %cst_48 = arith.constant dense<0.000000e+00> : vector<8x512xf32>
    %114 = tpu.matmul %108, %112, %cst_48 {dimension_numbers = #tpu.dot_dimension_numbers<[1], [0], [0], [1], [0, 0, 1, 1], [], []>} : vector<8x256xbf16>, vector<256x512xbf16>, vector<8x512xf32> -> vector<8x512xf32>
    %115 = vector.broadcast %113 : vector<1x512xf32> to vector<8x512xf32>
    %116 = arith.mulf %114, %115 : vector<8x512xf32>
    %c0_49 = arith.constant 0 : index
    %c1792_50 = arith.constant 1792 : index
    %117 = vector.load %arg1[%c0_49, %c1792_50] : memref<4x3840xf32, #tpu.memory_space<vmem>>, vector<1x512xf32>
    %c1_51 = arith.constant 1 : index
    %c1792_52 = arith.constant 1792 : index
    %118 = vector.load %arg1[%c1_51, %c1792_52] : memref<4x3840xf32, #tpu.memory_space<vmem>>, vector<1x512xf32>
    %cst_53 = arith.constant dense<0.000000e+00> : vector<512xf32>
    %119 = vector.multi_reduction <add>, %116, %cst_53 [0] : vector<8x512xf32> to vector<512xf32>
    %120 = vector.shape_cast %119 : vector<512xf32> to vector<1x512xf32>
    %cst_54 = arith.constant 1.250000e-01 : f32
    %121 = vector.broadcast %cst_54 : f32 to vector<1x512xf32>
    %122 = arith.mulf %120, %121 : vector<1x512xf32>
    %123 = vector.broadcast %122 : vector<1x512xf32> to vector<8x512xf32>
    %124 = arith.subf %116, %123 : vector<8x512xf32>
    %125 = arith.mulf %124, %124 : vector<8x512xf32>
    %cst_55 = arith.constant dense<0.000000e+00> : vector<512xf32>
    %126 = vector.multi_reduction <add>, %125, %cst_55 [0] : vector<8x512xf32> to vector<512xf32>
    %127 = vector.shape_cast %126 : vector<512xf32> to vector<1x512xf32>
    %cst_56 = arith.constant 1.250000e-01 : f32
    %128 = vector.broadcast %cst_56 : f32 to vector<1x512xf32>
    %129 = arith.mulf %127, %128 : vector<1x512xf32>
    %cst_57 = arith.constant 9.99999974E-6 : f32
    %130 = vector.broadcast %cst_57 : f32 to vector<1x512xf32>
    %131 = arith.addf %129, %130 : vector<1x512xf32>
    %132 = math.rsqrt %131 : vector<1x512xf32>
    %133 = arith.mulf %117, %132 : vector<1x512xf32>
    %134 = vector.broadcast %133 : vector<1x512xf32> to vector<8x512xf32>
    %135 = arith.mulf %124, %134 : vector<8x512xf32>
    %136 = vector.broadcast %118 : vector<1x512xf32> to vector<8x512xf32>
    %137 = arith.addf %135, %136 : vector<8x512xf32>
    %cst_58 = arith.constant 0.000000e+00 : f32
    %138 = vector.broadcast %cst_58 : f32 to vector<8x512xf32>
    %139 = arith.maximumf %137, %138 : vector<8x512xf32>
    %140 = arith.truncf %139 : vector<8x512xf32> to vector<8x512xbf16>
    %c4_i32_59 = arith.constant 4 : i32
    %141 = tpu.memref_slice %arg15[%c4_i32_59] : memref<6x!tpu.dma_semaphore, #tpu.memory_space<semaphore_mem>> -> memref<1x!tpu.dma_semaphore, #tpu.memory_space<semaphore_mem>>
    %142 = tpu.memref_squeeze %141 : memref<1x!tpu.dma_semaphore, #tpu.memory_space<semaphore_mem>> -> memref<!tpu.dma_semaphore, #tpu.memory_space<semaphore_mem>>
    tpu.wait_dma2 semaphore(%142 : memref<!tpu.dma_semaphore, #tpu.memory_space<semaphore_mem>>) src(%arg6 : memref<512x1024xi8, #tpu.memory_space<any>>) dst(%arg13 : memref<512x1024xi8, #tpu.memory_space<vmem>>)
    %c0_60 = arith.constant 0 : index
    %c0_61 = arith.constant 0 : index
    %143 = vector.load %arg13[%c0_60, %c0_61] : memref<512x1024xi8, #tpu.memory_space<vmem>>, vector<512x1024xi8>
    %144 = arith.sitofp %143 : vector<512x1024xi8> to vector<512x1024xbf16>
    %c2_62 = arith.constant 2 : index
    %c2304 = arith.constant 2304 : index
    %145 = vector.load %arg1[%c2_62, %c2304] : memref<4x3840xf32, #tpu.memory_space<vmem>>, vector<1x1024xf32>
    %cst_63 = arith.constant dense<0.000000e+00> : vector<8x1024xf32>
    %146 = tpu.matmul %140, %144, %cst_63 {dimension_numbers = #tpu.dot_dimension_numbers<[1], [0], [0], [1], [0, 0, 1, 1], [], []>} : vector<8x512xbf16>, vector<512x1024xbf16>, vector<8x1024xf32> -> vector<8x1024xf32>
    %147 = vector.broadcast %145 : vector<1x1024xf32> to vector<8x1024xf32>
    %148 = arith.mulf %146, %147 : vector<8x1024xf32>
    %c0_64 = arith.constant 0 : index
    %c2304_65 = arith.constant 2304 : index
    %149 = vector.load %arg1[%c0_64, %c2304_65] : memref<4x3840xf32, #tpu.memory_space<vmem>>, vector<1x1024xf32>
    %c1_66 = arith.constant 1 : index
    %c2304_67 = arith.constant 2304 : index
    %150 = vector.load %arg1[%c1_66, %c2304_67] : memref<4x3840xf32, #tpu.memory_space<vmem>>, vector<1x1024xf32>
    %cst_68 = arith.constant dense<0.000000e+00> : vector<1024xf32>
    %151 = vector.multi_reduction <add>, %148, %cst_68 [0] : vector<8x1024xf32> to vector<1024xf32>
    %152 = vector.shape_cast %151 : vector<1024xf32> to vector<1x1024xf32>
    %cst_69 = arith.constant 1.250000e-01 : f32
    %153 = vector.broadcast %cst_69 : f32 to vector<1x1024xf32>
    %154 = arith.mulf %152, %153 : vector<1x1024xf32>
    %155 = vector.broadcast %154 : vector<1x1024xf32> to vector<8x1024xf32>
    %156 = arith.subf %148, %155 : vector<8x1024xf32>
    %157 = arith.mulf %156, %156 : vector<8x1024xf32>
    %cst_70 = arith.constant dense<0.000000e+00> : vector<1024xf32>
    %158 = vector.multi_reduction <add>, %157, %cst_70 [0] : vector<8x1024xf32> to vector<1024xf32>
    %159 = vector.shape_cast %158 : vector<1024xf32> to vector<1x1024xf32>
    %cst_71 = arith.constant 1.250000e-01 : f32
    %160 = vector.broadcast %cst_71 : f32 to vector<1x1024xf32>
    %161 = arith.mulf %159, %160 : vector<1x1024xf32>
    %cst_72 = arith.constant 9.99999974E-6 : f32
    %162 = vector.broadcast %cst_72 : f32 to vector<1x1024xf32>
    %163 = arith.addf %161, %162 : vector<1x1024xf32>
    %164 = math.rsqrt %163 : vector<1x1024xf32>
    %165 = arith.mulf %149, %164 : vector<1x1024xf32>
    %166 = vector.broadcast %165 : vector<1x1024xf32> to vector<8x1024xf32>
    %167 = arith.mulf %156, %166 : vector<8x1024xf32>
    %168 = vector.broadcast %150 : vector<1x1024xf32> to vector<8x1024xf32>
    %169 = arith.addf %167, %168 : vector<8x1024xf32>
    %cst_73 = arith.constant 0.000000e+00 : f32
    %170 = vector.broadcast %cst_73 : f32 to vector<8x1024xf32>
    %171 = arith.maximumf %169, %170 : vector<8x1024xf32>
    %172 = arith.truncf %171 : vector<8x1024xf32> to vector<8x1024xbf16>
    %c5_i32_74 = arith.constant 5 : i32
    %173 = tpu.memref_slice %arg15[%c5_i32_74] : memref<6x!tpu.dma_semaphore, #tpu.memory_space<semaphore_mem>> -> memref<1x!tpu.dma_semaphore, #tpu.memory_space<semaphore_mem>>
    %174 = tpu.memref_squeeze %173 : memref<1x!tpu.dma_semaphore, #tpu.memory_space<semaphore_mem>> -> memref<!tpu.dma_semaphore, #tpu.memory_space<semaphore_mem>>
    tpu.wait_dma2 semaphore(%174 : memref<!tpu.dma_semaphore, #tpu.memory_space<semaphore_mem>>) src(%arg7 : memref<1024x512xi8, #tpu.memory_space<any>>) dst(%arg14 : memref<1024x512xi8, #tpu.memory_space<vmem>>)
    %c0_75 = arith.constant 0 : index
    %c0_76 = arith.constant 0 : index
    %175 = vector.load %arg14[%c0_75, %c0_76] : memref<1024x512xi8, #tpu.memory_space<vmem>>, vector<1024x512xi8>
    %176 = arith.sitofp %175 : vector<1024x512xi8> to vector<1024x512xbf16>
    %c2_77 = arith.constant 2 : index
    %c3328 = arith.constant 3328 : index
    %177 = vector.load %arg1[%c2_77, %c3328] : memref<4x3840xf32, #tpu.memory_space<vmem>>, vector<1x512xf32>
    %cst_78 = arith.constant dense<0.000000e+00> : vector<8x512xf32>
    %178 = tpu.matmul %172, %176, %cst_78 {dimension_numbers = #tpu.dot_dimension_numbers<[1], [0], [0], [1], [0, 0, 1, 1], [], []>} : vector<8x1024xbf16>, vector<1024x512xbf16>, vector<8x512xf32> -> vector<8x512xf32>
    %179 = vector.broadcast %177 : vector<1x512xf32> to vector<8x512xf32>
    %180 = arith.mulf %178, %179 : vector<8x512xf32>
    %c3 = arith.constant 3 : index
    %c3328_79 = arith.constant 3328 : index
    %181 = vector.load %arg1[%c3, %c3328_79] : memref<4x3840xf32, #tpu.memory_space<vmem>>, vector<1x512xf32>
    %182 = vector.broadcast %181 : vector<1x512xf32> to vector<8x512xf32>
    %183 = arith.addf %180, %182 : vector<8x512xf32>
    %c0_80 = arith.constant 0 : index
    %c0_81 = arith.constant 0 : index
    %184 = vector.load %arg8[%c0_80, %c0_81] : memref<8x512xf32, #tpu.memory_space<vmem>>, vector<8x512xf32>
    tpu.vector_store %arg8[%c0_80, %c0_81], %183 {strides = array<i32>} : memref<8x512xf32, #tpu.memory_space<vmem>>, vector<8x512xf32>,
    return
  }
}

</mosaic_0001>

<bundles_post_ra>
// kernel: autoencoder_forward.1
= control target key start
LH: loop header
LB: loop body
LE: loop exit
PB: predicated region body
PF: predicated region fallthrough
CT: control target
= control target key end

     0   :  { %13 = vsyncpa [#allocation10], 0  ;;  %s5424_s0 = inlined_call_operand.vmem [shape: bf16[8,512], index: 0, kind: input, shape index: {}]   ;;  %s5425_s1 = inlined_call_operand.hbm [shape: f32[4,3840], index: 1, kind: input, shape index: {}]   ;;  %s5426_s2 = inlined_call_operand.hbm [shape: s8[512,1024], index: 2, kind: input, shape index: {}]   ;;  %s5427_s3 = inlined_call_operand.hbm [shape: s8[1024,512], index: 3, kind: input, shape index: {}]   ;;  %s5428_s4 = inlined_call_operand.hbm [shape: s8[512,256], index: 4, kind: input, shape index: {}]   ;;  %s5429_s5 = inlined_call_operand.hbm [shape: s8[256,512], index: 5, kind: input, shape index: {}]   ;;  %s5430_s6 = inlined_call_operand.hbm [shape: s8[512,1024], index: 6, kind: input, shape index: {}]   ;;  %s5431_s7 = inlined_call_operand.hbm [shape: s8[1024,512], index: 7, kind: input, shape index: {}]   ;;  %s5432_s8 = inlined_call_operand.hbm [shape: f32[8,512], index: 8, kind: output, shape index: {}]  }
   0x1   :  { %14 = vsyncpa [#allocation11], 0  ;;  %s4930_s27 = smov [#allocation9]  }
   0x2   :  { %s23_s28 = sshll.u32 %s4930_s27, 4  ;;  %s24_s28 = int_to_ptr.vmem [resolvable:$true] %s23_s28 }
   0x3   :  { %s4762_s29 = scalar_lea.vmem %s24_s28, 1920  ;;  %p4767_p1 = scmp.lt.s32.totalorder %s24_s28, %s24_s28 }
   0x4   :  { %p4763_p0 = scmp.ne.s32.totalorder %s24_s28, %s4762_s29  ;;  %p4768_p2 = scmp.lt.s32.totalorder %s4762_s29, %s4762_s29 }
   0x6   :  { %p4769_p3 = por %p4768_p2, %p4767_p1 }
   0x8   :  { %p4770_p4 = pnand %p4769_p3, %p4763_p0 }
   0xa   :  { %4773 = shalt.err (!%p4770_p4)
}
   0xb   :  { %26 = dma.hbm_to_vmem [thread:$0]  %s5425_s1, 1920, %s24_s28, [#allocation10]  }
   0xc   :  { %4914 = dma.done.wait [#allocation10], 1920  }
   0xd   :  { %4915 = vsyncadd [#allocation10], 4294965376  ;;  %s4931_s10 = smov [#allocation2]   ;;  %s4932_s12 = smov [#allocation3]  }
   0xe   :  { %s37_s11 = sshll.u32 %s4931_s10, 4  ;;  %s49_s13 = sshll.u32 %s4932_s12, 4  ;;  %s38_s11 = int_to_ptr.vmem [resolvable:$true] %s37_s11  ;;  %s50_s13 = int_to_ptr.vmem [resolvable:$true] %s49_s13 }
   0xf   :  { %s4782_s14 = scalar_lea.vmem %s38_s11, 16384  ;;  %p4787_p6 = scmp.lt.s32.totalorder %s38_s11, %s38_s11 }
  0x10   :  { %p4783_p5 = scmp.ne.s32.totalorder %s38_s11, %s4782_s14  ;;  %p4788_p7 = scmp.lt.s32.totalorder %s4782_s14, %s4782_s14 }
  0x12   :  { %p4789_p8 = por %p4788_p7, %p4787_p6 }
  0x14   :  { %p4790_p9 = pnand %p4789_p8, %p4783_p5 }
  0x16   :  { %4793 = shalt.err (!%p4790_p9)  }
  0x17   :  { %40 = dma.hbm_to_vmem [thread:$0]  %s5426_s2, 16384, %s38_s11, [#allocation8] }
  0x18   :  { %s4802_s1 = scalar_lea.vmem %s50_s13, 16384  ;;  %p4807_p11 = scmp.lt.s32.totalorder %s50_s13, %s50_s13 }
  0x19   :  { %p4803_p10 = scmp.ne.s32.totalorder %s50_s13, %s4802_s1  ;;  %p4808_p12 = scmp.lt.s32.totalorder %s4802_s1, %s4802_s1 }
  0x1b   :  { %p4809_p13 = por %p4808_p12, %p4807_p11 }
  0x1d   :  { %p4810_p0 = pnand %p4809_p13, %p4803_p10 }
  0x1f   :  { %4813 = shalt.err (!%p4810_p0)  }
  0x20   :  { %52 = dma.hbm_to_vmem [thread:$0]  %s5427_s3, 16384, %s50_s13, [#allocation8 + $0x1]  ;;  %v4996_v0 = vld [vmem:[%s5424_s0] sm:$0xff]  ;;  %v5001_v1 = vld [vmem:[%s5424_s0 + $0x8] sm:$0xff] }
  0x21   :  { %s4933_s19 = smov [#allocation4]   ;;  %s4934_s21 = smov [#allocation5]  }
  0x22   :  { %s61_s20 = sshll.u32 %s4933_s19, 4  ;;  %s73_s22 = sshll.u32 %s4934_s21, 4  ;;  %s62_s20 = int_to_ptr.vmem [resolvable:$true] %s61_s20  ;;  %s74_s22 = int_to_ptr.vmem [resolvable:$true] %s73_s22 }
  0x23   :  { %s4822_s26 = scalar_lea.vmem %s62_s20, 4096  ;;  %p4827_p2 = scmp.lt.s32.totalorder %s62_s20, %s62_s20 }
  0x24   :  { %p4823_p1 = scmp.ne.s32.totalorder %s62_s20, %s4822_s26  ;;  %p4828_p3 = scmp.lt.s32.totalorder %s4822_s26, %s4822_s26 }
  0x26   :  { %p4829_p4 = por %p4828_p3, %p4827_p2 }
  0x28   :  { %p4830_p5 = pnand %p4829_p4, %p4823_p1 }
  0x2a   :  { %4833 = shalt.err (!%p4830_p5)  }
  0x2b   :  { %64 = dma.hbm_to_vmem [thread:$0]  %s5428_s4, 4096, %s62_s20, [#allocation8 + $0x2] }
  0x2c   :  { %s4842_s28 = scalar_lea.vmem %s74_s22, 4096  ;;  %p4847_p7 = scmp.lt.s32.totalorder %s74_s22, %s74_s22 }
  0x2d   :  { %p4843_p6 = scmp.ne.s32.totalorder %s74_s22, %s4842_s28  ;;  %p4848_p8 = scmp.lt.s32.totalorder %s4842_s28, %s4842_s28 }
  0x2f   :  { %p4849_p9 = por %p4848_p8, %p4847_p7 }
  0x31   :  { %p4850_p10 = pnand %p4849_p9, %p4843_p6 }
  0x33   :  { %4853 = shalt.err (!%p4850_p10)  }
  0x34   :  { %76 = dma.hbm_to_vmem [thread:$0]  %s5429_s5, 4096, %s74_s22, [#allocation8 + $0x3] }
  0x35   :  { %s4935_s30 = smov [#allocation6]   ;;  %s4936_s10 = smov [#allocation7]  }
  0x36   :  { %s85_s9 = sshll.u32 %s4935_s30, 4  ;;  %s97_s11 = sshll.u32 %s4936_s10, 4  ;;  %s86_s9 = int_to_ptr.vmem [resolvable:$true] %s85_s9  ;;  %s98_s11 = int_to_ptr.vmem [resolvable:$true] %s97_s11 }
  0x37   :  { %s4862_s12 = scalar_lea.vmem %s86_s9, 16384  ;;  %p4867_p12 = scmp.lt.s32.totalorder %s86_s9, %s86_s9 }
  0x38   :  { %p4863_p11 = scmp.ne.s32.totalorder %s86_s9, %s4862_s12  ;;  %p4868_p13 = scmp.lt.s32.totalorder %s4862_s12, %s4862_s12 }
  0x3a   :  { %p4869_p0 = por %p4868_p13, %p4867_p12 }
  0x3c   :  { %p4870_p1 = pnand %p4869_p0, %p4863_p11 }
  0x3e   :  { %4873 = shalt.err (!%p4870_p1)  }
  0x3f   :  { %88 = dma.hbm_to_vmem [thread:$0]  %s5430_s6, 16384, %s86_s9, [#allocation8 + $0x4] }
  0x40   :  { %s4882_s14 = scalar_lea.vmem %s98_s11, 16384  ;;  %p4887_p3 = scmp.lt.s32.totalorder %s98_s11, %s98_s11 }
  0x41   :  { %p4883_p2 = scmp.ne.s32.totalorder %s98_s11, %s4882_s14  ;;  %p4888_p4 = scmp.lt.s32.totalorder %s4882_s14, %s4882_s14 }
  0x43   :  { %p4889_p5 = por %p4888_p4, %p4887_p3 }
  0x45   :  { %p4890_p6 = pnand %p4889_p5, %p4883_p2 }
  0x47   :  { %4893 = shalt.err (!%p4890_p6)  }
  0x48   :  { %100 = dma.hbm_to_vmem [thread:$0]  %s5431_s7, 16384, %s98_s11, [#allocation8 + $0x5] }
  0x49   :  { %4916 = dma.done.wait [#allocation8], 16384 }
  0x4a   :  { %4917 = vsyncadd [#allocation8], 4294950912  ;;  %v5017_v2 = vcombine.high %v4996_v0, %v4996_v0  ;;  %v5021_v3 = vcombine.high %v5001_v1, %v5001_v1  ;;  %v132_v4 = vld [vmem:[#allocation2 + $0xc8] sm:$0xff]  ;;  %v131_v6 = vld [vmem:[#allocation2 + $0xc0] sm:$0xff] }
  0x4b   :  { %v196_v5 = vld [vmem:[#allocation2 + $0x2c8] sm:$0xff]  ;;  %v284_v7 = vunpack.c.l.s8.bf16 %v132_v4  ;;  %v292_v8 = vunpack.c.h.s8.bf16 %v132_v4  ;;  %v195_v11 = vld [vmem:[#allocation2 + $0x2c0] sm:$0xff]  ;;  %v291_v12 = vunpack.c.h.s8.bf16 %v131_v6  ;;  %v283_v16 = vunpack.c.l.s8.bf16 %v131_v6 }
  0x4c   :  { %539 = vmatprep.mubr.bf16.mxu0 %v5017_v2  ;;  %580 = vmatprep.mubr.bf16.mxu1 %v5021_v3  ;;  %v412_v9 = vunpack.c.l.s8.bf16 %v196_v5  ;;  %v420_v10 = vunpack.c.h.s8.bf16 %v196_v5  ;;  %v419_v13 = vunpack.c.h.s8.bf16 %v195_v11  ;;  %v124_v14 = vld [vmem:[#allocation2 + $0x88] sm:$0xff]  ;;  %v411_v17 = vunpack.c.l.s8.bf16 %v195_v11  ;;  %v123_v20 = vld [vmem:[#allocation2 + $0x80] sm:$0xff] }
  0x4d   :  { %v188_v15 = vld [vmem:[#allocation2 + $0x288] sm:$0xff]  ;;  %507 = vmatprep.subr.bf16.mxu0 %v292_v8  ;;  %v276_v18 = vunpack.c.h.s8.bf16 %v124_v14  ;;  %v187_v21 = vld [vmem:[#allocation2 + $0x280] sm:$0xff]  ;;  %v275_v22 = vunpack.c.h.s8.bf16 %v123_v20  ;;  %v268_v24 = vunpack.c.l.s8.bf16 %v124_v14  ;;  %v267_v28 = vunpack.c.l.s8.bf16 %v123_v20 }
  0x4e   :  { %548 = vmatprep.subr.bf16.mxu1 %v420_v10  ;;  %508 = vmatpush1.bf16.msra.mxu0 %v291_v12  ;;  %v404_v19 = vunpack.c.h.s8.bf16 %v188_v15  ;;  %v403_v23 = vunpack.c.h.s8.bf16 %v187_v21  ;;  %v396_v25 = vunpack.c.l.s8.bf16 %v188_v15  ;;  %v116_v26 = vld [vmem:[#allocation2 + $0x48] sm:$0xff]  ;;  %v395_v29 = vunpack.c.l.s8.bf16 %v187_v21  ;;  %v115_v32 = vld [vmem:[#allocation2 + $0x40] sm:$0xff] }
  0x4f   :  { %549 = vmatpush1.bf16.msra.mxu1 %v419_v13  ;;  %509 = vmatprep.subr.bf16.mxu0 %v284_v7  ;;  %v180_v27 = vld [vmem:[#allocation2 + $0x248] sm:$0xff]  ;;  %v260_v30 = vunpack.c.h.s8.bf16 %v116_v26  ;;  %v179_v33 = vld [vmem:[#allocation2 + $0x240] sm:$0xff]  ;;  %v259_v34 = vunpack.c.h.s8.bf16 %v115_v32  ;;  %v252_v36 = vunpack.c.l.s8.bf16 %v116_v26  ;;  %v251_v40 = vunpack.c.l.s8.bf16 %v115_v32 }
  0x50   :  { %550 = vmatprep.subr.bf16.mxu1 %v412_v9  ;;  %v388_v31 = vunpack.c.h.s8.bf16 %v180_v27  ;;  %v387_v35 = vunpack.c.h.s8.bf16 %v179_v33  ;;  %v380_v37 = vunpack.c.l.s8.bf16 %v180_v27  ;;  %v108_v38 = vld [vmem:[#allocation2 + $0x8] sm:$0xff]  ;;  %v379_v41 = vunpack.c.l.s8.bf16 %v179_v33  ;;  %v107_v44 = vld [vmem:[#allocation2] sm:$0xff] }
  0x51   :  { %v172_v39 = vld [vmem:[#allocation2 + $0x208] sm:$0xff]  ;;  %v244_v42 = vunpack.c.h.s8.bf16 %v108_v38  ;;  %v171_v45 = vld [vmem:[#allocation2 + $0x200] sm:$0xff]  ;;  %v243_v46 = vunpack.c.h.s8.bf16 %v107_v44  ;;  %v236_v48 = vunpack.c.l.s8.bf16 %v108_v38  ;;  %v235_v52 = vunpack.c.l.s8.bf16 %v107_v44  ;;  %v134_v38 = vld [vmem:[#allocation2 + $0xd8] sm:$0xff] }
  0x52   :  { %510 = vmatpush1.bf16.msra.mxu0 %v283_v16  ;;  %v372_v43 = vunpack.c.h.s8.bf16 %v172_v39  ;;  %v371_v47 = vunpack.c.h.s8.bf16 %v171_v45  ;;  %v364_v49 = vunpack.c.l.s8.bf16 %v172_v39  ;;  %v164_v50 = vld [vmem:[#allocation2 + $0x1c8] sm:$0xff]  ;;  %v363_v53 = vunpack.c.l.s8.bf16 %v171_v45  ;;  %v163_v56 = vld [vmem:[#allocation2 + $0x1c0] sm:$0xff]  ;;  %v198_v39 = vld [vmem:[#allocation2 + $0x2d8] sm:$0xff] }
  0x53   :  { %551 = vmatpush1.bf16.msra.mxu1 %v411_v17  ;;  %511 = vmatprep.subr.bf16.mxu0 %v276_v18  ;;  %v228_v51 = vld [vmem:[#allocation2 + $0x3c8] sm:$0xff]  ;;  %v356_v54 = vunpack.c.h.s8.bf16 %v164_v50  ;;  %v227_v57 = vld [vmem:[#allocation2 + $0x3c0] sm:$0xff]  ;;  %v355_v58 = vunpack.c.h.s8.bf16 %v163_v56  ;;  %v348_v60 = vunpack.c.l.s8.bf16 %v164_v50  ;;  %v347_v4 = vunpack.c.l.s8.bf16 %v163_v56  ;;  %v133_v44 = vld [vmem:[#allocation2 + $0xd0] sm:$0xff] }
  0x54   :  { %552 = vmatprep.subr.bf16.mxu1 %v404_v19  ;;  %v484_v55 = vunpack.c.h.s8.bf16 %v228_v51  ;;  %v483_v59 = vunpack.c.h.s8.bf16 %v227_v57  ;;  %v476_v61 = vunpack.c.l.s8.bf16 %v228_v51  ;;  %v156_v62 = vld [vmem:[#allocation2 + $0x188] sm:$0xff]  ;;  %v475_v5 = vunpack.c.l.s8.bf16 %v227_v57  ;;  %v155_v8 = vld [vmem:[#allocation2 + $0x180] sm:$0xff]  ;;  %v197_v45 = vld [vmem:[#allocation2 + $0x2d0] sm:$0xff] }
  0x55   :  { %v220_v63 = vld [vmem:[#allocation2 + $0x388] sm:$0xff]  ;;  %v340_v6 = vunpack.c.h.s8.bf16 %v156_v62  ;;  %v219_v9 = vld [vmem:[#allocation2 + $0x380] sm:$0xff]  ;;  %v339_v10 = vunpack.c.h.s8.bf16 %v155_v8  ;;  %v332_v12 = vunpack.c.l.s8.bf16 %v156_v62  ;;  %v331_v16 = vunpack.c.l.s8.bf16 %v155_v8  ;;  %v125_v56 = vld [vmem:[#allocation2 + $0x90] sm:$0xff] }
  0x56   :  { %512 = vmatpush1.bf16.msra.mxu0 %v275_v22  ;;  %v468_v7 = vunpack.c.h.s8.bf16 %v220_v63  ;;  %v467_v11 = vunpack.c.h.s8.bf16 %v219_v9  ;;  %v460_v13 = vunpack.c.l.s8.bf16 %v220_v63  ;;  %v148_v14 = vld [vmem:[#allocation2 + $0x148] sm:$0xff]  ;;  %v459_v17 = vunpack.c.l.s8.bf16 %v219_v9  ;;  %v147_v20 = vld [vmem:[#allocation2 + $0x140] sm:$0xff]  ;;  %v189_v57 = vld [vmem:[#allocation2 + $0x290] sm:$0xff] }
  0x57   :  { %553 = vmatpush1.bf16.msra.mxu1 %v403_v23  ;;  %513 = vmatprep.subr.bf16.mxu0 %v268_v24  ;;  %v212_v15 = vld [vmem:[#allocation2 + $0x348] sm:$0xff]  ;;  %v324_v18 = vunpack.c.h.s8.bf16 %v148_v14  ;;  %v211_v21 = vld [vmem:[#allocation2 + $0x340] sm:$0xff]  ;;  %v323_v22 = vunpack.c.h.s8.bf16 %v147_v20  ;;  %v316_v24 = vunpack.c.l.s8.bf16 %v148_v14  ;;  %v286_v50 = vunpack.c.l.s8.bf16 %v134_v38  ;;  %v118_v62 = vld [vmem:[#allocation2 + $0x58] sm:$0xff] }
  0x58   :  { %554 = vmatprep.subr.bf16.mxu1 %v396_v25  ;;  %v452_v19 = vunpack.c.h.s8.bf16 %v212_v15  ;;  %v451_v23 = vunpack.c.h.s8.bf16 %v211_v21  ;;  %v444_v25 = vunpack.c.l.s8.bf16 %v212_v15  ;;  %v140_v26 = vld [vmem:[#allocation2 + $0x108] sm:$0xff]  ;;  %v139_v32 = vld [vmem:[#allocation2 + $0x100] sm:$0xff]  ;;  %v414_v51 = vunpack.c.l.s8.bf16 %v198_v39  ;;  %v182_v63 = vld [vmem:[#allocation2 + $0x258] sm:$0xff] }
  0x59   :  { %v204_v27 = vld [vmem:[#allocation2 + $0x308] sm:$0xff]  ;;  %v203_v33 = vld [vmem:[#allocation2 + $0x300] sm:$0xff]  ;;  %v117_v8 = vld [vmem:[#allocation2 + $0x50] sm:$0xff] }
  0x5a   :  { %514 = vmatpush1.bf16.msra.mxu0 %v267_v28  ;;  %v315_v28 = vunpack.c.l.s8.bf16 %v147_v20  ;;  %v181_v9 = vld [vmem:[#allocation2 + $0x250] sm:$0xff]  ;;  %v110_v14 = vld [vmem:[#allocation2 + $0x18] sm:$0xff] }
  0x5b   :  { %555 = vmatpush1.bf16.msra.mxu1 %v395_v29  ;;  %515 = vmatprep.subr.bf16.mxu0 %v260_v30  ;;  %v443_v29 = vunpack.c.l.s8.bf16 %v211_v21  ;;  %v308_v30 = vunpack.c.h.s8.bf16 %v140_v26  ;;  %v174_v15 = vld [vmem:[#allocation2 + $0x218] sm:$0xff]  ;;  %v109_v20 = vld [vmem:[#allocation2 + $0x10] sm:$0xff] }
  0x5c   :  { %556 = vmatprep.subr.bf16.mxu1 %v388_v31  ;;  %v436_v31 = vunpack.c.h.s8.bf16 %v204_v27  ;;  %v173_v21 = vld [vmem:[#allocation2 + $0x210] sm:$0xff] }
  0x5e   :  { %516 = vmatpush1.bf16.msra.mxu0 %v259_v34  ;;  %v307_v34 = vunpack.c.h.s8.bf16 %v139_v32 }
  0x5f   :  { %557 = vmatpush1.bf16.msra.mxu1 %v387_v35  ;;  %517 = vmatprep.subr.bf16.mxu0 %v252_v36  ;;  %v435_v35 = vunpack.c.h.s8.bf16 %v203_v33  ;;  %v300_v36 = vunpack.c.l.s8.bf16 %v140_v26  ;;  %v166_v26 = vld [vmem:[#allocation2 + $0x1d8] sm:$0xff] }
  0x60   :  { %558 = vmatprep.subr.bf16.mxu1 %v380_v37  ;;  %v428_v37 = vunpack.c.l.s8.bf16 %v204_v27  ;;  %v230_v27 = vld [vmem:[#allocation2 + $0x3d8] sm:$0xff] }
  0x62   :  { %518 = vmatpush1.bf16.msra.mxu0 %v251_v40  ;;  %v299_v40 = vunpack.c.l.s8.bf16 %v139_v32  ;;  %v165_v32 = vld [vmem:[#allocation2 + $0x1d0] sm:$0xff] }
  0x63   :  { %559 = vmatpush1.bf16.msra.mxu1 %v379_v41  ;;  %519 = vmatprep.subr.bf16.mxu0 %v244_v42  ;;  %v427_v41 = vunpack.c.l.s8.bf16 %v203_v33  ;;  %v294_v42 = vunpack.c.h.s8.bf16 %v134_v38  ;;  %v229_v33 = vld [vmem:[#allocation2 + $0x3d0] sm:$0xff]  ;;  %v158_v38 = vld [vmem:[#allocation2 + $0x198] sm:$0xff] }
  0x64   :  { %560 = vmatprep.subr.bf16.mxu1 %v372_v43  ;;  %v422_v43 = vunpack.c.h.s8.bf16 %v198_v39  ;;  %v222_v39 = vld [vmem:[#allocation2 + $0x398] sm:$0xff] }
  0x66   :  { %520 = vmatpush1.bf16.msra.mxu0 %v243_v46  ;;  %v5027_v46 = vcombine.low %v4996_v0, %v4996_v0  ;;  %v285_v0 = vunpack.c.l.s8.bf16 %v133_v44 }
  0x67   :  { %561 = vmatpush1.bf16.msra.mxu1 %v371_v47  ;;  %521 = vmatprep.subr.bf16.mxu0 %v236_v48  ;;  %v5031_v47 = vcombine.low %v5001_v1, %v5001_v1  ;;  %v293_v48 = vunpack.c.h.s8.bf16 %v133_v44  ;;  %v157_v44 = vld [vmem:[#allocation2 + $0x190] sm:$0xff] }
  0x68   :  { %562 = vmatprep.subr.bf16.mxu1 %v364_v49  ;;  %v421_v49 = vunpack.c.h.s8.bf16 %v197_v45 }
  0x6a   :  { %522 = vmatpush1.bf16.msra.mxu0 %v235_v52  ;;  %v126_v52 = vld [vmem:[#allocation2 + $0x98] sm:$0xff] }
  0x6b   :  { %563 = vmatpush1.bf16.msra.mxu1 %v363_v53  ;;  %523 = vmatprep.subr.bf16.mxu0 %v356_v54  ;;  %v190_v53 = vld [vmem:[#allocation2 + $0x298] sm:$0xff]  ;;  %v413_v54 = vunpack.c.l.s8.bf16 %v197_v45  ;;  %v278_v1 = vunpack.c.h.s8.bf16 %v126_v52  ;;  %v221_v45 = vld [vmem:[#allocation2 + $0x390] sm:$0xff] }
  0x6c   :  { %564 = vmatprep.subr.bf16.mxu1 %v484_v55  ;;  %v406_v55 = vunpack.c.h.s8.bf16 %v190_v53 }
  0x6e   :  { %524 = vmatpush2.bf16.msra.mxu0 %v355_v58  ;;  %v277_v58 = vunpack.c.h.s8.bf16 %v125_v56 }
  0x6f   :  { %565 = vmatpush2.bf16.msra.mxu1 %v483_v59  ;;  %525 = vmatprep.subr.bf16.mxu0 %v348_v60  ;;  %v405_v59 = vunpack.c.h.s8.bf16 %v189_v57  ;;  %v270_v60 = vunpack.c.l.s8.bf16 %v126_v52  ;;  %v150_v52 = vld [vmem:[#allocation2 + $0x158] sm:$0xff] }
  0x70   :  { %566 = vmatprep.subr.bf16.mxu1 %v476_v61  ;;  %v398_v61 = vunpack.c.l.s8.bf16 %v190_v53  ;;  %v214_v53 = vld [vmem:[#allocation2 + $0x358] sm:$0xff] }
  0x72   :  { %526 = vmatpush2.bf16.msra.mxu0 %v347_v4  ;;  %v269_v4 = vunpack.c.l.s8.bf16 %v125_v56  ;;  %v149_v56 = vld [vmem:[#allocation2 + $0x150] sm:$0xff] }
  0x73   :  { %567 = vmatpush2.bf16.msra.mxu1 %v475_v5  ;;  %527 = vmatprep.subr.bf16.mxu0 %v340_v6  ;;  %v397_v5 = vunpack.c.l.s8.bf16 %v189_v57  ;;  %v262_v6 = vunpack.c.h.s8.bf16 %v118_v62  ;;  %v213_v57 = vld [vmem:[#allocation2 + $0x350] sm:$0xff] }
  0x74   :  { %568 = vmatprep.subr.bf16.mxu1 %v468_v7  ;;  %v390_v7 = vunpack.c.h.s8.bf16 %v182_v63 }
  0x76   :  { %528 = vmatpush2.bf16.msra.mxu0 %v339_v10  ;;  %v261_v10 = vunpack.c.h.s8.bf16 %v117_v8 }
  0x77   :  { %569 = vmatpush2.bf16.msra.mxu1 %v467_v11  ;;  %529 = vmatprep.subr.bf16.mxu0 %v332_v12  ;;  %v389_v11 = vunpack.c.h.s8.bf16 %v181_v9  ;;  %v254_v12 = vunpack.c.l.s8.bf16 %v118_v62  ;;  %v142_v62 = vld [vmem:[#allocation2 + $0x118] sm:$0xff] }
  0x78   :  { %570 = vmatprep.subr.bf16.mxu1 %v460_v13  ;;  %v382_v13 = vunpack.c.l.s8.bf16 %v182_v63  ;;  %v206_v63 = vld [vmem:[#allocation2 + $0x318] sm:$0xff] }
  0x7a   :  { %530 = vmatpush2.bf16.msra.mxu0 %v331_v16  ;;  %v253_v16 = vunpack.c.l.s8.bf16 %v117_v8  ;;  %v141_v8 = vld [vmem:[#allocation2 + $0x110] sm:$0xff] }
  0x7b   :  { %571 = vmatpush2.bf16.msra.mxu1 %v459_v17  ;;  %531 = vmatprep.subr.bf16.mxu0 %v324_v18  ;;  %v381_v17 = vunpack.c.l.s8.bf16 %v181_v9  ;;  %v246_v18 = vunpack.c.h.s8.bf16 %v110_v14  ;;  %v205_v9 = vld [vmem:[#allocation2 + $0x310] sm:$0xff] }
  0x7c   :  { %572 = vmatprep.subr.bf16.mxu1 %v452_v19  ;;  %v374_v19 = vunpack.c.h.s8.bf16 %v174_v15 }
  0x7e   :  { %532 = vmatpush2.bf16.msra.mxu0 %v323_v22  ;;  %v245_v22 = vunpack.c.h.s8.bf16 %v109_v20 }
  0x7f   :  { %573 = vmatpush2.bf16.msra.mxu1 %v451_v23  ;;  %533 = vmatprep.subr.bf16.mxu0 %v316_v24  ;;  %v373_v23 = vunpack.c.h.s8.bf16 %v173_v21  ;;  %v238_v24 = vunpack.c.l.s8.bf16 %v110_v14  ;;  %v136_v14 = vld [vmem:[#allocation2 + $0xe8] sm:$0xff] }
  0x80   :  { %574 = vmatprep.subr.bf16.mxu1 %v444_v25  ;;  %v366_v25 = vunpack.c.l.s8.bf16 %v174_v15  ;;  %v200_v15 = vld [vmem:[#allocation2 + $0x2e8] sm:$0xff] }
  0x82   :  { %534 = vmatpush2.bf16.msra.mxu0 %v315_v28  ;;  %v237_v28 = vunpack.c.l.s8.bf16 %v109_v20  ;;  %v135_v20 = vld [vmem:[#allocation2 + $0xe0] sm:$0xff] }
  0x83   :  { %575 = vmatpush2.bf16.msra.mxu1 %v443_v29  ;;  %535 = vmatprep.subr.bf16.mxu0 %v308_v30  ;;  %v365_v29 = vunpack.c.l.s8.bf16 %v173_v21  ;;  %v358_v30 = vunpack.c.h.s8.bf16 %v166_v26  ;;  %v199_v21 = vld [vmem:[#allocation2 + $0x2e0] sm:$0xff] }
  0x84   :  { %576 = vmatprep.subr.bf16.mxu1 %v436_v31  ;;  %v486_v31 = vunpack.c.h.s8.bf16 %v230_v27 }
  0x86   :  { %536 = vmatpush2.bf16.msra.mxu0 %v307_v34  ;;  %v357_v34 = vunpack.c.h.s8.bf16 %v165_v32 }
  0x87   :  { %577 = vmatpush2.bf16.msra.mxu1 %v435_v35  ;;  %537 = vmatprep.subr.bf16.mxu0 %v300_v36  ;;  %v485_v35 = vunpack.c.h.s8.bf16 %v229_v33  ;;  %v350_v36 = vunpack.c.l.s8.bf16 %v166_v26  ;;  %v128_v26 = vld [vmem:[#allocation2 + $0xa8] sm:$0xff] }
  0x88   :  { %578 = vmatprep.subr.bf16.mxu1 %v428_v37  ;;  %v478_v37 = vunpack.c.l.s8.bf16 %v230_v27  ;;  %v192_v27 = vld [vmem:[#allocation2 + $0x2a8] sm:$0xff] }
  0x8a   :  { %538 = vmatpush2.bf16.msra.mxu0 %v299_v40  ;;  %v349_v40 = vunpack.c.l.s8.bf16 %v165_v32  ;;  %v127_v32 = vld [vmem:[#allocation2 + $0xa0] sm:$0xff] }
  0x8b   :  { %579 = vmatpush2.bf16.msra.mxu1 %v427_v41  ;;  %589 = vmatprep.subr.bf16.mxu0 %v294_v42  ;;  %v477_v41 = vunpack.c.l.s8.bf16 %v229_v33  ;;  %v342_v42 = vunpack.c.h.s8.bf16 %v158_v38  ;;  %v191_v33 = vld [vmem:[#allocation2 + $0x2a0] sm:$0xff] }
  0x8c   :  { %630 = vmatprep.subr.bf16.mxu1 %v422_v43  ;;  %v470_v43 = vunpack.c.h.s8.bf16 %v222_v39 }
  0x8d   :  { %540 = vmatmul.mubr.bf16.vlgmr.msra.gmra.mxu0 %v5027_v46 }
  0x8e   :  { %581 = vmatmul.mubr.bf16.vlgmr.msra.gmra.mxu1 %v5031_v47  ;;  %590 = vmatpush1.bf16.msra.mxu0 %v293_v48  ;;  %v341_v48 = vunpack.c.h.s8.bf16 %v157_v44 }
  0x8f   :  { %631 = vmatpush1.bf16.msra.mxu1 %v421_v49  ;;  %591 = vmatprep.subr.bf16.mxu0 %v286_v50  ;;  %v469_v49 = vunpack.c.h.s8.bf16 %v221_v45  ;;  %v334_v50 = vunpack.c.l.s8.bf16 %v158_v38  ;;  %v120_v38 = vld [vmem:[#allocation2 + $0x68] sm:$0xff] }
  0x90   :  { %632 = vmatprep.subr.bf16.mxu1 %v414_v51  ;;  %621 = vmatprep.mubr.bf16.mxu0 %v5017_v2  ;;  %v462_v51 = vunpack.c.l.s8.bf16 %v222_v39  ;;  %v184_v39 = vld [vmem:[#allocation2 + $0x268] sm:$0xff] }
  0x91   :  { %662 = vmatprep.mubr.bf16.mxu1 %v5021_v3 }
  0x92   :  { %592 = vmatpush1.bf16.msra.mxu0 %v285_v0  ;;  %v333_v0 = vunpack.c.l.s8.bf16 %v157_v44  ;;  %v119_v44 = vld [vmem:[#allocation2 + $0x60] sm:$0xff] }
  0x93   :  { %633 = vmatpush1.bf16.msra.mxu1 %v413_v54  ;;  %593 = vmatprep.subr.bf16.mxu0 %v278_v1  ;;  %v461_v54 = vunpack.c.l.s8.bf16 %v221_v45  ;;  %v326_v1 = vunpack.c.h.s8.bf16 %v150_v52  ;;  %v183_v45 = vld [vmem:[#allocation2 + $0x260] sm:$0xff] }
  0x94   :  { %634 = vmatprep.subr.bf16.mxu1 %v406_v55  ;;  %v454_v55 = vunpack.c.h.s8.bf16 %v214_v53 }
  0x96   :  { %594 = vmatpush1.bf16.msra.mxu0 %v277_v58  ;;  %v325_v58 = vunpack.c.h.s8.bf16 %v149_v56 }
  0x97   :  { %635 = vmatpush1.bf16.msra.mxu1 %v405_v59  ;;  %595 = vmatprep.subr.bf16.mxu0 %v270_v60  ;;  %v453_v59 = vunpack.c.h.s8.bf16 %v213_v57  ;;  %v318_v60 = vunpack.c.l.s8.bf16 %v150_v52  ;;  %v112_v52 = vld [vmem:[#allocation2 + $0x28] sm:$0xff] }
  0x98   :  { %636 = vmatprep.subr.bf16.mxu1 %v398_v61  ;;  %v446_v61 = vunpack.c.l.s8.bf16 %v214_v53  ;;  %v176_v53 = vld [vmem:[#allocation2 + $0x228] sm:$0xff] }
  0x9a   :  { %596 = vmatpush1.bf16.msra.mxu0 %v269_v4  ;;  %v317_v4 = vunpack.c.l.s8.bf16 %v149_v56  ;;  %v111_v56 = vld [vmem:[#allocation2 + $0x20] sm:$0xff] }
  0x9b   :  { %637 = vmatpush1.bf16.msra.mxu1 %v397_v5  ;;  %597 = vmatprep.subr.bf16.mxu0 %v262_v6  ;;  %v445_v5 = vunpack.c.l.s8.bf16 %v213_v57  ;;  %v310_v6 = vunpack.c.h.s8.bf16 %v142_v62  ;;  %v175_v57 = vld [vmem:[#allocation2 + $0x220] sm:$0xff] }
  0x9c   :  { %638 = vmatprep.subr.bf16.mxu1 %v390_v7  ;;  %v438_v7 = vunpack.c.h.s8.bf16 %v206_v63 }
  0x9e   :  { %598 = vmatpush1.bf16.msra.mxu0 %v261_v10  ;;  %v309_v10 = vunpack.c.h.s8.bf16 %v141_v8 }
  0x9f   :  { %639 = vmatpush1.bf16.msra.mxu1 %v389_v11  ;;  %599 = vmatprep.subr.bf16.mxu0 %v254_v12  ;;  %v437_v11 = vunpack.c.h.s8.bf16 %v205_v9  ;;  %v302_v12 = vunpack.c.l.s8.bf16 %v142_v62  ;;  %v168_v62 = vld [vmem:[#allocation2 + $0x1e8] sm:$0xff] }
  0xa0   :  { %640 = vmatprep.subr.bf16.mxu1 %v382_v13  ;;  %v430_v13 = vunpack.c.l.s8.bf16 %v206_v63  ;;  %v232_v63 = vld [vmem:[#allocation2 + $0x3e8] sm:$0xff] }
  0xa2   :  { %600 = vmatpush1.bf16.msra.mxu0 %v253_v16  ;;  %v301_v16 = vunpack.c.l.s8.bf16 %v141_v8  ;;  %v167_v8 = vld [vmem:[#allocation2 + $0x1e0] sm:$0xff] }
  0xa3   :  { %641 = vmatpush1.bf16.msra.mxu1 %v381_v17  ;;  %601 = vmatprep.subr.bf16.mxu0 %v246_v18  ;;  %v429_v17 = vunpack.c.l.s8.bf16 %v205_v9  ;;  %v296_v18 = vunpack.c.h.s8.bf16 %v136_v14  ;;  %v231_v9 = vld [vmem:[#allocation2 + $0x3e0] sm:$0xff] }
  0xa4   :  { %642 = vmatprep.subr.bf16.mxu1 %v374_v19  ;;  %v424_v19 = vunpack.c.h.s8.bf16 %v200_v15 }
  0xa6   :  { %602 = vmatpush1.bf16.msra.mxu0 %v245_v22  ;;  %v295_v22 = vunpack.c.h.s8.bf16 %v135_v20 }
  0xa7   :  { %643 = vmatpush1.bf16.msra.mxu1 %v373_v23  ;;  %603 = vmatprep.subr.bf16.mxu0 %v238_v24  ;;  %v423_v23 = vunpack.c.h.s8.bf16 %v199_v21  ;;  %v288_v24 = vunpack.c.l.s8.bf16 %v136_v14  ;;  %v160_v14 = vld [vmem:[#allocation2 + $0x1a8] sm:$0xff] }
  0xa8   :  { %644 = vmatprep.subr.bf16.mxu1 %v366_v25  ;;  %v416_v25 = vunpack.c.l.s8.bf16 %v200_v15  ;;  %v224_v15 = vld [vmem:[#allocation2 + $0x3a8] sm:$0xff] }
  0xaa   :  { %604 = vmatpush1.bf16.msra.mxu0 %v237_v28  ;;  %v287_v28 = vunpack.c.l.s8.bf16 %v135_v20  ;;  %v159_v20 = vld [vmem:[#allocation2 + $0x1a0] sm:$0xff] }
  0xab   :  { %645 = vmatpush1.bf16.msra.mxu1 %v365_v29  ;;  %605 = vmatprep.subr.bf16.mxu0 %v358_v30  ;;  %v415_v29 = vunpack.c.l.s8.bf16 %v199_v21  ;;  %v280_v30 = vunpack.c.h.s8.bf16 %v128_v26  ;;  %v223_v21 = vld [vmem:[#allocation2 + $0x3a0] sm:$0xff] }
  0xac   :  { %646 = vmatprep.subr.bf16.mxu1 %v486_v31  ;;  %v408_v31 = vunpack.c.h.s8.bf16 %v192_v27 }
  0xae   :  { %606 = vmatpush2.bf16.msra.mxu0 %v357_v34  ;;  %v279_v34 = vunpack.c.h.s8.bf16 %v127_v32 }
  0xaf   :  { %647 = vmatpush2.bf16.msra.mxu1 %v485_v35  ;;  %607 = vmatprep.subr.bf16.mxu0 %v350_v36  ;;  %v407_v35 = vunpack.c.h.s8.bf16 %v191_v33  ;;  %v272_v36 = vunpack.c.l.s8.bf16 %v128_v26  ;;  %v152_v26 = vld [vmem:[#allocation2 + $0x168] sm:$0xff] }
  0xb0   :  { %648 = vmatprep.subr.bf16.mxu1 %v478_v37  ;;  %v400_v37 = vunpack.c.l.s8.bf16 %v192_v27  ;;  %v216_v27 = vld [vmem:[#allocation2 + $0x368] sm:$0xff] }
  0xb2   :  { %608 = vmatpush2.bf16.msra.mxu0 %v349_v40  ;;  %v271_v40 = vunpack.c.l.s8.bf16 %v127_v32  ;;  %v151_v32 = vld [vmem:[#allocation2 + $0x160] sm:$0xff] }
  0xb3   :  { %649 = vmatpush2.bf16.msra.mxu1 %v477_v41  ;;  %609 = vmatprep.subr.bf16.mxu0 %v342_v42  ;;  %v399_v41 = vunpack.c.l.s8.bf16 %v191_v33  ;;  %v264_v42 = vunpack.c.h.s8.bf16 %v120_v38  ;;  %v215_v33 = vld [vmem:[#allocation2 + $0x360] sm:$0xff] }
  0xb4   :  { %650 = vmatprep.subr.bf16.mxu1 %v470_v43  ;;  %v392_v43 = vunpack.c.h.s8.bf16 %v184_v39 }
  0xb6   :  { %610 = vmatpush2.bf16.msra.mxu0 %v341_v48  ;;  %v263_v48 = vunpack.c.h.s8.bf16 %v119_v44 }
  0xb7   :  { %651 = vmatpush2.bf16.msra.mxu1 %v469_v49  ;;  %611 = vmatprep.subr.bf16.mxu0 %v334_v50  ;;  %v391_v49 = vunpack.c.h.s8.bf16 %v183_v45  ;;  %v256_v50 = vunpack.c.l.s8.bf16 %v120_v38  ;;  %v144_v38 = vld [vmem:[#allocation2 + $0x128] sm:$0xff] }
  0xb8   :  { %652 = vmatprep.subr.bf16.mxu1 %v462_v51  ;;  %v384_v51 = vunpack.c.l.s8.bf16 %v184_v39  ;;  %v208_v39 = vld [vmem:[#allocation2 + $0x328] sm:$0xff] }
  0xba   :  { %612 = vmatpush2.bf16.msra.mxu0 %v333_v0  ;;  %v255_v0 = vunpack.c.l.s8.bf16 %v119_v44  ;;  %v143_v44 = vld [vmem:[#allocation2 + $0x120] sm:$0xff] }
  0xbb   :  { %653 = vmatpush2.bf16.msra.mxu1 %v461_v54  ;;  %613 = vmatprep.subr.bf16.mxu0 %v326_v1  ;;  %v383_v54 = vunpack.c.l.s8.bf16 %v183_v45  ;;  %v248_v1 = vunpack.c.h.s8.bf16 %v112_v52  ;;  %v207_v45 = vld [vmem:[#allocation2 + $0x320] sm:$0xff] }
  0xbc   :  { %654 = vmatprep.subr.bf16.mxu1 %v454_v55  ;;  %v376_v55 = vunpack.c.h.s8.bf16 %v176_v53 }
  0xbe   :  { %614 = vmatpush2.bf16.msra.mxu0 %v325_v58  ;;  %v247_v58 = vunpack.c.h.s8.bf16 %v111_v56 }
  0xbf   :  { %655 = vmatpush2.bf16.msra.mxu1 %v453_v59  ;;  %615 = vmatprep.subr.bf16.mxu0 %v318_v60  ;;  %v375_v59 = vunpack.c.h.s8.bf16 %v175_v57  ;;  %v240_v60 = vunpack.c.l.s8.bf16 %v112_v52  ;;  %v138_v52 = vld [vmem:[#allocation2 + $0xf8] sm:$0xff] }
  0xc0   :  { %656 = vmatprep.subr.bf16.mxu1 %v446_v61  ;;  %v368_v61 = vunpack.c.l.s8.bf16 %v176_v53  ;;  %v202_v53 = vld [vmem:[#allocation2 + $0x2f8] sm:$0xff] }
  0xc2   :  { %616 = vmatpush2.bf16.msra.mxu0 %v317_v4  ;;  %v239_v4 = vunpack.c.l.s8.bf16 %v111_v56  ;;  %v137_v56 = vld [vmem:[#allocation2 + $0xf0] sm:$0xff] }
  0xc3   :  { %657 = vmatpush2.bf16.msra.mxu1 %v445_v5  ;;  %617 = vmatprep.subr.bf16.mxu0 %v310_v6  ;;  %v367_v5 = vunpack.c.l.s8.bf16 %v175_v57  ;;  %v360_v6 = vunpack.c.h.s8.bf16 %v168_v62  ;;  %v201_v57 = vld [vmem:[#allocation2 + $0x2f0] sm:$0xff] }
  0xc4   :  { %658 = vmatprep.subr.bf16.mxu1 %v438_v7  ;;  %v488_v7 = vunpack.c.h.s8.bf16 %v232_v63 }
  0xc6   :  { %618 = vmatpush2.bf16.msra.mxu0 %v309_v10  ;;  %v359_v10 = vunpack.c.h.s8.bf16 %v167_v8 }
  0xc7   :  { %659 = vmatpush2.bf16.msra.mxu1 %v437_v11  ;;  %619 = vmatprep.subr.bf16.mxu0 %v302_v12  ;;  %v487_v11 = vunpack.c.h.s8.bf16 %v231_v9  ;;  %v352_v12 = vunpack.c.l.s8.bf16 %v168_v62  ;;  %v130_v62 = vld [vmem:[#allocation2 + $0xb8] sm:$0xff] }
  0xc8   :  { %660 = vmatprep.subr.bf16.mxu1 %v430_v13  ;;  %v480_v13 = vunpack.c.l.s8.bf16 %v232_v63  ;;  %v194_v63 = vld [vmem:[#allocation2 + $0x2b8] sm:$0xff] }
  0xca   :  { %620 = vmatpush2.bf16.msra.mxu0 %v301_v16  ;;  %v351_v16 = vunpack.c.l.s8.bf16 %v167_v8  ;;  %v129_v8 = vld [vmem:[#allocation2 + $0xb0] sm:$0xff] }
  0xcb   :  { %661 = vmatpush2.bf16.msra.mxu1 %v429_v17  ;;  %671 = vmatprep.subr.bf16.mxu0 %v296_v18  ;;  %v479_v17 = vunpack.c.l.s8.bf16 %v231_v9  ;;  %v344_v18 = vunpack.c.h.s8.bf16 %v160_v14  ;;  %v193_v9 = vld [vmem:[#allocation2 + $0x2b0] sm:$0xff] }
  0xcc   :  { %712 = vmatprep.subr.bf16.mxu1 %v424_v19  ;;  %v472_v19 = vunpack.c.h.s8.bf16 %v224_v15 }
  0xcd   :  { %622 = vmatmul.mubr.bf16.vlgmr.msra.gmra.mxu0 %v5027_v46 }
  0xce   :  { %663 = vmatmul.mubr.bf16.vlgmr.msra.gmra.mxu1 %v5031_v47  ;;  %672 = vmatpush1.bf16.msra.mxu0 %v295_v22  ;;  %v343_v22 = vunpack.c.h.s8.bf16 %v159_v20 }
  0xcf   :  { %713 = vmatpush1.bf16.msra.mxu1 %v423_v23  ;;  %673 = vmatprep.subr.bf16.mxu0 %v288_v24  ;;  %v471_v23 = vunpack.c.h.s8.bf16 %v223_v21  ;;  %v336_v24 = vunpack.c.l.s8.bf16 %v160_v14  ;;  %v122_v14 = vld [vmem:[#allocation2 + $0x78] sm:$0xff] }
  0xd0   :  { %714 = vmatprep.subr.bf16.mxu1 %v416_v25  ;;  %703 = vmatprep.mubr.bf16.mxu0 %v5017_v2  ;;  %v464_v25 = vunpack.c.l.s8.bf16 %v224_v15  ;;  %v186_v15 = vld [vmem:[#allocation2 + $0x278] sm:$0xff] }
  0xd1   :  { %744 = vmatprep.mubr.bf16.mxu1 %v5021_v3 }
  0xd2   :  { %674 = vmatpush1.bf16.msra.mxu0 %v287_v28  ;;  %v335_v28 = vunpack.c.l.s8.bf16 %v159_v20 }
  0xd3   :  { %715 = vmatpush1.bf16.msra.mxu1 %v415_v29  ;;  %675 = vmatprep.subr.bf16.mxu0 %v280_v30  ;;  %v463_v29 = vunpack.c.l.s8.bf16 %v223_v21  ;;  %v328_v30 = vunpack.c.h.s8.bf16 %v152_v26 }
  0xd4   :  { %716 = vmatprep.subr.bf16.mxu1 %v408_v31  ;;  %v456_v31 = vunpack.c.h.s8.bf16 %v216_v27 }
  0xd6   :  { %676 = vmatpush1.bf16.msra.mxu0 %v279_v34  ;;  %v327_v34 = vunpack.c.h.s8.bf16 %v151_v32 }
  0xd7   :  { %717 = vmatpush1.bf16.msra.mxu1 %v407_v35  ;;  %677 = vmatprep.subr.bf16.mxu0 %v272_v36  ;;  %v455_v35 = vunpack.c.h.s8.bf16 %v215_v33  ;;  %v320_v36 = vunpack.c.l.s8.bf16 %v152_v26 }
  0xd8   :  { %718 = vmatprep.subr.bf16.mxu1 %v400_v37  ;;  %v448_v37 = vunpack.c.l.s8.bf16 %v216_v27 }
  0xda   :  { %678 = vmatpush1.bf16.msra.mxu0 %v271_v40  ;;  %v319_v40 = vunpack.c.l.s8.bf16 %v151_v32 }
  0xdb   :  { %719 = vmatpush1.bf16.msra.mxu1 %v399_v41  ;;  %679 = vmatprep.subr.bf16.mxu0 %v264_v42  ;;  %v447_v41 = vunpack.c.l.s8.bf16 %v215_v33  ;;  %v312_v42 = vunpack.c.h.s8.bf16 %v144_v38 }
  0xdc   :  { %720 = vmatprep.subr.bf16.mxu1 %v392_v43  ;;  %v440_v43 = vunpack.c.h.s8.bf16 %v208_v39 }
  0xde   :  { %680 = vmatpush1.bf16.msra.mxu0 %v263_v48  ;;  %v311_v48 = vunpack.c.h.s8.bf16 %v143_v44 }
  0xdf   :  { %721 = vmatpush1.bf16.msra.mxu1 %v391_v49  ;;  %681 = vmatprep.subr.bf16.mxu0 %v256_v50  ;;  %v439_v49 = vunpack.c.h.s8.bf16 %v207_v45  ;;  %v304_v50 = vunpack.c.l.s8.bf16 %v144_v38 }
  0xe0   :  { %722 = vmatprep.subr.bf16.mxu1 %v384_v51  ;;  %v432_v51 = vunpack.c.l.s8.bf16 %v208_v39 }
  0xe2   :  { %682 = vmatpush1.bf16.msra.mxu0 %v255_v0  ;;  %v303_v0 = vunpack.c.l.s8.bf16 %v143_v44 }
  0xe3   :  { %723 = vmatpush1.bf16.msra.mxu1 %v383_v54  ;;  %683 = vmatprep.subr.bf16.mxu0 %v248_v1  ;;  %v431_v54 = vunpack.c.l.s8.bf16 %v207_v45  ;;  %v298_v1 = vunpack.c.h.s8.bf16 %v138_v52 }
  0xe4   :  { %724 = vmatprep.subr.bf16.mxu1 %v376_v55  ;;  %v426_v55 = vunpack.c.h.s8.bf16 %v202_v53 }
  0xe6   :  { %684 = vmatpush1.bf16.msra.mxu0 %v247_v58  ;;  %v297_v58 = vunpack.c.h.s8.bf16 %v137_v56 }
  0xe7   :  { %725 = vmatpush1.bf16.msra.mxu1 %v375_v59  ;;  %685 = vmatprep.subr.bf16.mxu0 %v240_v60  ;;  %v425_v59 = vunpack.c.h.s8.bf16 %v201_v57  ;;  %v290_v60 = vunpack.c.l.s8.bf16 %v138_v52 }
  0xe8   :  { %726 = vmatprep.subr.bf16.mxu1 %v368_v61  ;;  %v418_v61 = vunpack.c.l.s8.bf16 %v202_v53 }
  0xea   :  { %686 = vmatpush1.bf16.msra.mxu0 %v239_v4  ;;  %v289_v4 = vunpack.c.l.s8.bf16 %v137_v56 }
  0xeb   :  { %727 = vmatpush1.bf16.msra.mxu1 %v367_v5  ;;  %687 = vmatprep.subr.bf16.mxu0 %v360_v6  ;;  %v417_v5 = vunpack.c.l.s8.bf16 %v201_v57  ;;  %v282_v6 = vunpack.c.h.s8.bf16 %v130_v62 }
  0xec   :  { %728 = vmatprep.subr.bf16.mxu1 %v488_v7  ;;  %v410_v7 = vunpack.c.h.s8.bf16 %v194_v63 }
  0xee   :  { %688 = vmatpush2.bf16.msra.mxu0 %v359_v10  ;;  %v281_v10 = vunpack.c.h.s8.bf16 %v129_v8 }
  0xef   :  { %729 = vmatpush2.bf16.msra.mxu1 %v487_v11  ;;  %689 = vmatprep.subr.bf16.mxu0 %v352_v12  ;;  %v409_v11 = vunpack.c.h.s8.bf16 %v193_v9  ;;  %v274_v12 = vunpack.c.l.s8.bf16 %v130_v62 }
  0xf0   :  { %730 = vmatprep.subr.bf16.mxu1 %v480_v13  ;;  %v402_v13 = vunpack.c.l.s8.bf16 %v194_v63 }
  0xf2   :  { %690 = vmatpush2.bf16.msra.mxu0 %v351_v16  ;;  %v273_v16 = vunpack.c.l.s8.bf16 %v129_v8 }
  0xf3   :  { %731 = vmatpush2.bf16.msra.mxu1 %v479_v17  ;;  %691 = vmatprep.subr.bf16.mxu0 %v344_v18  ;;  %v401_v17 = vunpack.c.l.s8.bf16 %v193_v9  ;;  %v266_v18 = vunpack.c.h.s8.bf16 %v122_v14 }
  0xf4   :  { %732 = vmatprep.subr.bf16.mxu1 %v472_v19  ;;  %v121_v19 = vld [vmem:[#allocation2 + $0x70] sm:$0xff] }
  0xf5   :  { %v265_v20 = vunpack.c.h.s8.bf16 %v121_v19  ;;  %v257_v26 = vunpack.c.l.s8.bf16 %v121_v19  ;;  %v836_v19 = vlaneseq }
  0xf6   :  { %692 = vmatpush2.bf16.msra.mxu0 %v343_v22  ;;  %v258_v22 = vunpack.c.l.s8.bf16 %v122_v14 }
  0xf7   :  { %733 = vmatpush2.bf16.msra.mxu1 %v471_v23  ;;  %693 = vmatprep.subr.bf16.mxu0 %v336_v24  ;;  %v386_v23 = vunpack.c.l.s8.bf16 %v186_v15  ;;  %v114_v24 = vld [vmem:[#allocation2 + $0x38] sm:$0xff] }
  0xf8   :  { %734 = vmatprep.subr.bf16.mxu1 %v464_v25  ;;  %v178_v25 = vld [vmem:[#allocation2 + $0x238] sm:$0xff] }
  0xfa   :  { %694 = vmatpush2.bf16.msra.mxu0 %v335_v28  ;;  %v250_v28 = vunpack.c.h.s8.bf16 %v114_v24 }
  0xfb   :  { %735 = vmatpush2.bf16.msra.mxu1 %v463_v29  ;;  %695 = vmatprep.subr.bf16.mxu0 %v328_v30  ;;  %v378_v29 = vunpack.c.h.s8.bf16 %v178_v25  ;;  %v113_v30 = vld [vmem:[#allocation2 + $0x30] sm:$0xff] }
  0xfc   :  { %736 = vmatprep.subr.bf16.mxu1 %v456_v31  ;;  %v177_v31 = vld [vmem:[#allocation2 + $0x230] sm:$0xff]  ;;  %v249_v32 = vunpack.c.h.s8.bf16 %v113_v30  ;;  %v241_v38 = vunpack.c.l.s8.bf16 %v113_v30 }
  0xfd   :  { %v377_v33 = vunpack.c.h.s8.bf16 %v177_v31  ;;  %v369_v39 = vunpack.c.l.s8.bf16 %v177_v31 }
  0xfe   :  { %696 = vmatpush2.bf16.msra.mxu0 %v327_v34  ;;  %v242_v34 = vunpack.c.l.s8.bf16 %v114_v24 }
  0xff   :  { %737 = vmatpush2.bf16.msra.mxu1 %v455_v35  ;;  %697 = vmatprep.subr.bf16.mxu0 %v320_v36  ;;  %v370_v35 = vunpack.c.l.s8.bf16 %v178_v25  ;;  %v170_v36 = vld [vmem:[#allocation2 + $0x1f8] sm:$0xff] }
 0x100   :  { %738 = vmatprep.subr.bf16.mxu1 %v448_v37  ;;  %v234_v37 = vld [vmem:[#allocation2 + $0x3f8] sm:$0xff] }
 0x102   :  { %698 = vmatpush2.bf16.msra.mxu0 %v319_v40  ;;  %v362_v40 = vunpack.c.h.s8.bf16 %v170_v36 }
 0x103   :  { %739 = vmatpush2.bf16.msra.mxu1 %v447_v41  ;;  %699 = vmatprep.subr.bf16.mxu0 %v312_v42  ;;  %v490_v41 = vunpack.c.h.s8.bf16 %v234_v37  ;;  %v169_v42 = vld [vmem:[#allocation2 + $0x1f0] sm:$0xff] }
 0x104   :  { %740 = vmatprep.subr.bf16.mxu1 %v440_v43  ;;  %v233_v43 = vld [vmem:[#allocation2 + $0x3f0] sm:$0xff]  ;;  %v361_v44 = vunpack.c.h.s8.bf16 %v169_v42  ;;  %v353_v52 = vunpack.c.l.s8.bf16 %v169_v42 }
 0x105   :  { %v489_v45 = vunpack.c.h.s8.bf16 %v233_v43  ;;  %v481_v53 = vunpack.c.l.s8.bf16 %v233_v43 }
 0x106   :  { %700 = vmatpush2.bf16.msra.mxu0 %v311_v48  ;;  %v354_v48 = vunpack.c.l.s8.bf16 %v170_v36 }
 0x107   :  { %741 = vmatpush2.bf16.msra.mxu1 %v439_v49  ;;  %701 = vmatprep.subr.bf16.mxu0 %v304_v50  ;;  %v482_v49 = vunpack.c.l.s8.bf16 %v234_v37  ;;  %v162_v50 = vld [vmem:[#allocation2 + $0x1b8] sm:$0xff] }
 0x108   :  { %742 = vmatprep.subr.bf16.mxu1 %v432_v51  ;;  %v226_v51 = vld [vmem:[#allocation2 + $0x3b8] sm:$0xff] }
 0x10a   :  { %702 = vmatpush2.bf16.msra.mxu0 %v303_v0  ;;  %v346_v0 = vunpack.c.h.s8.bf16 %v162_v50 }
 0x10b   :  { %743 = vmatpush2.bf16.msra.mxu1 %v431_v54  ;;  %753 = vmatprep.subr.bf16.mxu0 %v298_v1  ;;  %v474_v54 = vunpack.c.h.s8.bf16 %v226_v51  ;;  %v161_v1 = vld [vmem:[#allocation2 + $0x1b0] sm:$0xff] }
 0x10c   :  { %794 = vmatprep.subr.bf16.mxu1 %v426_v55  ;;  %v225_v55 = vld [vmem:[#allocation2 + $0x3b0] sm:$0xff]  ;;  %v345_v56 = vunpack.c.h.s8.bf16 %v161_v1  ;;  %v337_v62 = vunpack.c.l.s8.bf16 %v161_v1 }
 0x10d   :  { %704 = vmatmul.mubr.bf16.vlgmr.msra.gmra.mxu0 %v5027_v46  ;;  %v473_v57 = vunpack.c.h.s8.bf16 %v225_v55  ;;  %v465_v63 = vunpack.c.l.s8.bf16 %v225_v55 }
 0x10e   :  { %745 = vmatmul.mubr.bf16.vlgmr.msra.gmra.mxu1 %v5031_v47  ;;  %754 = vmatpush1.bf16.msra.mxu0 %v297_v58  ;;  %v338_v58 = vunpack.c.l.s8.bf16 %v162_v50 }
 0x10f   :  { %795 = vmatpush1.bf16.msra.mxu1 %v425_v59  ;;  %755 = vmatprep.subr.bf16.mxu0 %v290_v60  ;;  %v466_v59 = vunpack.c.l.s8.bf16 %v226_v51  ;;  %v154_v60 = vld [vmem:[#allocation2 + $0x178] sm:$0xff] }
 0x110   :  { %796 = vmatprep.subr.bf16.mxu1 %v418_v61  ;;  %785 = vmatprep.mubr.bf16.mxu0 %v5017_v2  ;;  %v394_v2 = vunpack.c.h.s8.bf16 %v186_v15  ;;  %v218_v61 = vld [vmem:[#allocation2 + $0x378] sm:$0xff] }
 0x111   :  { %826 = vmatprep.mubr.bf16.mxu1 %v5021_v3  ;;  %v185_v3 = vld [vmem:[#allocation2 + $0x270] sm:$0xff] }
 0x112   :  { %756 = vmatpush1.bf16.msra.mxu0 %v289_v4  ;;  %v393_v21 = vunpack.c.h.s8.bf16 %v185_v3  ;;  %v385_v27 = vunpack.c.l.s8.bf16 %v185_v3  ;;  %v330_v4 = vunpack.c.h.s8.bf16 %v154_v60 }
 0x113   :  { %797 = vmatpush1.bf16.msra.mxu1 %v417_v5  ;;  %757 = vmatprep.subr.bf16.mxu0 %v282_v6  ;;  %v458_v5 = vunpack.c.h.s8.bf16 %v218_v61  ;;  %v153_v6 = vld [vmem:[#allocation2 + $0x170] sm:$0xff] }
 0x114   :  { %798 = vmatprep.subr.bf16.mxu1 %v410_v7  ;;  %v217_v7 = vld [vmem:[#allocation2 + $0x370] sm:$0xff]  ;;  %v329_v8 = vunpack.c.h.s8.bf16 %v153_v6  ;;  %v321_v14 = vunpack.c.l.s8.bf16 %v153_v6 }
 0x115   :  { %v457_v9 = vunpack.c.h.s8.bf16 %v217_v7  ;;  %v449_v15 = vunpack.c.l.s8.bf16 %v217_v7 }
 0x116   :  { %758 = vmatpush1.bf16.msra.mxu0 %v281_v10  ;;  %v322_v10 = vunpack.c.l.s8.bf16 %v154_v60 }
 0x117   :  { %799 = vmatpush1.bf16.msra.mxu1 %v409_v11  ;;  %759 = vmatprep.subr.bf16.mxu0 %v274_v12  ;;  %v450_v11 = vunpack.c.l.s8.bf16 %v218_v61  ;;  %v146_v12 = vld [vmem:[#allocation2 + $0x138] sm:$0xff] }
 0x118   :  { %800 = vmatprep.subr.bf16.mxu1 %v402_v13  ;;  %v210_v13 = vld [vmem:[#allocation2 + $0x338] sm:$0xff] }
 0x11a   :  { %760 = vmatpush1.bf16.msra.mxu0 %v273_v16  ;;  %v314_v16 = vunpack.c.h.s8.bf16 %v146_v12 }
 0x11b   :  { %801 = vmatpush1.bf16.msra.mxu1 %v401_v17  ;;  %761 = vmatprep.subr.bf16.mxu0 %v266_v18  ;;  %v442_v17 = vunpack.c.h.s8.bf16 %v210_v13  ;;  %v145_v18 = vld [vmem:[#allocation2 + $0x130] sm:$0xff] }
 0x11c   :  { %802 = vmatprep.subr.bf16.mxu1 %v394_v2  ;;  %v209_v2 = vld [vmem:[#allocation2 + $0x330] sm:$0xff]  ;;  %v313_v3 = vunpack.c.h.s8.bf16 %v145_v18  ;;  %v305_v24 = vunpack.c.l.s8.bf16 %v145_v18 }
 0x11d   :  { %v433_v25 = vunpack.c.l.s8.bf16 %v209_v2 }
 0x11e   :  { %762 = vmatpush1.bf16.msra.mxu0 %v265_v20  ;;  %v441_v20 = vunpack.c.h.s8.bf16 %v209_v2 }
 0x11f   :  { %803 = vmatpush1.bf16.msra.mxu1 %v393_v21  ;;  %763 = vmatprep.subr.bf16.mxu0 %v258_v22  ;;  %v306_v21 = vunpack.c.l.s8.bf16 %v146_v12  ;;  %v434_v22 = vunpack.c.l.s8.bf16 %v210_v13 }
 0x120   :  { %804 = vmatprep.subr.bf16.mxu1 %v386_v23  ;;  %v5045_v23 = vshrl.u32 %v836_v19, 7 }
 0x122   :  { %764 = vmatpush1.bf16.msra.mxu0 %v257_v26  ;;  %v5048_v26 = vsub.s32 0, %v5045_v23  ;;  %v5073_v18 = vsub.s32 2, %v5045_v23  ;;  %v5076_v2 = vsub.s32 3, %v5045_v23 }
 0x123   :  { %805 = vmatpush1.bf16.msra.mxu1 %v385_v27  ;;  %765 = vmatprep.subr.bf16.mxu0 %v250_v28  ;;  %v5050_v27 = vld [vmem:[#allocation9 + $0x2] ss:$4 sm:$0xff]  ;;  %v5053_v28 = vsub.s32 1, %v5045_v23 }
 0x124   :  { %806 = vmatprep.subr.bf16.mxu1 %v378_v29  ;;  %v839_v29 = vrot.slane %v5050_v27, %v5048_v26  ;;  %v847_v19 = vrot.slane %v5050_v27, %v5073_v18 }
 0x126   :  { %766 = vmatpush1.bf16.msra.mxu0 %v249_v32 }
 0x127   :  { %807 = vmatpush1.bf16.msra.mxu1 %v377_v33  ;;  %767 = vmatprep.subr.bf16.mxu0 %v242_v34  ;;  %v843_v33 = vrot.slane %v5050_v27, %v5053_v28 }
 0x128   :  { %808 = vmatprep.subr.bf16.mxu1 %v370_v35 }
 0x12a   :  { %768 = vmatpush1.bf16.msra.mxu0 %v241_v38 }
 0x12b   :  { %809 = vmatpush1.bf16.msra.mxu1 %v369_v39  ;;  %769 = vmatprep.subr.bf16.mxu0 %v362_v40 }
 0x12c   :  { %810 = vmatprep.subr.bf16.mxu1 %v490_v41 }
 0x12e   :  { %770 = vmatpush2.bf16.msra.mxu0 %v361_v44 }
 0x12f   :  { %811 = vmatpush2.bf16.msra.mxu1 %v489_v45  ;;  %771 = vmatprep.subr.bf16.mxu0 %v354_v48 }
 0x130   :  { %812 = vmatprep.subr.bf16.mxu1 %v482_v49 }
 0x132   :  { %772 = vmatpush2.bf16.msra.mxu0 %v353_v52 }
 0x133   :  { %813 = vmatpush2.bf16.msra.mxu1 %v481_v53  ;;  %773 = vmatprep.subr.bf16.mxu0 %v346_v0 }
 0x134   :  { %814 = vmatprep.subr.bf16.mxu1 %v474_v54 }
 0x136   :  { %774 = vmatpush2.bf16.msra.mxu0 %v345_v56 }
 0x137   :  { %815 = vmatpush2.bf16.msra.mxu1 %v473_v57  ;;  %775 = vmatprep.subr.bf16.mxu0 %v338_v58 }
 0x138   :  { %816 = vmatprep.subr.bf16.mxu1 %v466_v59 }
 0x13a   :  { %776 = vmatpush2.bf16.msra.mxu0 %v337_v62 }
 0x13b   :  { %817 = vmatpush2.bf16.msra.mxu1 %v465_v63  ;;  %777 = vmatprep.subr.bf16.mxu0 %v330_v4 }
 0x13c   :  { %818 = vmatprep.subr.bf16.mxu1 %v458_v5 }
 0x13e   :  { %778 = vmatpush2.bf16.msra.mxu0 %v329_v8 }
 0x13f   :  { %819 = vmatpush2.bf16.msra.mxu1 %v457_v9  ;;  %779 = vmatprep.subr.bf16.mxu0 %v322_v10 }
 0x140   :  { %820 = vmatprep.subr.bf16.mxu1 %v450_v11 }
 0x142   :  { %780 = vmatpush2.bf16.msra.mxu0 %v321_v14 }
 0x143   :  { %821 = vmatpush2.bf16.msra.mxu1 %v449_v15  ;;  %781 = vmatprep.subr.bf16.mxu0 %v314_v16 }
 0x144   :  { %822 = vmatprep.subr.bf16.mxu1 %v442_v17 }
 0x146   :  { %782 = vmatpush2.bf16.msra.mxu0 %v313_v3 }
 0x147   :  { %823 = vmatpush2.bf16.msra.mxu1 %v441_v20  ;;  %783 = vmatprep.subr.bf16.mxu0 %v306_v21 }
 0x148   :  { %824 = vmatprep.subr.bf16.mxu1 %v434_v22  ;;  %v851_v22 = vrot.slane %v5050_v27, %v5076_v2 }
 0x14a   :  { %784 = vmatpush2.bf16.msra.mxu0 %v305_v24 }
 0x14b   :  { %825 = vmatpush2.bf16.msra.mxu1 %v433_v25 }
 0x14d   :  { %v541_v30 = vpop.f32.mrf.mxu0  ;;  %786 = vmatmul.mubr.bf16.vlgmr.msra.gmra.mxu0 %v5027_v46 }
 0x14e   :  { %v582_v31 = vpop.f32.mrf.mxu1  ;;  %827 = vmatmul.mubr.bf16.vlgmr.msra.gmra.mxu1 %v5031_v47 }
 0x14f   :  { %v583_v32 = vadd.f32 %v582_v31, %v541_v30  ;;  %v543_v34 = vpop.f32.mrf.mxu0 }
 0x150   :  { %v584_v35 = vpop.f32.mrf.mxu1 }
 0x151   :  { %v876_v36 = vmul.f32 %v839_v29, %v583_v32  ;;  %v585_v37 = vadd.f32 %v584_v35, %v543_v34  ;;  %v545_v38 = vpop.f32.mrf.mxu0 }
 0x152   :  { %v586_v39 = vpop.f32.mrf.mxu1 }
 0x153   :  { %v887_v40 = vrot.slane %v876_v36, 4  ;;  %v877_v41 = vmul.f32 %v843_v33, %v585_v37  ;;  %v546_v42 = vpop.f32.mrf.mxu0 }
 0x154   :  { %v587_v43 = vpop.f32.mrf.mxu1 }
 0x155   :  { %v888_v44 = vadd.f32 %v887_v40, %v876_v36  ;;  %v893_v45 = vrot.slane %v877_v41, 4 }
 0x157   :  { %v889_v48 = vrot.slane %v888_v44, 2  ;;  %v894_v46 = vadd.f32 %v893_v45, %v877_v41 }
 0x159   :  { %v890_v49 = vadd.f32 %v889_v48, %v888_v44  ;;  %v895_v47 = vrot.slane %v894_v46, 2 }
 0x15b   :  { %v891_v50 = vrot.slane %v890_v49, 1  ;;  %v896_v51 = vadd.f32 %v895_v47, %v894_v46 }
 0x15d   :  { %v892_v52 = vadd.f32 %v891_v50, %v890_v49  ;;  %v897_v53 = vrot.slane %v896_v51, 1 }
 0x15f   :  { %v935_v0 = vmul.f32 0.125, %v892_v52  ;;  %v898_v54 = vadd.f32 %v897_v53, %v896_v51 }
 0x161   :  { %v5061_v1 = vsub.f32 %v876_v36, %v935_v0  ;;  %v936_v55 = vmul.f32 0.125, %v898_v54 }
 0x163   :  { %v951_v56 = vmul.f32 %v5061_v1, %v5061_v1  ;;  %v5065_v57 = vsub.f32 %v877_v41, %v936_v55 }
 0x165   :  { %v959_v58 = vrot.slane %v951_v56, 4  ;;  %v952_v59 = vmul.f32 %v5065_v57, %v5065_v57 }
 0x167   :  { %v960_v60 = vadd.f32 %v959_v58, %v951_v56  ;;  %v965_v61 = vrot.slane %v952_v59, 4 }
 0x169   :  { %v961_v62 = vrot.slane %v960_v60, 2  ;;  %v966_v63 = vadd.f32 %v965_v61, %v952_v59 }
 0x16b   :  { %v962_v4 = vadd.f32 %v961_v62, %v960_v60  ;;  %v967_v5 = vrot.slane %v966_v63, 2 }
 0x16d   :  { %v963_v6 = vrot.slane %v962_v4, 1  ;;  %v968_v7 = vadd.f32 %v967_v5, %v966_v63 }
 0x16f   :  { %v964_v8 = vadd.f32 %v963_v6, %v962_v4  ;;  %v969_v9 = vrot.slane %v968_v7, 1 }
 0x171   :  { %v1007_v10 = vmul.f32 0.125, %v964_v8  ;;  %v970_v11 = vadd.f32 %v969_v9, %v968_v7 }
 0x173   :  { %v1015_v12 = vadd.f32 1e-05, %v1007_v10  ;;  %v1008_v13 = vmul.f32 0.125, %v970_v11  ;;  %v4937_v10 = vmov 1966171168  }
 0x174   :  { %v1044_v11 = vunpack.c.l.s4 %v4937_v10 }
 0x175   :  { %v1016_v14 = vadd.f32 1e-05, %v1008_v13  ;;  %4702 = vrsqrt.f32 %v1015_v12 }
 0x176   :  { %v1045_v12 = vunpack.c.0.s8 %v1044_v11 }
 0x177   :  { %4704 = vrsqrt.f32 %v1016_v14 }
 0x178   :  { %v5091_v14 = vsub.s32 %v1045_v12, %v5045_v23 }
 0x182   :  { %v5069_v15 = vpop.eup %4702 }
 0x184   :  { %v4705_v16 = vpop.eup %4704 }
 0x185   :  { %v1039_v17 = vcombine.low %v5069_v15, %v4705_v16 }
 0x18d   :  { %v623_v3 = vpop.f32.mrf.mxu0 }
 0x18e   :  { %v664_v20 = vpop.f32.mrf.mxu1 }
 0x18f   :  { %v665_v21 = vadd.f32 %v664_v20, %v623_v3  ;;  %v625_v24 = vpop.f32.mrf.mxu0 }
 0x190   :  { %v666_v25 = vpop.f32.mrf.mxu1 }
 0x191   :  { %v878_v29 = vmul.f32 %v847_v19, %v665_v21  ;;  %v667_v30 = vadd.f32 %v666_v25, %v625_v24  ;;  %v627_v31 = vpop.f32.mrf.mxu0  ;;  %v5094_v19 = vrot.slane %v1039_v17, %v5091_v14  ;;  %v5102_v21 = vsub.s32 4, %v5045_v23 }
 0x192   :  { %v668_v32 = vpop.f32.mrf.mxu1 }
 0x193   :  { %v899_v33 = vrot.slane %v878_v29, 4  ;;  %v879_v34 = vmul.f32 %v851_v22, %v667_v30  ;;  %v628_v35 = vpop.f32.mrf.mxu0  ;;  %v5105_v22 = vsub.s32 5, %v5045_v23  ;;  %v855_v24 = vrot.slane %v5050_v27, %v5102_v21 }
 0x194   :  { %v669_v36 = vpop.f32.mrf.mxu1 }
 0x195   :  { %v900_v37 = vadd.f32 %v899_v33, %v878_v29  ;;  %v905_v38 = vrot.slane %v879_v34, 4  ;;  %v859_v17 = vrot.slane %v5050_v27, %v5105_v22 }
 0x197   :  { %v901_v39 = vrot.slane %v900_v37, 2  ;;  %v906_v40 = vadd.f32 %v905_v38, %v879_v34 }
 0x199   :  { %v902_v41 = vadd.f32 %v901_v39, %v900_v37  ;;  %v907_v42 = vrot.slane %v906_v40, 2 }
 0x19b   :  { %v903_v43 = vrot.slane %v902_v41, 1  ;;  %v908_v44 = vadd.f32 %v907_v42, %v906_v40 }
 0x19d   :  { %v904_v45 = vadd.f32 %v903_v43, %v902_v41  ;;  %v909_v48 = vrot.slane %v908_v44, 1 }
 0x19f   :  { %v937_v46 = vmul.f32 0.125, %v904_v45  ;;  %v910_v49 = vadd.f32 %v909_v48, %v908_v44 }
 0x1a1   :  { %v5082_v47 = vsub.f32 %v878_v29, %v937_v46  ;;  %v938_v50 = vmul.f32 0.125, %v910_v49 }
 0x1a3   :  { %v953_v51 = vmul.f32 %v5082_v47, %v5082_v47  ;;  %v5086_v52 = vsub.f32 %v879_v34, %v938_v50 }
 0x1a5   :  { %v971_v53 = vrot.slane %v953_v51, 4  ;;  %v954_v0 = vmul.f32 %v5086_v52, %v5086_v52 }
 0x1a7   :  { %v972_v54 = vadd.f32 %v971_v53, %v953_v51  ;;  %v977_v55 = vrot.slane %v954_v0, 4 }
 0x1a9   :  { %v973_v56 = vrot.slane %v972_v54, 2  ;;  %v978_v58 = vadd.f32 %v977_v55, %v954_v0 }
 0x1ab   :  { %v974_v59 = vadd.f32 %v973_v56, %v972_v54  ;;  %v979_v60 = vrot.slane %v978_v58, 2 }
 0x1ad   :  { %v975_v61 = vrot.slane %v974_v59, 1  ;;  %v980_v62 = vadd.f32 %v979_v60, %v978_v58 }
 0x1af   :  { %v976_v63 = vadd.f32 %v975_v61, %v974_v59  ;;  %v981_v4 = vrot.slane %v980_v62, 1 }
 0x1b1   :  { %v1009_v5 = vmul.f32 0.125, %v976_v63  ;;  %v982_v6 = vadd.f32 %v981_v4, %v980_v62 }
 0x1b3   :  { %v1017_v7 = vadd.f32 1e-05, %v1009_v5  ;;  %v1010_v8 = vmul.f32 0.125, %v982_v6 }
 0x1b5   :  { %v1018_v9 = vadd.f32 1e-05, %v1010_v8  ;;  %4706 = vrsqrt.f32 %v1017_v7 }
 0x1b7   :  { %4708 = vrsqrt.f32 %v1018_v9 }
 0x1c2   :  { %v4707_v13 = vpop.eup %4706 }
 0x1c4   :  { %v4709_v15 = vpop.eup %4708 }
 0x1c5   :  { %v1040_v16 = vcombine.low %v4707_v13, %v4709_v15 }
 0x1c7   :  { %v5097_v3 = vrot.slane %v1040_v16, %v5091_v14 }
 0x1c9   :  { %v1071_v20 = vcombine.low %v5094_v19, %v5097_v3 }
 0x1cd   :  { %v705_v25 = vpop.f32.mrf.mxu0 }
 0x1ce   :  { %v746_v29 = vpop.f32.mrf.mxu1 }
 0x1cf   :  { %v747_v30 = vadd.f32 %v746_v29, %v705_v25  ;;  %v707_v31 = vpop.f32.mrf.mxu0 }
 0x1d0   :  { %v748_v32 = vpop.f32.mrf.mxu1 }
 0x1d1   :  { %v880_v33 = vmul.f32 %v855_v24, %v747_v30  ;;  %v749_v34 = vadd.f32 %v748_v32, %v707_v31  ;;  %v709_v35 = vpop.f32.mrf.mxu0  ;;  %v5120_v30 = vsub.s32 6, %v5045_v23 }
 0x1d2   :  { %v750_v36 = vpop.f32.mrf.mxu1 }
 0x1d3   :  { %v911_v37 = vrot.slane %v880_v33, 4  ;;  %v881_v38 = vmul.f32 %v859_v17, %v749_v34  ;;  %v710_v39 = vpop.f32.mrf.mxu0  ;;  %v5123_v17 = vsub.s32 7, %v5045_v23  ;;  %v863_v31 = vrot.slane %v5050_v27, %v5120_v30 }
 0x1d4   :  { %v751_v40 = vpop.f32.mrf.mxu1 }
 0x1d5   :  { %v912_v41 = vadd.f32 %v911_v37, %v880_v33  ;;  %v917_v42 = vrot.slane %v881_v38, 4  ;;  %v867_v35 = vrot.slane %v5050_v27, %v5123_v17 }
 0x1d7   :  { %v913_v43 = vrot.slane %v912_v41, 2  ;;  %v918_v44 = vadd.f32 %v917_v42, %v881_v38 }
 0x1d9   :  { %v914_v45 = vadd.f32 %v913_v43, %v912_v41  ;;  %v919_v48 = vrot.slane %v918_v44, 2 }
 0x1db   :  { %v915_v46 = vrot.slane %v914_v45, 1  ;;  %v920_v49 = vadd.f32 %v919_v48, %v918_v44 }
 0x1dd   :  { %v916_v50 = vadd.f32 %v915_v46, %v914_v45  ;;  %v921_v51 = vrot.slane %v920_v49, 1 }
 0x1df   :  { %v939_v53 = vmul.f32 0.125, %v916_v50  ;;  %v922_v0 = vadd.f32 %v921_v51, %v920_v49 }
 0x1e1   :  { %v5111_v54 = vsub.f32 %v880_v33, %v939_v53  ;;  %v940_v55 = vmul.f32 0.125, %v922_v0 }
 0x1e3   :  { %v955_v56 = vmul.f32 %v5111_v54, %v5111_v54  ;;  %v5115_v58 = vsub.f32 %v881_v38, %v940_v55 }
 0x1e5   :  { %v983_v59 = vrot.slane %v955_v56, 4  ;;  %v956_v60 = vmul.f32 %v5115_v58, %v5115_v58 }
 0x1e7   :  { %v984_v61 = vadd.f32 %v983_v59, %v955_v56  ;;  %v989_v62 = vrot.slane %v956_v60, 4 }
 0x1e9   :  { %v985_v63 = vrot.slane %v984_v61, 2  ;;  %v990_v4 = vadd.f32 %v989_v62, %v956_v60 }
 0x1eb   :  { %v986_v5 = vadd.f32 %v985_v63, %v984_v61  ;;  %v991_v6 = vrot.slane %v990_v4, 2 }
 0x1ed   :  { %v987_v7 = vrot.slane %v986_v5, 1  ;;  %v992_v8 = vadd.f32 %v991_v6, %v990_v4 }
 0x1ef   :  { %v988_v9 = vadd.f32 %v987_v7, %v986_v5  ;;  %v993_v10 = vrot.slane %v992_v8, 1 }
 0x1f1   :  { %v1011_v11 = vmul.f32 0.125, %v988_v9  ;;  %v994_v12 = vadd.f32 %v993_v10, %v992_v8 }
 0x1f3   :  { %v1019_v13 = vadd.f32 1e-05, %v1011_v11  ;;  %v1012_v15 = vmul.f32 0.125, %v994_v12 }
 0x1f5   :  { %v1020_v16 = vadd.f32 1e-05, %v1012_v15  ;;  %4710 = vrsqrt.f32 %v1019_v13 }
 0x1f7   :  { %4712 = vrsqrt.f32 %v1020_v16 }
 0x202   :  { %v4711_v24 = vpop.eup %4710 }
 0x204   :  { %v4713_v25 = vpop.eup %4712 }
 0x205   :  { %v1041_v29 = vcombine.low %v4711_v24, %v4713_v25 }
 0x20d   :  { %v787_v32 = vpop.f32.mrf.mxu0 }
 0x20e   :  { %v828_v33 = vpop.f32.mrf.mxu1 }
 0x20f   :  { %v829_v34 = vadd.f32 %v828_v33, %v787_v32  ;;  %v789_v36 = vpop.f32.mrf.mxu0 }
 0x210   :  { %v830_v37 = vpop.f32.mrf.mxu1 }
 0x211   :  { %v882_v38 = vmul.f32 %v863_v31, %v829_v34  ;;  %v831_v39 = vadd.f32 %v830_v37, %v789_v36  ;;  %v791_v40 = vpop.f32.mrf.mxu0  ;;  %v1063_v37 = vrot.slane %v1041_v29, %v5091_v14 }
 0x212   :  { %v832_v41 = vpop.f32.mrf.mxu1  ;;  %v886_v40 = vld [vmem:[#allocation9 + $0x1] ss:$4 sm:$0xff] }
 0x213   :  { %v923_v42 = vrot.slane %v882_v38, 4  ;;  %v883_v43 = vmul.f32 %v867_v35, %v831_v39  ;;  %v792_v44 = vpop.f32.mrf.mxu0  ;;  %v1079_v41 = vrot.slane %v1071_v20, %v5091_v14  ;;  %v1155_v29 = vrot.slane %v886_v40, %v5076_v2 }
 0x214   :  { %v833_v23 = vpop.f32.mrf.mxu1  ;;  %v1167_v19 = vrot.slane %v886_v40, %v5120_v30  ;;  %v1171_v3 = vrot.slane %v886_v40, %v5123_v17 }
 0x215   :  { %v924_v45 = vadd.f32 %v923_v42, %v882_v38  ;;  %v929_v48 = vrot.slane %v883_v43, 4  ;;  %v1143_v23 = vrot.slane %v886_v40, %v5048_v26 }
 0x217   :  { %v925_v46 = vrot.slane %v924_v45, 2  ;;  %v930_v49 = vadd.f32 %v929_v48, %v883_v43  ;;  %v1151_v48 = vrot.slane %v886_v40, %v5073_v18 }
 0x219   :  { %v926_v50 = vadd.f32 %v925_v46, %v924_v45  ;;  %v931_v51 = vrot.slane %v930_v49, 2  ;;  %v1147_v45 = vrot.slane %v886_v40, %v5053_v28 }
 0x21b   :  { %v927_v53 = vrot.slane %v926_v50, 1  ;;  %v932_v0 = vadd.f32 %v931_v51, %v930_v49  ;;  %v1159_v49 = vrot.slane %v886_v40, %v5102_v21 }
 0x21d   :  { %v928_v55 = vadd.f32 %v927_v53, %v926_v50  ;;  %v933_v27 = vrot.slane %v932_v0, 1  ;;  %v1163_v50 = vrot.slane %v886_v40, %v5105_v22 }
 0x21f   :  { %v941_v56 = vmul.f32 0.125, %v928_v55  ;;  %v934_v59 = vadd.f32 %v933_v27, %v932_v0 }
 0x221   :  { %v949_v60 = vsub.f32 %v882_v38, %v941_v56  ;;  %v942_v61 = vmul.f32 0.125, %v934_v59 }
 0x223   :  { %v957_v62 = vmul.f32 %v949_v60, %v949_v60  ;;  %v950_v63 = vsub.f32 %v883_v43, %v942_v61  ;;  %v884_v43 = vld [vmem:[#allocation9] ss:$4 sm:$0xff] }
 0x225   :  { %v995_v4 = vrot.slane %v957_v62, 4  ;;  %v958_v5 = vmul.f32 %v950_v63, %v950_v63 }
 0x227   :  { %v996_v6 = vadd.f32 %v995_v4, %v957_v62  ;;  %v1001_v7 = vrot.slane %v958_v5, 4 }
 0x229   :  { %v997_v8 = vrot.slane %v996_v6, 2  ;;  %v1002_v9 = vadd.f32 %v1001_v7, %v958_v5 }
 0x22b   :  { %v998_v10 = vadd.f32 %v997_v8, %v996_v6  ;;  %v1003_v11 = vrot.slane %v1002_v9, 2 }
 0x22d   :  { %v999_v12 = vrot.slane %v998_v10, 1  ;;  %v1004_v13 = vadd.f32 %v1003_v11, %v1002_v9 }
 0x22f   :  { %v1000_v15 = vadd.f32 %v999_v12, %v998_v10  ;;  %v1005_v16 = vrot.slane %v1004_v13, 1 }
 0x231   :  { %v1013_v24 = vmul.f32 0.125, %v1000_v15  ;;  %v1006_v25 = vadd.f32 %v1005_v16, %v1004_v13 }
 0x233   :  { %v1021_v31 = vadd.f32 1e-05, %v1013_v24  ;;  %v1014_v32 = vmul.f32 0.125, %v1006_v25 }
 0x235   :  { %v1022_v33 = vadd.f32 1e-05, %v1014_v32  ;;  %4714 = vrsqrt.f32 %v1021_v31 }
 0x237   :  { %4716 = vrsqrt.f32 %v1022_v33 }
 0x242   :  { %v4715_v34 = vpop.eup %4714 }
 0x244   :  { %v4717_v35 = vpop.eup %4716 }
 0x245   :  { %v1042_v36 = vcombine.low %v4715_v34, %v4717_v35 }
 0x247   :  { %v1070_v38 = vrot.slane %v1042_v36, %v5091_v14 }
 0x249   :  { %v1072_v39 = vcombine.low %v1063_v37, %v1070_v38 }
 0x24b   :  { %v1086_v42 = vrot.slane %v1072_v39, %v5091_v14 }
 0x24d   :  { %v1087_v44 = vcombine.low %v1079_v41, %v1086_v42 }
 0x24f   :  { %v1089_v46 = vmul.f32 %v1087_v44, %v884_v43 }
 0x251   :  { %v1094_v20 = vrot.slane %v1089_v46, %v5048_v26  ;;  %v1098_v51 = vrot.slane %v1089_v46, %v5053_v28  ;;  %v1102_v53 = vrot.slane %v1089_v46, %v5073_v18  ;;  %v1106_v0 = vrot.slane %v1089_v46, %v5076_v2 }
 0x252   :  { %v1110_v55 = vrot.slane %v1089_v46, %v5102_v21  ;;  %v1114_v27 = vrot.slane %v1089_v46, %v5105_v22  ;;  %v1118_v56 = vrot.slane %v1089_v46, %v5120_v30  ;;  %v1122_v59 = vrot.slane %v1089_v46, %v5123_v17 }
 0x253   :  { %v1131_v61 = vmul.f32 %v1094_v20, %v5061_v1  ;;  %v1132_v62 = vmul.f32 %v1098_v51, %v5065_v57  ;;  %v1133_v4 = vmul.f32 %v1102_v53, %v5082_v47  ;;  %v1134_v5 = vmul.f32 %v1106_v0, %v5086_v52 }
 0x254   :  { %v1135_v6 = vmul.f32 %v1110_v55, %v5111_v54  ;;  %v1136_v7 = vmul.f32 %v1114_v27, %v5115_v58  ;;  %v1137_v8 = vmul.f32 %v1118_v56, %v949_v60  ;;  %v1138_v9 = vmul.f32 %v1122_v59, %v950_v63 }
 0x255   :  { %v1180_v10 = vadd.f32 %v1143_v23, %v1131_v61  ;;  %v1181_v11 = vadd.f32 %v1147_v45, %v1132_v62  ;;  %v1182_v12 = vadd.f32 %v1151_v48, %v1133_v4  ;;  %v1183_v13 = vadd.f32 %v1155_v29, %v1134_v5 }
 0x256   :  { %v1184_v15 = vadd.f32 %v1159_v49, %v1135_v6  ;;  %v1185_v16 = vadd.f32 %v1163_v50, %v1136_v7  ;;  %v1186_v24 = vadd.f32 %v1167_v19, %v1137_v8  ;;  %v1187_v1 = vadd.f32 %v1171_v3, %v1138_v9 }
 0x257   :  { %v1188_v25 = vmax.f32 %v1180_v10, 0.0  ;;  %v1189_v57 = vmax.f32 %v1181_v11, 0.0  ;;  %v1190_v31 = vmax.f32 %v1182_v12, 0.0  ;;  %v1191_v47 = vmax.f32 %v1183_v13, 0.0 }
 0x258   :  { %v1192_v32 = vmax.f32 %v1184_v15, 0.0  ;;  %v1193_v52 = vmax.f32 %v1185_v16, 0.0  ;;  %v1194_v33 = vmax.f32 %v1186_v24, 0.0  ;;  %v1195_v54 = vmax.f32 %v1187_v1, 0.0 }
 0x259   :  { %v5158_v34 = vpack.c.bf16 %v1188_v25, %v1188_v25  ;;  %v5160_v58 = vpack.c.bf16 %v1189_v57, %v1189_v57  ;;  %v5162_v60 = vpack.c.bf16 %v1190_v31, %v1190_v31  ;;  %v5164_v63 = vpack.c.bf16 %v1191_v47, %v1191_v47 }
 0x25a   :  { %v5166_v35 = vpack.c.bf16 %v1192_v32, %v1192_v32  ;;  %v5168_v36 = vpack.c.bf16 %v1193_v52, %v1193_v52  ;;  %v5170_v37 = vpack.c.bf16 %v1194_v33, %v1194_v33  ;;  %v5172_v38 = vpack.c.bf16 %v1195_v54, %v1195_v54 }
 0x25b   :  { %4918 = dma.done.wait [#allocation8 + $0x1], 16384 }
 0x25c   :  { %4919 = vsyncadd [#allocation8 + $0x1], 4294950912  ;;  %1626 = vmatprep.mubr.bf16.mxu0 %v5160_v58  ;;  %1667 = vmatprep.mubr.bf16.mxu1 %v5164_v63  ;;  %v1221_v39 = vld [vmem:[#allocation3 + $0x68] sm:$0xff]  ;;  %v1220_v41 = vld [vmem:[#allocation3 + $0x60] sm:$0xff] }
 0x25d   :  { %v1253_v40 = vld [vmem:[#allocation3 + $0x168] sm:$0xff]  ;;  %v1361_v42 = vunpack.c.l.s8.bf16 %v1221_v39  ;;  %v1365_v43 = vunpack.c.h.s8.bf16 %v1221_v39  ;;  %v1252_v45 = vld [vmem:[#allocation3 + $0x160] sm:$0xff]  ;;  %v1364_v48 = vunpack.c.h.s8.bf16 %v1220_v41  ;;  %v1360_v50 = vunpack.c.l.s8.bf16 %v1220_v41 }
 0x25e   :  { %v1425_v44 = vunpack.c.l.s8.bf16 %v1253_v40  ;;  %v1429_v23 = vunpack.c.h.s8.bf16 %v1253_v40  ;;  %v1428_v29 = vunpack.c.h.s8.bf16 %v1252_v45  ;;  %v1217_v46 = vld [vmem:[#allocation3 + $0x48] sm:$0xff]  ;;  %v1424_v19 = vunpack.c.l.s8.bf16 %v1252_v45  ;;  %v1216_v51 = vld [vmem:[#allocation3 + $0x40] sm:$0xff] }
 0x25f   :  { %v1249_v49 = vld [vmem:[#allocation3 + $0x148] sm:$0xff]  ;;  %1594 = vmatprep.subr.bf16.mxu0 %v1365_v43  ;;  %v1357_v3 = vunpack.c.h.s8.bf16 %v1217_v46  ;;  %v1248_v53 = vld [vmem:[#allocation3 + $0x140] sm:$0xff]  ;;  %v1356_v0 = vunpack.c.h.s8.bf16 %v1216_v51  ;;  %v1353_v27 = vunpack.c.l.s8.bf16 %v1217_v46  ;;  %v1352_v62 = vunpack.c.l.s8.bf16 %v1216_v51 }
 0x260   :  { %1635 = vmatprep.subr.bf16.mxu1 %v1429_v23  ;;  %1595 = vmatpush1.bf16.msra.mxu0 %v1364_v48  ;;  %v1421_v20 = vunpack.c.h.s8.bf16 %v1249_v49  ;;  %v1420_v55 = vunpack.c.h.s8.bf16 %v1248_v53  ;;  %v1417_v56 = vunpack.c.l.s8.bf16 %v1249_v49  ;;  %v1213_v59 = vld [vmem:[#allocation3 + $0x28] sm:$0xff]  ;;  %v1416_v4 = vunpack.c.l.s8.bf16 %v1248_v53  ;;  %v1212_v7 = vld [vmem:[#allocation3 + $0x20] sm:$0xff] }
 0x261   :  { %1636 = vmatpush1.bf16.msra.mxu1 %v1428_v29  ;;  %1596 = vmatprep.subr.bf16.mxu0 %v1361_v42  ;;  %v1245_v61 = vld [vmem:[#allocation3 + $0x128] sm:$0xff]  ;;  %v1349_v5 = vunpack.c.h.s8.bf16 %v1213_v59  ;;  %v1244_v8 = vld [vmem:[#allocation3 + $0x120] sm:$0xff]  ;;  %v1348_v9 = vunpack.c.h.s8.bf16 %v1212_v7  ;;  %v1345_v11 = vunpack.c.l.s8.bf16 %v1213_v59  ;;  %v1344_v16 = vunpack.c.l.s8.bf16 %v1212_v7 }
 0x262   :  { %1637 = vmatprep.subr.bf16.mxu1 %v1425_v44  ;;  %v1413_v6 = vunpack.c.h.s8.bf16 %v1245_v61  ;;  %v1412_v10 = vunpack.c.h.s8.bf16 %v1244_v8  ;;  %v1409_v12 = vunpack.c.l.s8.bf16 %v1245_v61  ;;  %v1209_v13 = vld [vmem:[#allocation3 + $0x8] sm:$0xff]  ;;  %v1408_v24 = vunpack.c.l.s8.bf16 %v1244_v8  ;;  %v1208_v57 = vld [vmem:[#allocation3] sm:$0xff] }
 0x263   :  { %v1241_v15 = vld [vmem:[#allocation3 + $0x108] sm:$0xff]  ;;  %v1341_v1 = vunpack.c.h.s8.bf16 %v1209_v13  ;;  %v1240_v31 = vld [vmem:[#allocation3 + $0x100] sm:$0xff]  ;;  %v1340_v47 = vunpack.c.h.s8.bf16 %v1208_v57  ;;  %v1337_v52 = vunpack.c.l.s8.bf16 %v1209_v13  ;;  %v1336_v40 = vunpack.c.l.s8.bf16 %v1208_v57 }
 0x264   :  { %1597 = vmatpush1.bf16.msra.mxu0 %v1360_v50  ;;  %v1405_v25 = vunpack.c.h.s8.bf16 %v1241_v15  ;;  %v1404_v32 = vunpack.c.h.s8.bf16 %v1240_v31  ;;  %v1401_v33 = vunpack.c.l.s8.bf16 %v1241_v15  ;;  %v1237_v54 = vld [vmem:[#allocation3 + $0xe8] sm:$0xff]  ;;  %v1400_v41 = vunpack.c.l.s8.bf16 %v1240_v31  ;;  %v1236_v44 = vld [vmem:[#allocation3 + $0xe0] sm:$0xff] }
 0x265   :  { %1638 = vmatpush1.bf16.msra.mxu1 %v1424_v19  ;;  %1598 = vmatprep.subr.bf16.mxu0 %v1357_v3  ;;  %v1269_v39 = vld [vmem:[#allocation3 + $0x1e8] sm:$0xff]  ;;  %v1397_v42 = vunpack.c.h.s8.bf16 %v1237_v54  ;;  %v1268_v23 = vld [vmem:[#allocation3 + $0x1e0] sm:$0xff]  ;;  %v1396_v45 = vunpack.c.h.s8.bf16 %v1236_v44  ;;  %v1393_v29 = vunpack.c.l.s8.bf16 %v1237_v54  ;;  %v1392_v19 = vunpack.c.l.s8.bf16 %v1236_v44 }
 0x266   :  { %1639 = vmatprep.subr.bf16.mxu1 %v1421_v20  ;;  %v1461_v43 = vunpack.c.h.s8.bf16 %v1269_v39  ;;  %v1460_v48 = vunpack.c.h.s8.bf16 %v1268_v23  ;;  %v1457_v46 = vunpack.c.l.s8.bf16 %v1269_v39  ;;  %v1233_v49 = vld [vmem:[#allocation3 + $0xc8] sm:$0xff]  ;;  %v1456_v3 = vunpack.c.l.s8.bf16 %v1268_v23  ;;  %v1232_v53 = vld [vmem:[#allocation3 + $0xc0] sm:$0xff] }
 0x267   :  { %v1265_v50 = vld [vmem:[#allocation3 + $0x1c8] sm:$0xff]  ;;  %v1389_v20 = vunpack.c.h.s8.bf16 %v1233_v49  ;;  %v1228_v8 = vld [vmem:[#allocation3 + $0xa0] sm:$0xff] }
 0x268   :  { %1599 = vmatpush1.bf16.msra.mxu0 %v1356_v0  ;;  %v1453_v51 = vunpack.c.h.s8.bf16 %v1265_v50  ;;  %v1264_v0 = vld [vmem:[#allocation3 + $0x1c0] sm:$0xff]  ;;  %v1449_v59 = vunpack.c.l.s8.bf16 %v1265_v50  ;;  %v1229_v61 = vld [vmem:[#allocation3 + $0xa8] sm:$0xff] }
 0x269   :  { %1640 = vmatpush1.bf16.msra.mxu1 %v1420_v55  ;;  %1600 = vmatprep.subr.bf16.mxu0 %v1353_v27  ;;  %v1388_v55 = vunpack.c.h.s8.bf16 %v1232_v53  ;;  %v1452_v27 = vunpack.c.h.s8.bf16 %v1264_v0  ;;  %v1225_v15 = vld [vmem:[#allocation3 + $0x88] sm:$0xff]  ;;  %v1224_v31 = vld [vmem:[#allocation3 + $0x80] sm:$0xff] }
 0x26a   :  { %1641 = vmatprep.subr.bf16.mxu1 %v1417_v56  ;;  %v1385_v56 = vunpack.c.l.s8.bf16 %v1233_v49  ;;  %v1285_v39 = vld [vmem:[#allocation3 + $0x268] sm:$0xff]  ;;  %v1284_v23 = vld [vmem:[#allocation3 + $0x260] sm:$0xff] }
 0x26b   :  { %v1281_v50 = vld [vmem:[#allocation3 + $0x248] sm:$0xff] }
 0x26c   :  { %1601 = vmatpush1.bf16.msra.mxu0 %v1352_v62  ;;  %v1261_v62 = vld [vmem:[#allocation3 + $0x1a8] sm:$0xff] }
 0x26d   :  { %1642 = vmatpush1.bf16.msra.mxu1 %v1416_v4  ;;  %1602 = vmatprep.subr.bf16.mxu0 %v1349_v5  ;;  %v1384_v4 = vunpack.c.l.s8.bf16 %v1232_v53  ;;  %v1448_v5 = vunpack.c.l.s8.bf16 %v1264_v0  ;;  %v1445_v7 = vunpack.c.h.s8.bf16 %v1261_v62  ;;  %v1441_v13 = vunpack.c.l.s8.bf16 %v1261_v62  ;;  %v1280_v0 = vld [vmem:[#allocation3 + $0x240] sm:$0xff]  ;;  %v1277_v62 = vld [vmem:[#allocation3 + $0x228] sm:$0xff] }
 0x26e   :  { %1643 = vmatprep.subr.bf16.mxu1 %v1413_v6  ;;  %v1381_v6 = vunpack.c.h.s8.bf16 %v1229_v61 }
 0x270   :  { %1603 = vmatpush1.bf16.msra.mxu0 %v1348_v9  ;;  %v1260_v9 = vld [vmem:[#allocation3 + $0x1a0] sm:$0xff] }
 0x271   :  { %1644 = vmatpush1.bf16.msra.mxu1 %v1412_v10  ;;  %1604 = vmatprep.subr.bf16.mxu0 %v1345_v11  ;;  %v1380_v10 = vunpack.c.h.s8.bf16 %v1228_v8  ;;  %v1444_v11 = vunpack.c.h.s8.bf16 %v1260_v9 }
 0x272   :  { %1645 = vmatprep.subr.bf16.mxu1 %v1409_v12  ;;  %v1377_v12 = vunpack.c.l.s8.bf16 %v1229_v61 }
 0x274   :  { %1605 = vmatpush1.bf16.msra.mxu0 %v1344_v16  ;;  %v1257_v16 = vld [vmem:[#allocation3 + $0x188] sm:$0xff] }
 0x275   :  { %1646 = vmatpush1.bf16.msra.mxu1 %v1408_v24  ;;  %1606 = vmatprep.subr.bf16.mxu0 %v1341_v1  ;;  %v1376_v24 = vunpack.c.l.s8.bf16 %v1228_v8  ;;  %v1440_v1 = vunpack.c.l.s8.bf16 %v1260_v9  ;;  %v1437_v57 = vunpack.c.h.s8.bf16 %v1257_v16  ;;  %v1433_v54 = vunpack.c.l.s8.bf16 %v1257_v16  ;;  %v1276_v9 = vld [vmem:[#allocation3 + $0x220] sm:$0xff]  ;;  %v1273_v16 = vld [vmem:[#allocation3 + $0x208] sm:$0xff] }
 0x276   :  { %1647 = vmatprep.subr.bf16.mxu1 %v1405_v25  ;;  %v1373_v25 = vunpack.c.h.s8.bf16 %v1225_v15 }
 0x278   :  { %1607 = vmatpush1.bf16.msra.mxu0 %v1340_v47  ;;  %v1256_v47 = vld [vmem:[#allocation3 + $0x180] sm:$0xff] }
 0x279   :  { %1648 = vmatpush1.bf16.msra.mxu1 %v1404_v32  ;;  %1608 = vmatprep.subr.bf16.mxu0 %v1337_v52  ;;  %v1372_v32 = vunpack.c.h.s8.bf16 %v1224_v31  ;;  %v1436_v52 = vunpack.c.h.s8.bf16 %v1256_v47 }
 0x27a   :  { %1649 = vmatprep.subr.bf16.mxu1 %v1401_v33  ;;  %v1369_v33 = vunpack.c.l.s8.bf16 %v1225_v15 }
 0x27c   :  { %1609 = vmatpush1.bf16.msra.mxu0 %v1336_v40  ;;  %v1317_v40 = vld [vmem:[#allocation3 + $0x368] sm:$0xff] }
 0x27d   :  { %1650 = vmatpush1.bf16.msra.mxu1 %v1400_v41  ;;  %1610 = vmatprep.subr.bf16.mxu0 %v1397_v42  ;;  %v1368_v41 = vunpack.c.l.s8.bf16 %v1224_v31  ;;  %v1432_v42 = vunpack.c.l.s8.bf16 %v1256_v47  ;;  %v1557_v44 = vunpack.c.h.s8.bf16 %v1317_v40  ;;  %v1553_v49 = vunpack.c.l.s8.bf16 %v1317_v40  ;;  %v1272_v47 = vld [vmem:[#allocation3 + $0x200] sm:$0xff]  ;;  %v1301_v40 = vld [vmem:[#allocation3 + $0x2e8] sm:$0xff] }
 0x27e   :  { %1651 = vmatprep.subr.bf16.mxu1 %v1461_v43  ;;  %v1493_v43 = vunpack.c.h.s8.bf16 %v1285_v39 }
 0x280   :  { %1611 = vmatpush2.bf16.msra.mxu0 %v1396_v45  ;;  %v1316_v45 = vld [vmem:[#allocation3 + $0x360] sm:$0xff] }
 0x281   :  { %1652 = vmatpush2.bf16.msra.mxu1 %v1460_v48  ;;  %1612 = vmatprep.subr.bf16.mxu0 %v1393_v29  ;;  %v1492_v48 = vunpack.c.h.s8.bf16 %v1284_v23  ;;  %v1556_v29 = vunpack.c.h.s8.bf16 %v1316_v45 }
 0x282   :  { %1653 = vmatprep.subr.bf16.mxu1 %v1457_v46  ;;  %v1489_v46 = vunpack.c.l.s8.bf16 %v1285_v39 }
 0x284   :  { %1613 = vmatpush2.bf16.msra.mxu0 %v1392_v19  ;;  %v1313_v19 = vld [vmem:[#allocation3 + $0x348] sm:$0xff] }
 0x285   :  { %1654 = vmatpush2.bf16.msra.mxu1 %v1456_v3  ;;  %1614 = vmatprep.subr.bf16.mxu0 %v1389_v20  ;;  %v1488_v3 = vunpack.c.l.s8.bf16 %v1284_v23  ;;  %v1552_v20 = vunpack.c.l.s8.bf16 %v1316_v45  ;;  %v1549_v53 = vunpack.c.h.s8.bf16 %v1313_v19  ;;  %v1545_v61 = vunpack.c.l.s8.bf16 %v1313_v19  ;;  %v1300_v45 = vld [vmem:[#allocation3 + $0x2e0] sm:$0xff]  ;;  %v1297_v19 = vld [vmem:[#allocation3 + $0x2c8] sm:$0xff] }
 0x286   :  { %1655 = vmatprep.subr.bf16.mxu1 %v1453_v51  ;;  %v1485_v51 = vunpack.c.h.s8.bf16 %v1281_v50 }
 0x288   :  { %1615 = vmatpush2.bf16.msra.mxu0 %v1388_v55  ;;  %v1312_v55 = vld [vmem:[#allocation3 + $0x340] sm:$0xff] }
 0x289   :  { %1656 = vmatpush2.bf16.msra.mxu1 %v1452_v27  ;;  %1616 = vmatprep.subr.bf16.mxu0 %v1385_v56  ;;  %v1484_v27 = vunpack.c.h.s8.bf16 %v1280_v0  ;;  %v1548_v56 = vunpack.c.h.s8.bf16 %v1312_v55 }
 0x28a   :  { %1657 = vmatprep.subr.bf16.mxu1 %v1449_v59  ;;  %v1481_v59 = vunpack.c.l.s8.bf16 %v1281_v50 }
 0x28c   :  { %1617 = vmatpush2.bf16.msra.mxu0 %v1384_v4  ;;  %v1309_v4 = vld [vmem:[#allocation3 + $0x328] sm:$0xff] }
 0x28d   :  { %1658 = vmatpush2.bf16.msra.mxu1 %v1448_v5  ;;  %1618 = vmatprep.subr.bf16.mxu0 %v1381_v6  ;;  %v1480_v5 = vunpack.c.l.s8.bf16 %v1280_v0  ;;  %v1544_v6 = vunpack.c.l.s8.bf16 %v1312_v55  ;;  %v1541_v8 = vunpack.c.h.s8.bf16 %v1309_v4  ;;  %v1537_v15 = vunpack.c.l.s8.bf16 %v1309_v4  ;;  %v1296_v55 = vld [vmem:[#allocation3 + $0x2c0] sm:$0xff]  ;;  %v1293_v4 = vld [vmem:[#allocation3 + $0x2a8] sm:$0xff] }
 0x28e   :  { %1659 = vmatprep.subr.bf16.mxu1 %v1445_v7  ;;  %v1477_v7 = vunpack.c.h.s8.bf16 %v1277_v62 }
 0x290   :  { %1619 = vmatpush2.bf16.msra.mxu0 %v1380_v10  ;;  %v1308_v10 = vld [vmem:[#allocation3 + $0x320] sm:$0xff] }
 0x291   :  { %1660 = vmatpush2.bf16.msra.mxu1 %v1444_v11  ;;  %1620 = vmatprep.subr.bf16.mxu0 %v1377_v12  ;;  %v1476_v11 = vunpack.c.h.s8.bf16 %v1276_v9  ;;  %v1540_v12 = vunpack.c.h.s8.bf16 %v1308_v10 }
 0x292   :  { %1661 = vmatprep.subr.bf16.mxu1 %v1441_v13  ;;  %v1473_v13 = vunpack.c.l.s8.bf16 %v1277_v62 }
 0x294   :  { %1621 = vmatpush2.bf16.msra.mxu0 %v1376_v24  ;;  %v1305_v24 = vld [vmem:[#allocation3 + $0x308] sm:$0xff] }
 0x295   :  { %1662 = vmatpush2.bf16.msra.mxu1 %v1440_v1  ;;  %1622 = vmatprep.subr.bf16.mxu0 %v1373_v25  ;;  %v1472_v1 = vunpack.c.l.s8.bf16 %v1276_v9  ;;  %v1536_v25 = vunpack.c.l.s8.bf16 %v1308_v10  ;;  %v1533_v31 = vunpack.c.h.s8.bf16 %v1305_v24  ;;  %v1529_v39 = vunpack.c.l.s8.bf16 %v1305_v24  ;;  %v1292_v10 = vld [vmem:[#allocation3 + $0x2a0] sm:$0xff]  ;;  %v1289_v24 = vld [vmem:[#allocation3 + $0x288] sm:$0xff] }
 0x296   :  { %1663 = vmatprep.subr.bf16.mxu1 %v1437_v57  ;;  %v1469_v57 = vunpack.c.h.s8.bf16 %v1273_v16 }
 0x298   :  { %1623 = vmatpush2.bf16.msra.mxu0 %v1372_v32  ;;  %v1304_v32 = vld [vmem:[#allocation3 + $0x300] sm:$0xff] }
 0x299   :  { %1664 = vmatpush2.bf16.msra.mxu1 %v1436_v52  ;;  %1624 = vmatprep.subr.bf16.mxu0 %v1369_v33  ;;  %v1468_v52 = vunpack.c.h.s8.bf16 %v1272_v47  ;;  %v1532_v33 = vunpack.c.h.s8.bf16 %v1304_v32 }
 0x29a   :  { %1665 = vmatprep.subr.bf16.mxu1 %v1433_v54  ;;  %v1465_v54 = vunpack.c.l.s8.bf16 %v1273_v16 }
 0x29c   :  { %1625 = vmatpush2.bf16.msra.mxu0 %v1368_v41  ;;  %v1333_v41 = vld [vmem:[#allocation3 + $0x3e8] sm:$0xff] }
 0x29d   :  { %1666 = vmatpush2.bf16.msra.mxu1 %v1432_v42  ;;  %1676 = vmatprep.subr.bf16.mxu0 %v1493_v43  ;;  %v1464_v42 = vunpack.c.l.s8.bf16 %v1272_v47  ;;  %v1528_v43 = vunpack.c.l.s8.bf16 %v1304_v32  ;;  %v1589_v23 = vunpack.c.h.s8.bf16 %v1333_v41  ;;  %v1585_v50 = vunpack.c.l.s8.bf16 %v1333_v41  ;;  %v1288_v32 = vld [vmem:[#allocation3 + $0x280] sm:$0xff]  ;;  %v1223_v41 = vld [vmem:[#allocation3 + $0x78] sm:$0xff] }
 0x29e   :  { %1717 = vmatprep.subr.bf16.mxu1 %v1557_v44  ;;  %v1525_v44 = vunpack.c.h.s8.bf16 %v1301_v40 }
 0x29f   :  { %1627 = vmatmul.mubr.bf16.vlgmr.msra.gmra.mxu0 %v5158_v34 }
 0x2a0   :  { %1668 = vmatmul.mubr.bf16.vlgmr.msra.gmra.mxu1 %v5162_v60  ;;  %1677 = vmatpush1.bf16.msra.mxu0 %v1492_v48  ;;  %v1332_v48 = vld [vmem:[#allocation3 + $0x3e0] sm:$0xff] }
 0x2a1   :  { %1718 = vmatpush1.bf16.msra.mxu1 %v1556_v29  ;;  %1678 = vmatprep.subr.bf16.mxu0 %v1489_v46  ;;  %v1524_v29 = vunpack.c.h.s8.bf16 %v1300_v45  ;;  %v1588_v46 = vunpack.c.h.s8.bf16 %v1332_v48 }
 0x2a2   :  { %1719 = vmatprep.subr.bf16.mxu1 %v1553_v49  ;;  %1708 = vmatprep.mubr.bf16.mxu0 %v5168_v36  ;;  %v1521_v49 = vunpack.c.l.s8.bf16 %v1301_v40 }
 0x2a3   :  { %1749 = vmatprep.mubr.bf16.mxu1 %v5172_v38 }
 0x2a4   :  { %1679 = vmatpush1.bf16.msra.mxu0 %v1488_v3  ;;  %v1329_v3 = vld [vmem:[#allocation3 + $0x3c8] sm:$0xff] }
 0x2a5   :  { %1720 = vmatpush1.bf16.msra.mxu1 %v1552_v20  ;;  %1680 = vmatprep.subr.bf16.mxu0 %v1485_v51  ;;  %v1520_v20 = vunpack.c.l.s8.bf16 %v1300_v45  ;;  %v1584_v51 = vunpack.c.l.s8.bf16 %v1332_v48  ;;  %v1581_v0 = vunpack.c.h.s8.bf16 %v1329_v3  ;;  %v1577_v62 = vunpack.c.l.s8.bf16 %v1329_v3  ;;  %v1222_v48 = vld [vmem:[#allocation3 + $0x70] sm:$0xff]  ;;  %v1219_v3 = vld [vmem:[#allocation3 + $0x58] sm:$0xff] }
 0x2a6   :  { %1721 = vmatprep.subr.bf16.mxu1 %v1549_v53  ;;  %v1517_v53 = vunpack.c.h.s8.bf16 %v1297_v19 }
 0x2a8   :  { %1681 = vmatpush1.bf16.msra.mxu0 %v1484_v27  ;;  %v1328_v27 = vld [vmem:[#allocation3 + $0x3c0] sm:$0xff] }
 0x2a9   :  { %1722 = vmatpush1.bf16.msra.mxu1 %v1548_v56  ;;  %1682 = vmatprep.subr.bf16.mxu0 %v1481_v59  ;;  %v1516_v56 = vunpack.c.h.s8.bf16 %v1296_v55  ;;  %v1580_v59 = vunpack.c.h.s8.bf16 %v1328_v27 }
 0x2aa   :  { %1723 = vmatprep.subr.bf16.mxu1 %v1545_v61  ;;  %v1513_v61 = vunpack.c.l.s8.bf16 %v1297_v19 }
 0x2ac   :  { %1683 = vmatpush1.bf16.msra.mxu0 %v1480_v5  ;;  %v1325_v5 = vld [vmem:[#allocation3 + $0x3a8] sm:$0xff] }
 0x2ad   :  { %1724 = vmatpush1.bf16.msra.mxu1 %v1544_v6  ;;  %1684 = vmatprep.subr.bf16.mxu0 %v1477_v7  ;;  %v1512_v6 = vunpack.c.l.s8.bf16 %v1296_v55  ;;  %v1576_v7 = vunpack.c.l.s8.bf16 %v1328_v27  ;;  %v1573_v9 = vunpack.c.h.s8.bf16 %v1325_v5  ;;  %v1569_v16 = vunpack.c.l.s8.bf16 %v1325_v5  ;;  %v1218_v27 = vld [vmem:[#allocation3 + $0x50] sm:$0xff]  ;;  %v1215_v5 = vld [vmem:[#allocation3 + $0x38] sm:$0xff] }
 0x2ae   :  { %1725 = vmatprep.subr.bf16.mxu1 %v1541_v8  ;;  %v1509_v8 = vunpack.c.h.s8.bf16 %v1293_v4 }
 0x2b0   :  { %1685 = vmatpush1.bf16.msra.mxu0 %v1476_v11  ;;  %v1324_v11 = vld [vmem:[#allocation3 + $0x3a0] sm:$0xff] }
 0x2b1   :  { %1726 = vmatpush1.bf16.msra.mxu1 %v1540_v12  ;;  %1686 = vmatprep.subr.bf16.mxu0 %v1473_v13  ;;  %v1508_v12 = vunpack.c.h.s8.bf16 %v1292_v10  ;;  %v1572_v13 = vunpack.c.h.s8.bf16 %v1324_v11 }
 0x2b2   :  { %1727 = vmatprep.subr.bf16.mxu1 %v1537_v15  ;;  %v1505_v15 = vunpack.c.l.s8.bf16 %v1293_v4 }
 0x2b4   :  { %1687 = vmatpush1.bf16.msra.mxu0 %v1472_v1  ;;  %v1321_v1 = vld [vmem:[#allocation3 + $0x388] sm:$0xff] }
 0x2b5   :  { %1728 = vmatpush1.bf16.msra.mxu1 %v1536_v25  ;;  %1688 = vmatprep.subr.bf16.mxu0 %v1469_v57  ;;  %v1504_v25 = vunpack.c.l.s8.bf16 %v1292_v10  ;;  %v1568_v57 = vunpack.c.l.s8.bf16 %v1324_v11  ;;  %v1565_v47 = vunpack.c.h.s8.bf16 %v1321_v1  ;;  %v1561_v40 = vunpack.c.l.s8.bf16 %v1321_v1  ;;  %v1214_v10 = vld [vmem:[#allocation3 + $0x30] sm:$0xff] }
 0x2b6   :  { %1729 = vmatprep.subr.bf16.mxu1 %v1533_v31  ;;  %v1501_v31 = vunpack.c.h.s8.bf16 %v1289_v24  ;;  %v1350_v11 = vunpack.c.h.s8.bf16 %v1214_v10  ;;  %v1346_v1 = vunpack.c.l.s8.bf16 %v1214_v10  ;;  %v1262_v10 = vld [vmem:[#allocation3 + $0x1b0] sm:$0xff] }
 0x2b8   :  { %1689 = vmatpush1.bf16.msra.mxu0 %v1468_v52  ;;  %v1320_v52 = vld [vmem:[#allocation3 + $0x380] sm:$0xff] }
 0x2b9   :  { %1730 = vmatpush1.bf16.msra.mxu1 %v1532_v33  ;;  %1690 = vmatprep.subr.bf16.mxu0 %v1465_v54  ;;  %v1500_v33 = vunpack.c.h.s8.bf16 %v1288_v32  ;;  %v1564_v54 = vunpack.c.h.s8.bf16 %v1320_v52 }
 0x2ba   :  { %1731 = vmatprep.subr.bf16.mxu1 %v1529_v39  ;;  %v1497_v39 = vunpack.c.l.s8.bf16 %v1289_v24  ;;  %v1243_v24 = vld [vmem:[#allocation3 + $0x118] sm:$0xff] }
 0x2bc   :  { %1691 = vmatpush1.bf16.msra.mxu0 %v1464_v42  ;;  %v1255_v42 = vld [vmem:[#allocation3 + $0x178] sm:$0xff] }
 0x2bd   :  { %1732 = vmatpush1.bf16.msra.mxu1 %v1528_v43  ;;  %1692 = vmatprep.subr.bf16.mxu0 %v1525_v44  ;;  %v1496_v43 = vunpack.c.l.s8.bf16 %v1288_v32  ;;  %v1560_v44 = vunpack.c.l.s8.bf16 %v1320_v52  ;;  %v1431_v45 = vunpack.c.h.s8.bf16 %v1255_v42  ;;  %v1427_v19 = vunpack.c.l.s8.bf16 %v1255_v42  ;;  %v1242_v32 = vld [vmem:[#allocation3 + $0x110] sm:$0xff] }
 0x2be   :  { %1733 = vmatprep.subr.bf16.mxu1 %v1589_v23  ;;  %v1367_v23 = vunpack.c.h.s8.bf16 %v1223_v41 }
 0x2c0   :  { %1693 = vmatpush2.bf16.msra.mxu0 %v1524_v29  ;;  %v1254_v29 = vld [vmem:[#allocation3 + $0x170] sm:$0xff] }
 0x2c1   :  { %1734 = vmatpush2.bf16.msra.mxu1 %v1588_v46  ;;  %1694 = vmatprep.subr.bf16.mxu0 %v1521_v49  ;;  %v1366_v46 = vunpack.c.h.s8.bf16 %v1222_v48  ;;  %v1430_v49 = vunpack.c.h.s8.bf16 %v1254_v29 }
 0x2c2   :  { %1735 = vmatprep.subr.bf16.mxu1 %v1585_v50  ;;  %v1363_v50 = vunpack.c.l.s8.bf16 %v1223_v41  ;;  %v1271_v41 = vld [vmem:[#allocation3 + $0x1f8] sm:$0xff] }
 0x2c4   :  { %1695 = vmatpush2.bf16.msra.mxu0 %v1520_v20  ;;  %v1251_v20 = vld [vmem:[#allocation3 + $0x158] sm:$0xff] }
 0x2c5   :  { %1736 = vmatpush2.bf16.msra.mxu1 %v1584_v51  ;;  %1696 = vmatprep.subr.bf16.mxu0 %v1517_v53  ;;  %v1362_v51 = vunpack.c.l.s8.bf16 %v1222_v48  ;;  %v1426_v53 = vunpack.c.l.s8.bf16 %v1254_v29  ;;  %v1423_v55 = vunpack.c.h.s8.bf16 %v1251_v20  ;;  %v1419_v4 = vunpack.c.l.s8.bf16 %v1251_v20  ;;  %v1270_v48 = vld [vmem:[#allocation3 + $0x1f0] sm:$0xff] }
 0x2c6   :  { %1737 = vmatprep.subr.bf16.mxu1 %v1581_v0  ;;  %v1359_v0 = vunpack.c.h.s8.bf16 %v1219_v3 }
 0x2c8   :  { %1697 = vmatpush2.bf16.msra.mxu0 %v1516_v56  ;;  %v1250_v56 = vld [vmem:[#allocation3 + $0x150] sm:$0xff] }
 0x2c9   :  { %1738 = vmatpush2.bf16.msra.mxu1 %v1580_v59  ;;  %1698 = vmatprep.subr.bf16.mxu0 %v1513_v61  ;;  %v1358_v59 = vunpack.c.h.s8.bf16 %v1218_v27  ;;  %v1422_v61 = vunpack.c.h.s8.bf16 %v1250_v56 }
 0x2ca   :  { %1739 = vmatprep.subr.bf16.mxu1 %v1577_v62  ;;  %v1355_v62 = vunpack.c.l.s8.bf16 %v1219_v3  ;;  %v1267_v3 = vld [vmem:[#allocation3 + $0x1d8] sm:$0xff] }
 0x2cc   :  { %1699 = vmatpush2.bf16.msra.mxu0 %v1512_v6  ;;  %v1247_v6 = vld [vmem:[#allocation3 + $0x138] sm:$0xff] }
 0x2cd   :  { %1740 = vmatpush2.bf16.msra.mxu1 %v1576_v7  ;;  %1700 = vmatprep.subr.bf16.mxu0 %v1509_v8  ;;  %v1354_v7 = vunpack.c.l.s8.bf16 %v1218_v27  ;;  %v1418_v8 = vunpack.c.l.s8.bf16 %v1250_v56  ;;  %v1266_v27 = vld [vmem:[#allocation3 + $0x1d0] sm:$0xff] }
 0x2ce   :  { %1741 = vmatprep.subr.bf16.mxu1 %v1573_v9  ;;  %v1351_v9 = vunpack.c.h.s8.bf16 %v1215_v5 }
 0x2d0   :  { %1701 = vmatpush2.bf16.msra.mxu0 %v1508_v12 }
 0x2d1   :  { %1742 = vmatpush2.bf16.msra.mxu1 %v1572_v13  ;;  %1702 = vmatprep.subr.bf16.mxu0 %v1505_v15  ;;  %v1347_v13 = vunpack.c.l.s8.bf16 %v1215_v5  ;;  %v1411_v15 = vunpack.c.l.s8.bf16 %v1247_v6  ;;  %v1263_v5 = vld [vmem:[#allocation3 + $0x1b8] sm:$0xff] }
 0x2d2   :  { %1743 = vmatprep.subr.bf16.mxu1 %v1569_v16  ;;  %v1211_v16 = vld [vmem:[#allocation3 + $0x18] sm:$0xff] }
 0x2d4   :  { %1703 = vmatpush2.bf16.msra.mxu0 %v1504_v25 }
 0x2d5   :  { %1744 = vmatpush2.bf16.msra.mxu1 %v1568_v57  ;;  %1704 = vmatprep.subr.bf16.mxu0 %v1501_v31  ;;  %v1343_v57 = vunpack.c.h.s8.bf16 %v1211_v16  ;;  %v1407_v31 = vunpack.c.h.s8.bf16 %v1243_v24 }
 0x2d6   :  { %1745 = vmatprep.subr.bf16.mxu1 %v1565_v47  ;;  %v1210_v47 = vld [vmem:[#allocation3 + $0x10] sm:$0xff] }
 0x2d7   :  { %v1342_v52 = vunpack.c.h.s8.bf16 %v1210_v47  ;;  %v1338_v42 = vunpack.c.l.s8.bf16 %v1210_v47  ;;  %v1258_v47 = vld [vmem:[#allocation3 + $0x190] sm:$0xff] }
 0x2d8   :  { %1705 = vmatpush2.bf16.msra.mxu0 %v1500_v33  ;;  %v1406_v33 = vunpack.c.h.s8.bf16 %v1242_v32 }
 0x2d9   :  { %1746 = vmatpush2.bf16.msra.mxu1 %v1564_v54  ;;  %1706 = vmatprep.subr.bf16.mxu0 %v1497_v39  ;;  %v1339_v54 = vunpack.c.l.s8.bf16 %v1211_v16  ;;  %v1403_v39 = vunpack.c.l.s8.bf16 %v1243_v24  ;;  %v1259_v16 = vld [vmem:[#allocation3 + $0x198] sm:$0xff] }
 0x2da   :  { %1747 = vmatprep.subr.bf16.mxu1 %v1561_v40  ;;  %v1239_v40 = vld [vmem:[#allocation3 + $0xf8] sm:$0xff] }
 0x2dc   :  { %1707 = vmatpush2.bf16.msra.mxu0 %v1496_v43  ;;  %v1402_v43 = vunpack.c.l.s8.bf16 %v1242_v32 }
 0x2dd   :  { %1748 = vmatpush2.bf16.msra.mxu1 %v1560_v44  ;;  %1758 = vmatprep.subr.bf16.mxu0 %v1367_v23  ;;  %v1399_v44 = vunpack.c.h.s8.bf16 %v1239_v40  ;;  %v1463_v23 = vunpack.c.h.s8.bf16 %v1271_v41 }
 0x2de   :  { %1799 = vmatprep.subr.bf16.mxu1 %v1431_v45  ;;  %v1238_v45 = vld [vmem:[#allocation3 + $0xf0] sm:$0xff] }
 0x2df   :  { %1709 = vmatmul.mubr.bf16.vlgmr.msra.gmra.mxu0 %v5166_v35  ;;  %v1398_v29 = vunpack.c.h.s8.bf16 %v1238_v45  ;;  %v1394_v20 = vunpack.c.l.s8.bf16 %v1238_v45  ;;  %v1318_v45 = vld [vmem:[#allocation3 + $0x370] sm:$0xff] }
 0x2e0   :  { %1750 = vmatmul.mubr.bf16.vlgmr.msra.gmra.mxu1 %v5170_v37  ;;  %1759 = vmatpush1.bf16.msra.mxu0 %v1366_v46  ;;  %v1462_v46 = vunpack.c.h.s8.bf16 %v1270_v48 }
 0x2e1   :  { %1800 = vmatpush1.bf16.msra.mxu1 %v1430_v49  ;;  %1760 = vmatprep.subr.bf16.mxu0 %v1363_v50  ;;  %v1395_v49 = vunpack.c.l.s8.bf16 %v1239_v40  ;;  %v1459_v50 = vunpack.c.l.s8.bf16 %v1271_v41  ;;  %v1319_v40 = vld [vmem:[#allocation3 + $0x378] sm:$0xff] }
 0x2e2   :  { %1801 = vmatprep.subr.bf16.mxu1 %v1427_v19  ;;  %1790 = vmatprep.mubr.bf16.mxu0 %v5160_v58  ;;  %v1415_v58 = vunpack.c.h.s8.bf16 %v1247_v6  ;;  %v1235_v19 = vld [vmem:[#allocation3 + $0xd8] sm:$0xff] }
 0x2e3   :  { %1831 = vmatprep.mubr.bf16.mxu1 %v5164_v63  ;;  %v1246_v63 = vld [vmem:[#allocation3 + $0x130] sm:$0xff] }
 0x2e4   :  { %1761 = vmatpush1.bf16.msra.mxu0 %v1362_v51  ;;  %v1414_v12 = vunpack.c.h.s8.bf16 %v1246_v63  ;;  %v1410_v25 = vunpack.c.l.s8.bf16 %v1246_v63  ;;  %v1458_v51 = vunpack.c.l.s8.bf16 %v1270_v48 }
 0x2e5   :  { %1802 = vmatpush1.bf16.msra.mxu1 %v1426_v53  ;;  %1762 = vmatprep.subr.bf16.mxu0 %v1359_v0  ;;  %v1391_v53 = vunpack.c.h.s8.bf16 %v1235_v19  ;;  %v1455_v0 = vunpack.c.h.s8.bf16 %v1267_v3 }
 0x2e6   :  { %1803 = vmatprep.subr.bf16.mxu1 %v1423_v55  ;;  %v1234_v55 = vld [vmem:[#allocation3 + $0xd0] sm:$0xff] }
 0x2e7   :  { %v1390_v56 = vunpack.c.h.s8.bf16 %v1234_v55  ;;  %v1386_v6 = vunpack.c.l.s8.bf16 %v1234_v55  ;;  %v1314_v55 = vld [vmem:[#allocation3 + $0x350] sm:$0xff] }
 0x2e8   :  { %1763 = vmatpush1.bf16.msra.mxu0 %v1358_v59  ;;  %v1454_v59 = vunpack.c.h.s8.bf16 %v1266_v27 }
 0x2e9   :  { %1804 = vmatpush1.bf16.msra.mxu1 %v1422_v61  ;;  %1764 = vmatprep.subr.bf16.mxu0 %v1355_v62  ;;  %v1387_v61 = vunpack.c.l.s8.bf16 %v1235_v19  ;;  %v1451_v62 = vunpack.c.l.s8.bf16 %v1267_v3  ;;  %v1315_v19 = vld [vmem:[#allocation3 + $0x358] sm:$0xff] }
 0x2ea   :  { %1805 = vmatprep.subr.bf16.mxu1 %v1419_v4  ;;  %v1231_v4 = vld [vmem:[#allocation3 + $0xb8] sm:$0xff] }
 0x2ec   :  { %1765 = vmatpush1.bf16.msra.mxu0 %v1354_v7  ;;  %v1450_v7 = vunpack.c.l.s8.bf16 %v1266_v27 }
 0x2ed   :  { %1806 = vmatpush1.bf16.msra.mxu1 %v1418_v8  ;;  %1766 = vmatprep.subr.bf16.mxu0 %v1351_v9  ;;  %v1383_v8 = vunpack.c.h.s8.bf16 %v1231_v4  ;;  %v1447_v9 = vunpack.c.h.s8.bf16 %v1263_v5 }
 0x2ee   :  { %1807 = vmatprep.subr.bf16.mxu1 %v1415_v58  ;;  %v1230_v58 = vld [vmem:[#allocation3 + $0xb0] sm:$0xff] }
 0x2ef   :  { %v1382_v63 = vunpack.c.h.s8.bf16 %v1230_v58  ;;  %v1378_v24 = vunpack.c.l.s8.bf16 %v1230_v58 }
 0x2f0   :  { %1767 = vmatpush1.bf16.msra.mxu0 %v1350_v11  ;;  %v1446_v11 = vunpack.c.h.s8.bf16 %v1262_v10 }
 0x2f1   :  { %1808 = vmatpush1.bf16.msra.mxu1 %v1414_v12  ;;  %1768 = vmatprep.subr.bf16.mxu0 %v1347_v13  ;;  %v1379_v12 = vunpack.c.l.s8.bf16 %v1231_v4  ;;  %v1443_v13 = vunpack.c.l.s8.bf16 %v1263_v5  ;;  %v1546_v4 = vunpack.c.l.s8.bf16 %v1314_v55 }
 0x2f2   :  { %1809 = vmatprep.subr.bf16.mxu1 %v1411_v15  ;;  %v1227_v15 = vld [vmem:[#allocation3 + $0x98] sm:$0xff] }
 0x2f4   :  { %1769 = vmatpush1.bf16.msra.mxu0 %v1346_v1  ;;  %v1442_v1 = vunpack.c.l.s8.bf16 %v1262_v10  ;;  %v1275_v10 = vld [vmem:[#allocation3 + $0x218] sm:$0xff] }
 0x2f5   :  { %1810 = vmatpush1.bf16.msra.mxu1 %v1410_v25  ;;  %1770 = vmatprep.subr.bf16.mxu0 %v1343_v57  ;;  %v1375_v25 = vunpack.c.h.s8.bf16 %v1227_v15  ;;  %v1439_v57 = vunpack.c.h.s8.bf16 %v1259_v16 }
 0x2f6   :  { %1811 = vmatprep.subr.bf16.mxu1 %v1407_v31  ;;  %v1226_v31 = vld [vmem:[#allocation3 + $0x90] sm:$0xff] }
 0x2f7   :  { %v1374_v32 = vunpack.c.h.s8.bf16 %v1226_v31  ;;  %v1370_v41 = vunpack.c.l.s8.bf16 %v1226_v31 }
 0x2f8   :  { %1771 = vmatpush1.bf16.msra.mxu0 %v1342_v52  ;;  %v1438_v52 = vunpack.c.h.s8.bf16 %v1258_v47 }
 0x2f9   :  { %1812 = vmatpush1.bf16.msra.mxu1 %v1406_v33  ;;  %1772 = vmatprep.subr.bf16.mxu0 %v1339_v54  ;;  %v1371_v33 = vunpack.c.l.s8.bf16 %v1227_v15  ;;  %v1435_v54 = vunpack.c.l.s8.bf16 %v1259_v16  ;;  %v1274_v16 = vld [vmem:[#allocation3 + $0x210] sm:$0xff] }
 0x2fa   :  { %1813 = vmatprep.subr.bf16.mxu1 %v1403_v39  ;;  %v1287_v39 = vld [vmem:[#allocation3 + $0x278] sm:$0xff] }
 0x2fc   :  { %1773 = vmatpush1.bf16.msra.mxu0 %v1338_v42  ;;  %v1434_v42 = vunpack.c.l.s8.bf16 %v1258_v47  ;;  %v1303_v47 = vld [vmem:[#allocation3 + $0x2f8] sm:$0xff] }
 0x2fd   :  { %1814 = vmatpush1.bf16.msra.mxu1 %v1402_v43  ;;  %1774 = vmatprep.subr.bf16.mxu0 %v1399_v44  ;;  %v1495_v43 = vunpack.c.h.s8.bf16 %v1287_v39  ;;  %v1559_v44 = vunpack.c.h.s8.bf16 %v1319_v40 }
 0x2fe   :  { %1815 = vmatprep.subr.bf16.mxu1 %v1463_v23  ;;  %v1286_v23 = vld [vmem:[#allocation3 + $0x270] sm:$0xff] }
 0x2ff   :  { %v1494_v48 = vunpack.c.h.s8.bf16 %v1286_v23  ;;  %v1490_v3 = vunpack.c.l.s8.bf16 %v1286_v23 }
 0x300   :  { %1775 = vmatpush2.bf16.msra.mxu0 %v1398_v29  ;;  %v1558_v29 = vunpack.c.h.s8.bf16 %v1318_v45 }
 0x301   :  { %1816 = vmatpush2.bf16.msra.mxu1 %v1462_v46  ;;  %1776 = vmatprep.subr.bf16.mxu0 %v1395_v49  ;;  %v1491_v46 = vunpack.c.l.s8.bf16 %v1287_v39  ;;  %v1555_v49 = vunpack.c.l.s8.bf16 %v1319_v40  ;;  %v1302_v40 = vld [vmem:[#allocation3 + $0x2f0] sm:$0xff] }
 0x302   :  { %1817 = vmatprep.subr.bf16.mxu1 %v1459_v50  ;;  %v1283_v50 = vld [vmem:[#allocation3 + $0x258] sm:$0xff] }
 0x304   :  { %1777 = vmatpush2.bf16.msra.mxu0 %v1394_v20  ;;  %v1554_v20 = vunpack.c.l.s8.bf16 %v1318_v45  ;;  %v1299_v45 = vld [vmem:[#allocation3 + $0x2d8] sm:$0xff] }
 0x305   :  { %1818 = vmatpush2.bf16.msra.mxu1 %v1458_v51  ;;  %1778 = vmatprep.subr.bf16.mxu0 %v1391_v53  ;;  %v1487_v51 = vunpack.c.h.s8.bf16 %v1283_v50  ;;  %v1551_v53 = vunpack.c.h.s8.bf16 %v1315_v19 }
 0x306   :  { %1819 = vmatprep.subr.bf16.mxu1 %v1455_v0  ;;  %v1282_v0 = vld [vmem:[#allocation3 + $0x250] sm:$0xff] }
 0x307   :  { %v1486_v27 = vunpack.c.h.s8.bf16 %v1282_v0 }
 0x308   :  { %1779 = vmatpush2.bf16.msra.mxu0 %v1390_v56  ;;  %v1547_v56 = vunpack.c.l.s8.bf16 %v1315_v19  ;;  %v1298_v19 = vld [vmem:[#allocation3 + $0x2d0] sm:$0xff] }
 0x309   :  { %1820 = vmatpush2.bf16.msra.mxu1 %v1454_v59  ;;  %1780 = vmatprep.subr.bf16.mxu0 %v1387_v61  ;;  %v1279_v59 = vld [vmem:[#allocation3 + $0x238] sm:$0xff] }
 0x30a   :  { %1821 = vmatprep.subr.bf16.mxu1 %v1451_v62  ;;  %v1311_v61 = vld [vmem:[#allocation3 + $0x338] sm:$0xff]  ;;  %v1482_v62 = vunpack.c.l.s8.bf16 %v1282_v0  ;;  %v1479_v5 = vunpack.c.h.s8.bf16 %v1279_v59 }
 0x30b   :  { %v1539_v58 = vunpack.c.l.s8.bf16 %v1311_v61 }
 0x30c   :  { %1781 = vmatpush2.bf16.msra.mxu0 %v1386_v6  ;;  %v1278_v6 = vld [vmem:[#allocation3 + $0x230] sm:$0xff] }
 0x30d   :  { %1822 = vmatpush2.bf16.msra.mxu1 %v1450_v7  ;;  %1782 = vmatprep.subr.bf16.mxu0 %v1383_v8  ;;  %v1478_v7 = vunpack.c.h.s8.bf16 %v1278_v6 }
 0x30e   :  { %1823 = vmatprep.subr.bf16.mxu1 %v1447_v9  ;;  %v1475_v9 = vunpack.c.l.s8.bf16 %v1279_v59 }
 0x310   :  { %1783 = vmatpush2.bf16.msra.mxu0 %v1382_v63  ;;  %v1307_v63 = vld [vmem:[#allocation3 + $0x318] sm:$0xff] }
 0x311   :  { %1824 = vmatpush2.bf16.msra.mxu1 %v1446_v11  ;;  %1784 = vmatprep.subr.bf16.mxu0 %v1379_v12  ;;  %v1474_v11 = vunpack.c.l.s8.bf16 %v1278_v6  ;;  %v1535_v15 = vunpack.c.h.s8.bf16 %v1307_v63  ;;  %v1531_v31 = vunpack.c.l.s8.bf16 %v1307_v63  ;;  %v1290_v63 = vld [vmem:[#allocation3 + $0x290] sm:$0xff] }
 0x312   :  { %1825 = vmatprep.subr.bf16.mxu1 %v1443_v13  ;;  %v1471_v13 = vunpack.c.h.s8.bf16 %v1275_v10 }
 0x314   :  { %1785 = vmatpush2.bf16.msra.mxu0 %v1378_v24  ;;  %v1306_v24 = vld [vmem:[#allocation3 + $0x310] sm:$0xff] }
 0x315   :  { %1826 = vmatpush2.bf16.msra.mxu1 %v1442_v1  ;;  %1786 = vmatprep.subr.bf16.mxu0 %v1375_v25  ;;  %v1470_v1 = vunpack.c.h.s8.bf16 %v1274_v16  ;;  %v1534_v25 = vunpack.c.h.s8.bf16 %v1306_v24 }
 0x316   :  { %1827 = vmatprep.subr.bf16.mxu1 %v1439_v57  ;;  %v1467_v57 = vunpack.c.l.s8.bf16 %v1275_v10 }
 0x318   :  { %1787 = vmatpush2.bf16.msra.mxu0 %v1374_v32  ;;  %v1335_v32 = vld [vmem:[#allocation3 + $0x3f8] sm:$0xff] }
 0x319   :  { %1828 = vmatpush2.bf16.msra.mxu1 %v1438_v52  ;;  %1788 = vmatprep.subr.bf16.mxu0 %v1371_v33  ;;  %v1466_v52 = vunpack.c.l.s8.bf16 %v1274_v16  ;;  %v1530_v33 = vunpack.c.l.s8.bf16 %v1306_v24  ;;  %v1591_v39 = vunpack.c.h.s8.bf16 %v1335_v32  ;;  %v1587_v23 = vunpack.c.l.s8.bf16 %v1335_v32 }
 0x31a   :  { %1829 = vmatprep.subr.bf16.mxu1 %v1435_v54  ;;  %v1527_v54 = vunpack.c.h.s8.bf16 %v1303_v47  ;;  %v1498_v24 = vunpack.c.l.s8.bf16 %v1290_v63 }
 0x31c   :  { %1789 = vmatpush2.bf16.msra.mxu0 %v1370_v41  ;;  %v1334_v41 = vld [vmem:[#allocation3 + $0x3f0] sm:$0xff] }
 0x31d   :  { %1830 = vmatpush2.bf16.msra.mxu1 %v1434_v42  ;;  %1840 = vmatprep.subr.bf16.mxu0 %v1495_v43  ;;  %v1526_v42 = vunpack.c.h.s8.bf16 %v1302_v40  ;;  %v1590_v43 = vunpack.c.h.s8.bf16 %v1334_v41 }
 0x31e   :  { %1881 = vmatprep.subr.bf16.mxu1 %v1559_v44  ;;  %v1523_v44 = vunpack.c.l.s8.bf16 %v1303_v47 }
 0x31f   :  { %1791 = vmatmul.mubr.bf16.vlgmr.msra.gmra.mxu0 %v5158_v34  ;;  %v1550_v34 = vunpack.c.h.s8.bf16 %v1314_v55  ;;  %v1295_v55 = vld [vmem:[#allocation3 + $0x2b8] sm:$0xff] }
 0x320   :  { %1832 = vmatmul.mubr.bf16.vlgmr.msra.gmra.mxu1 %v5162_v60  ;;  %1841 = vmatpush1.bf16.msra.mxu0 %v1494_v48  ;;  %v1483_v60 = vunpack.c.l.s8.bf16 %v1283_v50  ;;  %v1331_v48 = vld [vmem:[#allocation3 + $0x3d8] sm:$0xff] }
 0x321   :  { %1882 = vmatpush1.bf16.msra.mxu1 %v1558_v29  ;;  %1842 = vmatprep.subr.bf16.mxu0 %v1491_v46  ;;  %v1522_v29 = vunpack.c.l.s8.bf16 %v1302_v40  ;;  %v1586_v46 = vunpack.c.l.s8.bf16 %v1334_v41  ;;  %v1583_v50 = vunpack.c.h.s8.bf16 %v1331_v48  ;;  %v1579_v0 = vunpack.c.l.s8.bf16 %v1331_v48  ;;  %v5190_v41 = vld [vmem:[#allocation9 + $0x22] ss:$4 sm:$0xf] }
 0x322   :  { %1883 = vmatprep.subr.bf16.mxu1 %v1555_v49  ;;  %1872 = vmatprep.mubr.bf16.mxu0 %v5168_v36  ;;  %v1543_v36 = vunpack.c.h.s8.bf16 %v1311_v61  ;;  %v1519_v49 = vunpack.c.h.s8.bf16 %v1299_v45  ;;  %v1294_v61 = vld [vmem:[#allocation3 + $0x2b0] sm:$0xff] }
 0x323   :  { %1913 = vmatprep.mubr.bf16.mxu1 %v5172_v38  ;;  %v1310_v38 = vld [vmem:[#allocation3 + $0x330] sm:$0xff] }
 0x324   :  { %1843 = vmatpush1.bf16.msra.mxu0 %v1490_v3  ;;  %v1542_v8 = vunpack.c.h.s8.bf16 %v1310_v38  ;;  %v1538_v12 = vunpack.c.l.s8.bf16 %v1310_v38  ;;  %v1330_v3 = vld [vmem:[#allocation3 + $0x3d0] sm:$0xff]  ;;  %v1291_v38 = vld [vmem:[#allocation3 + $0x298] sm:$0xff] }
 0x325   :  { %1884 = vmatpush1.bf16.msra.mxu1 %v1554_v20  ;;  %1844 = vmatprep.subr.bf16.mxu0 %v1487_v51  ;;  %v1518_v20 = vunpack.c.h.s8.bf16 %v1298_v19  ;;  %v1582_v51 = vunpack.c.h.s8.bf16 %v1330_v3 }
 0x326   :  { %1885 = vmatprep.subr.bf16.mxu1 %v1551_v53  ;;  %v1515_v53 = vunpack.c.l.s8.bf16 %v1299_v45 }
 0x328   :  { %1845 = vmatpush1.bf16.msra.mxu0 %v1486_v27  ;;  %v1327_v27 = vld [vmem:[#allocation3 + $0x3b8] sm:$0xff] }
 0x329   :  { %1886 = vmatpush1.bf16.msra.mxu1 %v1550_v34  ;;  %1846 = vmatprep.subr.bf16.mxu0 %v1483_v60  ;;  %v1514_v34 = vunpack.c.l.s8.bf16 %v1298_v19  ;;  %v1578_v60 = vunpack.c.l.s8.bf16 %v1330_v3  ;;  %v1575_v59 = vunpack.c.h.s8.bf16 %v1327_v27  ;;  %v1571_v6 = vunpack.c.l.s8.bf16 %v1327_v27 }
 0x32a   :  { %1887 = vmatprep.subr.bf16.mxu1 %v1547_v56  ;;  %v1511_v56 = vunpack.c.h.s8.bf16 %v1295_v55 }
 0x32c   :  { %1847 = vmatpush1.bf16.msra.mxu0 %v1482_v62  ;;  %v1326_v62 = vld [vmem:[#allocation3 + $0x3b0] sm:$0xff] }
 0x32d   :  { %1888 = vmatpush1.bf16.msra.mxu1 %v1546_v4  ;;  %1848 = vmatprep.subr.bf16.mxu0 %v1479_v5  ;;  %v1510_v4 = vunpack.c.h.s8.bf16 %v1294_v61  ;;  %v1574_v5 = vunpack.c.h.s8.bf16 %v1326_v62 }
 0x32e   :  { %1889 = vmatprep.subr.bf16.mxu1 %v1543_v36  ;;  %v1507_v36 = vunpack.c.l.s8.bf16 %v1295_v55 }
 0x330   :  { %1849 = vmatpush1.bf16.msra.mxu0 %v1478_v7  ;;  %v1323_v7 = vld [vmem:[#allocation3 + $0x398] sm:$0xff] }
 0x331   :  { %1890 = vmatpush1.bf16.msra.mxu1 %v1542_v8  ;;  %1850 = vmatprep.subr.bf16.mxu0 %v1475_v9  ;;  %v1506_v8 = vunpack.c.l.s8.bf16 %v1294_v61  ;;  %v1570_v9 = vunpack.c.l.s8.bf16 %v1326_v62  ;;  %v1567_v10 = vunpack.c.h.s8.bf16 %v1323_v7  ;;  %v1563_v16 = vunpack.c.l.s8.bf16 %v1323_v7 }
 0x332   :  { %1891 = vmatprep.subr.bf16.mxu1 %v1539_v58  ;;  %v1503_v58 = vunpack.c.h.s8.bf16 %v1291_v38 }
 0x334   :  { %1851 = vmatpush1.bf16.msra.mxu0 %v1474_v11  ;;  %v1322_v11 = vld [vmem:[#allocation3 + $0x390] sm:$0xff] }
 0x335   :  { %1892 = vmatpush1.bf16.msra.mxu1 %v1538_v12  ;;  %1852 = vmatprep.subr.bf16.mxu0 %v1471_v13  ;;  %v1502_v12 = vunpack.c.h.s8.bf16 %v1290_v63  ;;  %v1566_v13 = vunpack.c.h.s8.bf16 %v1322_v11 }
 0x336   :  { %1893 = vmatprep.subr.bf16.mxu1 %v1535_v15  ;;  %v1499_v15 = vunpack.c.l.s8.bf16 %v1291_v38 }
 0x338   :  { %1853 = vmatpush1.bf16.msra.mxu0 %v1470_v1  ;;  %v1562_v1 = vunpack.c.l.s8.bf16 %v1322_v11 }
 0x339   :  { %1894 = vmatpush1.bf16.msra.mxu1 %v1534_v25  ;;  %1854 = vmatprep.subr.bf16.mxu0 %v1467_v57 }
 0x33a   :  { %1895 = vmatprep.subr.bf16.mxu1 %v1531_v31 }
 0x33c   :  { %1855 = vmatpush1.bf16.msra.mxu0 %v1466_v52 }
 0x33d   :  { %1896 = vmatpush1.bf16.msra.mxu1 %v1530_v33  ;;  %1856 = vmatprep.subr.bf16.mxu0 %v1527_v54 }
 0x33e   :  { %1897 = vmatprep.subr.bf16.mxu1 %v1591_v39 }
 0x340   :  { %1857 = vmatpush2.bf16.msra.mxu0 %v1526_v42 }
 0x341   :  { %1898 = vmatpush2.bf16.msra.mxu1 %v1590_v43  ;;  %1858 = vmatprep.subr.bf16.mxu0 %v1523_v44 }
 0x342   :  { %1899 = vmatprep.subr.bf16.mxu1 %v1587_v23  ;;  %v1926_v23 = vrot.slane %v5190_v41, %v5048_v26 }
 0x344   :  { %1859 = vmatpush2.bf16.msra.mxu0 %v1522_v29  ;;  %v1930_v29 = vrot.slane %v5190_v41, %v5053_v28 }
 0x345   :  { %1900 = vmatpush2.bf16.msra.mxu1 %v1586_v46  ;;  %1860 = vmatprep.subr.bf16.mxu0 %v1519_v49 }
 0x346   :  { %1901 = vmatprep.subr.bf16.mxu1 %v1583_v50 }
 0x348   :  { %1861 = vmatpush2.bf16.msra.mxu0 %v1518_v20 }
 0x349   :  { %1902 = vmatpush2.bf16.msra.mxu1 %v1582_v51  ;;  %1862 = vmatprep.subr.bf16.mxu0 %v1515_v53 }
 0x34a   :  { %1903 = vmatprep.subr.bf16.mxu1 %v1579_v0 }
 0x34c   :  { %1863 = vmatpush2.bf16.msra.mxu0 %v1514_v34 }
 0x34d   :  { %1904 = vmatpush2.bf16.msra.mxu1 %v1578_v60  ;;  %1864 = vmatprep.subr.bf16.mxu0 %v1511_v56 }
 0x34e   :  { %1905 = vmatprep.subr.bf16.mxu1 %v1575_v59 }
 0x350   :  { %1865 = vmatpush2.bf16.msra.mxu0 %v1510_v4 }
 0x351   :  { %1906 = vmatpush2.bf16.msra.mxu1 %v1574_v5  ;;  %1866 = vmatprep.subr.bf16.mxu0 %v1507_v36 }
 0x352   :  { %1907 = vmatprep.subr.bf16.mxu1 %v1571_v6 }
 0x354   :  { %1867 = vmatpush2.bf16.msra.mxu0 %v1506_v8 }
 0x355   :  { %1908 = vmatpush2.bf16.msra.mxu1 %v1570_v9  ;;  %1868 = vmatprep.subr.bf16.mxu0 %v1503_v58 }
 0x356   :  { %1909 = vmatprep.subr.bf16.mxu1 %v1567_v10 }
 0x358   :  { %1869 = vmatpush2.bf16.msra.mxu0 %v1502_v12 }
 0x359   :  { %1910 = vmatpush2.bf16.msra.mxu1 %v1566_v13  ;;  %1870 = vmatprep.subr.bf16.mxu0 %v1499_v15 }
 0x35a   :  { %1911 = vmatprep.subr.bf16.mxu1 %v1563_v16 }
 0x35c   :  { %1871 = vmatpush2.bf16.msra.mxu0 %v1498_v24 }
 0x35d   :  { %1912 = vmatpush2.bf16.msra.mxu1 %v1562_v1 }
 0x35f   :  { %v1628_v25 = vpop.f32.mrf.mxu0  ;;  %1873 = vmatmul.mubr.bf16.vlgmr.msra.gmra.mxu0 %v5166_v35 }
 0x360   :  { %v1669_v57 = vpop.f32.mrf.mxu1  ;;  %1914 = vmatmul.mubr.bf16.vlgmr.msra.gmra.mxu1 %v5170_v37 }
 0x361   :  { %v1670_v31 = vadd.f32 %v1669_v57, %v1628_v25  ;;  %v1630_v47 = vpop.f32.mrf.mxu0 }
 0x362   :  { %v1671_v32 = vpop.f32.mrf.mxu1 }
 0x363   :  { %v1672_v52 = vadd.f32 %v1671_v32, %v1630_v47  ;;  %v1632_v33 = vpop.f32.mrf.mxu0 }
 0x364   :  { %v1673_v54 = vpop.f32.mrf.mxu1 }
 0x365   :  { %v1633_v39 = vpop.f32.mrf.mxu0 }
 0x366   :  { %v1674_v40 = vpop.f32.mrf.mxu1 }
 0x39f   :  { %v1710_v42 = vpop.f32.mrf.mxu0 }
 0x3a0   :  { %v1751_v43 = vpop.f32.mrf.mxu1  ;;  %v1711_v44 = vadd.f32 %v1710_v42, %v1670_v31 }
 0x3a1   :  { %v1712_v45 = vpop.f32.mrf.mxu0 }
 0x3a2   :  { %v1753_v35 = vpop.f32.mrf.mxu1  ;;  %v1752_v48 = vadd.f32 %v1751_v43, %v1711_v44  ;;  %v1713_v37 = vadd.f32 %v1712_v45, %v1672_v52 }
 0x3a3   :  { %v1714_v46 = vpop.f32.mrf.mxu0 }
 0x3a4   :  { %v1755_v49 = vpop.f32.mrf.mxu1  ;;  %v1943_v50 = vmul.f32 %v1926_v23, %v1752_v48  ;;  %v1754_v19 = vadd.f32 %v1753_v35, %v1713_v37 }
 0x3a5   :  { %v1715_v3 = vpop.f32.mrf.mxu0 }
 0x3a6   :  { %v1756_v20 = vpop.f32.mrf.mxu1  ;;  %v1951_v51 = vrot.slane %v1943_v50, 4  ;;  %v1944_v53 = vmul.f32 %v1930_v29, %v1754_v19  ;;  %v1934_v19 = vrot.slane %v5190_v41, %v5073_v18 }
 0x3a8   :  { %v1952_v0 = vadd.f32 %v1951_v51, %v1943_v50  ;;  %v1957_v55 = vrot.slane %v1944_v53, 4 }
 0x3aa   :  { %v1953_v27 = vrot.slane %v1952_v0, 2  ;;  %v1958_v34 = vadd.f32 %v1957_v55, %v1944_v53 }
 0x3ac   :  { %v1954_v60 = vadd.f32 %v1953_v27, %v1952_v0  ;;  %v1959_v56 = vrot.slane %v1958_v34, 2  ;;  %v1938_v0 = vrot.slane %v5190_v41, %v5076_v2 }
 0x3ae   :  { %v1955_v59 = vrot.slane %v1954_v60, 1  ;;  %v1960_v61 = vadd.f32 %v1959_v56, %v1958_v34 }
 0x3b0   :  { %v1956_v62 = vadd.f32 %v1955_v59, %v1954_v60  ;;  %v1961_v4 = vrot.slane %v1960_v61, 1 }
 0x3b2   :  { %v1975_v5 = vmul.f32 0.125, %v1956_v62  ;;  %v1962_v36 = vadd.f32 %v1961_v4, %v1960_v61 }
 0x3b4   :  { %v5196_v6 = vsub.f32 %v1943_v50, %v1975_v5  ;;  %v1976_v38 = vmul.f32 0.125, %v1962_v36 }
 0x3b6   :  { %v1983_v7 = vmul.f32 %v5196_v6, %v5196_v6  ;;  %v5200_v8 = vsub.f32 %v1944_v53, %v1976_v38 }
 0x3b8   :  { %v1987_v9 = vrot.slane %v1983_v7, 4  ;;  %v1984_v58 = vmul.f32 %v5200_v8, %v5200_v8 }
 0x3ba   :  { %v1988_v10 = vadd.f32 %v1987_v9, %v1983_v7  ;;  %v1993_v63 = vrot.slane %v1984_v58, 4 }
 0x3bc   :  { %v1989_v11 = vrot.slane %v1988_v10, 2  ;;  %v1994_v12 = vadd.f32 %v1993_v63, %v1984_v58 }
 0x3be   :  { %v1990_v13 = vadd.f32 %v1989_v11, %v1988_v10  ;;  %v1995_v15 = vrot.slane %v1994_v12, 2 }
 0x3c0   :  { %v1991_v16 = vrot.slane %v1990_v13, 1  ;;  %v1996_v24 = vadd.f32 %v1995_v15, %v1994_v12 }
 0x3c2   :  { %v1992_v1 = vadd.f32 %v1991_v16, %v1990_v13  ;;  %v1997_v25 = vrot.slane %v1996_v24, 1 }
 0x3c4   :  { %v2011_v57 = vmul.f32 0.125, %v1992_v1  ;;  %v1998_v31 = vadd.f32 %v1997_v25, %v1996_v24 }
 0x3c6   :  { %v2015_v47 = vadd.f32 1e-05, %v2011_v57  ;;  %v2012_v32 = vmul.f32 0.125, %v1998_v31 }
 0x3c8   :  { %v2016_v52 = vadd.f32 1e-05, %v2012_v32  ;;  %4718 = vrsqrt.f32 %v2015_v47 }
 0x3ca   :  { %4720 = vrsqrt.f32 %v2016_v52 }
 0x3d5   :  { %v5204_v33 = vpop.eup %4718 }
 0x3d7   :  { %v5206_v54 = vpop.eup %4720 }
 0x3d8   :  { %v2027_v39 = vcombine.low %v5204_v33, %v5206_v54 }
 0x3df   :  { %v1792_v40 = vpop.f32.mrf.mxu0 }
 0x3e0   :  { %v1833_v42 = vpop.f32.mrf.mxu1 }
 0x3e1   :  { %v1834_v43 = vadd.f32 %v1833_v42, %v1792_v40  ;;  %v1794_v44 = vpop.f32.mrf.mxu0 }
 0x3e2   :  { %v1835_v23 = vpop.f32.mrf.mxu1 }
 0x3e3   :  { %v1796_v45 = vpop.f32.mrf.mxu0  ;;  %v1836_v49 = vadd.f32 %v1835_v23, %v1794_v44 }
 0x3e4   :  { %v1837_v35 = vpop.f32.mrf.mxu1 }
 0x3e5   :  { %v1797_v48 = vpop.f32.mrf.mxu0 }
 0x3e6   :  { %v1838_v37 = vpop.f32.mrf.mxu1 }
 0x41f   :  { %v1874_v29 = vpop.f32.mrf.mxu0 }
 0x420   :  { %v1915_v46 = vpop.f32.mrf.mxu1  ;;  %v1875_v50 = vadd.f32 %v1874_v29, %v1834_v43 }
 0x421   :  { %v1876_v3 = vpop.f32.mrf.mxu0 }
 0x422   :  { %v1917_v20 = vpop.f32.mrf.mxu1  ;;  %v1916_v51 = vadd.f32 %v1915_v46, %v1875_v50  ;;  %v1877_v53 = vadd.f32 %v1876_v3, %v1836_v49 }
 0x423   :  { %v1878_v55 = vpop.f32.mrf.mxu0 }
 0x424   :  { %v1919_v27 = vpop.f32.mrf.mxu1  ;;  %v1945_v34 = vmul.f32 %v1934_v19, %v1916_v51  ;;  %v1918_v60 = vadd.f32 %v1917_v20, %v1877_v53  ;;  %v2035_v19 = vrot.slane %v2027_v39, %v5091_v14  ;;  %v1948_v51 = vld [vmem:[#allocation9 + $0x20] ss:$4 sm:$0xf]  ;;  %v1950_v53 = vld [vmem:[#allocation9 + $0x21] ss:$4 sm:$0xf] }
 0x425   :  { %v1879_v56 = vpop.f32.mrf.mxu0  ;;  %v2082_v27 = vrot.slane %v1950_v53, %v5048_v26 }
 0x426   :  { %v1920_v59 = vpop.f32.mrf.mxu1  ;;  %v1963_v61 = vrot.slane %v1945_v34, 4  ;;  %v1946_v62 = vmul.f32 %v1938_v0, %v1918_v60  ;;  %v2090_v60 = vrot.slane %v1950_v53, %v5073_v18  ;;  %v2094_v56 = vrot.slane %v1950_v53, %v5076_v2 }
 0x428   :  { %v1964_v4 = vadd.f32 %v1963_v61, %v1945_v34  ;;  %v1969_v5 = vrot.slane %v1946_v62, 4 }
 0x42a   :  { %v1965_v36 = vrot.slane %v1964_v4, 2  ;;  %v1970_v38 = vadd.f32 %v1969_v5, %v1946_v62 }
 0x42c   :  { %v1966_v7 = vadd.f32 %v1965_v36, %v1964_v4  ;;  %v1971_v9 = vrot.slane %v1970_v38, 2 }
 0x42e   :  { %v1967_v58 = vrot.slane %v1966_v7, 1  ;;  %v1972_v10 = vadd.f32 %v1971_v9, %v1970_v38 }
 0x430   :  { %v1968_v63 = vadd.f32 %v1967_v58, %v1966_v7  ;;  %v1973_v11 = vrot.slane %v1972_v10, 1 }
 0x432   :  { %v1977_v12 = vmul.f32 0.125, %v1968_v63  ;;  %v1974_v41 = vadd.f32 %v1973_v11, %v1972_v10 }
 0x434   :  { %v1981_v13 = vsub.f32 %v1945_v34, %v1977_v12  ;;  %v1978_v15 = vmul.f32 0.125, %v1974_v41  ;;  %v2086_v34 = vrot.slane %v1950_v53, %v5053_v28 }
 0x436   :  { %v1985_v16 = vmul.f32 %v1981_v13, %v1981_v13  ;;  %v1982_v24 = vsub.f32 %v1946_v62, %v1978_v15 }
 0x438   :  { %v1999_v1 = vrot.slane %v1985_v16, 4  ;;  %v1986_v25 = vmul.f32 %v1982_v24, %v1982_v24 }
 0x43a   :  { %v2000_v57 = vadd.f32 %v1999_v1, %v1985_v16  ;;  %v2005_v31 = vrot.slane %v1986_v25, 4 }
 0x43c   :  { %v2001_v47 = vrot.slane %v2000_v57, 2  ;;  %v2006_v32 = vadd.f32 %v2005_v31, %v1986_v25 }
 0x43e   :  { %v2002_v52 = vadd.f32 %v2001_v47, %v2000_v57  ;;  %v2007_v40 = vrot.slane %v2006_v32, 2 }
 0x440   :  { %v2003_v42 = vrot.slane %v2002_v52, 1  ;;  %v2008_v43 = vadd.f32 %v2007_v40, %v2006_v32 }
 0x442   :  { %v2004_v44 = vadd.f32 %v2003_v42, %v2002_v52  ;;  %v2009_v23 = vrot.slane %v2008_v43, 1 }
 0x444   :  { %v2013_v45 = vmul.f32 0.125, %v2004_v44  ;;  %v2010_v35 = vadd.f32 %v2009_v23, %v2008_v43 }
 0x446   :  { %v2017_v48 = vadd.f32 1e-05, %v2013_v45  ;;  %v2014_v37 = vmul.f32 0.125, %v2010_v35 }
 0x448   :  { %v2018_v29 = vadd.f32 1e-05, %v2014_v37  ;;  %4722 = vrsqrt.f32 %v2017_v48 }
 0x44a   :  { %4724 = vrsqrt.f32 %v2018_v29 }
 0x455   :  { %v4723_v46 = vpop.eup %4722 }
 0x457   :  { %v4725_v49 = vpop.eup %4724 }
 0x458   :  { %v2028_v50 = vcombine.low %v4723_v46, %v4725_v49 }
 0x45a   :  { %v2042_v3 = vrot.slane %v2028_v50, %v5091_v14 }
 0x45c   :  { %v2043_v20 = vcombine.low %v2035_v19, %v2042_v3 }
 0x45e   :  { %v2050_v0 = vrot.slane %v2043_v20, %v5091_v14 }
 0x460   :  { %v2052_v55 = vmul.f32 %v2050_v0, %v1948_v51 }
 0x462   :  { %v2057_v59 = vrot.slane %v2052_v55, %v5048_v26  ;;  %v2061_v33 = vrot.slane %v2052_v55, %v5053_v28  ;;  %v2065_v54 = vrot.slane %v2052_v55, %v5073_v18  ;;  %v2069_v39 = vrot.slane %v2052_v55, %v5076_v2 }
 0x464   :  { %v2074_v61 = vmul.f32 %v2057_v59, %v5196_v6  ;;  %v2075_v62 = vmul.f32 %v2061_v33, %v5200_v8  ;;  %v2076_v4 = vmul.f32 %v2065_v54, %v1981_v13  ;;  %v2077_v5 = vmul.f32 %v2069_v39, %v1982_v24 }
 0x466   :  { %v2099_v36 = vadd.f32 %v2082_v27, %v2074_v61  ;;  %v2100_v38 = vadd.f32 %v2086_v34, %v2075_v62  ;;  %v2101_v7 = vadd.f32 %v2090_v60, %v2076_v4  ;;  %v2102_v9 = vadd.f32 %v2094_v56, %v2077_v5 }
 0x468   :  { %v2103_v58 = vmax.f32 %v2099_v36, 0.0  ;;  %v2104_v10 = vmax.f32 %v2100_v38, 0.0  ;;  %v2105_v63 = vmax.f32 %v2101_v7, 0.0  ;;  %v2106_v11 = vmax.f32 %v2102_v9, 0.0 }
 0x46a   :  { %v5230_v12 = vpack.c.bf16 %v2103_v58, %v2103_v58  ;;  %v2108_v41 = vpack.c.bf16 %v2104_v10, %v2104_v10  ;;  %v5232_v15 = vpack.c.bf16 %v2105_v63, %v2105_v63  ;;  %v2110_v16 = vpack.c.bf16 %v2106_v11, %v2106_v11 }
 0x46b   :  { %4920 = dma.done.wait [#allocation8 + $0x2], 4096 }
 0x46c   :  { %4921 = vsyncadd [#allocation8 + $0x2], 4294963200  ;;  %2244 = vmatprep.mubr.bf16.mxu0 %v2108_v41  ;;  %2285 = vmatprep.mubr.bf16.mxu1 %v2110_v16  ;;  %v2121_v6 = vld [vmem:[#allocation4 + $0x38] sm:$0xff]  ;;  %v2120_v13 = vld [vmem:[#allocation4 + $0x30] sm:$0xff] }
 0x46d   :  { %v2137_v8 = vld [vmem:[#allocation4 + $0xb8] sm:$0xff]  ;;  %v2159_v24 = vunpack.c.l.s8.bf16 %v2121_v6  ;;  %v2161_v1 = vunpack.c.h.s8.bf16 %v2121_v6  ;;  %v2136_v31 = vld [vmem:[#allocation4 + $0xb0] sm:$0xff]  ;;  %v2160_v47 = vunpack.c.h.s8.bf16 %v2120_v13  ;;  %v2119_v52 = vld [vmem:[#allocation4 + $0x28] sm:$0xff]  ;;  %v2158_v42 = vunpack.c.l.s8.bf16 %v2120_v13 }
 0x46e   :  { %v2191_v25 = vunpack.c.l.s8.bf16 %v2137_v8  ;;  %v2193_v57 = vunpack.c.h.s8.bf16 %v2137_v8  ;;  %v2192_v32 = vunpack.c.h.s8.bf16 %v2136_v31  ;;  %v2135_v40 = vld [vmem:[#allocation4 + $0xa8] sm:$0xff]  ;;  %v2190_v43 = vunpack.c.l.s8.bf16 %v2136_v31  ;;  %v2118_v45 = vld [vmem:[#allocation4 + $0x20] sm:$0xff]  ;;  %v2117_v49 = vld [vmem:[#allocation4 + $0x18] sm:$0xff] }
 0x46f   :  { %2212 = vmatprep.subr.bf16.mxu0 %v2161_v1  ;;  %v2157_v44 = vunpack.c.h.s8.bf16 %v2119_v52  ;;  %v2189_v23 = vunpack.c.h.s8.bf16 %v2135_v40  ;;  %v2134_v35 = vld [vmem:[#allocation4 + $0xa0] sm:$0xff]  ;;  %v2156_v48 = vunpack.c.h.s8.bf16 %v2118_v45  ;;  %v2155_v29 = vunpack.c.l.s8.bf16 %v2119_v52  ;;  %v2133_v50 = vld [vmem:[#allocation4 + $0x98] sm:$0xff]  ;;  %v2116_v53 = vld [vmem:[#allocation4 + $0x10] sm:$0xff] }
 0x470   :  { %2253 = vmatprep.subr.bf16.mxu1 %v2193_v57  ;;  %2213 = vmatpush1.bf16.msra.mxu0 %v2160_v47  ;;  %v2188_v37 = vunpack.c.h.s8.bf16 %v2134_v35  ;;  %v2187_v46 = vunpack.c.l.s8.bf16 %v2135_v40  ;;  %v2154_v19 = vunpack.c.l.s8.bf16 %v2118_v45  ;;  %v2186_v3 = vunpack.c.l.s8.bf16 %v2134_v35  ;;  %v2132_v0 = vld [vmem:[#allocation4 + $0x90] sm:$0xff]  ;;  %v2115_v56 = vld [vmem:[#allocation4 + $0x8] sm:$0xff]  ;;  %v2114_v62 = vld [vmem:[#allocation4] sm:$0xff] }
 0x471   :  { %2254 = vmatpush1.bf16.msra.mxu1 %v2192_v32  ;;  %2214 = vmatprep.subr.bf16.mxu0 %v2159_v24  ;;  %v2153_v20 = vunpack.c.h.s8.bf16 %v2117_v49  ;;  %v2185_v51 = vunpack.c.h.s8.bf16 %v2133_v50  ;;  %v2152_v55 = vunpack.c.h.s8.bf16 %v2116_v53  ;;  %v2184_v27 = vunpack.c.h.s8.bf16 %v2132_v0  ;;  %v2131_v59 = vld [vmem:[#allocation4 + $0x88] sm:$0xff]  ;;  %v2130_v4 = vld [vmem:[#allocation4 + $0x80] sm:$0xff]  ;;  %v2129_v9 = vld [vmem:[#allocation4 + $0x78] sm:$0xff] }
 0x472   :  { %2255 = vmatprep.subr.bf16.mxu1 %v2191_v25  ;;  %v2151_v34 = vunpack.c.l.s8.bf16 %v2117_v49  ;;  %v2183_v60 = vunpack.c.l.s8.bf16 %v2133_v50  ;;  %v2150_v33 = vunpack.c.l.s8.bf16 %v2116_v53  ;;  %v2182_v54 = vunpack.c.l.s8.bf16 %v2132_v0  ;;  %v2145_v58 = vld [vmem:[#allocation4 + $0xf8] sm:$0xff]  ;;  %v2128_v16 = vld [vmem:[#allocation4 + $0x70] sm:$0xff]  ;;  %v2127_v25 = vld [vmem:[#allocation4 + $0x68] sm:$0xff] }
 0x473   :  { %v2149_v39 = vunpack.c.h.s8.bf16 %v2115_v56  ;;  %v2181_v61 = vunpack.c.h.s8.bf16 %v2131_v59  ;;  %v2148_v5 = vunpack.c.h.s8.bf16 %v2114_v62  ;;  %v2180_v36 = vunpack.c.h.s8.bf16 %v2130_v4  ;;  %v2144_v6 = vld [vmem:[#allocation4 + $0xf0] sm:$0xff]  ;;  %v2143_v57 = vld [vmem:[#allocation4 + $0xe8] sm:$0xff]  ;;  %v2126_v40 = vld [vmem:[#allocation4 + $0x60] sm:$0xff] }
 0x474   :  { %2215 = vmatpush1.bf16.msra.mxu0 %v2158_v42  ;;  %v2147_v38 = vunpack.c.l.s8.bf16 %v2115_v56  ;;  %v2179_v7 = vunpack.c.l.s8.bf16 %v2131_v59  ;;  %v2146_v10 = vunpack.c.l.s8.bf16 %v2114_v62  ;;  %v2178_v63 = vunpack.c.l.s8.bf16 %v2130_v4  ;;  %v2142_v42 = vld [vmem:[#allocation4 + $0xe0] sm:$0xff]  ;;  %v2125_v35 = vld [vmem:[#allocation4 + $0x58] sm:$0xff]  ;;  %v2124_v50 = vld [vmem:[#allocation4 + $0x50] sm:$0xff] }
 0x475   :  { %2256 = vmatpush1.bf16.msra.mxu1 %v2190_v43  ;;  %2216 = vmatprep.subr.bf16.mxu0 %v2157_v44  ;;  %v2177_v11 = vunpack.c.h.s8.bf16 %v2129_v9  ;;  %v2209_v41 = vunpack.c.h.s8.bf16 %v2145_v58  ;;  %v2176_v8 = vunpack.c.h.s8.bf16 %v2128_v16  ;;  %v2208_v13 = vunpack.c.h.s8.bf16 %v2144_v6  ;;  %v2123_v0 = vld [vmem:[#allocation4 + $0x48] sm:$0xff]  ;;  %v2122_v59 = vld [vmem:[#allocation4 + $0x40] sm:$0xff] }
 0x476   :  { %2257 = vmatprep.subr.bf16.mxu1 %v2189_v23  ;;  %v2175_v24 = vunpack.c.l.s8.bf16 %v2129_v9  ;;  %v2207_v1 = vunpack.c.l.s8.bf16 %v2145_v58  ;;  %v2174_v31 = vunpack.c.l.s8.bf16 %v2128_v16  ;;  %v2206_v47 = vunpack.c.l.s8.bf16 %v2144_v6 }
 0x477   :  { %v2173_v32 = vunpack.c.h.s8.bf16 %v2127_v25  ;;  %v2205_v52 = vunpack.c.h.s8.bf16 %v2143_v57  ;;  %v2172_v43 = vunpack.c.h.s8.bf16 %v2126_v40  ;;  %v2204_v44 = vunpack.c.h.s8.bf16 %v2142_v42 }
 0x478   :  { %2217 = vmatpush1.bf16.msra.mxu0 %v2156_v48  ;;  %v2171_v23 = vunpack.c.l.s8.bf16 %v2127_v25  ;;  %v2203_v45 = vunpack.c.l.s8.bf16 %v2143_v57  ;;  %v2141_v48 = vld [vmem:[#allocation4 + $0xd8] sm:$0xff]  ;;  %v2162_v4 = vunpack.c.l.s8.bf16 %v2122_v59 }
 0x479   :  { %2258 = vmatpush1.bf16.msra.mxu1 %v2188_v37  ;;  %2218 = vmatprep.subr.bf16.mxu0 %v2155_v29  ;;  %v2170_v37 = vunpack.c.l.s8.bf16 %v2126_v40  ;;  %v2202_v29 = vunpack.c.l.s8.bf16 %v2142_v42  ;;  %v2201_v49 = vunpack.c.h.s8.bf16 %v2141_v48  ;;  %v2199_v53 = vunpack.c.l.s8.bf16 %v2141_v48 }
 0x47a   :  { %2259 = vmatprep.subr.bf16.mxu1 %v2187_v46  ;;  %v2169_v46 = vunpack.c.h.s8.bf16 %v2125_v35 }
 0x47c   :  { %2219 = vmatpush1.bf16.msra.mxu0 %v2154_v19  ;;  %v2140_v19 = vld [vmem:[#allocation4 + $0xd0] sm:$0xff] }
 0x47d   :  { %2260 = vmatpush1.bf16.msra.mxu1 %v2186_v3  ;;  %2220 = vmatprep.subr.bf16.mxu0 %v2153_v20  ;;  %v2168_v3 = vunpack.c.h.s8.bf16 %v2124_v50  ;;  %v2200_v20 = vunpack.c.h.s8.bf16 %v2140_v19 }
 0x47e   :  { %2261 = vmatprep.subr.bf16.mxu1 %v2185_v51  ;;  %v2167_v51 = vunpack.c.l.s8.bf16 %v2125_v35 }
 0x480   :  { %2221 = vmatpush1.bf16.msra.mxu0 %v2152_v55  ;;  %v2139_v55 = vld [vmem:[#allocation4 + $0xc8] sm:$0xff] }
 0x481   :  { %2262 = vmatpush1.bf16.msra.mxu1 %v2184_v27  ;;  %2222 = vmatprep.subr.bf16.mxu0 %v2151_v34  ;;  %v2166_v27 = vunpack.c.l.s8.bf16 %v2124_v50  ;;  %v2198_v34 = vunpack.c.l.s8.bf16 %v2140_v19  ;;  %v2197_v56 = vunpack.c.h.s8.bf16 %v2139_v55  ;;  %v2195_v62 = vunpack.c.l.s8.bf16 %v2139_v55 }
 0x482   :  { %2263 = vmatprep.subr.bf16.mxu1 %v2183_v60  ;;  %v2165_v60 = vunpack.c.h.s8.bf16 %v2123_v0 }
 0x484   :  { %2223 = vmatpush1.bf16.msra.mxu0 %v2150_v33  ;;  %v2138_v33 = vld [vmem:[#allocation4 + $0xc0] sm:$0xff] }
 0x485   :  { %2264 = vmatpush1.bf16.msra.mxu1 %v2182_v54  ;;  %2224 = vmatprep.subr.bf16.mxu0 %v2149_v39  ;;  %v2164_v54 = vunpack.c.h.s8.bf16 %v2122_v59  ;;  %v2196_v39 = vunpack.c.h.s8.bf16 %v2138_v33 }
 0x486   :  { %2265 = vmatprep.subr.bf16.mxu1 %v2181_v61  ;;  %v2163_v61 = vunpack.c.l.s8.bf16 %v2123_v0 }
 0x488   :  { %2225 = vmatpush1.bf16.msra.mxu0 %v2148_v5  ;;  %v2194_v5 = vunpack.c.l.s8.bf16 %v2138_v33 }
 0x489   :  { %2266 = vmatpush1.bf16.msra.mxu1 %v2180_v36  ;;  %2226 = vmatprep.subr.bf16.mxu0 %v2147_v38  ;;  %v2211_v36 = vld [vmem:[#allocation9 + $0x32] ss:$4 sm:$0x3] }
 0x48a   :  { %2267 = vmatprep.subr.bf16.mxu1 %v2179_v7  ;;  %v2298_v38 = vrot.slane %v2211_v36, %v5048_v26 }
 0x48c   :  { %2227 = vmatpush1.bf16.msra.mxu0 %v2146_v10  ;;  %v2302_v10 = vrot.slane %v2211_v36, %v5053_v28  ;;  %v2310_v36 = vld [vmem:[#allocation9 + $0x31] ss:$4 sm:$0x3] }
 0x48d   :  { %2268 = vmatpush1.bf16.msra.mxu1 %v2178_v63  ;;  %2228 = vmatprep.subr.bf16.mxu0 %v2177_v11 }
 0x48e   :  { %2269 = vmatprep.subr.bf16.mxu1 %v2209_v41 }
 0x490   :  { %2229 = vmatpush2.bf16.msra.mxu0 %v2176_v8 }
 0x491   :  { %2270 = vmatpush2.bf16.msra.mxu1 %v2208_v13  ;;  %2230 = vmatprep.subr.bf16.mxu0 %v2175_v24 }
 0x492   :  { %2271 = vmatprep.subr.bf16.mxu1 %v2207_v1 }
 0x494   :  { %2231 = vmatpush2.bf16.msra.mxu0 %v2174_v31 }
 0x495   :  { %2272 = vmatpush2.bf16.msra.mxu1 %v2206_v47  ;;  %2232 = vmatprep.subr.bf16.mxu0 %v2173_v32 }
 0x496   :  { %2273 = vmatprep.subr.bf16.mxu1 %v2205_v52 }
 0x498   :  { %2233 = vmatpush2.bf16.msra.mxu0 %v2172_v43 }
 0x499   :  { %2274 = vmatpush2.bf16.msra.mxu1 %v2204_v44  ;;  %2234 = vmatprep.subr.bf16.mxu0 %v2171_v23 }
 0x49a   :  { %2275 = vmatprep.subr.bf16.mxu1 %v2203_v45 }
 0x49c   :  { %2235 = vmatpush2.bf16.msra.mxu0 %v2170_v37 }
 0x49d   :  { %2276 = vmatpush2.bf16.msra.mxu1 %v2202_v29  ;;  %2236 = vmatprep.subr.bf16.mxu0 %v2169_v46 }
 0x49e   :  { %2277 = vmatprep.subr.bf16.mxu1 %v2201_v49 }
 0x4a0   :  { %2237 = vmatpush2.bf16.msra.mxu0 %v2168_v3 }
 0x4a1   :  { %2278 = vmatpush2.bf16.msra.mxu1 %v2200_v20  ;;  %2238 = vmatprep.subr.bf16.mxu0 %v2167_v51 }
 0x4a2   :  { %2279 = vmatprep.subr.bf16.mxu1 %v2199_v53 }
 0x4a4   :  { %2239 = vmatpush2.bf16.msra.mxu0 %v2166_v27 }
 0x4a5   :  { %2280 = vmatpush2.bf16.msra.mxu1 %v2198_v34  ;;  %2240 = vmatprep.subr.bf16.mxu0 %v2165_v60 }
 0x4a6   :  { %2281 = vmatprep.subr.bf16.mxu1 %v2197_v56 }
 0x4a8   :  { %2241 = vmatpush2.bf16.msra.mxu0 %v2164_v54 }
 0x4a9   :  { %2282 = vmatpush2.bf16.msra.mxu1 %v2196_v39  ;;  %2242 = vmatprep.subr.bf16.mxu0 %v2163_v61 }
 0x4aa   :  { %2283 = vmatprep.subr.bf16.mxu1 %v2195_v62 }
 0x4ac   :  { %2243 = vmatpush2.bf16.msra.mxu0 %v2162_v4  ;;  %v2308_v4 = vld [vmem:[#allocation9 + $0x30] ss:$4 sm:$0x3] }
 0x4ad   :  { %2284 = vmatpush2.bf16.msra.mxu1 %v2194_v5 }
 0x4af   :  { %2245 = vmatmul.mubr.bf16.vlgmr.msra.gmra.mxu0 %v5230_v12 }
 0x4b0   :  { %2286 = vmatmul.mubr.bf16.vlgmr.msra.gmra.mxu1 %v5232_v15 }
 0x56f   :  { %v2246_v7 = vpop.f32.mrf.mxu0 }
 0x570   :  { %v2287_v9 = vpop.f32.mrf.mxu1 }
 0x571   :  { %v2288_v58 = vadd.f32 %v2287_v9, %v2246_v7  ;;  %v2248_v63 = vpop.f32.mrf.mxu0 }
 0x572   :  { %v2289_v11 = vpop.f32.mrf.mxu1 }
 0x573   :  { %v2305_v41 = vmul.f32 %v2298_v38, %v2288_v58  ;;  %v2290_v16 = vadd.f32 %v2289_v11, %v2248_v63  ;;  %v2250_v6 = vpop.f32.mrf.mxu0  ;;  %v2383_v58 = vrot.slane %v2310_v36, %v5048_v26 }
 0x574   :  { %v2291_v8 = vpop.f32.mrf.mxu1 }
 0x575   :  { %v2311_v13 = vrot.slane %v2305_v41, 4  ;;  %v2306_v24 = vmul.f32 %v2302_v10, %v2290_v16  ;;  %v2251_v1 = vpop.f32.mrf.mxu0  ;;  %v2387_v10 = vrot.slane %v2310_v36, %v5053_v28 }
 0x576   :  { %v2292_v12 = vpop.f32.mrf.mxu1 }
 0x577   :  { %v2312_v25 = vadd.f32 %v2311_v13, %v2305_v41  ;;  %v2317_v15 = vrot.slane %v2306_v24, 4 }
 0x579   :  { %v2313_v57 = vrot.slane %v2312_v25, 2  ;;  %v2318_v31 = vadd.f32 %v2317_v15, %v2306_v24 }
 0x57b   :  { %v2314_v47 = vadd.f32 %v2313_v57, %v2312_v25  ;;  %v2319_v32 = vrot.slane %v2318_v31, 2 }
 0x57d   :  { %v2315_v52 = vrot.slane %v2314_v47, 1  ;;  %v2320_v40 = vadd.f32 %v2319_v32, %v2318_v31 }
 0x57f   :  { %v2316_v42 = vadd.f32 %v2315_v52, %v2314_v47  ;;  %v2321_v43 = vrot.slane %v2320_v40, 1 }
 0x581   :  { %v2323_v44 = vmul.f32 0.125, %v2316_v42  ;;  %v2322_v23 = vadd.f32 %v2321_v43, %v2320_v40 }
 0x583   :  { %v2325_v45 = vsub.f32 %v2305_v41, %v2323_v44  ;;  %v2324_v35 = vmul.f32 0.125, %v2322_v23 }
 0x585   :  { %v2327_v48 = vmul.f32 %v2325_v45, %v2325_v45  ;;  %v2326_v37 = vsub.f32 %v2306_v24, %v2324_v35 }
 0x587   :  { %v2329_v29 = vrot.slane %v2327_v48, 4  ;;  %v2328_v46 = vmul.f32 %v2326_v37, %v2326_v37 }
 0x589   :  { %v2330_v49 = vadd.f32 %v2329_v29, %v2327_v48  ;;  %v2335_v50 = vrot.slane %v2328_v46, 4 }
 0x58b   :  { %v2331_v19 = vrot.slane %v2330_v49, 2  ;;  %v2336_v3 = vadd.f32 %v2335_v50, %v2328_v46 }
 0x58d   :  { %v2332_v20 = vadd.f32 %v2331_v19, %v2330_v49  ;;  %v2337_v51 = vrot.slane %v2336_v3, 2 }
 0x58f   :  { %v2333_v53 = vrot.slane %v2332_v20, 1  ;;  %v2338_v0 = vadd.f32 %v2337_v51, %v2336_v3 }
 0x591   :  { %v2334_v55 = vadd.f32 %v2333_v53, %v2332_v20  ;;  %v2339_v27 = vrot.slane %v2338_v0, 1 }
 0x593   :  { %v2341_v34 = vmul.f32 0.125, %v2334_v55  ;;  %v2340_v60 = vadd.f32 %v2339_v27, %v2338_v0 }
 0x595   :  { %v2343_v56 = vadd.f32 1e-05, %v2341_v34  ;;  %v2342_v59 = vmul.f32 0.125, %v2340_v60 }
 0x597   :  { %v2344_v33 = vadd.f32 1e-05, %v2342_v59  ;;  %4726 = vrsqrt.f32 %v2343_v56 }
 0x599   :  { %4728 = vrsqrt.f32 %v2344_v33 }
 0x5a4   :  { %v4727_v54 = vpop.eup %4726 }
 0x5a6   :  { %v4729_v39 = vpop.eup %4728 }
 0x5a7   :  { %v2349_v61 = vcombine.low %v4727_v54, %v4729_v39 }
 0x5a9   :  { %v2356_v62 = vrot.slane %v2349_v61, %v5091_v14 }
 0x5ab   :  { %v2363_v5 = vrot.slane %v2356_v62, %v5091_v14 }
 0x5ad   :  { %v2365_v38 = vmul.f32 %v2363_v5, %v2308_v4 }
 0x5af   :  { %v2370_v7 = vrot.slane %v2365_v38, %v5048_v26  ;;  %v2374_v9 = vrot.slane %v2365_v38, %v5053_v28 }
 0x5b1   :  { %v2377_v63 = vmul.f32 %v2370_v7, %v2325_v45  ;;  %v2378_v11 = vmul.f32 %v2374_v9, %v2326_v37 }
 0x5b3   :  { %v2390_v41 = vadd.f32 %v2383_v58, %v2377_v63  ;;  %v2391_v16 = vadd.f32 %v2387_v10, %v2378_v11 }
 0x5b5   :  { %v2392_v6 = vmax.f32 %v2390_v41, 0.0  ;;  %v2393_v8 = vmax.f32 %v2391_v16, 0.0 }
 0x5b7   :  { %v5244_v13 = vpack.c.bf16 %v2392_v6, %v2392_v6  ;;  %v2395_v24 = vpack.c.bf16 %v2393_v8, %v2393_v8 }
 0x5b8   :  { %4922 = dma.done.wait [#allocation8 + $0x3], 4096 }
 0x5b9   :  { %4923 = vsyncadd [#allocation8 + $0x3], 4294963200  ;;  %2530 = vmatprep.mubr.bf16.mxu0 %v2395_v24  ;;  %2571 = vmatprep.mubr.bf16.mxu1 %v2395_v24  ;;  %v2413_v1 = vld [vmem:[#allocation5 + $0x68] sm:$0xff]  ;;  %v2415_v12 = vld [vmem:[#allocation5 + $0x78] sm:$0xff] }
 0x5ba   :  { %v2412_v25 = vld [vmem:[#allocation5 + $0x60] sm:$0xff]  ;;  %v2457_v15 = vunpack.c.l.s8.bf16 %v2413_v1  ;;  %v2461_v57 = vunpack.c.h.s8.bf16 %v2413_v1  ;;  %v2459_v31 = vunpack.c.l.s8.bf16 %v2415_v12  ;;  %v2463_v47 = vunpack.c.h.s8.bf16 %v2415_v12  ;;  %v2414_v32 = vld [vmem:[#allocation5 + $0x70] sm:$0xff]  ;;  %v2409_v42 = vld [vmem:[#allocation5 + $0x48] sm:$0xff] }
 0x5bb   :  { %v2460_v52 = vunpack.c.h.s8.bf16 %v2412_v25  ;;  %v2462_v40 = vunpack.c.h.s8.bf16 %v2414_v32  ;;  %v2411_v43 = vld [vmem:[#allocation5 + $0x58] sm:$0xff]  ;;  %v2456_v44 = vunpack.c.l.s8.bf16 %v2412_v25  ;;  %v2458_v23 = vunpack.c.l.s8.bf16 %v2414_v32  ;;  %v2408_v48 = vld [vmem:[#allocation5 + $0x40] sm:$0xff]  ;;  %v2410_v37 = vld [vmem:[#allocation5 + $0x50] sm:$0xff] }
 0x5bc   :  { %2498 = vmatprep.subr.bf16.mxu0 %v2461_v57  ;;  %2539 = vmatprep.subr.bf16.mxu1 %v2463_v47  ;;  %v2453_v45 = vunpack.c.h.s8.bf16 %v2409_v42  ;;  %v2455_v35 = vunpack.c.h.s8.bf16 %v2411_v43  ;;  %v2452_v29 = vunpack.c.h.s8.bf16 %v2408_v48  ;;  %v2454_v46 = vunpack.c.h.s8.bf16 %v2410_v37  ;;  %v2405_v19 = vld [vmem:[#allocation5 + $0x28] sm:$0xff]  ;;  %v2407_v3 = vld [vmem:[#allocation5 + $0x38] sm:$0xff]  ;;  %v2404_v55 = vld [vmem:[#allocation5 + $0x20] sm:$0xff] }
 0x5bd   :  { %2499 = vmatpush1.bf16.msra.mxu0 %v2460_v52  ;;  %2540 = vmatpush1.bf16.msra.mxu1 %v2462_v40  ;;  %v2449_v49 = vunpack.c.l.s8.bf16 %v2409_v42  ;;  %v2451_v50 = vunpack.c.l.s8.bf16 %v2411_v43  ;;  %v2448_v20 = vunpack.c.l.s8.bf16 %v2408_v48  ;;  %v2450_v51 = vunpack.c.l.s8.bf16 %v2410_v37  ;;  %v2406_v27 = vld [vmem:[#allocation5 + $0x30] sm:$0xff]  ;;  %v2401_v33 = vld [vmem:[#allocation5 + $0x8] sm:$0xff]  ;;  %v2403_v54 = vld [vmem:[#allocation5 + $0x18] sm:$0xff] }
 0x5be   :  { %2500 = vmatprep.subr.bf16.mxu0 %v2457_v15  ;;  %2541 = vmatprep.subr.bf16.mxu1 %v2459_v31  ;;  %v2445_v53 = vunpack.c.h.s8.bf16 %v2405_v19  ;;  %v2447_v0 = vunpack.c.h.s8.bf16 %v2407_v3  ;;  %v2444_v34 = vunpack.c.h.s8.bf16 %v2404_v55  ;;  %v2446_v60 = vunpack.c.h.s8.bf16 %v2406_v27  ;;  %v2400_v5 = vld [vmem:[#allocation5] sm:$0xff]  ;;  %v2402_v36 = vld [vmem:[#allocation5 + $0x10] sm:$0xff]  ;;  %v2429_v10 = vld [vmem:[#allocation5 + $0xe8] sm:$0xff] }
 0x5bf   :  { %v2441_v56 = vunpack.c.l.s8.bf16 %v2405_v19  ;;  %v2443_v59 = vunpack.c.l.s8.bf16 %v2407_v3  ;;  %v2440_v39 = vunpack.c.l.s8.bf16 %v2404_v55  ;;  %v2442_v61 = vunpack.c.l.s8.bf16 %v2406_v27  ;;  %v2431_v63 = vld [vmem:[#allocation5 + $0xf8] sm:$0xff]  ;;  %v2428_v8 = vld [vmem:[#allocation5 + $0xe0] sm:$0xff]  ;;  %v2430_v24 = vld [vmem:[#allocation5 + $0xf0] sm:$0xff] }
 0x5c0   :  { %v2437_v62 = vunpack.c.h.s8.bf16 %v2401_v33  ;;  %v2439_v4 = vunpack.c.h.s8.bf16 %v2403_v54  ;;  %v2436_v38 = vunpack.c.h.s8.bf16 %v2400_v5  ;;  %v2438_v7 = vunpack.c.h.s8.bf16 %v2402_v36  ;;  %v2425_v57 = vld [vmem:[#allocation5 + $0xc8] sm:$0xff]  ;;  %v2427_v31 = vld [vmem:[#allocation5 + $0xd8] sm:$0xff]  ;;  %v2424_v42 = vld [vmem:[#allocation5 + $0xc0] sm:$0xff] }
 0x5c1   :  { %2501 = vmatpush1.bf16.msra.mxu0 %v2456_v44  ;;  %2542 = vmatpush1.bf16.msra.mxu1 %v2458_v23  ;;  %v2433_v9 = vunpack.c.l.s8.bf16 %v2401_v33  ;;  %v2435_v58 = vunpack.c.l.s8.bf16 %v2403_v54  ;;  %v2432_v11 = vunpack.c.l.s8.bf16 %v2400_v5  ;;  %v2434_v41 = vunpack.c.l.s8.bf16 %v2402_v36  ;;  %v2426_v43 = vld [vmem:[#allocation5 + $0xd0] sm:$0xff]  ;;  %v2421_v48 = vld [vmem:[#allocation5 + $0xa8] sm:$0xff]  ;;  %v2423_v37 = vld [vmem:[#allocation5 + $0xb8] sm:$0xff] }
 0x5c2   :  { %2502 = vmatprep.subr.bf16.mxu0 %v2453_v45  ;;  %2543 = vmatprep.subr.bf16.mxu1 %v2455_v35  ;;  %v2493_v16 = vunpack.c.h.s8.bf16 %v2429_v10  ;;  %v2495_v6 = vunpack.c.h.s8.bf16 %v2431_v63  ;;  %v2492_v1 = vunpack.c.h.s8.bf16 %v2428_v8  ;;  %v2494_v12 = vunpack.c.h.s8.bf16 %v2430_v24  ;;  %v2420_v19 = vld [vmem:[#allocation5 + $0xa0] sm:$0xff]  ;;  %v2422_v3 = vld [vmem:[#allocation5 + $0xb0] sm:$0xff]  ;;  %v2417_v55 = vld [vmem:[#allocation5 + $0x88] sm:$0xff] }
 0x5c3   :  { %v2489_v25 = vunpack.c.l.s8.bf16 %v2429_v10  ;;  %v2491_v15 = vunpack.c.l.s8.bf16 %v2431_v63  ;;  %v2488_v47 = vunpack.c.l.s8.bf16 %v2428_v8  ;;  %v2490_v32 = vunpack.c.l.s8.bf16 %v2430_v24  ;;  %v2419_v27 = vld [vmem:[#allocation5 + $0x98] sm:$0xff]  ;;  %v2416_v33 = vld [vmem:[#allocation5 + $0x80] sm:$0xff]  ;;  %v2418_v54 = vld [vmem:[#allocation5 + $0x90] sm:$0xff] }
 0x5c4   :  { %v2485_v52 = vunpack.c.h.s8.bf16 %v2425_v57  ;;  %v2487_v40 = vunpack.c.h.s8.bf16 %v2427_v31  ;;  %v2484_v44 = vunpack.c.h.s8.bf16 %v2424_v42  ;;  %v2486_v23 = vunpack.c.h.s8.bf16 %v2426_v43 }
 0x5c5   :  { %2503 = vmatpush1.bf16.msra.mxu0 %v2452_v29  ;;  %2544 = vmatpush1.bf16.msra.mxu1 %v2454_v46  ;;  %v2481_v45 = vunpack.c.l.s8.bf16 %v2425_v57  ;;  %v2483_v35 = vunpack.c.l.s8.bf16 %v2427_v31  ;;  %v2480_v29 = vunpack.c.l.s8.bf16 %v2424_v42  ;;  %v2482_v46 = vunpack.c.l.s8.bf16 %v2426_v43 }
 0x5c6   :  { %2504 = vmatprep.subr.bf16.mxu0 %v2449_v49  ;;  %2545 = vmatprep.subr.bf16.mxu1 %v2451_v50  ;;  %v2477_v49 = vunpack.c.h.s8.bf16 %v2421_v48  ;;  %v2479_v50 = vunpack.c.h.s8.bf16 %v2423_v37  ;;  %v2464_v5 = vunpack.c.l.s8.bf16 %v2416_v33  ;;  %v2466_v36 = vunpack.c.l.s8.bf16 %v2418_v54 }
 0x5c9   :  { %2505 = vmatpush1.bf16.msra.mxu0 %v2448_v20  ;;  %2546 = vmatpush1.bf16.msra.mxu1 %v2450_v51  ;;  %v2476_v20 = vunpack.c.h.s8.bf16 %v2420_v19  ;;  %v2478_v51 = vunpack.c.h.s8.bf16 %v2422_v3 }
 0x5ca   :  { %2506 = vmatprep.subr.bf16.mxu0 %v2445_v53  ;;  %2547 = vmatprep.subr.bf16.mxu1 %v2447_v0  ;;  %v2473_v53 = vunpack.c.l.s8.bf16 %v2421_v48  ;;  %v2475_v0 = vunpack.c.l.s8.bf16 %v2423_v37 }
 0x5cd   :  { %2507 = vmatpush1.bf16.msra.mxu0 %v2444_v34  ;;  %2548 = vmatpush1.bf16.msra.mxu1 %v2446_v60  ;;  %v2472_v34 = vunpack.c.l.s8.bf16 %v2420_v19  ;;  %v2474_v60 = vunpack.c.l.s8.bf16 %v2422_v3 }
 0x5ce   :  { %2508 = vmatprep.subr.bf16.mxu0 %v2441_v56  ;;  %2549 = vmatprep.subr.bf16.mxu1 %v2443_v59  ;;  %v2469_v56 = vunpack.c.h.s8.bf16 %v2417_v55  ;;  %v2471_v59 = vunpack.c.h.s8.bf16 %v2419_v27 }
 0x5d1   :  { %2509 = vmatpush1.bf16.msra.mxu0 %v2440_v39  ;;  %2550 = vmatpush1.bf16.msra.mxu1 %v2442_v61  ;;  %v2468_v39 = vunpack.c.h.s8.bf16 %v2416_v33  ;;  %v2470_v61 = vunpack.c.h.s8.bf16 %v2418_v54 }
 0x5d2   :  { %2510 = vmatprep.subr.bf16.mxu0 %v2437_v62  ;;  %2551 = vmatprep.subr.bf16.mxu1 %v2439_v4  ;;  %v2465_v62 = vunpack.c.l.s8.bf16 %v2417_v55  ;;  %v2467_v4 = vunpack.c.l.s8.bf16 %v2419_v27 }
 0x5d5   :  { %2511 = vmatpush1.bf16.msra.mxu0 %v2436_v38  ;;  %2552 = vmatpush1.bf16.msra.mxu1 %v2438_v7  ;;  %v2497_v38 = vld [vmem:[#allocation9 + $0x3a] ss:$4 sm:$0xf] }
 0x5d6   :  { %2512 = vmatprep.subr.bf16.mxu0 %v2433_v9  ;;  %2553 = vmatprep.subr.bf16.mxu1 %v2435_v58  ;;  %v2584_v7 = vrot.slane %v2497_v38, %v5048_v26  ;;  %v2592_v9 = vrot.slane %v2497_v38, %v5073_v18  ;;  %v2588_v58 = vrot.slane %v2497_v38, %v5053_v28 }
 0x5d7   :  { %v2596_v10 = vrot.slane %v2497_v38, %v5076_v2 }
 0x5d9   :  { %2513 = vmatpush1.bf16.msra.mxu0 %v2432_v11  ;;  %2554 = vmatpush1.bf16.msra.mxu1 %v2434_v41 }
 0x5da   :  { %2514 = vmatprep.subr.bf16.mxu0 %v2493_v16  ;;  %2555 = vmatprep.subr.bf16.mxu1 %v2495_v6 }
 0x5dd   :  { %2515 = vmatpush2.bf16.msra.mxu0 %v2492_v1  ;;  %2556 = vmatpush2.bf16.msra.mxu1 %v2494_v12 }
 0x5de   :  { %2516 = vmatprep.subr.bf16.mxu0 %v2489_v25  ;;  %2557 = vmatprep.subr.bf16.mxu1 %v2491_v15 }
 0x5e1   :  { %2517 = vmatpush2.bf16.msra.mxu0 %v2488_v47  ;;  %2558 = vmatpush2.bf16.msra.mxu1 %v2490_v32 }
 0x5e2   :  { %2518 = vmatprep.subr.bf16.mxu0 %v2485_v52  ;;  %2559 = vmatprep.subr.bf16.mxu1 %v2487_v40 }
 0x5e5   :  { %2519 = vmatpush2.bf16.msra.mxu0 %v2484_v44  ;;  %2560 = vmatpush2.bf16.msra.mxu1 %v2486_v23 }
 0x5e6   :  { %2520 = vmatprep.subr.bf16.mxu0 %v2481_v45  ;;  %2561 = vmatprep.subr.bf16.mxu1 %v2483_v35 }
 0x5e9   :  { %2521 = vmatpush2.bf16.msra.mxu0 %v2480_v29  ;;  %2562 = vmatpush2.bf16.msra.mxu1 %v2482_v46 }
 0x5ea   :  { %2522 = vmatprep.subr.bf16.mxu0 %v2477_v49  ;;  %2563 = vmatprep.subr.bf16.mxu1 %v2479_v50 }
 0x5ed   :  { %2523 = vmatpush2.bf16.msra.mxu0 %v2476_v20  ;;  %2564 = vmatpush2.bf16.msra.mxu1 %v2478_v51 }
 0x5ee   :  { %2524 = vmatprep.subr.bf16.mxu0 %v2473_v53  ;;  %2565 = vmatprep.subr.bf16.mxu1 %v2475_v0 }
 0x5f1   :  { %2525 = vmatpush2.bf16.msra.mxu0 %v2472_v34  ;;  %2566 = vmatpush2.bf16.msra.mxu1 %v2474_v60 }
 0x5f2   :  { %2526 = vmatprep.subr.bf16.mxu0 %v2469_v56  ;;  %2567 = vmatprep.subr.bf16.mxu1 %v2471_v59 }
 0x5f5   :  { %2527 = vmatpush2.bf16.msra.mxu0 %v2468_v39  ;;  %2568 = vmatpush2.bf16.msra.mxu1 %v2470_v61 }
 0x5f6   :  { %2528 = vmatprep.subr.bf16.mxu0 %v2465_v62  ;;  %2569 = vmatprep.subr.bf16.mxu1 %v2467_v4 }
 0x5f9   :  { %2529 = vmatpush2.bf16.msra.mxu0 %v2464_v5  ;;  %2570 = vmatpush2.bf16.msra.mxu1 %v2466_v36 }
 0x5fc   :  { %2531 = vmatmul.mubr.bf16.vlgmr.msra.gmra.mxu0 %v5244_v13  ;;  %2572 = vmatmul.mubr.bf16.vlgmr.msra.gmra.mxu1 %v5244_v13 }
 0x6bc   :  { %v2532_v63 = vpop.f32.mrf.mxu0  ;;  %v2573_v11 = vpop.f32.mrf.mxu1 }
 0x6bd   :  { %v2601_v41 = vmul.f32 %v2584_v7, %v2532_v63  ;;  %v2603_v16 = vmul.f32 %v2592_v9, %v2573_v11 }
 0x6be   :  { %v2534_v6 = vpop.f32.mrf.mxu0  ;;  %v2575_v8 = vpop.f32.mrf.mxu1 }
 0x6bf   :  { %v2609_v24 = vrot.slane %v2601_v41, 4  ;;  %v2621_v1 = vrot.slane %v2603_v16, 4  ;;  %v2602_v12 = vmul.f32 %v2588_v58, %v2534_v6  ;;  %v2604_v25 = vmul.f32 %v2596_v10, %v2575_v8 }
 0x6c0   :  { %v2536_v13 = vpop.f32.mrf.mxu0  ;;  %v2577_v15 = vpop.f32.mrf.mxu1 }
 0x6c1   :  { %v2610_v57 = vadd.f32 %v2609_v24, %v2601_v41  ;;  %v2622_v31 = vadd.f32 %v2621_v1, %v2603_v16  ;;  %v2615_v47 = vrot.slane %v2602_v12, 4  ;;  %v2627_v32 = vrot.slane %v2604_v25, 4 }
 0x6c2   :  { %v2537_v52 = vpop.f32.mrf.mxu0  ;;  %v2578_v40 = vpop.f32.mrf.mxu1 }
 0x6c3   :  { %v2611_v42 = vrot.slane %v2610_v57, 2  ;;  %v2623_v43 = vrot.slane %v2622_v31, 2  ;;  %v2616_v44 = vadd.f32 %v2615_v47, %v2602_v12  ;;  %v2628_v23 = vadd.f32 %v2627_v32, %v2604_v25 }
 0x6c5   :  { %v2612_v45 = vadd.f32 %v2611_v42, %v2610_v57  ;;  %v2624_v35 = vadd.f32 %v2623_v43, %v2622_v31  ;;  %v2617_v48 = vrot.slane %v2616_v44, 2  ;;  %v2629_v37 = vrot.slane %v2628_v23, 2 }
 0x6c7   :  { %v2613_v29 = vrot.slane %v2612_v45, 1  ;;  %v2625_v46 = vrot.slane %v2624_v35, 1  ;;  %v2618_v49 = vadd.f32 %v2617_v48, %v2616_v44  ;;  %v2630_v50 = vadd.f32 %v2629_v37, %v2628_v23 }
 0x6c9   :  { %v2614_v19 = vadd.f32 %v2613_v29, %v2612_v45  ;;  %v2626_v3 = vadd.f32 %v2625_v46, %v2624_v35  ;;  %v2619_v20 = vrot.slane %v2618_v49, 1  ;;  %v2631_v51 = vrot.slane %v2630_v50, 1 }
 0x6cb   :  { %v2633_v53 = vmul.f32 0.125, %v2614_v19  ;;  %v2635_v0 = vmul.f32 0.125, %v2626_v3  ;;  %v2620_v55 = vadd.f32 %v2619_v20, %v2618_v49  ;;  %v2632_v27 = vadd.f32 %v2631_v51, %v2630_v50 }
 0x6cd   :  { %v5252_v34 = vsub.f32 %v2601_v41, %v2633_v53  ;;  %v5254_v60 = vsub.f32 %v2603_v16, %v2635_v0  ;;  %v2634_v56 = vmul.f32 0.125, %v2620_v55  ;;  %v2636_v59 = vmul.f32 0.125, %v2632_v27  ;;  %v2606_v53 = vld [vmem:[#allocation9 + $0x38] ss:$4 sm:$0xf] }
 0x6ce   :  { %v2608_v0 = vld [vmem:[#allocation9 + $0x39] ss:$4 sm:$0xf] }
 0x6cf   :  { %v2641_v33 = vmul.f32 %v5252_v34, %v5252_v34  ;;  %v2643_v54 = vmul.f32 %v5254_v60, %v5254_v60  ;;  %v2638_v39 = vsub.f32 %v2602_v12, %v2634_v56  ;;  %v5260_v61 = vsub.f32 %v2604_v25, %v2636_v59 }
 0x6d0   :  { %v2740_v56 = vrot.slane %v2608_v0, %v5048_v26  ;;  %v2744_v59 = vrot.slane %v2608_v0, %v5053_v28 }
 0x6d1   :  { %v2645_v62 = vrot.slane %v2641_v33, 4  ;;  %v2657_v4 = vrot.slane %v2643_v54, 4  ;;  %v2642_v5 = vmul.f32 %v2638_v39, %v2638_v39  ;;  %v2644_v36 = vmul.f32 %v5260_v61, %v5260_v61 }
 0x6d3   :  { %v2646_v38 = vadd.f32 %v2645_v62, %v2641_v33  ;;  %v2658_v7 = vadd.f32 %v2657_v4, %v2643_v54  ;;  %v2651_v9 = vrot.slane %v2642_v5, 4  ;;  %v2663_v58 = vrot.slane %v2644_v36, 4 }
 0x6d4   :  { %v2748_v33 = vrot.slane %v2608_v0, %v5073_v18  ;;  %v2752_v54 = vrot.slane %v2608_v0, %v5076_v2 }
 0x6d5   :  { %v2647_v10 = vrot.slane %v2646_v38, 2  ;;  %v2659_v63 = vrot.slane %v2658_v7, 2  ;;  %v2652_v11 = vadd.f32 %v2651_v9, %v2642_v5  ;;  %v2664_v41 = vadd.f32 %v2663_v58, %v2644_v36 }
 0x6d7   :  { %v2648_v16 = vadd.f32 %v2647_v10, %v2646_v38  ;;  %v2660_v6 = vadd.f32 %v2659_v63, %v2658_v7  ;;  %v2653_v8 = vrot.slane %v2652_v11, 2  ;;  %v2665_v24 = vrot.slane %v2664_v41, 2 }
 0x6d9   :  { %v2649_v1 = vrot.slane %v2648_v16, 1  ;;  %v2661_v12 = vrot.slane %v2660_v6, 1  ;;  %v2654_v25 = vadd.f32 %v2653_v8, %v2652_v11  ;;  %v2666_v13 = vadd.f32 %v2665_v24, %v2664_v41 }
 0x6db   :  { %v2650_v15 = vadd.f32 %v2649_v1, %v2648_v16  ;;  %v2662_v57 = vadd.f32 %v2661_v12, %v2660_v6  ;;  %v2655_v31 = vrot.slane %v2654_v25, 1  ;;  %v2667_v47 = vrot.slane %v2666_v13, 1 }
 0x6dd   :  { %v2669_v32 = vmul.f32 0.125, %v2650_v15  ;;  %v2671_v52 = vmul.f32 0.125, %v2662_v57  ;;  %v2656_v40 = vadd.f32 %v2655_v31, %v2654_v25  ;;  %v2668_v42 = vadd.f32 %v2667_v47, %v2666_v13 }
 0x6df   :  { %v2673_v43 = vadd.f32 1e-05, %v2669_v32  ;;  %v2675_v44 = vadd.f32 1e-05, %v2671_v52  ;;  %v2670_v23 = vmul.f32 0.125, %v2656_v40  ;;  %v2672_v45 = vmul.f32 0.125, %v2668_v42 }
 0x6e1   :  { %4730 = vrsqrt.f32 %v2673_v43  ;;  %v2674_v35 = vadd.f32 1e-05, %v2670_v23  ;;  %v2676_v48 = vadd.f32 1e-05, %v2672_v45 }
 0x6e2   :  { %4732 = vrsqrt.f32 %v2675_v44 }
 0x6e3   :  { %4734 = vrsqrt.f32 %v2674_v35 }
 0x6e4   :  { %4736 = vrsqrt.f32 %v2676_v48 }
 0x6ee   :  { %v4731_v37 = vpop.eup %4730 }
 0x6ef   :  { %v4733_v29 = vpop.eup %4732 }
 0x6f0   :  { %v4735_v46 = vpop.eup %4734 }
 0x6f1   :  { %v4737_v49 = vpop.eup %4736  ;;  %v2685_v50 = vcombine.low %v4731_v37, %v4735_v46 }
 0x6f2   :  { %v2686_v19 = vcombine.low %v4733_v29, %v4737_v49 }
 0x6f3   :  { %v2693_v3 = vrot.slane %v2685_v50, %v5091_v14 }
 0x6f4   :  { %v2700_v20 = vrot.slane %v2686_v19, %v5091_v14 }
 0x6f6   :  { %v2701_v51 = vcombine.low %v2693_v3, %v2700_v20 }
 0x6f8   :  { %v2708_v55 = vrot.slane %v2701_v51, %v5091_v14 }
 0x6fa   :  { %v2710_v27 = vmul.f32 %v2708_v55, %v2606_v53 }
 0x6fc   :  { %v2715_v62 = vrot.slane %v2710_v27, %v5048_v26  ;;  %v2719_v4 = vrot.slane %v2710_v27, %v5053_v28  ;;  %v2723_v5 = vrot.slane %v2710_v27, %v5073_v18  ;;  %v2727_v36 = vrot.slane %v2710_v27, %v5076_v2 }
 0x6fe   :  { %v2732_v38 = vmul.f32 %v2715_v62, %v5252_v34  ;;  %v2733_v7 = vmul.f32 %v2719_v4, %v2638_v39  ;;  %v2734_v9 = vmul.f32 %v2723_v5, %v5254_v60  ;;  %v2735_v58 = vmul.f32 %v2727_v36, %v5260_v61 }
 0x700   :  { %v2757_v10 = vadd.f32 %v2740_v56, %v2732_v38  ;;  %v2758_v63 = vadd.f32 %v2744_v59, %v2733_v7  ;;  %v2759_v11 = vadd.f32 %v2748_v33, %v2734_v9  ;;  %v2760_v41 = vadd.f32 %v2752_v54, %v2735_v58 }
 0x702   :  { %v2761_v16 = vmax.f32 %v2757_v10, 0.0  ;;  %v2762_v6 = vmax.f32 %v2758_v63, 0.0  ;;  %v2763_v8 = vmax.f32 %v2759_v11, 0.0  ;;  %v2764_v24 = vmax.f32 %v2760_v41, 0.0 }
 0x704   :  { %v5278_v1 = vpack.c.bf16 %v2761_v16, %v2761_v16  ;;  %v5280_v12 = vpack.c.bf16 %v2762_v6, %v2762_v6  ;;  %v5282_v25 = vpack.c.bf16 %v2763_v8, %v2763_v8  ;;  %v5284_v34 = vpack.c.bf16 %v2764_v24, %v2764_v24 }
 0x705   :  { %4924 = dma.done.wait [#allocation8 + $0x4], 16384 }
 0x706   :  { %4925 = vsyncadd [#allocation8 + $0x4], 4294950912  ;;  %3189 = vmatprep.mubr.bf16.mxu0 %v5280_v12  ;;  %3230 = vmatprep.mubr.bf16.mxu1 %v5284_v34  ;;  %v2796_v60 = vld [vmem:[#allocation6 + $0xc8] sm:$0xff]  ;;  %v2795_v61 = vld [vmem:[#allocation6 + $0xc0] sm:$0xff] }
 0x707   :  { %v2860_v39 = vld [vmem:[#allocation6 + $0x2c8] sm:$0xff]  ;;  %v2948_v13 = vunpack.c.l.s8.bf16 %v2796_v60  ;;  %v2956_v15 = vunpack.c.h.s8.bf16 %v2796_v60  ;;  %v2859_v47 = vld [vmem:[#allocation6 + $0x2c0] sm:$0xff]  ;;  %v2955_v32 = vunpack.c.h.s8.bf16 %v2795_v61  ;;  %v2947_v43 = vunpack.c.l.s8.bf16 %v2795_v61 }
 0x708   :  { %v3076_v57 = vunpack.c.l.s8.bf16 %v2860_v39  ;;  %v3084_v31 = vunpack.c.h.s8.bf16 %v2860_v39  ;;  %v3083_v52 = vunpack.c.h.s8.bf16 %v2859_v47  ;;  %v2788_v40 = vld [vmem:[#allocation6 + $0x88] sm:$0xff]  ;;  %v3075_v44 = vunpack.c.l.s8.bf16 %v2859_v47  ;;  %v2787_v35 = vld [vmem:[#allocation6 + $0x80] sm:$0xff] }
 0x709   :  { %v2852_v42 = vld [vmem:[#allocation6 + $0x288] sm:$0xff]  ;;  %3157 = vmatprep.subr.bf16.mxu0 %v2956_v15  ;;  %v2940_v23 = vunpack.c.h.s8.bf16 %v2788_v40  ;;  %v2851_v48 = vld [vmem:[#allocation6 + $0x280] sm:$0xff]  ;;  %v2939_v37 = vunpack.c.h.s8.bf16 %v2787_v35  ;;  %v2932_v46 = vunpack.c.l.s8.bf16 %v2788_v40  ;;  %v2931_v3 = vunpack.c.l.s8.bf16 %v2787_v35 }
 0x70a   :  { %3198 = vmatprep.subr.bf16.mxu1 %v3084_v31  ;;  %3158 = vmatpush1.bf16.msra.mxu0 %v2955_v32  ;;  %v3068_v45 = vunpack.c.h.s8.bf16 %v2852_v42  ;;  %v3067_v29 = vunpack.c.h.s8.bf16 %v2851_v48  ;;  %v3060_v49 = vunpack.c.l.s8.bf16 %v2852_v42  ;;  %v2780_v50 = vld [vmem:[#allocation6 + $0x48] sm:$0xff]  ;;  %v3059_v20 = vunpack.c.l.s8.bf16 %v2851_v48  ;;  %v2779_v0 = vld [vmem:[#allocation6 + $0x40] sm:$0xff] }
 0x70b   :  { %3199 = vmatpush1.bf16.msra.mxu1 %v3083_v52  ;;  %3159 = vmatprep.subr.bf16.mxu0 %v2948_v13  ;;  %v2844_v19 = vld [vmem:[#allocation6 + $0x248] sm:$0xff]  ;;  %v2924_v51 = vunpack.c.h.s8.bf16 %v2780_v50  ;;  %v2843_v55 = vld [vmem:[#allocation6 + $0x240] sm:$0xff]  ;;  %v2923_v27 = vunpack.c.h.s8.bf16 %v2779_v0  ;;  %v2916_v59 = vunpack.c.l.s8.bf16 %v2780_v50  ;;  %v2915_v4 = vunpack.c.l.s8.bf16 %v2779_v0 }
 0x70c   :  { %3200 = vmatprep.subr.bf16.mxu1 %v3076_v57  ;;  %v3052_v53 = vunpack.c.h.s8.bf16 %v2844_v19  ;;  %v3051_v56 = vunpack.c.h.s8.bf16 %v2843_v55  ;;  %v3044_v33 = vunpack.c.l.s8.bf16 %v2844_v19  ;;  %v2772_v54 = vld [vmem:[#allocation6 + $0x8] sm:$0xff]  ;;  %v3043_v5 = vunpack.c.l.s8.bf16 %v2843_v55  ;;  %v2771_v7 = vld [vmem:[#allocation6] sm:$0xff] }
 0x70d   :  { %v2836_v62 = vld [vmem:[#allocation6 + $0x208] sm:$0xff]  ;;  %v2908_v36 = vunpack.c.h.s8.bf16 %v2772_v54  ;;  %v2835_v9 = vld [vmem:[#allocation6 + $0x200] sm:$0xff]  ;;  %v2907_v58 = vunpack.c.h.s8.bf16 %v2771_v7  ;;  %v2900_v63 = vunpack.c.l.s8.bf16 %v2772_v54  ;;  %v2899_v6 = vunpack.c.l.s8.bf16 %v2771_v7 }
 0x70e   :  { %3160 = vmatpush1.bf16.msra.mxu0 %v2947_v43  ;;  %v3036_v38 = vunpack.c.h.s8.bf16 %v2836_v62  ;;  %v3035_v10 = vunpack.c.h.s8.bf16 %v2835_v9  ;;  %v3028_v11 = vunpack.c.l.s8.bf16 %v2836_v62  ;;  %v2828_v41 = vld [vmem:[#allocation6 + $0x1c8] sm:$0xff]  ;;  %v3027_v8 = vunpack.c.l.s8.bf16 %v2835_v9  ;;  %v2827_v39 = vld [vmem:[#allocation6 + $0x1c0] sm:$0xff] }
 0x70f   :  { %3201 = vmatpush1.bf16.msra.mxu1 %v3075_v44  ;;  %3161 = vmatprep.subr.bf16.mxu0 %v2940_v23  ;;  %v2892_v16 = vld [vmem:[#allocation6 + $0x3c8] sm:$0xff]  ;;  %v3020_v24 = vunpack.c.h.s8.bf16 %v2828_v41  ;;  %v2891_v61 = vld [vmem:[#allocation6 + $0x3c0] sm:$0xff]  ;;  %v3019_v13 = vunpack.c.h.s8.bf16 %v2827_v39  ;;  %v3012_v57 = vunpack.c.l.s8.bf16 %v2828_v41  ;;  %v3011_v52 = vunpack.c.l.s8.bf16 %v2827_v39 }
 0x710   :  { %3202 = vmatprep.subr.bf16.mxu1 %v3068_v45  ;;  %v3148_v60 = vunpack.c.h.s8.bf16 %v2892_v16  ;;  %v3147_v15 = vunpack.c.h.s8.bf16 %v2891_v61  ;;  %v3140_v31 = vunpack.c.l.s8.bf16 %v2892_v16  ;;  %v2820_v47 = vld [vmem:[#allocation6 + $0x188] sm:$0xff]  ;;  %v3139_v40 = vunpack.c.l.s8.bf16 %v2891_v61  ;;  %v2819_v44 = vld [vmem:[#allocation6 + $0x180] sm:$0xff] }
 0x711   :  { %v2884_v32 = vld [vmem:[#allocation6 + $0x388] sm:$0xff]  ;;  %v3004_v42 = vunpack.c.h.s8.bf16 %v2820_v47  ;;  %v2883_v23 = vld [vmem:[#allocation6 + $0x380] sm:$0xff]  ;;  %v3003_v45 = vunpack.c.h.s8.bf16 %v2819_v44  ;;  %v2996_v48 = vunpack.c.l.s8.bf16 %v2820_v47 }
 0x712   :  { %3162 = vmatpush1.bf16.msra.mxu0 %v2939_v37  ;;  %v3132_v43 = vunpack.c.h.s8.bf16 %v2884_v32  ;;  %v3131_v35 = vunpack.c.h.s8.bf16 %v2883_v23  ;;  %v3124_v37 = vunpack.c.l.s8.bf16 %v2884_v32  ;;  %v3123_v50 = vunpack.c.l.s8.bf16 %v2883_v23 }
 0x713   :  { %3203 = vmatpush1.bf16.msra.mxu1 %v3067_v29  ;;  %3163 = vmatprep.subr.bf16.mxu0 %v2932_v46  ;;  %v2812_v29 = vld [vmem:[#allocation6 + $0x148] sm:$0xff] }
 0x714   :  { %3204 = vmatprep.subr.bf16.mxu1 %v3060_v49  ;;  %v2876_v46 = vld [vmem:[#allocation6 + $0x348] sm:$0xff]  ;;  %v2995_v49 = vunpack.c.l.s8.bf16 %v2819_v44  ;;  %v2988_v19 = vunpack.c.h.s8.bf16 %v2812_v29  ;;  %v2980_v55 = vunpack.c.l.s8.bf16 %v2812_v29 }
 0x716   :  { %3164 = vmatpush1.bf16.msra.mxu0 %v2931_v3  ;;  %v3116_v3 = vunpack.c.h.s8.bf16 %v2876_v46 }
 0x717   :  { %3205 = vmatpush1.bf16.msra.mxu1 %v3059_v20  ;;  %3165 = vmatprep.subr.bf16.mxu0 %v2924_v51  ;;  %v2811_v20 = vld [vmem:[#allocation6 + $0x140] sm:$0xff] }
 0x718   :  { %3206 = vmatprep.subr.bf16.mxu1 %v3052_v53  ;;  %v2875_v51 = vld [vmem:[#allocation6 + $0x340] sm:$0xff]  ;;  %v2987_v53 = vunpack.c.h.s8.bf16 %v2811_v20 }
 0x719   :  { %v3115_v0 = vunpack.c.h.s8.bf16 %v2875_v51  ;;  %v3107_v54 = vunpack.c.l.s8.bf16 %v2875_v51 }
 0x71a   :  { %3166 = vmatpush1.bf16.msra.mxu0 %v2923_v27  ;;  %v3108_v27 = vunpack.c.l.s8.bf16 %v2876_v46 }
 0x71b   :  { %3207 = vmatpush1.bf16.msra.mxu1 %v3051_v56  ;;  %3167 = vmatprep.subr.bf16.mxu0 %v2916_v59  ;;  %v2804_v56 = vld [vmem:[#allocation6 + $0x108] sm:$0xff] }
 0x71c   :  { %3208 = vmatprep.subr.bf16.mxu1 %v3044_v33  ;;  %v2868_v59 = vld [vmem:[#allocation6 + $0x308] sm:$0xff]  ;;  %v2979_v33 = vunpack.c.l.s8.bf16 %v2811_v20  ;;  %v2972_v62 = vunpack.c.h.s8.bf16 %v2804_v56  ;;  %v2964_v9 = vunpack.c.l.s8.bf16 %v2804_v56 }
 0x71e   :  { %3168 = vmatpush1.bf16.msra.mxu0 %v2915_v4  ;;  %v3100_v4 = vunpack.c.h.s8.bf16 %v2868_v59 }
 0x71f   :  { %3209 = vmatpush1.bf16.msra.mxu1 %v3043_v5  ;;  %3169 = vmatprep.subr.bf16.mxu0 %v2908_v36  ;;  %v2803_v5 = vld [vmem:[#allocation6 + $0x100] sm:$0xff] }
 0x720   :  { %3210 = vmatprep.subr.bf16.mxu1 %v3036_v38  ;;  %v2867_v36 = vld [vmem:[#allocation6 + $0x300] sm:$0xff]  ;;  %v2971_v38 = vunpack.c.h.s8.bf16 %v2803_v5 }
 0x721   :  { %v3099_v7 = vunpack.c.h.s8.bf16 %v2867_v36  ;;  %v3091_v41 = vunpack.c.l.s8.bf16 %v2867_v36 }
 0x722   :  { %3170 = vmatpush1.bf16.msra.mxu0 %v2907_v58  ;;  %v3092_v58 = vunpack.c.l.s8.bf16 %v2868_v59 }
 0x723   :  { %3211 = vmatpush1.bf16.msra.mxu1 %v3035_v10  ;;  %3171 = vmatprep.subr.bf16.mxu0 %v2900_v63  ;;  %v2798_v10 = vld [vmem:[#allocation6 + $0xd8] sm:$0xff] }
 0x724   :  { %3212 = vmatprep.subr.bf16.mxu1 %v3028_v11  ;;  %v2862_v63 = vld [vmem:[#allocation6 + $0x2d8] sm:$0xff]  ;;  %v2963_v11 = vunpack.c.l.s8.bf16 %v2803_v5  ;;  %v2958_v16 = vunpack.c.h.s8.bf16 %v2798_v10  ;;  %v2950_v61 = vunpack.c.l.s8.bf16 %v2798_v10 }
 0x726   :  { %3172 = vmatpush1.bf16.msra.mxu0 %v2899_v6  ;;  %v3086_v6 = vunpack.c.h.s8.bf16 %v2862_v63 }
 0x727   :  { %3213 = vmatpush1.bf16.msra.mxu1 %v3027_v8  ;;  %3173 = vmatprep.subr.bf16.mxu0 %v3020_v24  ;;  %v2797_v8 = vld [vmem:[#allocation6 + $0xd0] sm:$0xff] }
 0x728   :  { %3214 = vmatprep.subr.bf16.mxu1 %v3148_v60  ;;  %v2861_v24 = vld [vmem:[#allocation6 + $0x2d0] sm:$0xff]  ;;  %v2957_v60 = vunpack.c.h.s8.bf16 %v2797_v8 }
 0x729   :  { %v3085_v39 = vunpack.c.h.s8.bf16 %v2861_v24  ;;  %v3077_v47 = vunpack.c.l.s8.bf16 %v2861_v24 }
 0x72a   :  { %3174 = vmatpush2.bf16.msra.mxu0 %v3019_v13  ;;  %v3078_v13 = vunpack.c.l.s8.bf16 %v2862_v63 }
 0x72b   :  { %3215 = vmatpush2.bf16.msra.mxu1 %v3147_v15  ;;  %3175 = vmatprep.subr.bf16.mxu0 %v3012_v57  ;;  %v2790_v15 = vld [vmem:[#allocation6 + $0x98] sm:$0xff] }
 0x72c   :  { %3216 = vmatprep.subr.bf16.mxu1 %v3140_v31  ;;  %v2854_v57 = vld [vmem:[#allocation6 + $0x298] sm:$0xff]  ;;  %v2949_v31 = vunpack.c.l.s8.bf16 %v2797_v8  ;;  %v2942_v32 = vunpack.c.h.s8.bf16 %v2790_v15  ;;  %v2934_v23 = vunpack.c.l.s8.bf16 %v2790_v15 }
 0x72e   :  { %3176 = vmatpush2.bf16.msra.mxu0 %v3011_v52  ;;  %v3070_v52 = vunpack.c.h.s8.bf16 %v2854_v57 }
 0x72f   :  { %3217 = vmatpush2.bf16.msra.mxu1 %v3139_v40  ;;  %3177 = vmatprep.subr.bf16.mxu0 %v3004_v42  ;;  %v2789_v40 = vld [vmem:[#allocation6 + $0x90] sm:$0xff] }
 0x730   :  { %3218 = vmatprep.subr.bf16.mxu1 %v3132_v43  ;;  %v2853_v42 = vld [vmem:[#allocation6 + $0x290] sm:$0xff]  ;;  %v2941_v43 = vunpack.c.h.s8.bf16 %v2789_v40 }
 0x731   :  { %v3069_v44 = vunpack.c.h.s8.bf16 %v2853_v42  ;;  %v3061_v29 = vunpack.c.l.s8.bf16 %v2853_v42 }
 0x732   :  { %3178 = vmatpush2.bf16.msra.mxu0 %v3003_v45  ;;  %v3062_v45 = vunpack.c.l.s8.bf16 %v2854_v57 }
 0x733   :  { %3219 = vmatpush2.bf16.msra.mxu1 %v3131_v35  ;;  %3179 = vmatprep.subr.bf16.mxu0 %v2996_v48  ;;  %v2782_v35 = vld [vmem:[#allocation6 + $0x58] sm:$0xff] }
 0x734   :  { %3220 = vmatprep.subr.bf16.mxu1 %v3124_v37  ;;  %v2846_v48 = vld [vmem:[#allocation6 + $0x258] sm:$0xff]  ;;  %v2933_v37 = vunpack.c.l.s8.bf16 %v2789_v40  ;;  %v2926_v46 = vunpack.c.h.s8.bf16 %v2782_v35  ;;  %v2918_v51 = vunpack.c.l.s8.bf16 %v2782_v35 }
 0x736   :  { %3180 = vmatpush2.bf16.msra.mxu0 %v2995_v49  ;;  %v3054_v49 = vunpack.c.h.s8.bf16 %v2846_v48 }
 0x737   :  { %3221 = vmatpush2.bf16.msra.mxu1 %v3123_v50  ;;  %3181 = vmatprep.subr.bf16.mxu0 %v2988_v19  ;;  %v2781_v50 = vld [vmem:[#allocation6 + $0x50] sm:$0xff] }
 0x738   :  { %3222 = vmatprep.subr.bf16.mxu1 %v3116_v3  ;;  %v2845_v19 = vld [vmem:[#allocation6 + $0x250] sm:$0xff]  ;;  %v2925_v3 = vunpack.c.h.s8.bf16 %v2781_v50 }
 0x739   :  { %v3053_v20 = vunpack.c.h.s8.bf16 %v2845_v19  ;;  %v3045_v56 = vunpack.c.l.s8.bf16 %v2845_v19 }
 0x73a   :  { %3182 = vmatpush2.bf16.msra.mxu0 %v2987_v53  ;;  %v3046_v53 = vunpack.c.l.s8.bf16 %v2846_v48 }
 0x73b   :  { %3223 = vmatpush2.bf16.msra.mxu1 %v3115_v0  ;;  %3183 = vmatprep.subr.bf16.mxu0 %v2980_v55  ;;  %v2774_v0 = vld [vmem:[#allocation6 + $0x18] sm:$0xff] }
 0x73c   :  { %3224 = vmatprep.subr.bf16.mxu1 %v3108_v27  ;;  %v2838_v55 = vld [vmem:[#allocation6 + $0x218] sm:$0xff]  ;;  %v2917_v27 = vunpack.c.l.s8.bf16 %v2781_v50  ;;  %v2910_v59 = vunpack.c.h.s8.bf16 %v2774_v0  ;;  %v2902_v36 = vunpack.c.l.s8.bf16 %v2774_v0 }
 0x73e   :  { %3184 = vmatpush2.bf16.msra.mxu0 %v2979_v33  ;;  %v3038_v33 = vunpack.c.h.s8.bf16 %v2838_v55 }
 0x73f   :  { %3225 = vmatpush2.bf16.msra.mxu1 %v3107_v54  ;;  %3185 = vmatprep.subr.bf16.mxu0 %v2972_v62  ;;  %v2773_v54 = vld [vmem:[#allocation6 + $0x10] sm:$0xff] }
 0x740   :  { %3226 = vmatprep.subr.bf16.mxu1 %v3100_v4  ;;  %v2837_v62 = vld [vmem:[#allocation6 + $0x210] sm:$0xff]  ;;  %v2909_v4 = vunpack.c.h.s8.bf16 %v2773_v54 }
 0x741   :  { %v3037_v5 = vunpack.c.h.s8.bf16 %v2837_v62  ;;  %v3029_v10 = vunpack.c.l.s8.bf16 %v2837_v62 }
 0x742   :  { %3186 = vmatpush2.bf16.msra.mxu0 %v2971_v38  ;;  %v3030_v38 = vunpack.c.l.s8.bf16 %v2838_v55 }
 0x743   :  { %3227 = vmatpush2.bf16.msra.mxu1 %v3099_v7  ;;  %3187 = vmatprep.subr.bf16.mxu0 %v2964_v9  ;;  %v2830_v7 = vld [vmem:[#allocation6 + $0x1d8] sm:$0xff] }
 0x744   :  { %3228 = vmatprep.subr.bf16.mxu1 %v3092_v58  ;;  %v2894_v9 = vld [vmem:[#allocation6 + $0x3d8] sm:$0xff]  ;;  %v2901_v58 = vunpack.c.l.s8.bf16 %v2773_v54  ;;  %v3022_v63 = vunpack.c.h.s8.bf16 %v2830_v7  ;;  %v3014_v24 = vunpack.c.l.s8.bf16 %v2830_v7 }
 0x746   :  { %3188 = vmatpush2.bf16.msra.mxu0 %v2963_v11  ;;  %v3150_v11 = vunpack.c.h.s8.bf16 %v2894_v9 }
 0x747   :  { %3229 = vmatpush2.bf16.msra.mxu1 %v3091_v41  ;;  %3239 = vmatprep.subr.bf16.mxu0 %v2958_v16  ;;  %v2829_v41 = vld [vmem:[#allocation6 + $0x1d0] sm:$0xff] }
 0x748   :  { %3280 = vmatprep.subr.bf16.mxu1 %v3086_v6  ;;  %v2893_v16 = vld [vmem:[#allocation6 + $0x3d0] sm:$0xff]  ;;  %v3021_v6 = vunpack.c.h.s8.bf16 %v2829_v41 }
 0x749   :  { %3190 = vmatmul.mubr.bf16.vlgmr.msra.gmra.mxu0 %v5278_v1  ;;  %v3149_v8 = vunpack.c.h.s8.bf16 %v2893_v16  ;;  %v3141_v15 = vunpack.c.l.s8.bf16 %v2893_v16 }
 0x74a   :  { %3231 = vmatmul.mubr.bf16.vlgmr.msra.gmra.mxu1 %v5282_v25  ;;  %3240 = vmatpush1.bf16.msra.mxu0 %v2957_v60  ;;  %v3142_v60 = vunpack.c.l.s8.bf16 %v2894_v9 }
 0x74b   :  { %3281 = vmatpush1.bf16.msra.mxu1 %v3085_v39  ;;  %3241 = vmatprep.subr.bf16.mxu0 %v2950_v61  ;;  %v2822_v39 = vld [vmem:[#allocation6 + $0x198] sm:$0xff] }
 0x74c   :  { %3282 = vmatprep.subr.bf16.mxu1 %v3078_v13  ;;  %3271 = vmatprep.mubr.bf16.mxu0 %v5280_v12  ;;  %v2886_v61 = vld [vmem:[#allocation6 + $0x398] sm:$0xff]  ;;  %v3013_v13 = vunpack.c.l.s8.bf16 %v2829_v41  ;;  %v3006_v57 = vunpack.c.h.s8.bf16 %v2822_v39  ;;  %v2998_v42 = vunpack.c.l.s8.bf16 %v2822_v39 }
 0x74d   :  { %3312 = vmatprep.mubr.bf16.mxu1 %v5284_v34 }
 0x74e   :  { %3242 = vmatpush1.bf16.msra.mxu0 %v2949_v31  ;;  %v3134_v31 = vunpack.c.h.s8.bf16 %v2886_v61 }
 0x74f   :  { %3283 = vmatpush1.bf16.msra.mxu1 %v3077_v47  ;;  %3243 = vmatprep.subr.bf16.mxu0 %v2942_v32  ;;  %v2821_v47 = vld [vmem:[#allocation6 + $0x190] sm:$0xff] }
 0x750   :  { %3284 = vmatprep.subr.bf16.mxu1 %v3070_v52  ;;  %v2885_v32 = vld [vmem:[#allocation6 + $0x390] sm:$0xff]  ;;  %v3005_v52 = vunpack.c.h.s8.bf16 %v2821_v47 }
 0x751   :  { %v3133_v40 = vunpack.c.h.s8.bf16 %v2885_v32  ;;  %v3125_v35 = vunpack.c.l.s8.bf16 %v2885_v32 }
 0x752   :  { %3244 = vmatpush1.bf16.msra.mxu0 %v2941_v43  ;;  %v3126_v43 = vunpack.c.l.s8.bf16 %v2886_v61 }
 0x753   :  { %3285 = vmatpush1.bf16.msra.mxu1 %v3069_v44  ;;  %3245 = vmatprep.subr.bf16.mxu0 %v2934_v23  ;;  %v2814_v44 = vld [vmem:[#allocation6 + $0x158] sm:$0xff] }
 0x754   :  { %3286 = vmatprep.subr.bf16.mxu1 %v3062_v45  ;;  %v2878_v23 = vld [vmem:[#allocation6 + $0x358] sm:$0xff]  ;;  %v2997_v45 = vunpack.c.l.s8.bf16 %v2821_v47  ;;  %v2990_v48 = vunpack.c.h.s8.bf16 %v2814_v44  ;;  %v2982_v19 = vunpack.c.l.s8.bf16 %v2814_v44 }
 0x756   :  { %3246 = vmatpush1.bf16.msra.mxu0 %v2933_v37  ;;  %v3118_v37 = vunpack.c.h.s8.bf16 %v2878_v23 }
 0x757   :  { %3287 = vmatpush1.bf16.msra.mxu1 %v3061_v29  ;;  %3247 = vmatprep.subr.bf16.mxu0 %v2926_v46  ;;  %v2813_v29 = vld [vmem:[#allocation6 + $0x150] sm:$0xff] }
 0x758   :  { %3288 = vmatprep.subr.bf16.mxu1 %v3054_v49  ;;  %v2877_v46 = vld [vmem:[#allocation6 + $0x350] sm:$0xff]  ;;  %v2989_v49 = vunpack.c.h.s8.bf16 %v2813_v29 }
 0x759   :  { %v3117_v50 = vunpack.c.h.s8.bf16 %v2877_v46  ;;  %v3109_v0 = vunpack.c.l.s8.bf16 %v2877_v46 }
 0x75a   :  { %3248 = vmatpush1.bf16.msra.mxu0 %v2925_v3  ;;  %v3110_v3 = vunpack.c.l.s8.bf16 %v2878_v23 }
 0x75b   :  { %3289 = vmatpush1.bf16.msra.mxu1 %v3053_v20  ;;  %3249 = vmatprep.subr.bf16.mxu0 %v2918_v51  ;;  %v2806_v20 = vld [vmem:[#allocation6 + $0x118] sm:$0xff] }
 0x75c   :  { %3290 = vmatprep.subr.bf16.mxu1 %v3046_v53  ;;  %v2870_v51 = vld [vmem:[#allocation6 + $0x318] sm:$0xff]  ;;  %v2981_v53 = vunpack.c.l.s8.bf16 %v2813_v29  ;;  %v2974_v55 = vunpack.c.h.s8.bf16 %v2806_v20  ;;  %v2966_v62 = vunpack.c.l.s8.bf16 %v2806_v20 }
 0x75e   :  { %3250 = vmatpush1.bf16.msra.mxu0 %v2917_v27  ;;  %v3102_v27 = vunpack.c.h.s8.bf16 %v2870_v51 }
 0x75f   :  { %3291 = vmatpush1.bf16.msra.mxu1 %v3045_v56  ;;  %3251 = vmatprep.subr.bf16.mxu0 %v2910_v59  ;;  %v2805_v56 = vld [vmem:[#allocation6 + $0x110] sm:$0xff] }
 0x760   :  { %3292 = vmatprep.subr.bf16.mxu1 %v3038_v33  ;;  %v2869_v59 = vld [vmem:[#allocation6 + $0x310] sm:$0xff]  ;;  %v2973_v33 = vunpack.c.h.s8.bf16 %v2805_v56 }
 0x761   :  { %v3101_v54 = vunpack.c.h.s8.bf16 %v2869_v59  ;;  %v3093_v7 = vunpack.c.l.s8.bf16 %v2869_v59 }
 0x762   :  { %3252 = vmatpush1.bf16.msra.mxu0 %v2909_v4  ;;  %v3094_v4 = vunpack.c.l.s8.bf16 %v2870_v51 }
 0x763   :  { %3293 = vmatpush1.bf16.msra.mxu1 %v3037_v5  ;;  %3253 = vmatprep.subr.bf16.mxu0 %v2902_v36  ;;  %v2800_v5 = vld [vmem:[#allocation6 + $0xe8] sm:$0xff] }
 0x764   :  { %3294 = vmatprep.subr.bf16.mxu1 %v3030_v38  ;;  %v2864_v36 = vld [vmem:[#allocation6 + $0x2e8] sm:$0xff]  ;;  %v2965_v38 = vunpack.c.l.s8.bf16 %v2805_v56  ;;  %v2960_v9 = vunpack.c.h.s8.bf16 %v2800_v5  ;;  %v2952_v16 = vunpack.c.l.s8.bf16 %v2800_v5 }
 0x766   :  { %3254 = vmatpush1.bf16.msra.mxu0 %v2901_v58  ;;  %v3088_v58 = vunpack.c.h.s8.bf16 %v2864_v36 }
 0x767   :  { %3295 = vmatpush1.bf16.msra.mxu1 %v3029_v10  ;;  %3255 = vmatprep.subr.bf16.mxu0 %v3022_v63  ;;  %v2799_v10 = vld [vmem:[#allocation6 + $0xe0] sm:$0xff] }
 0x768   :  { %3296 = vmatprep.subr.bf16.mxu1 %v3150_v11  ;;  %v2863_v63 = vld [vmem:[#allocation6 + $0x2e0] sm:$0xff]  ;;  %v2959_v11 = vunpack.c.h.s8.bf16 %v2799_v10 }
 0x769   :  { %v3087_v41 = vunpack.c.h.s8.bf16 %v2863_v63  ;;  %v3079_v39 = vunpack.c.l.s8.bf16 %v2863_v63 }
 0x76a   :  { %3256 = vmatpush2.bf16.msra.mxu0 %v3021_v6  ;;  %v3080_v6 = vunpack.c.l.s8.bf16 %v2864_v36 }
 0x76b   :  { %3297 = vmatpush2.bf16.msra.mxu1 %v3149_v8  ;;  %3257 = vmatprep.subr.bf16.mxu0 %v3014_v24  ;;  %v2792_v8 = vld [vmem:[#allocation6 + $0xa8] sm:$0xff] }
 0x76c   :  { %3298 = vmatprep.subr.bf16.mxu1 %v3142_v60  ;;  %v2856_v24 = vld [vmem:[#allocation6 + $0x2a8] sm:$0xff]  ;;  %v2951_v60 = vunpack.c.l.s8.bf16 %v2799_v10  ;;  %v2944_v61 = vunpack.c.h.s8.bf16 %v2792_v8  ;;  %v2936_v32 = vunpack.c.l.s8.bf16 %v2792_v8 }
 0x76e   :  { %3258 = vmatpush2.bf16.msra.mxu0 %v3013_v13  ;;  %v3072_v13 = vunpack.c.h.s8.bf16 %v2856_v24 }
 0x76f   :  { %3299 = vmatpush2.bf16.msra.mxu1 %v3141_v15  ;;  %3259 = vmatprep.subr.bf16.mxu0 %v3006_v57  ;;  %v2791_v15 = vld [vmem:[#allocation6 + $0xa0] sm:$0xff] }
 0x770   :  { %3300 = vmatprep.subr.bf16.mxu1 %v3134_v31  ;;  %v2855_v57 = vld [vmem:[#allocation6 + $0x2a0] sm:$0xff]  ;;  %v2943_v31 = vunpack.c.h.s8.bf16 %v2791_v15 }
 0x771   :  { %v3071_v47 = vunpack.c.h.s8.bf16 %v2855_v57  ;;  %v3063_v44 = vunpack.c.l.s8.bf16 %v2855_v57 }
 0x772   :  { %3260 = vmatpush2.bf16.msra.mxu0 %v3005_v52  ;;  %v3064_v52 = vunpack.c.l.s8.bf16 %v2856_v24 }
 0x773   :  { %3301 = vmatpush2.bf16.msra.mxu1 %v3133_v40  ;;  %3261 = vmatprep.subr.bf16.mxu0 %v2998_v42  ;;  %v2784_v40 = vld [vmem:[#allocation6 + $0x68] sm:$0xff] }
 0x774   :  { %3302 = vmatprep.subr.bf16.mxu1 %v3126_v43  ;;  %v2848_v42 = vld [vmem:[#allocation6 + $0x268] sm:$0xff]  ;;  %v2935_v43 = vunpack.c.l.s8.bf16 %v2791_v15  ;;  %v2928_v23 = vunpack.c.h.s8.bf16 %v2784_v40  ;;  %v2920_v46 = vunpack.c.l.s8.bf16 %v2784_v40 }
 0x776   :  { %3262 = vmatpush2.bf16.msra.mxu0 %v2997_v45  ;;  %v3056_v45 = vunpack.c.h.s8.bf16 %v2848_v42 }
 0x777   :  { %3303 = vmatpush2.bf16.msra.mxu1 %v3125_v35  ;;  %3263 = vmatprep.subr.bf16.mxu0 %v2990_v48  ;;  %v2783_v35 = vld [vmem:[#allocation6 + $0x60] sm:$0xff] }
 0x778   :  { %3304 = vmatprep.subr.bf16.mxu1 %v3118_v37  ;;  %v2847_v48 = vld [vmem:[#allocation6 + $0x260] sm:$0xff]  ;;  %v2927_v37 = vunpack.c.h.s8.bf16 %v2783_v35 }
 0x779   :  { %v3055_v29 = vunpack.c.h.s8.bf16 %v2847_v48  ;;  %v3047_v20 = vunpack.c.l.s8.bf16 %v2847_v48 }
 0x77a   :  { %3264 = vmatpush2.bf16.msra.mxu0 %v2989_v49  ;;  %v3048_v49 = vunpack.c.l.s8.bf16 %v2848_v42 }
 0x77b   :  { %3305 = vmatpush2.bf16.msra.mxu1 %v3117_v50  ;;  %3265 = vmatprep.subr.bf16.mxu0 %v2982_v19  ;;  %v2776_v50 = vld [vmem:[#allocation6 + $0x28] sm:$0xff] }
 0x77c   :  { %3306 = vmatprep.subr.bf16.mxu1 %v3110_v3  ;;  %v2840_v19 = vld [vmem:[#allocation6 + $0x228] sm:$0xff]  ;;  %v2919_v3 = vunpack.c.l.s8.bf16 %v2783_v35  ;;  %v2912_v51 = vunpack.c.h.s8.bf16 %v2776_v50  ;;  %v2904_v59 = vunpack.c.l.s8.bf16 %v2776_v50 }
 0x77e   :  { %3266 = vmatpush2.bf16.msra.mxu0 %v2981_v53  ;;  %v3040_v53 = vunpack.c.h.s8.bf16 %v2840_v19 }
 0x77f   :  { %3307 = vmatpush2.bf16.msra.mxu1 %v3109_v0  ;;  %3267 = vmatprep.subr.bf16.mxu0 %v2974_v55  ;;  %v2775_v0 = vld [vmem:[#allocation6 + $0x20] sm:$0xff] }
 0x780   :  { %3308 = vmatprep.subr.bf16.mxu1 %v3102_v27  ;;  %v2839_v55 = vld [vmem:[#allocation6 + $0x220] sm:$0xff]  ;;  %v2911_v27 = vunpack.c.h.s8.bf16 %v2775_v0 }
 0x781   :  { %v3039_v56 = vunpack.c.h.s8.bf16 %v2839_v55  ;;  %v3031_v5 = vunpack.c.l.s8.bf16 %v2839_v55 }
 0x782   :  { %3268 = vmatpush2.bf16.msra.mxu0 %v2973_v33  ;;  %v3032_v33 = vunpack.c.l.s8.bf16 %v2840_v19 }
 0x783   :  { %3309 = vmatpush2.bf16.msra.mxu1 %v3101_v54  ;;  %3269 = vmatprep.subr.bf16.mxu0 %v2966_v62  ;;  %v2832_v54 = vld [vmem:[#allocation6 + $0x1e8] sm:$0xff] }
 0x784   :  { %3310 = vmatprep.subr.bf16.mxu1 %v3094_v4  ;;  %v2896_v62 = vld [vmem:[#allocation6 + $0x3e8] sm:$0xff]  ;;  %v2903_v4 = vunpack.c.l.s8.bf16 %v2775_v0  ;;  %v3024_v36 = vunpack.c.h.s8.bf16 %v2832_v54  ;;  %v3016_v63 = vunpack.c.l.s8.bf16 %v2832_v54 }
 0x786   :  { %3270 = vmatpush2.bf16.msra.mxu0 %v2965_v38  ;;  %v3152_v38 = vunpack.c.h.s8.bf16 %v2896_v62 }
 0x787   :  { %3311 = vmatpush2.bf16.msra.mxu1 %v3093_v7  ;;  %3321 = vmatprep.subr.bf16.mxu0 %v2960_v9  ;;  %v2831_v7 = vld [vmem:[#allocation6 + $0x1e0] sm:$0xff] }
 0x788   :  { %3362 = vmatprep.subr.bf16.mxu1 %v3088_v58  ;;  %v2895_v9 = vld [vmem:[#allocation6 + $0x3e0] sm:$0xff]  ;;  %v3023_v58 = vunpack.c.h.s8.bf16 %v2831_v7 }
 0x789   :  { %3272 = vmatmul.mubr.bf16.vlgmr.msra.gmra.mxu0 %v5278_v1  ;;  %v3151_v10 = vunpack.c.h.s8.bf16 %v2895_v9  ;;  %v3143_v8 = vunpack.c.l.s8.bf16 %v2895_v9 }
 0x78a   :  { %3313 = vmatmul.mubr.bf16.vlgmr.msra.gmra.mxu1 %v5282_v25  ;;  %3322 = vmatpush1.bf16.msra.mxu0 %v2959_v11  ;;  %v3144_v11 = vunpack.c.l.s8.bf16 %v2896_v62 }
 0x78b   :  { %3363 = vmatpush1.bf16.msra.mxu1 %v3087_v41  ;;  %3323 = vmatprep.subr.bf16.mxu0 %v2952_v16  ;;  %v2824_v41 = vld [vmem:[#allocation6 + $0x1a8] sm:$0xff] }
 0x78c   :  { %3364 = vmatprep.subr.bf16.mxu1 %v3080_v6  ;;  %3353 = vmatprep.mubr.bf16.mxu0 %v5280_v12  ;;  %v2888_v16 = vld [vmem:[#allocation6 + $0x3a8] sm:$0xff]  ;;  %v3015_v6 = vunpack.c.l.s8.bf16 %v2831_v7  ;;  %v3008_v24 = vunpack.c.h.s8.bf16 %v2824_v41  ;;  %v3000_v57 = vunpack.c.l.s8.bf16 %v2824_v41 }
 0x78d   :  { %3394 = vmatprep.mubr.bf16.mxu1 %v5284_v34 }
 0x78e   :  { %3324 = vmatpush1.bf16.msra.mxu0 %v2951_v60  ;;  %v3136_v60 = vunpack.c.h.s8.bf16 %v2888_v16 }
 0x78f   :  { %3365 = vmatpush1.bf16.msra.mxu1 %v3079_v39  ;;  %3325 = vmatprep.subr.bf16.mxu0 %v2944_v61  ;;  %v2823_v39 = vld [vmem:[#allocation6 + $0x1a0] sm:$0xff] }
 0x790   :  { %3366 = vmatprep.subr.bf16.mxu1 %v3072_v13  ;;  %v2887_v61 = vld [vmem:[#allocation6 + $0x3a0] sm:$0xff]  ;;  %v3007_v13 = vunpack.c.h.s8.bf16 %v2823_v39 }
 0x791   :  { %v3135_v15 = vunpack.c.h.s8.bf16 %v2887_v61  ;;  %v3127_v40 = vunpack.c.l.s8.bf16 %v2887_v61 }
 0x792   :  { %3326 = vmatpush1.bf16.msra.mxu0 %v2943_v31  ;;  %v3128_v31 = vunpack.c.l.s8.bf16 %v2888_v16 }
 0x793   :  { %3367 = vmatpush1.bf16.msra.mxu1 %v3071_v47  ;;  %3327 = vmatprep.subr.bf16.mxu0 %v2936_v32  ;;  %v2816_v47 = vld [vmem:[#allocation6 + $0x168] sm:$0xff] }
 0x794   :  { %3368 = vmatprep.subr.bf16.mxu1 %v3064_v52  ;;  %v2880_v32 = vld [vmem:[#allocation6 + $0x368] sm:$0xff]  ;;  %v2999_v52 = vunpack.c.l.s8.bf16 %v2823_v39  ;;  %v2992_v42 = vunpack.c.h.s8.bf16 %v2816_v47  ;;  %v2984_v48 = vunpack.c.l.s8.bf16 %v2816_v47 }
 0x796   :  { %3328 = vmatpush1.bf16.msra.mxu0 %v2935_v43  ;;  %v3120_v43 = vunpack.c.h.s8.bf16 %v2880_v32 }
 0x797   :  { %3369 = vmatpush1.bf16.msra.mxu1 %v3063_v44  ;;  %3329 = vmatprep.subr.bf16.mxu0 %v2928_v23  ;;  %v2815_v44 = vld [vmem:[#allocation6 + $0x160] sm:$0xff] }
 0x798   :  { %3370 = vmatprep.subr.bf16.mxu1 %v3056_v45  ;;  %v2879_v23 = vld [vmem:[#allocation6 + $0x360] sm:$0xff]  ;;  %v2991_v45 = vunpack.c.h.s8.bf16 %v2815_v44 }
 0x799   :  { %v3119_v35 = vunpack.c.h.s8.bf16 %v2879_v23  ;;  %v3111_v50 = vunpack.c.l.s8.bf16 %v2879_v23  ;;  %v2778_v23 = vld [vmem:[#allocation6 + $0x38] sm:$0xff] }
 0x79a   :  { %3330 = vmatpush1.bf16.msra.mxu0 %v2927_v37  ;;  %v3112_v37 = vunpack.c.l.s8.bf16 %v2880_v32 }
 0x79b   :  { %3371 = vmatpush1.bf16.msra.mxu1 %v3055_v29  ;;  %3331 = vmatprep.subr.bf16.mxu0 %v2920_v46  ;;  %v2808_v29 = vld [vmem:[#allocation6 + $0x128] sm:$0xff] }
 0x79c   :  { %3372 = vmatprep.subr.bf16.mxu1 %v3048_v49  ;;  %v2872_v46 = vld [vmem:[#allocation6 + $0x328] sm:$0xff]  ;;  %v2983_v49 = vunpack.c.l.s8.bf16 %v2815_v44  ;;  %v2976_v19 = vunpack.c.h.s8.bf16 %v2808_v29  ;;  %v2968_v55 = vunpack.c.l.s8.bf16 %v2808_v29 }
 0x79e   :  { %3332 = vmatpush1.bf16.msra.mxu0 %v2919_v3  ;;  %v3104_v3 = vunpack.c.h.s8.bf16 %v2872_v46 }
 0x79f   :  { %3373 = vmatpush1.bf16.msra.mxu1 %v3047_v20  ;;  %3333 = vmatprep.subr.bf16.mxu0 %v2912_v51  ;;  %v2807_v20 = vld [vmem:[#allocation6 + $0x120] sm:$0xff] }
 0x7a0   :  { %3374 = vmatprep.subr.bf16.mxu1 %v3040_v53  ;;  %v2871_v51 = vld [vmem:[#allocation6 + $0x320] sm:$0xff]  ;;  %v2975_v53 = vunpack.c.h.s8.bf16 %v2807_v20 }
 0x7a1   :  { %v3103_v0 = vunpack.c.h.s8.bf16 %v2871_v51  ;;  %v3095_v54 = vunpack.c.l.s8.bf16 %v2871_v51  ;;  %v2834_v51 = vld [vmem:[#allocation6 + $0x1f8] sm:$0xff] }
 0x7a2   :  { %3334 = vmatpush1.bf16.msra.mxu0 %v2911_v27  ;;  %v3096_v27 = vunpack.c.l.s8.bf16 %v2872_v46  ;;  %v2777_v46 = vld [vmem:[#allocation6 + $0x30] sm:$0xff] }
 0x7a3   :  { %3375 = vmatpush1.bf16.msra.mxu1 %v3039_v56  ;;  %3335 = vmatprep.subr.bf16.mxu0 %v2904_v59  ;;  %v2802_v56 = vld [vmem:[#allocation6 + $0xf8] sm:$0xff] }
 0x7a4   :  { %3376 = vmatprep.subr.bf16.mxu1 %v3032_v33  ;;  %v2866_v59 = vld [vmem:[#allocation6 + $0x2f8] sm:$0xff]  ;;  %v2967_v33 = vunpack.c.l.s8.bf16 %v2807_v20  ;;  %v2962_v62 = vunpack.c.h.s8.bf16 %v2802_v56  ;;  %v2954_v9 = vunpack.c.l.s8.bf16 %v2802_v56 }
 0x7a6   :  { %3336 = vmatpush1.bf16.msra.mxu0 %v2903_v4  ;;  %v3090_v4 = vunpack.c.h.s8.bf16 %v2866_v59 }
 0x7a7   :  { %3377 = vmatpush1.bf16.msra.mxu1 %v3031_v5  ;;  %3337 = vmatprep.subr.bf16.mxu0 %v3024_v36  ;;  %v2801_v5 = vld [vmem:[#allocation6 + $0xf0] sm:$0xff] }
 0x7a8   :  { %3378 = vmatprep.subr.bf16.mxu1 %v3152_v38  ;;  %v2865_v36 = vld [vmem:[#allocation6 + $0x2f0] sm:$0xff]  ;;  %v2961_v38 = vunpack.c.h.s8.bf16 %v2801_v5 }
 0x7a9   :  { %v3089_v7 = vunpack.c.h.s8.bf16 %v2865_v36  ;;  %v3081_v41 = vunpack.c.l.s8.bf16 %v2865_v36  ;;  %v2826_v36 = vld [vmem:[#allocation6 + $0x1b8] sm:$0xff] }
 0x7aa   :  { %3338 = vmatpush2.bf16.msra.mxu0 %v3023_v58  ;;  %v3082_v58 = vunpack.c.l.s8.bf16 %v2866_v59  ;;  %v2833_v59 = vld [vmem:[#allocation6 + $0x1f0] sm:$0xff] }
 0x7ab   :  { %3379 = vmatpush2.bf16.msra.mxu1 %v3151_v10  ;;  %3339 = vmatprep.subr.bf16.mxu0 %v3016_v63  ;;  %v2794_v10 = vld [vmem:[#allocation6 + $0xb8] sm:$0xff] }
 0x7ac   :  { %3380 = vmatprep.subr.bf16.mxu1 %v3144_v11  ;;  %v2858_v63 = vld [vmem:[#allocation6 + $0x2b8] sm:$0xff]  ;;  %v2953_v11 = vunpack.c.l.s8.bf16 %v2801_v5  ;;  %v2946_v16 = vunpack.c.h.s8.bf16 %v2794_v10  ;;  %v2938_v61 = vunpack.c.l.s8.bf16 %v2794_v10 }
 0x7ae   :  { %3340 = vmatpush2.bf16.msra.mxu0 %v3015_v6  ;;  %v3074_v6 = vunpack.c.h.s8.bf16 %v2858_v63 }
 0x7af   :  { %3381 = vmatpush2.bf16.msra.mxu1 %v3143_v8  ;;  %3341 = vmatprep.subr.bf16.mxu0 %v3008_v24  ;;  %v2793_v8 = vld [vmem:[#allocation6 + $0xb0] sm:$0xff] }
 0x7b0   :  { %3382 = vmatprep.subr.bf16.mxu1 %v3136_v60  ;;  %v2857_v24 = vld [vmem:[#allocation6 + $0x2b0] sm:$0xff]  ;;  %v2945_v60 = vunpack.c.h.s8.bf16 %v2793_v8 }
 0x7b1   :  { %v3073_v39 = vunpack.c.h.s8.bf16 %v2857_v24  ;;  %v3065_v47 = vunpack.c.l.s8.bf16 %v2857_v24  ;;  %v2818_v24 = vld [vmem:[#allocation6 + $0x178] sm:$0xff] }
 0x7b2   :  { %3342 = vmatpush2.bf16.msra.mxu0 %v3007_v13  ;;  %v3066_v13 = vunpack.c.l.s8.bf16 %v2858_v63  ;;  %v2825_v63 = vld [vmem:[#allocation6 + $0x1b0] sm:$0xff] }
 0x7b3   :  { %3383 = vmatpush2.bf16.msra.mxu1 %v3135_v15  ;;  %3343 = vmatprep.subr.bf16.mxu0 %v3000_v57  ;;  %v2786_v15 = vld [vmem:[#allocation6 + $0x78] sm:$0xff] }
 0x7b4   :  { %3384 = vmatprep.subr.bf16.mxu1 %v3128_v31  ;;  %v2850_v57 = vld [vmem:[#allocation6 + $0x278] sm:$0xff]  ;;  %v2937_v31 = vunpack.c.l.s8.bf16 %v2793_v8  ;;  %v2930_v32 = vunpack.c.h.s8.bf16 %v2786_v15 }
 0x7b5   :  { %v3050_v44 = vunpack.c.l.s8.bf16 %v2850_v57 }
 0x7b6   :  { %3344 = vmatpush2.bf16.msra.mxu0 %v2999_v52  ;;  %v2785_v52 = vld [vmem:[#allocation6 + $0x70] sm:$0xff] }
 0x7b7   :  { %3385 = vmatpush2.bf16.msra.mxu1 %v3127_v40  ;;  %3345 = vmatprep.subr.bf16.mxu0 %v2992_v42  ;;  %v2929_v40 = vunpack.c.h.s8.bf16 %v2785_v52 }
 0x7b8   :  { %3386 = vmatprep.subr.bf16.mxu1 %v3120_v43  ;;  %v2922_v43 = vunpack.c.l.s8.bf16 %v2786_v15 }
 0x7ba   :  { %3346 = vmatpush2.bf16.msra.mxu0 %v2991_v45  ;;  %v2842_v45 = vld [vmem:[#allocation6 + $0x238] sm:$0xff] }
 0x7bb   :  { %3387 = vmatpush2.bf16.msra.mxu1 %v3119_v35  ;;  %3347 = vmatprep.subr.bf16.mxu0 %v2984_v48  ;;  %v2921_v35 = vunpack.c.l.s8.bf16 %v2785_v52  ;;  %v3042_v29 = vunpack.c.h.s8.bf16 %v2842_v45  ;;  %v3034_v20 = vunpack.c.l.s8.bf16 %v2842_v45  ;;  %v2809_v45 = vld [vmem:[#allocation6 + $0x130] sm:$0xff] }
 0x7bc   :  { %3388 = vmatprep.subr.bf16.mxu1 %v3112_v37  ;;  %v2914_v37 = vunpack.c.h.s8.bf16 %v2778_v23 }
 0x7be   :  { %3348 = vmatpush2.bf16.msra.mxu0 %v2983_v49  ;;  %v2841_v49 = vld [vmem:[#allocation6 + $0x230] sm:$0xff] }
 0x7bf   :  { %3389 = vmatpush2.bf16.msra.mxu1 %v3111_v50  ;;  %3349 = vmatprep.subr.bf16.mxu0 %v2976_v19  ;;  %v2913_v50 = vunpack.c.h.s8.bf16 %v2777_v46  ;;  %v3041_v19 = vunpack.c.h.s8.bf16 %v2841_v49 }
 0x7c0   :  { %3390 = vmatprep.subr.bf16.mxu1 %v3104_v3  ;;  %v2906_v3 = vunpack.c.l.s8.bf16 %v2778_v23 }
 0x7c2   :  { %3350 = vmatpush2.bf16.msra.mxu0 %v2975_v53  ;;  %v2898_v53 = vld [vmem:[#allocation6 + $0x3f8] sm:$0xff] }
 0x7c3   :  { %3391 = vmatpush2.bf16.msra.mxu1 %v3103_v0  ;;  %3351 = vmatprep.subr.bf16.mxu0 %v2968_v55  ;;  %v2905_v0 = vunpack.c.l.s8.bf16 %v2777_v46  ;;  %v3033_v55 = vunpack.c.l.s8.bf16 %v2841_v49  ;;  %v3154_v56 = vunpack.c.h.s8.bf16 %v2898_v53  ;;  %v3146_v5 = vunpack.c.l.s8.bf16 %v2898_v53 }
 0x7c4   :  { %3392 = vmatprep.subr.bf16.mxu1 %v3096_v27  ;;  %v3026_v27 = vunpack.c.h.s8.bf16 %v2834_v51  ;;  %v2969_v49 = vunpack.c.l.s8.bf16 %v2809_v45 }
 0x7c6   :  { %3352 = vmatpush2.bf16.msra.mxu0 %v2967_v33  ;;  %v2897_v33 = vld [vmem:[#allocation6 + $0x3f0] sm:$0xff] }
 0x7c7   :  { %3393 = vmatpush2.bf16.msra.mxu1 %v3095_v54  ;;  %3403 = vmatprep.subr.bf16.mxu0 %v2962_v62  ;;  %v3025_v54 = vunpack.c.h.s8.bf16 %v2833_v59  ;;  %v3153_v62 = vunpack.c.h.s8.bf16 %v2897_v33 }
 0x7c8   :  { %3444 = vmatprep.subr.bf16.mxu1 %v3090_v4  ;;  %v3018_v4 = vunpack.c.l.s8.bf16 %v2834_v51 }
 0x7c9   :  { %3354 = vmatmul.mubr.bf16.vlgmr.msra.gmra.mxu0 %v5278_v1 }
 0x7ca   :  { %3395 = vmatmul.mubr.bf16.vlgmr.msra.gmra.mxu1 %v5282_v25  ;;  %3404 = vmatpush1.bf16.msra.mxu0 %v2961_v38  ;;  %v2890_v38 = vld [vmem:[#allocation6 + $0x3b8] sm:$0xff] }
 0x7cb   :  { %3445 = vmatpush1.bf16.msra.mxu1 %v3089_v7  ;;  %3405 = vmatprep.subr.bf16.mxu0 %v2954_v9  ;;  %v3017_v7 = vunpack.c.l.s8.bf16 %v2833_v59  ;;  %v3145_v9 = vunpack.c.l.s8.bf16 %v2897_v33  ;;  %v3138_v10 = vunpack.c.h.s8.bf16 %v2890_v38  ;;  %v3130_v8 = vunpack.c.l.s8.bf16 %v2890_v38 }
 0x7cc   :  { %3446 = vmatprep.subr.bf16.mxu1 %v3082_v58  ;;  %3435 = vmatprep.mubr.bf16.mxu0 %v5280_v12  ;;  %v3058_v12 = vunpack.c.h.s8.bf16 %v2850_v57  ;;  %v3010_v58 = vunpack.c.h.s8.bf16 %v2826_v36  ;;  %v2817_v57 = vld [vmem:[#allocation6 + $0x170] sm:$0xff] }
 0x7cd   :  { %3476 = vmatprep.mubr.bf16.mxu1 %v5284_v34  ;;  %v2849_v34 = vld [vmem:[#allocation6 + $0x270] sm:$0xff] }
 0x7ce   :  { %3406 = vmatpush1.bf16.msra.mxu0 %v2953_v11  ;;  %v3057_v42 = vunpack.c.h.s8.bf16 %v2849_v34  ;;  %v3049_v48 = vunpack.c.l.s8.bf16 %v2849_v34  ;;  %v2889_v11 = vld [vmem:[#allocation6 + $0x3b0] sm:$0xff]  ;;  %v2810_v34 = vld [vmem:[#allocation6 + $0x138] sm:$0xff] }
 0x7cf   :  { %3447 = vmatpush1.bf16.msra.mxu1 %v3081_v41  ;;  %3407 = vmatprep.subr.bf16.mxu0 %v2946_v16  ;;  %v3009_v41 = vunpack.c.h.s8.bf16 %v2825_v63  ;;  %v3137_v16 = vunpack.c.h.s8.bf16 %v2889_v11 }
 0x7d0   :  { %3448 = vmatprep.subr.bf16.mxu1 %v3074_v6  ;;  %v3002_v6 = vunpack.c.l.s8.bf16 %v2826_v36 }
 0x7d2   :  { %3408 = vmatpush1.bf16.msra.mxu0 %v2945_v60  ;;  %v2882_v60 = vld [vmem:[#allocation6 + $0x378] sm:$0xff] }
 0x7d3   :  { %3449 = vmatpush1.bf16.msra.mxu1 %v3073_v39  ;;  %3409 = vmatprep.subr.bf16.mxu0 %v2938_v61  ;;  %v3001_v39 = vunpack.c.l.s8.bf16 %v2825_v63  ;;  %v3129_v61 = vunpack.c.l.s8.bf16 %v2889_v11  ;;  %v3122_v15 = vunpack.c.h.s8.bf16 %v2882_v60  ;;  %v3114_v52 = vunpack.c.l.s8.bf16 %v2882_v60 }
 0x7d4   :  { %3450 = vmatprep.subr.bf16.mxu1 %v3066_v13  ;;  %v2994_v13 = vunpack.c.h.s8.bf16 %v2818_v24 }
 0x7d6   :  { %3410 = vmatpush1.bf16.msra.mxu0 %v2937_v31  ;;  %v2881_v31 = vld [vmem:[#allocation6 + $0x370] sm:$0xff] }
 0x7d7   :  { %3451 = vmatpush1.bf16.msra.mxu1 %v3065_v47  ;;  %3411 = vmatprep.subr.bf16.mxu0 %v2930_v32  ;;  %v2993_v47 = vunpack.c.h.s8.bf16 %v2817_v57  ;;  %v3121_v32 = vunpack.c.h.s8.bf16 %v2881_v31 }
 0x7d8   :  { %3452 = vmatprep.subr.bf16.mxu1 %v3058_v12  ;;  %v2986_v12 = vunpack.c.l.s8.bf16 %v2818_v24 }
 0x7da   :  { %3412 = vmatpush1.bf16.msra.mxu0 %v2929_v40  ;;  %v2874_v40 = vld [vmem:[#allocation6 + $0x338] sm:$0xff] }
 0x7db   :  { %3453 = vmatpush1.bf16.msra.mxu1 %v3057_v42  ;;  %3413 = vmatprep.subr.bf16.mxu0 %v2922_v43  ;;  %v2985_v42 = vunpack.c.l.s8.bf16 %v2817_v57  ;;  %v3113_v43 = vunpack.c.l.s8.bf16 %v2881_v31  ;;  %v3106_v23 = vunpack.c.h.s8.bf16 %v2874_v40  ;;  %v3098_v46 = vunpack.c.l.s8.bf16 %v2874_v40 }
 0x7dc   :  { %3454 = vmatprep.subr.bf16.mxu1 %v3050_v44  ;;  %v2978_v44 = vunpack.c.h.s8.bf16 %v2810_v34 }
 0x7de   :  { %3414 = vmatpush1.bf16.msra.mxu0 %v2921_v35  ;;  %v2873_v35 = vld [vmem:[#allocation6 + $0x330] sm:$0xff] }
 0x7df   :  { %3455 = vmatpush1.bf16.msra.mxu1 %v3049_v48  ;;  %3415 = vmatprep.subr.bf16.mxu0 %v2914_v37  ;;  %v2977_v48 = vunpack.c.h.s8.bf16 %v2809_v45  ;;  %v3105_v37 = vunpack.c.h.s8.bf16 %v2873_v35 }
 0x7e0   :  { %3456 = vmatprep.subr.bf16.mxu1 %v3042_v29  ;;  %v2970_v29 = vunpack.c.l.s8.bf16 %v2810_v34 }
 0x7e2   :  { %3416 = vmatpush1.bf16.msra.mxu0 %v2913_v50  ;;  %v3097_v50 = vunpack.c.l.s8.bf16 %v2873_v35 }
 0x7e3   :  { %3457 = vmatpush1.bf16.msra.mxu1 %v3041_v19  ;;  %3417 = vmatprep.subr.bf16.mxu0 %v2906_v3  ;;  %v5300_v19 = vld [vmem:[#allocation9 + $0x4a] ss:$4 sm:$0xff] }
 0x7e4   :  { %3458 = vmatprep.subr.bf16.mxu1 %v3034_v20  ;;  %v3489_v3 = vrot.slane %v5300_v19, %v5048_v26 }
 0x7e6   :  { %3418 = vmatpush1.bf16.msra.mxu0 %v2905_v0  ;;  %v3493_v0 = vrot.slane %v5300_v19, %v5053_v28 }
 0x7e7   :  { %3459 = vmatpush1.bf16.msra.mxu1 %v3033_v55  ;;  %3419 = vmatprep.subr.bf16.mxu0 %v3026_v27 }
 0x7e8   :  { %3460 = vmatprep.subr.bf16.mxu1 %v3154_v56 }
 0x7ea   :  { %3420 = vmatpush2.bf16.msra.mxu0 %v3025_v54 }
 0x7eb   :  { %3461 = vmatpush2.bf16.msra.mxu1 %v3153_v62  ;;  %3421 = vmatprep.subr.bf16.mxu0 %v3018_v4 }
 0x7ec   :  { %3462 = vmatprep.subr.bf16.mxu1 %v3146_v5 }
 0x7ee   :  { %3422 = vmatpush2.bf16.msra.mxu0 %v3017_v7 }
 0x7ef   :  { %3463 = vmatpush2.bf16.msra.mxu1 %v3145_v9  ;;  %3423 = vmatprep.subr.bf16.mxu0 %v3010_v58 }
 0x7f0   :  { %3464 = vmatprep.subr.bf16.mxu1 %v3138_v10 }
 0x7f2   :  { %3424 = vmatpush2.bf16.msra.mxu0 %v3009_v41 }
 0x7f3   :  { %3465 = vmatpush2.bf16.msra.mxu1 %v3137_v16  ;;  %3425 = vmatprep.subr.bf16.mxu0 %v3002_v6 }
 0x7f4   :  { %3466 = vmatprep.subr.bf16.mxu1 %v3130_v8 }
 0x7f6   :  { %3426 = vmatpush2.bf16.msra.mxu0 %v3001_v39 }
 0x7f7   :  { %3467 = vmatpush2.bf16.msra.mxu1 %v3129_v61  ;;  %3427 = vmatprep.subr.bf16.mxu0 %v2994_v13 }
 0x7f8   :  { %3468 = vmatprep.subr.bf16.mxu1 %v3122_v15 }
 0x7fa   :  { %3428 = vmatpush2.bf16.msra.mxu0 %v2993_v47 }
 0x7fb   :  { %3469 = vmatpush2.bf16.msra.mxu1 %v3121_v32  ;;  %3429 = vmatprep.subr.bf16.mxu0 %v2986_v12 }
 0x7fc   :  { %3470 = vmatprep.subr.bf16.mxu1 %v3114_v52 }
 0x7fe   :  { %3430 = vmatpush2.bf16.msra.mxu0 %v2985_v42 }
 0x7ff   :  { %3471 = vmatpush2.bf16.msra.mxu1 %v3113_v43  ;;  %3431 = vmatprep.subr.bf16.mxu0 %v2978_v44 }
 0x800   :  { %3472 = vmatprep.subr.bf16.mxu1 %v3106_v23 }
 0x802   :  { %3432 = vmatpush2.bf16.msra.mxu0 %v2977_v48 }
 0x803   :  { %3473 = vmatpush2.bf16.msra.mxu1 %v3105_v37  ;;  %3433 = vmatprep.subr.bf16.mxu0 %v2970_v29 }
 0x804   :  { %3474 = vmatprep.subr.bf16.mxu1 %v3098_v46  ;;  %v3497_v46 = vrot.slane %v5300_v19, %v5073_v18 }
 0x806   :  { %3434 = vmatpush2.bf16.msra.mxu0 %v2969_v49 }
 0x807   :  { %3475 = vmatpush2.bf16.msra.mxu1 %v3097_v50 }
 0x809   :  { %v3191_v20 = vpop.f32.mrf.mxu0  ;;  %3436 = vmatmul.mubr.bf16.vlgmr.msra.gmra.mxu0 %v5278_v1 }
 0x80a   :  { %v3232_v51 = vpop.f32.mrf.mxu1  ;;  %3477 = vmatmul.mubr.bf16.vlgmr.msra.gmra.mxu1 %v5282_v25 }
 0x80b   :  { %v3233_v53 = vadd.f32 %v3232_v51, %v3191_v20  ;;  %v3193_v55 = vpop.f32.mrf.mxu0  ;;  %v3501_v20 = vrot.slane %v5300_v19, %v5076_v2 }
 0x80c   :  { %v3234_v27 = vpop.f32.mrf.mxu1 }
 0x80d   :  { %v3526_v56 = vmul.f32 %v3489_v3, %v3233_v53  ;;  %v3235_v59 = vadd.f32 %v3234_v27, %v3193_v55  ;;  %v3195_v33 = vpop.f32.mrf.mxu0 }
 0x80e   :  { %v3236_v54 = vpop.f32.mrf.mxu1 }
 0x80f   :  { %v3538_v62 = vrot.slane %v3526_v56, 4  ;;  %v3527_v4 = vmul.f32 %v3493_v0, %v3235_v59  ;;  %v3196_v5 = vpop.f32.mrf.mxu0 }
 0x810   :  { %v3237_v36 = vpop.f32.mrf.mxu1 }
 0x811   :  { %v3539_v38 = vadd.f32 %v3538_v62, %v3526_v56  ;;  %v3544_v7 = vrot.slane %v3527_v4, 4 }
 0x813   :  { %v3540_v9 = vrot.slane %v3539_v38, 2  ;;  %v3545_v1 = vadd.f32 %v3544_v7, %v3527_v4 }
 0x815   :  { %v3541_v58 = vadd.f32 %v3540_v9, %v3539_v38  ;;  %v3546_v25 = vrot.slane %v3545_v1, 2 }
 0x817   :  { %v3542_v10 = vrot.slane %v3541_v58, 1  ;;  %v3547_v63 = vadd.f32 %v3546_v25, %v3545_v1 }
 0x819   :  { %v3543_v11 = vadd.f32 %v3542_v10, %v3541_v58  ;;  %v3548_v41 = vrot.slane %v3547_v63, 1 }
 0x81b   :  { %v3586_v16 = vmul.f32 0.125, %v3543_v11  ;;  %v3549_v6 = vadd.f32 %v3548_v41, %v3547_v63 }
 0x81d   :  { %v5308_v8 = vsub.f32 %v3526_v56, %v3586_v16  ;;  %v3587_v24 = vmul.f32 0.125, %v3549_v6 }
 0x81f   :  { %v3602_v60 = vmul.f32 %v5308_v8, %v5308_v8  ;;  %v5312_v39 = vsub.f32 %v3527_v4, %v3587_v24 }
 0x821   :  { %v3610_v61 = vrot.slane %v3602_v60, 4  ;;  %v3603_v13 = vmul.f32 %v5312_v39, %v5312_v39 }
 0x823   :  { %v3611_v15 = vadd.f32 %v3610_v61, %v3602_v60  ;;  %v3616_v57 = vrot.slane %v3603_v13, 4 }
 0x825   :  { %v3612_v31 = vrot.slane %v3611_v15, 2  ;;  %v3617_v47 = vadd.f32 %v3616_v57, %v3603_v13 }
 0x827   :  { %v3613_v32 = vadd.f32 %v3612_v31, %v3611_v15  ;;  %v3618_v12 = vrot.slane %v3617_v47, 2 }
 0x829   :  { %v3614_v52 = vrot.slane %v3613_v32, 1  ;;  %v3619_v34 = vadd.f32 %v3618_v12, %v3617_v47 }
 0x82b   :  { %v3615_v40 = vadd.f32 %v3614_v52, %v3613_v32  ;;  %v3620_v42 = vrot.slane %v3619_v34, 1 }
 0x82d   :  { %v3658_v43 = vmul.f32 0.125, %v3615_v40  ;;  %v3621_v44 = vadd.f32 %v3620_v42, %v3619_v34 }
 0x82f   :  { %v3666_v23 = vadd.f32 1e-05, %v3658_v43  ;;  %v3659_v45 = vmul.f32 0.125, %v3621_v44 }
 0x831   :  { %v3667_v35 = vadd.f32 1e-05, %v3659_v45  ;;  %4738 = vrsqrt.f32 %v3666_v23 }
 0x833   :  { %4740 = vrsqrt.f32 %v3667_v35 }
 0x83e   :  { %v4739_v48 = vpop.eup %4738 }
 0x840   :  { %v4741_v37 = vpop.eup %4740 }
 0x841   :  { %v3690_v29 = vcombine.low %v4739_v48, %v4741_v37 }
 0x849   :  { %v3273_v49 = vpop.f32.mrf.mxu0 }
 0x84a   :  { %v3314_v50 = vpop.f32.mrf.mxu1 }
 0x84b   :  { %v3315_v3 = vadd.f32 %v3314_v50, %v3273_v49  ;;  %v3275_v51 = vpop.f32.mrf.mxu0 }
 0x84c   :  { %v3316_v53 = vpop.f32.mrf.mxu1 }
 0x84d   :  { %v3528_v0 = vmul.f32 %v3497_v46, %v3315_v3  ;;  %v3317_v55 = vadd.f32 %v3316_v53, %v3275_v51  ;;  %v3277_v27 = vpop.f32.mrf.mxu0  ;;  %v5329_v46 = vrot.slane %v3690_v29, %v5091_v14  ;;  %v3505_v3 = vrot.slane %v5300_v19, %v5102_v21 }
 0x84e   :  { %v3318_v56 = vpop.f32.mrf.mxu1 }
 0x84f   :  { %v3550_v59 = vrot.slane %v3528_v0, 4  ;;  %v3529_v33 = vmul.f32 %v3501_v20, %v3317_v55  ;;  %v3278_v54 = vpop.f32.mrf.mxu0 }
 0x850   :  { %v3319_v62 = vpop.f32.mrf.mxu1 }
 0x851   :  { %v3551_v4 = vadd.f32 %v3550_v59, %v3528_v0  ;;  %v3556_v5 = vrot.slane %v3529_v33, 4 }
 0x853   :  { %v3552_v36 = vrot.slane %v3551_v4, 2  ;;  %v3557_v38 = vadd.f32 %v3556_v5, %v3529_v33 }
 0x855   :  { %v3553_v7 = vadd.f32 %v3552_v36, %v3551_v4  ;;  %v3558_v9 = vrot.slane %v3557_v38, 2 }
 0x857   :  { %v3554_v1 = vrot.slane %v3553_v7, 1  ;;  %v3559_v58 = vadd.f32 %v3558_v9, %v3557_v38 }
 0x859   :  { %v3555_v25 = vadd.f32 %v3554_v1, %v3553_v7  ;;  %v3560_v10 = vrot.slane %v3559_v58, 1 }
 0x85b   :  { %v3588_v63 = vmul.f32 0.125, %v3555_v25  ;;  %v3561_v11 = vadd.f32 %v3560_v10, %v3559_v58 }
 0x85d   :  { %v5320_v41 = vsub.f32 %v3528_v0, %v3588_v63  ;;  %v3589_v16 = vmul.f32 0.125, %v3561_v11  ;;  %v3509_v0 = vrot.slane %v5300_v19, %v5105_v22 }
 0x85f   :  { %v3604_v6 = vmul.f32 %v5320_v41, %v5320_v41  ;;  %v5324_v24 = vsub.f32 %v3529_v33, %v3589_v16 }
 0x861   :  { %v3622_v60 = vrot.slane %v3604_v6, 4  ;;  %v3605_v61 = vmul.f32 %v5324_v24, %v5324_v24 }
 0x863   :  { %v3623_v13 = vadd.f32 %v3622_v60, %v3604_v6  ;;  %v3628_v15 = vrot.slane %v3605_v61, 4 }
 0x865   :  { %v3624_v57 = vrot.slane %v3623_v13, 2  ;;  %v3629_v31 = vadd.f32 %v3628_v15, %v3605_v61 }
 0x867   :  { %v3625_v47 = vadd.f32 %v3624_v57, %v3623_v13  ;;  %v3630_v32 = vrot.slane %v3629_v31, 2 }
 0x869   :  { %v3626_v12 = vrot.slane %v3625_v47, 1  ;;  %v3631_v52 = vadd.f32 %v3630_v32, %v3629_v31 }
 0x86b   :  { %v3627_v34 = vadd.f32 %v3626_v12, %v3625_v47  ;;  %v3632_v40 = vrot.slane %v3631_v52, 1 }
 0x86d   :  { %v3660_v42 = vmul.f32 0.125, %v3627_v34  ;;  %v3633_v43 = vadd.f32 %v3632_v40, %v3631_v52 }
 0x86f   :  { %v3668_v44 = vadd.f32 1e-05, %v3660_v42  ;;  %v3661_v23 = vmul.f32 0.125, %v3633_v43 }
 0x871   :  { %v3669_v45 = vadd.f32 1e-05, %v3661_v23  ;;  %4742 = vrsqrt.f32 %v3668_v44 }
 0x873   :  { %4744 = vrsqrt.f32 %v3669_v45 }
 0x87e   :  { %v4743_v35 = vpop.eup %4742 }
 0x880   :  { %v4745_v48 = vpop.eup %4744 }
 0x881   :  { %v3691_v37 = vcombine.low %v4743_v35, %v4745_v48 }
 0x883   :  { %v5332_v49 = vrot.slane %v3691_v37, %v5091_v14 }
 0x885   :  { %v3722_v50 = vcombine.low %v5329_v46, %v5332_v49 }
 0x889   :  { %v3355_v20 = vpop.f32.mrf.mxu0 }
 0x88a   :  { %v3396_v51 = vpop.f32.mrf.mxu1 }
 0x88b   :  { %v3397_v53 = vadd.f32 %v3396_v51, %v3355_v20  ;;  %v3357_v55 = vpop.f32.mrf.mxu0 }
 0x88c   :  { %v3398_v27 = vpop.f32.mrf.mxu1 }
 0x88d   :  { %v3530_v56 = vmul.f32 %v3505_v3, %v3397_v53  ;;  %v3399_v29 = vadd.f32 %v3398_v27, %v3357_v55  ;;  %v3359_v59 = vpop.f32.mrf.mxu0 }
 0x88e   :  { %v3400_v33 = vpop.f32.mrf.mxu1 }
 0x88f   :  { %v3562_v54 = vrot.slane %v3530_v56, 4  ;;  %v3531_v62 = vmul.f32 %v3509_v0, %v3399_v29  ;;  %v3360_v4 = vpop.f32.mrf.mxu0  ;;  %v3513_v0 = vrot.slane %v5300_v19, %v5120_v30  ;;  %v3517_v29 = vrot.slane %v5300_v19, %v5123_v17 }
 0x890   :  { %v3401_v5 = vpop.f32.mrf.mxu1 }
 0x891   :  { %v3563_v36 = vadd.f32 %v3562_v54, %v3530_v56  ;;  %v3568_v38 = vrot.slane %v3531_v62, 4 }
 0x893   :  { %v3564_v7 = vrot.slane %v3563_v36, 2  ;;  %v3569_v9 = vadd.f32 %v3568_v38, %v3531_v62 }
 0x895   :  { %v3565_v1 = vadd.f32 %v3564_v7, %v3563_v36  ;;  %v3570_v58 = vrot.slane %v3569_v9, 2 }
 0x897   :  { %v3566_v25 = vrot.slane %v3565_v1, 1  ;;  %v3571_v10 = vadd.f32 %v3570_v58, %v3569_v9 }
 0x899   :  { %v3567_v63 = vadd.f32 %v3566_v25, %v3565_v1  ;;  %v3572_v11 = vrot.slane %v3571_v10, 1 }
 0x89b   :  { %v3590_v16 = vmul.f32 0.125, %v3567_v63  ;;  %v3573_v6 = vadd.f32 %v3572_v11, %v3571_v10 }
 0x89d   :  { %v5340_v60 = vsub.f32 %v3530_v56, %v3590_v16  ;;  %v3591_v61 = vmul.f32 0.125, %v3573_v6 }
 0x89f   :  { %v3606_v13 = vmul.f32 %v5340_v60, %v5340_v60  ;;  %v5344_v15 = vsub.f32 %v3531_v62, %v3591_v61 }
 0x8a1   :  { %v3634_v57 = vrot.slane %v3606_v13, 4  ;;  %v3607_v31 = vmul.f32 %v5344_v15, %v5344_v15 }
 0x8a3   :  { %v3635_v47 = vadd.f32 %v3634_v57, %v3606_v13  ;;  %v3640_v32 = vrot.slane %v3607_v31, 4 }
 0x8a5   :  { %v3636_v12 = vrot.slane %v3635_v47, 2  ;;  %v3641_v52 = vadd.f32 %v3640_v32, %v3607_v31 }
 0x8a7   :  { %v3637_v34 = vadd.f32 %v3636_v12, %v3635_v47  ;;  %v3642_v40 = vrot.slane %v3641_v52, 2 }
 0x8a9   :  { %v3638_v42 = vrot.slane %v3637_v34, 1  ;;  %v3643_v43 = vadd.f32 %v3642_v40, %v3641_v52 }
 0x8ab   :  { %v3639_v44 = vadd.f32 %v3638_v42, %v3637_v34  ;;  %v3644_v23 = vrot.slane %v3643_v43, 1 }
 0x8ad   :  { %v3662_v45 = vmul.f32 0.125, %v3639_v44  ;;  %v3645_v35 = vadd.f32 %v3644_v23, %v3643_v43 }
 0x8af   :  { %v3670_v48 = vadd.f32 1e-05, %v3662_v45  ;;  %v3663_v37 = vmul.f32 0.125, %v3645_v35 }
 0x8b1   :  { %v3671_v3 = vadd.f32 1e-05, %v3663_v37  ;;  %4746 = vrsqrt.f32 %v3670_v48 }
 0x8b3   :  { %4748 = vrsqrt.f32 %v3671_v3 }
 0x8be   :  { %v4747_v20 = vpop.eup %4746 }
 0x8c0   :  { %v4749_v51 = vpop.eup %4748 }
 0x8c1   :  { %v3692_v53 = vcombine.low %v4747_v20, %v4749_v51 }
 0x8c9   :  { %v3437_v55 = vpop.f32.mrf.mxu0 }
 0x8ca   :  { %v3478_v27 = vpop.f32.mrf.mxu1 }
 0x8cb   :  { %v3479_v56 = vadd.f32 %v3478_v27, %v3437_v55  ;;  %v3439_v59 = vpop.f32.mrf.mxu0 }
 0x8cc   :  { %v3480_v33 = vpop.f32.mrf.mxu1 }
 0x8cd   :  { %v3532_v54 = vmul.f32 %v3513_v0, %v3479_v56  ;;  %v3481_v62 = vadd.f32 %v3480_v33, %v3439_v59  ;;  %v3441_v4 = vpop.f32.mrf.mxu0  ;;  %v3714_v33 = vrot.slane %v3692_v53, %v5091_v14 }
 0x8ce   :  { %v3482_v5 = vpop.f32.mrf.mxu1  ;;  %v3730_v4 = vrot.slane %v3722_v50, %v5091_v14 }
 0x8cf   :  { %v3574_v36 = vrot.slane %v3532_v54, 4  ;;  %v3533_v38 = vmul.f32 %v3517_v29, %v3481_v62  ;;  %v3442_v7 = vpop.f32.mrf.mxu0  ;;  %v3537_v5 = vld [vmem:[#allocation9 + $0x49] ss:$4 sm:$0xff] }
 0x8d0   :  { %v3483_v9 = vpop.f32.mrf.mxu1  ;;  %v3802_v53 = vrot.slane %v3537_v5, %v5073_v18  ;;  %v3818_v46 = vrot.slane %v3537_v5, %v5120_v30  ;;  %v3822_v49 = vrot.slane %v3537_v5, %v5123_v17 }
 0x8d1   :  { %v3575_v1 = vadd.f32 %v3574_v36, %v3532_v54  ;;  %v3580_v58 = vrot.slane %v3533_v38, 4  ;;  %v3794_v9 = vrot.slane %v3537_v5, %v5048_v26 }
 0x8d3   :  { %v3576_v25 = vrot.slane %v3575_v1, 2  ;;  %v3581_v10 = vadd.f32 %v3580_v58, %v3533_v38  ;;  %v3798_v58 = vrot.slane %v3537_v5, %v5053_v28 }
 0x8d5   :  { %v3577_v63 = vadd.f32 %v3576_v25, %v3575_v1  ;;  %v3582_v11 = vrot.slane %v3581_v10, 2  ;;  %v3806_v25 = vrot.slane %v3537_v5, %v5076_v2 }
 0x8d7   :  { %v3578_v16 = vrot.slane %v3577_v63, 1  ;;  %v3583_v6 = vadd.f32 %v3582_v11, %v3581_v10  ;;  %v3810_v10 = vrot.slane %v3537_v5, %v5102_v21 }
 0x8d9   :  { %v3579_v61 = vadd.f32 %v3578_v16, %v3577_v63  ;;  %v3584_v19 = vrot.slane %v3583_v6, 1  ;;  %v3814_v63 = vrot.slane %v3537_v5, %v5105_v22 }
 0x8db   :  { %v3592_v13 = vmul.f32 0.125, %v3579_v61  ;;  %v3585_v57 = vadd.f32 %v3584_v19, %v3583_v6 }
 0x8dd   :  { %v3600_v31 = vsub.f32 %v3532_v54, %v3592_v13  ;;  %v3593_v47 = vmul.f32 0.125, %v3585_v57 }
 0x8df   :  { %v3608_v32 = vmul.f32 %v3600_v31, %v3600_v31  ;;  %v3601_v12 = vsub.f32 %v3533_v38, %v3593_v47  ;;  %v3535_v38 = vld [vmem:[#allocation9 + $0x48] ss:$4 sm:$0xff] }
 0x8e1   :  { %v3646_v52 = vrot.slane %v3608_v32, 4  ;;  %v3609_v34 = vmul.f32 %v3601_v12, %v3601_v12 }
 0x8e3   :  { %v3647_v40 = vadd.f32 %v3646_v52, %v3608_v32  ;;  %v3652_v42 = vrot.slane %v3609_v34, 4 }
 0x8e5   :  { %v3648_v43 = vrot.slane %v3647_v40, 2  ;;  %v3653_v44 = vadd.f32 %v3652_v42, %v3609_v34 }
 0x8e7   :  { %v3649_v23 = vadd.f32 %v3648_v43, %v3647_v40  ;;  %v3654_v45 = vrot.slane %v3653_v44, 2 }
 0x8e9   :  { %v3650_v35 = vrot.slane %v3649_v23, 1  ;;  %v3655_v48 = vadd.f32 %v3654_v45, %v3653_v44 }
 0x8eb   :  { %v3651_v37 = vadd.f32 %v3650_v35, %v3649_v23  ;;  %v3656_v3 = vrot.slane %v3655_v48, 1 }
 0x8ed   :  { %v3664_v20 = vmul.f32 0.125, %v3651_v37  ;;  %v3657_v51 = vadd.f32 %v3656_v3, %v3655_v48 }
 0x8ef   :  { %v3672_v0 = vadd.f32 1e-05, %v3664_v20  ;;  %v3665_v55 = vmul.f32 0.125, %v3657_v51 }
 0x8f1   :  { %v3673_v27 = vadd.f32 1e-05, %v3665_v55  ;;  %4750 = vrsqrt.f32 %v3672_v0 }
 0x8f3   :  { %4752 = vrsqrt.f32 %v3673_v27 }
 0x8fe   :  { %v4751_v56 = vpop.eup %4750 }
 0x900   :  { %v4753_v29 = vpop.eup %4752 }
 0x901   :  { %v3693_v59 = vcombine.low %v4751_v56, %v4753_v29 }
 0x903   :  { %v3721_v54 = vrot.slane %v3693_v59, %v5091_v14 }
 0x905   :  { %v3723_v62 = vcombine.low %v3714_v33, %v3721_v54 }
 0x907   :  { %v3737_v36 = vrot.slane %v3723_v62, %v5091_v14 }
 0x909   :  { %v3738_v7 = vcombine.low %v3730_v4, %v3737_v36 }
 0x90b   :  { %v3740_v1 = vmul.f32 %v3738_v7, %v3535_v38 }
 0x90d   :  { %v3745_v14 = vrot.slane %v3740_v1, %v5048_v26  ;;  %v3749_v50 = vrot.slane %v3740_v1, %v5053_v28  ;;  %v3753_v11 = vrot.slane %v3740_v1, %v5073_v18  ;;  %v3757_v16 = vrot.slane %v3740_v1, %v5076_v2 }
 0x90e   :  { %v3761_v6 = vrot.slane %v3740_v1, %v5102_v21  ;;  %v3765_v61 = vrot.slane %v3740_v1, %v5105_v22  ;;  %v3769_v19 = vrot.slane %v3740_v1, %v5120_v30  ;;  %v3773_v13 = vrot.slane %v3740_v1, %v5123_v17 }
 0x90f   :  { %v3782_v57 = vmul.f32 %v3745_v14, %v5308_v8  ;;  %v3783_v47 = vmul.f32 %v3749_v50, %v5312_v39  ;;  %v3784_v32 = vmul.f32 %v3753_v11, %v5320_v41  ;;  %v3785_v52 = vmul.f32 %v3757_v16, %v5324_v24 }
 0x910   :  { %v3786_v34 = vmul.f32 %v3761_v6, %v5340_v60  ;;  %v3787_v40 = vmul.f32 %v3765_v61, %v5344_v15  ;;  %v3788_v42 = vmul.f32 %v3769_v19, %v3600_v31  ;;  %v3789_v21 = vmul.f32 %v3773_v13, %v3601_v12 }
 0x911   :  { %v3831_v43 = vadd.f32 %v3794_v9, %v3782_v57  ;;  %v3832_v22 = vadd.f32 %v3798_v58, %v3783_v47  ;;  %v3833_v44 = vadd.f32 %v3802_v53, %v3784_v32  ;;  %v3834_v30 = vadd.f32 %v3806_v25, %v3785_v52 }
 0x912   :  { %v3835_v23 = vadd.f32 %v3810_v10, %v3786_v34  ;;  %v3836_v17 = vadd.f32 %v3814_v63, %v3787_v40  ;;  %v3837_v45 = vadd.f32 %v3818_v46, %v3788_v42  ;;  %v3838_v8 = vadd.f32 %v3822_v49, %v3789_v21 }
 0x913   :  { %v3839_v35 = vmax.f32 %v3831_v43, 0.0  ;;  %v3840_v39 = vmax.f32 %v3832_v22, 0.0  ;;  %v3841_v48 = vmax.f32 %v3833_v44, 0.0  ;;  %v3842_v41 = vmax.f32 %v3834_v30, 0.0 }
 0x914   :  { %v3843_v37 = vmax.f32 %v3835_v23, 0.0  ;;  %v3844_v24 = vmax.f32 %v3836_v17, 0.0  ;;  %v3845_v3 = vmax.f32 %v3837_v45, 0.0  ;;  %v3846_v60 = vmax.f32 %v3838_v8, 0.0 }
 0x915   :  { %v5381_v20 = vpack.c.bf16 %v3839_v35, %v3839_v35  ;;  %v5383_v15 = vpack.c.bf16 %v3840_v39, %v3840_v39  ;;  %v5385_v31 = vpack.c.bf16 %v3841_v48, %v3841_v48  ;;  %v5387_v12 = vpack.c.bf16 %v3842_v41, %v3842_v41 }
 0x916   :  { %v5389_v51 = vpack.c.bf16 %v3843_v37, %v3843_v37  ;;  %v5391_v0 = vpack.c.bf16 %v3844_v24, %v3844_v24  ;;  %v5393_v55 = vpack.c.bf16 %v3845_v3, %v3845_v3  ;;  %v5395_v27 = vpack.c.bf16 %v3846_v60, %v3846_v60 }
 0x917   :  { %4926 = dma.done.wait [#allocation8 + $0x5], 16384 }
 0x918   :  { %4927 = vsyncadd [#allocation8 + $0x5], 4294950912  ;;  %4275 = vmatprep.mubr.bf16.mxu0 %v5383_v15  ;;  %4316 = vmatprep.mubr.bf16.mxu1 %v5387_v12  ;;  %v3870_v56 = vld [vmem:[#allocation7 + $0x68] sm:$0xff]  ;;  %v3869_v59 = vld [vmem:[#allocation7 + $0x60] sm:$0xff]  ;;  %s4938_s6 = smov [#allocation12]  }
 0x919   :  { %v3902_v29 = vld [vmem:[#allocation7 + $0x168] sm:$0xff]  ;;  %v4010_v33 = vunpack.c.l.s8.bf16 %v3870_v56  ;;  %v4014_v54 = vunpack.c.h.s8.bf16 %v3870_v56  ;;  %v3901_v5 = vld [vmem:[#allocation7 + $0x160] sm:$0xff]  ;;  %v4013_v36 = vunpack.c.h.s8.bf16 %v3869_v59  ;;  %v4009_v1 = vunpack.c.l.s8.bf16 %v3869_v59  ;;  %s4633_s7 = sshll.u32 %s4938_s6, 4  ;;  %s4634_s7 = int_to_ptr.vmem [resolvable:$true] %s4633_s7 }
 0x91a   :  { %v4074_v62 = vunpack.c.l.s8.bf16 %v3902_v29  ;;  %v4078_v4 = vunpack.c.h.s8.bf16 %v3902_v29  ;;  %v4077_v38 = vunpack.c.h.s8.bf16 %v3901_v5  ;;  %v3866_v7 = vld [vmem:[#allocation7 + $0x48] sm:$0xff]  ;;  %v4073_v58 = vunpack.c.l.s8.bf16 %v3901_v5  ;;  %v3865_v10 = vld [vmem:[#allocation7 + $0x40] sm:$0xff]  ;;  %s4894_s16 = scalar_lea.vmem %s4634_s7, 512  ;;  %p4899_p8 = scmp.lt.s32.totalorder %s4634_s7, %s4634_s7 }
 0x91b   :  { %v3898_v9 = vld [vmem:[#allocation7 + $0x148] sm:$0xff]  ;;  %4243 = vmatprep.subr.bf16.mxu0 %v4014_v54  ;;  %v4006_v53 = vunpack.c.h.s8.bf16 %v3866_v7  ;;  %v3897_v63 = vld [vmem:[#allocation7 + $0x140] sm:$0xff]  ;;  %v4005_v46 = vunpack.c.h.s8.bf16 %v3865_v10  ;;  %v4002_v14 = vunpack.c.l.s8.bf16 %v3866_v7  ;;  %v4001_v6 = vunpack.c.l.s8.bf16 %v3865_v10  ;;  %p4895_p7 = scmp.ne.s32.totalorder %s4634_s7, %s4894_s16  ;;  %p4900_p9 = scmp.lt.s32.totalorder %s4894_s16, %s4894_s16 }
 0x91c   :  { %4284 = vmatprep.subr.bf16.mxu1 %v4078_v4  ;;  %4244 = vmatpush1.bf16.msra.mxu0 %v4013_v36  ;;  %v4070_v25 = vunpack.c.h.s8.bf16 %v3898_v9  ;;  %v4069_v49 = vunpack.c.h.s8.bf16 %v3897_v63  ;;  %v4066_v50 = vunpack.c.l.s8.bf16 %v3898_v9  ;;  %v3862_v11 = vld [vmem:[#allocation7 + $0x28] sm:$0xff]  ;;  %v4065_v61 = vunpack.c.l.s8.bf16 %v3897_v63  ;;  %v3861_v57 = vld [vmem:[#allocation7 + $0x20] sm:$0xff] }
 0x91d   :  { %4285 = vmatpush1.bf16.msra.mxu1 %v4077_v38  ;;  %4245 = vmatprep.subr.bf16.mxu0 %v4010_v33  ;;  %v3894_v16 = vld [vmem:[#allocation7 + $0x128] sm:$0xff]  ;;  %v3998_v19 = vunpack.c.h.s8.bf16 %v3862_v11  ;;  %v3893_v47 = vld [vmem:[#allocation7 + $0x120] sm:$0xff]  ;;  %v3997_v32 = vunpack.c.h.s8.bf16 %v3861_v57  ;;  %v3994_v34 = vunpack.c.l.s8.bf16 %v3862_v11  ;;  %v3993_v43 = vunpack.c.l.s8.bf16 %v3861_v57  ;;  %p4901_p10 = por %p4900_p9, %p4899_p8 }
 0x91e   :  { %4286 = vmatprep.subr.bf16.mxu1 %v4074_v62  ;;  %v4062_v13 = vunpack.c.h.s8.bf16 %v3894_v16  ;;  %v4061_v52 = vunpack.c.h.s8.bf16 %v3893_v47  ;;  %v4058_v40 = vunpack.c.l.s8.bf16 %v3894_v16  ;;  %v3858_v42 = vld [vmem:[#allocation7 + $0x8] sm:$0xff]  ;;  %v4057_v22 = vunpack.c.l.s8.bf16 %v3893_v47  ;;  %v3857_v23 = vld [vmem:[#allocation7] sm:$0xff] }
 0x91f   :  { %v3890_v21 = vld [vmem:[#allocation7 + $0x108] sm:$0xff]  ;;  %v3990_v44 = vunpack.c.h.s8.bf16 %v3858_v42  ;;  %v3889_v17 = vld [vmem:[#allocation7 + $0x100] sm:$0xff]  ;;  %v3989_v45 = vunpack.c.h.s8.bf16 %v3857_v23  ;;  %v3986_v35 = vunpack.c.l.s8.bf16 %v3858_v42  ;;  %v3985_v37 = vunpack.c.l.s8.bf16 %v3857_v23  ;;  %p4902_p11 = pnand %p4901_p10, %p4895_p7 }
 0x920   :  { %4246 = vmatpush1.bf16.msra.mxu0 %v4009_v1  ;;  %v4054_v30 = vunpack.c.h.s8.bf16 %v3890_v21  ;;  %v4053_v8 = vunpack.c.h.s8.bf16 %v3889_v17  ;;  %v4050_v39 = vunpack.c.l.s8.bf16 %v3890_v21  ;;  %v3886_v48 = vld [vmem:[#allocation7 + $0xe8] sm:$0xff]  ;;  %v4049_v24 = vunpack.c.l.s8.bf16 %v3889_v17  ;;  %v3885_v56 = vld [vmem:[#allocation7 + $0xe0] sm:$0xff] }
 0x921   :  { %4287 = vmatpush1.bf16.msra.mxu1 %v4073_v58  ;;  %4247 = vmatprep.subr.bf16.mxu0 %v4006_v53  ;;  %v3918_v41 = vld [vmem:[#allocation7 + $0x1e8] sm:$0xff]  ;;  %v4046_v3 = vunpack.c.h.s8.bf16 %v3886_v48  ;;  %v3917_v29 = vld [vmem:[#allocation7 + $0x1e0] sm:$0xff]  ;;  %v4045_v59 = vunpack.c.h.s8.bf16 %v3885_v56  ;;  %v4042_v54 = vunpack.c.l.s8.bf16 %v3886_v48  ;;  %v4041_v36 = vunpack.c.l.s8.bf16 %v3885_v56 }
 0x922   :  { %4288 = vmatprep.subr.bf16.mxu1 %v4070_v25  ;;  %v4110_v60 = vunpack.c.h.s8.bf16 %v3918_v41  ;;  %v4109_v33 = vunpack.c.h.s8.bf16 %v3917_v29  ;;  %v4106_v62 = vunpack.c.l.s8.bf16 %v3918_v41  ;;  %v3882_v4 = vld [vmem:[#allocation7 + $0xc8] sm:$0xff]  ;;  %v4105_v38 = vunpack.c.l.s8.bf16 %v3917_v29  ;;  %v3881_v1 = vld [vmem:[#allocation7 + $0xc0] sm:$0xff] }
 0x923   :  { %v3914_v5 = vld [vmem:[#allocation7 + $0x1c8] sm:$0xff]  ;;  %v4038_v7 = vunpack.c.h.s8.bf16 %v3882_v4  ;;  %v3913_v58 = vld [vmem:[#allocation7 + $0x1c0] sm:$0xff]  ;;  %v4037_v53 = vunpack.c.h.s8.bf16 %v3881_v1  ;;  %v4034_v10 = vunpack.c.l.s8.bf16 %v3882_v4 }
 0x924   :  { %4248 = vmatpush1.bf16.msra.mxu0 %v4005_v46  ;;  %v4102_v9 = vunpack.c.h.s8.bf16 %v3914_v5  ;;  %v4101_v25 = vunpack.c.h.s8.bf16 %v3913_v58  ;;  %v4098_v63 = vunpack.c.l.s8.bf16 %v3914_v5  ;;  %v3878_v46 = vld [vmem:[#allocation7 + $0xa8] sm:$0xff] }
 0x925   :  { %4289 = vmatpush1.bf16.msra.mxu1 %v4069_v49  ;;  %4249 = vmatprep.subr.bf16.mxu0 %v4002_v14  ;;  %v3910_v49 = vld [vmem:[#allocation7 + $0x1a8] sm:$0xff]  ;;  %v4033_v14 = vunpack.c.l.s8.bf16 %v3881_v1  ;;  %v4030_v11 = vunpack.c.h.s8.bf16 %v3878_v46  ;;  %v4026_v57 = vunpack.c.l.s8.bf16 %v3878_v46 }
 0x926   :  { %4290 = vmatprep.subr.bf16.mxu1 %v4066_v50  ;;  %v4097_v50 = vunpack.c.l.s8.bf16 %v3913_v58  ;;  %v4094_v16 = vunpack.c.h.s8.bf16 %v3910_v49  ;;  %v4090_v47 = vunpack.c.l.s8.bf16 %v3910_v49 }
 0x928   :  { %4250 = vmatpush1.bf16.msra.mxu0 %v4001_v6  ;;  %v3877_v6 = vld [vmem:[#allocation7 + $0xa0] sm:$0xff] }
 0x929   :  { %4291 = vmatpush1.bf16.msra.mxu1 %v4065_v61  ;;  %4251 = vmatprep.subr.bf16.mxu0 %v3998_v19  ;;  %v3909_v61 = vld [vmem:[#allocation7 + $0x1a0] sm:$0xff]  ;;  %v4029_v19 = vunpack.c.h.s8.bf16 %v3877_v6 }
 0x92a   :  { %4292 = vmatprep.subr.bf16.mxu1 %v4062_v13  ;;  %v4093_v13 = vunpack.c.h.s8.bf16 %v3909_v61 }
 0x92c   :  { %4252 = vmatpush1.bf16.msra.mxu0 %v3997_v32  ;;  %v3874_v32 = vld [vmem:[#allocation7 + $0x88] sm:$0xff] }
 0x92d   :  { %4293 = vmatpush1.bf16.msra.mxu1 %v4061_v52  ;;  %4253 = vmatprep.subr.bf16.mxu0 %v3994_v34  ;;  %v3906_v52 = vld [vmem:[#allocation7 + $0x188] sm:$0xff]  ;;  %v4025_v34 = vunpack.c.l.s8.bf16 %v3877_v6  ;;  %v4022_v42 = vunpack.c.h.s8.bf16 %v3874_v32  ;;  %v4018_v23 = vunpack.c.l.s8.bf16 %v3874_v32 }
 0x92e   :  { %4294 = vmatprep.subr.bf16.mxu1 %v4058_v40  ;;  %v4089_v40 = vunpack.c.l.s8.bf16 %v3909_v61  ;;  %v4086_v21 = vunpack.c.h.s8.bf16 %v3906_v52  ;;  %v4082_v17 = vunpack.c.l.s8.bf16 %v3906_v52 }
 0x930   :  { %4254 = vmatpush1.bf16.msra.mxu0 %v3993_v43  ;;  %v3873_v43 = vld [vmem:[#allocation7 + $0x80] sm:$0xff] }
 0x931   :  { %4295 = vmatpush1.bf16.msra.mxu1 %v4057_v22  ;;  %4255 = vmatprep.subr.bf16.mxu0 %v3990_v44  ;;  %v3905_v22 = vld [vmem:[#allocation7 + $0x180] sm:$0xff]  ;;  %v4021_v44 = vunpack.c.h.s8.bf16 %v3873_v43 }
 0x932   :  { %4296 = vmatprep.subr.bf16.mxu1 %v4054_v30  ;;  %v4085_v30 = vunpack.c.h.s8.bf16 %v3905_v22 }
 0x934   :  { %4256 = vmatpush1.bf16.msra.mxu0 %v3989_v45  ;;  %v3934_v45 = vld [vmem:[#allocation7 + $0x268] sm:$0xff] }
 0x935   :  { %4297 = vmatpush1.bf16.msra.mxu1 %v4053_v8  ;;  %4257 = vmatprep.subr.bf16.mxu0 %v3986_v35  ;;  %v3966_v8 = vld [vmem:[#allocation7 + $0x368] sm:$0xff]  ;;  %v4017_v35 = vunpack.c.l.s8.bf16 %v3873_v43  ;;  %v4142_v48 = vunpack.c.h.s8.bf16 %v3934_v45  ;;  %v4138_v56 = vunpack.c.l.s8.bf16 %v3934_v45 }
 0x936   :  { %4298 = vmatprep.subr.bf16.mxu1 %v4050_v39  ;;  %v4081_v39 = vunpack.c.l.s8.bf16 %v3905_v22  ;;  %v4206_v41 = vunpack.c.h.s8.bf16 %v3966_v8  ;;  %v4202_v29 = vunpack.c.l.s8.bf16 %v3966_v8 }
 0x938   :  { %4258 = vmatpush1.bf16.msra.mxu0 %v3985_v37  ;;  %v3933_v37 = vld [vmem:[#allocation7 + $0x260] sm:$0xff] }
 0x939   :  { %4299 = vmatpush1.bf16.msra.mxu1 %v4049_v24  ;;  %4259 = vmatprep.subr.bf16.mxu0 %v4046_v3  ;;  %v3965_v24 = vld [vmem:[#allocation7 + $0x360] sm:$0xff]  ;;  %v4141_v3 = vunpack.c.h.s8.bf16 %v3933_v37 }
 0x93a   :  { %4300 = vmatprep.subr.bf16.mxu1 %v4110_v60  ;;  %v4205_v60 = vunpack.c.h.s8.bf16 %v3965_v24 }
 0x93c   :  { %4260 = vmatpush2.bf16.msra.mxu0 %v4045_v59  ;;  %v3930_v59 = vld [vmem:[#allocation7 + $0x248] sm:$0xff] }
 0x93d   :  { %4301 = vmatpush2.bf16.msra.mxu1 %v4109_v33  ;;  %4261 = vmatprep.subr.bf16.mxu0 %v4042_v54  ;;  %v3962_v33 = vld [vmem:[#allocation7 + $0x348] sm:$0xff]  ;;  %v4137_v54 = vunpack.c.l.s8.bf16 %v3933_v37  ;;  %v4134_v4 = vunpack.c.h.s8.bf16 %v3930_v59  ;;  %v4130_v1 = vunpack.c.l.s8.bf16 %v3930_v59 }
 0x93e   :  { %4302 = vmatprep.subr.bf16.mxu1 %v4106_v62  ;;  %v4201_v62 = vunpack.c.l.s8.bf16 %v3965_v24  ;;  %v4198_v5 = vunpack.c.h.s8.bf16 %v3962_v33  ;;  %v4194_v58 = vunpack.c.l.s8.bf16 %v3962_v33 }
 0x940   :  { %4262 = vmatpush2.bf16.msra.mxu0 %v4041_v36  ;;  %v3929_v36 = vld [vmem:[#allocation7 + $0x240] sm:$0xff] }
 0x941   :  { %4303 = vmatpush2.bf16.msra.mxu1 %v4105_v38  ;;  %4263 = vmatprep.subr.bf16.mxu0 %v4038_v7  ;;  %v3961_v38 = vld [vmem:[#allocation7 + $0x340] sm:$0xff]  ;;  %v4133_v7 = vunpack.c.h.s8.bf16 %v3929_v36 }
 0x942   :  { %4304 = vmatprep.subr.bf16.mxu1 %v4102_v9  ;;  %v4197_v9 = vunpack.c.h.s8.bf16 %v3961_v38 }
 0x944   :  { %4264 = vmatpush2.bf16.msra.mxu0 %v4037_v53  ;;  %v3926_v53 = vld [vmem:[#allocation7 + $0x228] sm:$0xff] }
 0x945   :  { %4305 = vmatpush2.bf16.msra.mxu1 %v4101_v25  ;;  %4265 = vmatprep.subr.bf16.mxu0 %v4034_v10  ;;  %v3958_v25 = vld [vmem:[#allocation7 + $0x328] sm:$0xff]  ;;  %v4129_v10 = vunpack.c.l.s8.bf16 %v3929_v36  ;;  %v4126_v46 = vunpack.c.h.s8.bf16 %v3926_v53  ;;  %v4122_v6 = vunpack.c.l.s8.bf16 %v3926_v53 }
 0x946   :  { %4306 = vmatprep.subr.bf16.mxu1 %v4098_v63  ;;  %v4193_v63 = vunpack.c.l.s8.bf16 %v3961_v38  ;;  %v4190_v49 = vunpack.c.h.s8.bf16 %v3958_v25  ;;  %v4186_v61 = vunpack.c.l.s8.bf16 %v3958_v25 }
 0x948   :  { %4266 = vmatpush2.bf16.msra.mxu0 %v4033_v14  ;;  %v3925_v14 = vld [vmem:[#allocation7 + $0x220] sm:$0xff] }
 0x949   :  { %4307 = vmatpush2.bf16.msra.mxu1 %v4097_v50  ;;  %4267 = vmatprep.subr.bf16.mxu0 %v4030_v11  ;;  %v3957_v50 = vld [vmem:[#allocation7 + $0x320] sm:$0xff]  ;;  %v4125_v11 = vunpack.c.h.s8.bf16 %v3925_v14 }
 0x94a   :  { %4308 = vmatprep.subr.bf16.mxu1 %v4094_v16  ;;  %v4189_v16 = vunpack.c.h.s8.bf16 %v3957_v50 }
 0x94c   :  { %4268 = vmatpush2.bf16.msra.mxu0 %v4029_v19  ;;  %v3922_v19 = vld [vmem:[#allocation7 + $0x208] sm:$0xff] }
 0x94d   :  { %4309 = vmatpush2.bf16.msra.mxu1 %v4093_v13  ;;  %4269 = vmatprep.subr.bf16.mxu0 %v4026_v57  ;;  %v3954_v13 = vld [vmem:[#allocation7 + $0x308] sm:$0xff]  ;;  %v4121_v57 = vunpack.c.l.s8.bf16 %v3925_v14  ;;  %v4118_v32 = vunpack.c.h.s8.bf16 %v3922_v19  ;;  %v4114_v43 = vunpack.c.l.s8.bf16 %v3922_v19 }
 0x94e   :  { %4310 = vmatprep.subr.bf16.mxu1 %v4090_v47  ;;  %v4185_v47 = vunpack.c.l.s8.bf16 %v3957_v50  ;;  %v4182_v52 = vunpack.c.h.s8.bf16 %v3954_v13  ;;  %v4178_v22 = vunpack.c.l.s8.bf16 %v3954_v13 }
 0x950   :  { %4270 = vmatpush2.bf16.msra.mxu0 %v4025_v34  ;;  %v3921_v34 = vld [vmem:[#allocation7 + $0x200] sm:$0xff] }
 0x951   :  { %4311 = vmatpush2.bf16.msra.mxu1 %v4089_v40  ;;  %4271 = vmatprep.subr.bf16.mxu0 %v4022_v42  ;;  %v3953_v40 = vld [vmem:[#allocation7 + $0x300] sm:$0xff]  ;;  %v4117_v42 = vunpack.c.h.s8.bf16 %v3921_v34 }
 0x952   :  { %4312 = vmatprep.subr.bf16.mxu1 %v4086_v21  ;;  %v4181_v21 = vunpack.c.h.s8.bf16 %v3953_v40 }
 0x954   :  { %4272 = vmatpush2.bf16.msra.mxu0 %v4021_v44  ;;  %v3950_v44 = vld [vmem:[#allocation7 + $0x2e8] sm:$0xff] }
 0x955   :  { %4313 = vmatpush2.bf16.msra.mxu1 %v4085_v30  ;;  %4273 = vmatprep.subr.bf16.mxu0 %v4018_v23  ;;  %v3982_v30 = vld [vmem:[#allocation7 + $0x3e8] sm:$0xff]  ;;  %v4113_v23 = vunpack.c.l.s8.bf16 %v3921_v34  ;;  %v4174_v45 = vunpack.c.h.s8.bf16 %v3950_v44  ;;  %v4170_v37 = vunpack.c.l.s8.bf16 %v3950_v44 }
 0x956   :  { %4314 = vmatprep.subr.bf16.mxu1 %v4082_v17  ;;  %v4177_v17 = vunpack.c.l.s8.bf16 %v3953_v40  ;;  %v4238_v8 = vunpack.c.h.s8.bf16 %v3982_v30  ;;  %v4234_v24 = vunpack.c.l.s8.bf16 %v3982_v30 }
 0x958   :  { %4274 = vmatpush2.bf16.msra.mxu0 %v4017_v35  ;;  %v3949_v35 = vld [vmem:[#allocation7 + $0x2e0] sm:$0xff] }
 0x959   :  { %4315 = vmatpush2.bf16.msra.mxu1 %v4081_v39  ;;  %4325 = vmatprep.subr.bf16.mxu0 %v4142_v48  ;;  %v3981_v39 = vld [vmem:[#allocation7 + $0x3e0] sm:$0xff]  ;;  %v4173_v48 = vunpack.c.h.s8.bf16 %v3949_v35 }
 0x95a   :  { %4366 = vmatprep.subr.bf16.mxu1 %v4206_v41  ;;  %v4237_v41 = vunpack.c.h.s8.bf16 %v3981_v39 }
 0x95b   :  { %4276 = vmatmul.mubr.bf16.vlgmr.msra.gmra.mxu0 %v5381_v20 }
 0x95c   :  { %4317 = vmatmul.mubr.bf16.vlgmr.msra.gmra.mxu1 %v5385_v31  ;;  %4326 = vmatpush1.bf16.msra.mxu0 %v4141_v3  ;;  %v3946_v3 = vld [vmem:[#allocation7 + $0x2c8] sm:$0xff] }
 0x95d   :  { %4367 = vmatpush1.bf16.msra.mxu1 %v4205_v60  ;;  %4327 = vmatprep.subr.bf16.mxu0 %v4138_v56  ;;  %v3978_v60 = vld [vmem:[#allocation7 + $0x3c8] sm:$0xff]  ;;  %v4169_v56 = vunpack.c.l.s8.bf16 %v3949_v35  ;;  %v4166_v59 = vunpack.c.h.s8.bf16 %v3946_v3  ;;  %v4162_v36 = vunpack.c.l.s8.bf16 %v3946_v3 }
 0x95e   :  { %4368 = vmatprep.subr.bf16.mxu1 %v4202_v29  ;;  %4357 = vmatprep.mubr.bf16.mxu0 %v5391_v0  ;;  %v4233_v29 = vunpack.c.l.s8.bf16 %v3981_v39  ;;  %v4230_v33 = vunpack.c.h.s8.bf16 %v3978_v60  ;;  %v4226_v38 = vunpack.c.l.s8.bf16 %v3978_v60 }
 0x95f   :  { %4398 = vmatprep.mubr.bf16.mxu1 %v5395_v27 }
 0x960   :  { %4328 = vmatpush1.bf16.msra.mxu0 %v4137_v54  ;;  %v3945_v54 = vld [vmem:[#allocation7 + $0x2c0] sm:$0xff] }
 0x961   :  { %4369 = vmatpush1.bf16.msra.mxu1 %v4201_v62  ;;  %4329 = vmatprep.subr.bf16.mxu0 %v4134_v4  ;;  %v3977_v62 = vld [vmem:[#allocation7 + $0x3c0] sm:$0xff]  ;;  %v4165_v4 = vunpack.c.h.s8.bf16 %v3945_v54 }
 0x962   :  { %4370 = vmatprep.subr.bf16.mxu1 %v4198_v5  ;;  %v4229_v5 = vunpack.c.h.s8.bf16 %v3977_v62 }
 0x964   :  { %4330 = vmatpush1.bf16.msra.mxu0 %v4133_v7  ;;  %v3942_v7 = vld [vmem:[#allocation7 + $0x2a8] sm:$0xff] }
 0x965   :  { %4371 = vmatpush1.bf16.msra.mxu1 %v4197_v9  ;;  %4331 = vmatprep.subr.bf16.mxu0 %v4130_v1  ;;  %v3974_v9 = vld [vmem:[#allocation7 + $0x3a8] sm:$0xff]  ;;  %v4161_v1 = vunpack.c.l.s8.bf16 %v3945_v54  ;;  %v4158_v53 = vunpack.c.h.s8.bf16 %v3942_v7  ;;  %v4154_v14 = vunpack.c.l.s8.bf16 %v3942_v7 }
 0x966   :  { %4372 = vmatprep.subr.bf16.mxu1 %v4194_v58  ;;  %v4225_v58 = vunpack.c.l.s8.bf16 %v3977_v62  ;;  %v4222_v25 = vunpack.c.h.s8.bf16 %v3974_v9  ;;  %v4218_v50 = vunpack.c.l.s8.bf16 %v3974_v9  ;;  %v3863_v9 = vld [vmem:[#allocation7 + $0x30] sm:$0xff] }
 0x968   :  { %4332 = vmatpush1.bf16.msra.mxu0 %v4129_v10  ;;  %v3941_v10 = vld [vmem:[#allocation7 + $0x2a0] sm:$0xff] }
 0x969   :  { %4373 = vmatpush1.bf16.msra.mxu1 %v4193_v63  ;;  %4333 = vmatprep.subr.bf16.mxu0 %v4126_v46  ;;  %v3973_v63 = vld [vmem:[#allocation7 + $0x3a0] sm:$0xff]  ;;  %v4157_v46 = vunpack.c.h.s8.bf16 %v3941_v10 }
 0x96a   :  { %4374 = vmatprep.subr.bf16.mxu1 %v4190_v49  ;;  %v4221_v49 = vunpack.c.h.s8.bf16 %v3973_v63 }
 0x96c   :  { %4334 = vmatpush1.bf16.msra.mxu0 %v4125_v11  ;;  %v3938_v11 = vld [vmem:[#allocation7 + $0x288] sm:$0xff] }
 0x96d   :  { %4375 = vmatpush1.bf16.msra.mxu1 %v4189_v16  ;;  %4335 = vmatprep.subr.bf16.mxu0 %v4122_v6  ;;  %v3970_v16 = vld [vmem:[#allocation7 + $0x388] sm:$0xff]  ;;  %v4153_v6 = vunpack.c.l.s8.bf16 %v3941_v10  ;;  %v4150_v19 = vunpack.c.h.s8.bf16 %v3938_v11  ;;  %v4146_v34 = vunpack.c.l.s8.bf16 %v3938_v11  ;;  %v3860_v10 = vld [vmem:[#allocation7 + $0x18] sm:$0xff]  ;;  %v3859_v11 = vld [vmem:[#allocation7 + $0x10] sm:$0xff] }
 0x96e   :  { %4376 = vmatprep.subr.bf16.mxu1 %v4186_v61  ;;  %v4217_v61 = vunpack.c.l.s8.bf16 %v3973_v63  ;;  %v4214_v13 = vunpack.c.h.s8.bf16 %v3970_v16  ;;  %v4210_v40 = vunpack.c.l.s8.bf16 %v3970_v16  ;;  %v3892_v63 = vld [vmem:[#allocation7 + $0x118] sm:$0xff]  ;;  %v3891_v16 = vld [vmem:[#allocation7 + $0x110] sm:$0xff] }
 0x970   :  { %4336 = vmatpush1.bf16.msra.mxu0 %v4121_v57  ;;  %v3937_v57 = vld [vmem:[#allocation7 + $0x280] sm:$0xff] }
 0x971   :  { %4377 = vmatpush1.bf16.msra.mxu1 %v4185_v47  ;;  %4337 = vmatprep.subr.bf16.mxu0 %v4118_v32  ;;  %v3969_v47 = vld [vmem:[#allocation7 + $0x380] sm:$0xff]  ;;  %v4149_v32 = vunpack.c.h.s8.bf16 %v3937_v57 }
 0x972   :  { %4378 = vmatprep.subr.bf16.mxu1 %v4182_v52  ;;  %v4213_v52 = vunpack.c.h.s8.bf16 %v3969_v47 }
 0x974   :  { %4338 = vmatpush1.bf16.msra.mxu0 %v4117_v42  ;;  %v3872_v42 = vld [vmem:[#allocation7 + $0x78] sm:$0xff] }
 0x975   :  { %4379 = vmatpush1.bf16.msra.mxu1 %v4181_v21  ;;  %4339 = vmatprep.subr.bf16.mxu0 %v4114_v43  ;;  %v3904_v21 = vld [vmem:[#allocation7 + $0x178] sm:$0xff]  ;;  %v4145_v43 = vunpack.c.l.s8.bf16 %v3937_v57  ;;  %v4016_v44 = vunpack.c.h.s8.bf16 %v3872_v42  ;;  %v4012_v35 = vunpack.c.l.s8.bf16 %v3872_v42  ;;  %v3887_v42 = vld [vmem:[#allocation7 + $0xf0] sm:$0xff] }
 0x976   :  { %4380 = vmatprep.subr.bf16.mxu1 %v4178_v22  ;;  %v4209_v22 = vunpack.c.l.s8.bf16 %v3969_v47  ;;  %v4080_v30 = vunpack.c.h.s8.bf16 %v3904_v21  ;;  %v4076_v39 = vunpack.c.l.s8.bf16 %v3904_v21  ;;  %v3888_v57 = vld [vmem:[#allocation7 + $0xf8] sm:$0xff]  ;;  %v3919_v21 = vld [vmem:[#allocation7 + $0x1f0] sm:$0xff] }
 0x977   :  { %v3920_v47 = vld [vmem:[#allocation7 + $0x1f8] sm:$0xff] }
 0x978   :  { %4340 = vmatpush1.bf16.msra.mxu0 %v4113_v23  ;;  %v3871_v23 = vld [vmem:[#allocation7 + $0x70] sm:$0xff] }
 0x979   :  { %4381 = vmatpush1.bf16.msra.mxu1 %v4177_v17  ;;  %4341 = vmatprep.subr.bf16.mxu0 %v4174_v45  ;;  %v3903_v17 = vld [vmem:[#allocation7 + $0x170] sm:$0xff]  ;;  %v4015_v45 = vunpack.c.h.s8.bf16 %v3871_v23 }
 0x97a   :  { %4382 = vmatprep.subr.bf16.mxu1 %v4238_v8  ;;  %v4079_v8 = vunpack.c.h.s8.bf16 %v3903_v17 }
 0x97c   :  { %4342 = vmatpush2.bf16.msra.mxu0 %v4173_v48  ;;  %v3868_v48 = vld [vmem:[#allocation7 + $0x58] sm:$0xff] }
 0x97d   :  { %4383 = vmatpush2.bf16.msra.mxu1 %v4237_v41  ;;  %4343 = vmatprep.subr.bf16.mxu0 %v4170_v37  ;;  %v3900_v41 = vld [vmem:[#allocation7 + $0x158] sm:$0xff]  ;;  %v4011_v37 = vunpack.c.l.s8.bf16 %v3871_v23  ;;  %v4008_v3 = vunpack.c.h.s8.bf16 %v3868_v48  ;;  %v4004_v54 = vunpack.c.l.s8.bf16 %v3868_v48  ;;  %v3883_v48 = vld [vmem:[#allocation7 + $0xd0] sm:$0xff] }
 0x97e   :  { %4384 = vmatprep.subr.bf16.mxu1 %v4234_v24  ;;  %v4075_v24 = vunpack.c.l.s8.bf16 %v3903_v17  ;;  %v4072_v60 = vunpack.c.h.s8.bf16 %v3900_v41  ;;  %v4068_v62 = vunpack.c.l.s8.bf16 %v3900_v41  ;;  %v3884_v23 = vld [vmem:[#allocation7 + $0xd8] sm:$0xff]  ;;  %v3915_v41 = vld [vmem:[#allocation7 + $0x1d0] sm:$0xff] }
 0x97f   :  { %v3916_v17 = vld [vmem:[#allocation7 + $0x1d8] sm:$0xff] }
 0x980   :  { %4344 = vmatpush2.bf16.msra.mxu0 %v4169_v56  ;;  %v3867_v56 = vld [vmem:[#allocation7 + $0x50] sm:$0xff] }
 0x981   :  { %4385 = vmatpush2.bf16.msra.mxu1 %v4233_v29  ;;  %4345 = vmatprep.subr.bf16.mxu0 %v4166_v59  ;;  %v3899_v29 = vld [vmem:[#allocation7 + $0x150] sm:$0xff]  ;;  %v4007_v59 = vunpack.c.h.s8.bf16 %v3867_v56 }
 0x982   :  { %4386 = vmatprep.subr.bf16.mxu1 %v4230_v33  ;;  %v4071_v33 = vunpack.c.h.s8.bf16 %v3899_v29 }
 0x984   :  { %4346 = vmatpush2.bf16.msra.mxu0 %v4165_v4  ;;  %v3864_v4 = vld [vmem:[#allocation7 + $0x38] sm:$0xff] }
 0x985   :  { %4387 = vmatpush2.bf16.msra.mxu1 %v4229_v5  ;;  %4347 = vmatprep.subr.bf16.mxu0 %v4162_v36  ;;  %v3896_v5 = vld [vmem:[#allocation7 + $0x138] sm:$0xff]  ;;  %v4003_v36 = vunpack.c.l.s8.bf16 %v3867_v56  ;;  %v4000_v7 = vunpack.c.h.s8.bf16 %v3864_v4 }
 0x986   :  { %4388 = vmatprep.subr.bf16.mxu1 %v4226_v38  ;;  %v4067_v38 = vunpack.c.l.s8.bf16 %v3899_v29  ;;  %v3880_v56 = vld [vmem:[#allocation7 + $0xb8] sm:$0xff] }
 0x987   :  { %v3912_v29 = vld [vmem:[#allocation7 + $0x1b8] sm:$0xff] }
 0x988   :  { %4348 = vmatpush2.bf16.msra.mxu0 %v4161_v1  ;;  %v3999_v1 = vunpack.c.h.s8.bf16 %v3863_v9 }
 0x989   :  { %4389 = vmatpush2.bf16.msra.mxu1 %v4225_v58  ;;  %4349 = vmatprep.subr.bf16.mxu0 %v4158_v53  ;;  %v3996_v53 = vunpack.c.l.s8.bf16 %v3864_v4  ;;  %v3879_v4 = vld [vmem:[#allocation7 + $0xb0] sm:$0xff] }
 0x98a   :  { %4390 = vmatprep.subr.bf16.mxu1 %v4222_v25  ;;  %v4060_v25 = vunpack.c.l.s8.bf16 %v3896_v5 }
 0x98c   :  { %4350 = vmatpush2.bf16.msra.mxu0 %v4157_v46  ;;  %v3995_v46 = vunpack.c.l.s8.bf16 %v3863_v9  ;;  %v3876_v9 = vld [vmem:[#allocation7 + $0x98] sm:$0xff] }
 0x98d   :  { %4391 = vmatpush2.bf16.msra.mxu1 %v4221_v49  ;;  %4351 = vmatprep.subr.bf16.mxu0 %v4154_v14  ;;  %v3992_v14 = vunpack.c.h.s8.bf16 %v3860_v10 }
 0x98e   :  { %4392 = vmatprep.subr.bf16.mxu1 %v4218_v50  ;;  %v4056_v50 = vunpack.c.h.s8.bf16 %v3892_v63 }
 0x990   :  { %4352 = vmatpush2.bf16.msra.mxu0 %v4153_v6  ;;  %v3991_v6 = vunpack.c.h.s8.bf16 %v3859_v11 }
 0x991   :  { %4393 = vmatpush2.bf16.msra.mxu1 %v4217_v61  ;;  %4353 = vmatprep.subr.bf16.mxu0 %v4150_v19  ;;  %v4055_v61 = vunpack.c.h.s8.bf16 %v3891_v16  ;;  %v3988_v19 = vunpack.c.l.s8.bf16 %v3860_v10  ;;  %v3875_v10 = vld [vmem:[#allocation7 + $0x90] sm:$0xff] }
 0x992   :  { %4394 = vmatprep.subr.bf16.mxu1 %v4214_v13  ;;  %v4052_v13 = vunpack.c.l.s8.bf16 %v3892_v63  ;;  %v3907_v63 = vld [vmem:[#allocation7 + $0x190] sm:$0xff] }
 0x994   :  { %4354 = vmatpush2.bf16.msra.mxu0 %v4149_v32  ;;  %v3987_v32 = vunpack.c.l.s8.bf16 %v3859_v11  ;;  %v3936_v11 = vld [vmem:[#allocation7 + $0x278] sm:$0xff] }
 0x995   :  { %4395 = vmatpush2.bf16.msra.mxu1 %v4213_v52  ;;  %4355 = vmatprep.subr.bf16.mxu0 %v4146_v34  ;;  %v4051_v52 = vunpack.c.l.s8.bf16 %v3891_v16  ;;  %v4048_v34 = vunpack.c.h.s8.bf16 %v3888_v57  ;;  %v3968_v16 = vld [vmem:[#allocation7 + $0x378] sm:$0xff] }
 0x996   :  { %4396 = vmatprep.subr.bf16.mxu1 %v4210_v40  ;;  %v4112_v40 = vunpack.c.h.s8.bf16 %v3920_v47 }
 0x998   :  { %4356 = vmatpush2.bf16.msra.mxu0 %v4145_v43  ;;  %v4047_v43 = vunpack.c.h.s8.bf16 %v3887_v42 }
 0x999   :  { %4397 = vmatpush2.bf16.msra.mxu1 %v4209_v22  ;;  %4407 = vmatprep.subr.bf16.mxu0 %v4016_v44  ;;  %v4111_v22 = vunpack.c.h.s8.bf16 %v3919_v21  ;;  %v4044_v44 = vunpack.c.l.s8.bf16 %v3888_v57  ;;  %v3935_v57 = vld [vmem:[#allocation7 + $0x270] sm:$0xff] }
 0x99a   :  { %4448 = vmatprep.subr.bf16.mxu1 %v4080_v30  ;;  %v4108_v30 = vunpack.c.l.s8.bf16 %v3920_v47  ;;  %v3967_v47 = vld [vmem:[#allocation7 + $0x370] sm:$0xff] }
 0x99b   :  { %4358 = vmatmul.mubr.bf16.vlgmr.msra.gmra.mxu0 %v5389_v51 }
 0x99c   :  { %4399 = vmatmul.mubr.bf16.vlgmr.msra.gmra.mxu1 %v5393_v55  ;;  %4408 = vmatpush1.bf16.msra.mxu0 %v4015_v45  ;;  %v4043_v45 = vunpack.c.l.s8.bf16 %v3887_v42  ;;  %v3932_v42 = vld [vmem:[#allocation7 + $0x258] sm:$0xff] }
 0x99d   :  { %4449 = vmatpush1.bf16.msra.mxu1 %v4079_v8  ;;  %4409 = vmatprep.subr.bf16.mxu0 %v4012_v35  ;;  %v4107_v8 = vunpack.c.l.s8.bf16 %v3919_v21  ;;  %v4040_v35 = vunpack.c.h.s8.bf16 %v3884_v23  ;;  %v3964_v21 = vld [vmem:[#allocation7 + $0x358] sm:$0xff] }
 0x99e   :  { %4450 = vmatprep.subr.bf16.mxu1 %v4076_v39  ;;  %4439 = vmatprep.mubr.bf16.mxu0 %v5383_v15  ;;  %v4064_v15 = vunpack.c.h.s8.bf16 %v3896_v5  ;;  %v4104_v39 = vunpack.c.h.s8.bf16 %v3916_v17  ;;  %v3911_v5 = vld [vmem:[#allocation7 + $0x1b0] sm:$0xff] }
 0x99f   :  { %4480 = vmatprep.mubr.bf16.mxu1 %v5387_v12  ;;  %v3895_v12 = vld [vmem:[#allocation7 + $0x130] sm:$0xff] }
 0x9a0   :  { %4410 = vmatpush1.bf16.msra.mxu0 %v4011_v37  ;;  %v4063_v58 = vunpack.c.h.s8.bf16 %v3895_v12  ;;  %v4059_v49 = vunpack.c.l.s8.bf16 %v3895_v12  ;;  %v4039_v37 = vunpack.c.h.s8.bf16 %v3883_v48  ;;  %v3908_v12 = vld [vmem:[#allocation7 + $0x198] sm:$0xff] }
 0x9a1   :  { %4451 = vmatpush1.bf16.msra.mxu1 %v4075_v24  ;;  %4411 = vmatprep.subr.bf16.mxu0 %v4008_v3  ;;  %v4103_v24 = vunpack.c.h.s8.bf16 %v3915_v41  ;;  %v4036_v3 = vunpack.c.l.s8.bf16 %v3884_v23  ;;  %v3931_v23 = vld [vmem:[#allocation7 + $0x250] sm:$0xff] }
 0x9a2   :  { %4452 = vmatprep.subr.bf16.mxu1 %v4072_v60  ;;  %v4100_v60 = vunpack.c.l.s8.bf16 %v3916_v17  ;;  %v3963_v17 = vld [vmem:[#allocation7 + $0x350] sm:$0xff] }
 0x9a4   :  { %4412 = vmatpush1.bf16.msra.mxu0 %v4007_v59  ;;  %v4035_v59 = vunpack.c.l.s8.bf16 %v3883_v48  ;;  %v4131_v48 = vunpack.c.l.s8.bf16 %v3931_v23 }
 0x9a5   :  { %4453 = vmatpush1.bf16.msra.mxu1 %v4071_v33  ;;  %4413 = vmatprep.subr.bf16.mxu0 %v4004_v54  ;;  %v4099_v33 = vunpack.c.l.s8.bf16 %v3915_v41  ;;  %v4032_v54 = vunpack.c.h.s8.bf16 %v3880_v56  ;;  %v4195_v41 = vunpack.c.l.s8.bf16 %v3963_v17 }
 0x9a6   :  { %4454 = vmatprep.subr.bf16.mxu1 %v4068_v62  ;;  %v4096_v62 = vunpack.c.h.s8.bf16 %v3912_v29 }
 0x9a8   :  { %4414 = vmatpush1.bf16.msra.mxu0 %v4003_v36  ;;  %v4031_v36 = vunpack.c.h.s8.bf16 %v3879_v4 }
 0x9a9   :  { %4455 = vmatpush1.bf16.msra.mxu1 %v4067_v38  ;;  %4415 = vmatprep.subr.bf16.mxu0 %v4000_v7  ;;  %v4095_v38 = vunpack.c.h.s8.bf16 %v3911_v5  ;;  %v4028_v7 = vunpack.c.l.s8.bf16 %v3880_v56 }
 0x9aa   :  { %4456 = vmatprep.subr.bf16.mxu1 %v4064_v15  ;;  %v4092_v15 = vunpack.c.l.s8.bf16 %v3912_v29 }
 0x9ac   :  { %4416 = vmatpush1.bf16.msra.mxu0 %v3999_v1  ;;  %v4027_v1 = vunpack.c.l.s8.bf16 %v3879_v4 }
 0x9ad   :  { %4457 = vmatpush1.bf16.msra.mxu1 %v4063_v58  ;;  %4417 = vmatprep.subr.bf16.mxu0 %v3996_v53  ;;  %v4091_v58 = vunpack.c.l.s8.bf16 %v3911_v5  ;;  %v4024_v53 = vunpack.c.h.s8.bf16 %v3876_v9 }
 0x9ae   :  { %4458 = vmatprep.subr.bf16.mxu1 %v4060_v25  ;;  %v4088_v25 = vunpack.c.h.s8.bf16 %v3908_v12 }
 0x9b0   :  { %4418 = vmatpush1.bf16.msra.mxu0 %v3995_v46  ;;  %v4023_v46 = vunpack.c.h.s8.bf16 %v3875_v10 }
 0x9b1   :  { %4459 = vmatpush1.bf16.msra.mxu1 %v4059_v49  ;;  %4419 = vmatprep.subr.bf16.mxu0 %v3992_v14  ;;  %v4087_v49 = vunpack.c.h.s8.bf16 %v3907_v63  ;;  %v4020_v14 = vunpack.c.l.s8.bf16 %v3876_v9 }
 0x9b2   :  { %4460 = vmatprep.subr.bf16.mxu1 %v4056_v50  ;;  %v4084_v50 = vunpack.c.l.s8.bf16 %v3908_v12 }
 0x9b4   :  { %4420 = vmatpush1.bf16.msra.mxu0 %v3991_v6  ;;  %v4019_v6 = vunpack.c.l.s8.bf16 %v3875_v10 }
 0x9b5   :  { %4461 = vmatpush1.bf16.msra.mxu1 %v4055_v61  ;;  %4421 = vmatprep.subr.bf16.mxu0 %v3988_v19  ;;  %v4083_v61 = vunpack.c.l.s8.bf16 %v3907_v63  ;;  %v4144_v19 = vunpack.c.h.s8.bf16 %v3936_v11 }
 0x9b6   :  { %4462 = vmatprep.subr.bf16.mxu1 %v4052_v13  ;;  %v4208_v13 = vunpack.c.h.s8.bf16 %v3968_v16 }
 0x9b8   :  { %4422 = vmatpush1.bf16.msra.mxu0 %v3987_v32  ;;  %v4143_v32 = vunpack.c.h.s8.bf16 %v3935_v57 }
 0x9b9   :  { %4463 = vmatpush1.bf16.msra.mxu1 %v4051_v52  ;;  %4423 = vmatprep.subr.bf16.mxu0 %v4048_v34  ;;  %v4207_v52 = vunpack.c.h.s8.bf16 %v3967_v47  ;;  %v4140_v34 = vunpack.c.l.s8.bf16 %v3936_v11 }
 0x9ba   :  { %4464 = vmatprep.subr.bf16.mxu1 %v4112_v40  ;;  %v4204_v40 = vunpack.c.l.s8.bf16 %v3968_v16 }
 0x9bc   :  { %4424 = vmatpush2.bf16.msra.mxu0 %v4047_v43  ;;  %v4139_v43 = vunpack.c.l.s8.bf16 %v3935_v57 }
 0x9bd   :  { %4465 = vmatpush2.bf16.msra.mxu1 %v4111_v22  ;;  %4425 = vmatprep.subr.bf16.mxu0 %v4044_v44  ;;  %v4203_v22 = vunpack.c.l.s8.bf16 %v3967_v47  ;;  %v4136_v44 = vunpack.c.h.s8.bf16 %v3932_v42 }
 0x9be   :  { %4466 = vmatprep.subr.bf16.mxu1 %v4108_v30  ;;  %v4200_v30 = vunpack.c.h.s8.bf16 %v3964_v21 }
 0x9c0   :  { %4426 = vmatpush2.bf16.msra.mxu0 %v4043_v45  ;;  %v4135_v45 = vunpack.c.h.s8.bf16 %v3931_v23 }
 0x9c1   :  { %4467 = vmatpush2.bf16.msra.mxu1 %v4107_v8  ;;  %4427 = vmatprep.subr.bf16.mxu0 %v4040_v35  ;;  %v4196_v8 = vunpack.c.l.s8.bf16 %v3964_v21  ;;  %v3928_v35 = vld [vmem:[#allocation7 + $0x238] sm:$0xff] }
 0x9c2   :  { %4468 = vmatprep.subr.bf16.mxu1 %v4104_v39  ;;  %v3960_v39 = vld [vmem:[#allocation7 + $0x338] sm:$0xff]  ;;  %v4124_v56 = vunpack.c.l.s8.bf16 %v3928_v35 }
 0x9c3   :  { %v4188_v29 = vunpack.c.l.s8.bf16 %v3960_v39 }
 0x9c4   :  { %4428 = vmatpush2.bf16.msra.mxu0 %v4039_v37  ;;  %v4128_v37 = vunpack.c.h.s8.bf16 %v3928_v35 }
 0x9c5   :  { %4469 = vmatpush2.bf16.msra.mxu1 %v4103_v24  ;;  %4429 = vmatprep.subr.bf16.mxu0 %v4036_v3  ;;  %v3927_v24 = vld [vmem:[#allocation7 + $0x230] sm:$0xff] }
 0x9c6   :  { %4470 = vmatprep.subr.bf16.mxu1 %v4100_v60  ;;  %v4127_v3 = vunpack.c.h.s8.bf16 %v3927_v24 }
 0x9c8   :  { %4430 = vmatpush2.bf16.msra.mxu0 %v4035_v59  ;;  %v3924_v59 = vld [vmem:[#allocation7 + $0x218] sm:$0xff] }
 0x9c9   :  { %4471 = vmatpush2.bf16.msra.mxu1 %v4099_v33  ;;  %4431 = vmatprep.subr.bf16.mxu0 %v4032_v54  ;;  %v3956_v33 = vld [vmem:[#allocation7 + $0x318] sm:$0xff]  ;;  %v4123_v54 = vunpack.c.l.s8.bf16 %v3927_v24  ;;  %v4120_v4 = vunpack.c.h.s8.bf16 %v3924_v59  ;;  %v4116_v9 = vunpack.c.l.s8.bf16 %v3924_v59 }
 0x9ca   :  { %4472 = vmatprep.subr.bf16.mxu1 %v4096_v62  ;;  %v4184_v5 = vunpack.c.h.s8.bf16 %v3956_v33  ;;  %v4180_v12 = vunpack.c.l.s8.bf16 %v3956_v33 }
 0x9cc   :  { %4432 = vmatpush2.bf16.msra.mxu0 %v4031_v36  ;;  %v3923_v36 = vld [vmem:[#allocation7 + $0x210] sm:$0xff] }
 0x9cd   :  { %4473 = vmatpush2.bf16.msra.mxu1 %v4095_v38  ;;  %4433 = vmatprep.subr.bf16.mxu0 %v4028_v7  ;;  %v3955_v38 = vld [vmem:[#allocation7 + $0x310] sm:$0xff]  ;;  %v4119_v7 = vunpack.c.h.s8.bf16 %v3923_v36 }
 0x9ce   :  { %4474 = vmatprep.subr.bf16.mxu1 %v4092_v15  ;;  %v4183_v15 = vunpack.c.h.s8.bf16 %v3955_v38 }
 0x9d0   :  { %4434 = vmatpush2.bf16.msra.mxu0 %v4027_v1  ;;  %v3952_v1 = vld [vmem:[#allocation7 + $0x2f8] sm:$0xff] }
 0x9d1   :  { %4475 = vmatpush2.bf16.msra.mxu1 %v4091_v58  ;;  %4435 = vmatprep.subr.bf16.mxu0 %v4024_v53  ;;  %v3984_v58 = vld [vmem:[#allocation7 + $0x3f8] sm:$0xff]  ;;  %v4115_v53 = vunpack.c.l.s8.bf16 %v3923_v36  ;;  %v4176_v10 = vunpack.c.h.s8.bf16 %v3952_v1  ;;  %v4172_v11 = vunpack.c.l.s8.bf16 %v3952_v1  ;;  %v4242_v1 = vld [vmem:[#allocation9 + $0x6a] ss:$4 sm:$0xf] }
 0x9d2   :  { %4476 = vmatprep.subr.bf16.mxu1 %v4088_v25  ;;  %v4179_v25 = vunpack.c.l.s8.bf16 %v3955_v38  ;;  %v4240_v63 = vunpack.c.h.s8.bf16 %v3984_v58  ;;  %v4236_v16 = vunpack.c.l.s8.bf16 %v3984_v58 }
 0x9d4   :  { %4436 = vmatpush2.bf16.msra.mxu0 %v4023_v46  ;;  %v3951_v46 = vld [vmem:[#allocation7 + $0x2f0] sm:$0xff] }
 0x9d5   :  { %4477 = vmatpush2.bf16.msra.mxu1 %v4087_v49  ;;  %4437 = vmatprep.subr.bf16.mxu0 %v4020_v14  ;;  %v3983_v49 = vld [vmem:[#allocation7 + $0x3f0] sm:$0xff]  ;;  %v4175_v14 = vunpack.c.h.s8.bf16 %v3951_v46 }
 0x9d6   :  { %4478 = vmatprep.subr.bf16.mxu1 %v4084_v50  ;;  %v4239_v50 = vunpack.c.h.s8.bf16 %v3983_v49 }
 0x9d8   :  { %4438 = vmatpush2.bf16.msra.mxu0 %v4019_v6  ;;  %v3948_v6 = vld [vmem:[#allocation7 + $0x2d8] sm:$0xff] }
 0x9d9   :  { %4479 = vmatpush2.bf16.msra.mxu1 %v4083_v61  ;;  %4489 = vmatprep.subr.bf16.mxu0 %v4144_v19  ;;  %v3980_v61 = vld [vmem:[#allocation7 + $0x3d8] sm:$0xff]  ;;  %v4171_v19 = vunpack.c.l.s8.bf16 %v3951_v46  ;;  %v4168_v57 = vunpack.c.h.s8.bf16 %v3948_v6 }
 0x9da   :  { %4530 = vmatprep.subr.bf16.mxu1 %v4208_v13  ;;  %v4235_v13 = vunpack.c.l.s8.bf16 %v3983_v49  ;;  %v4232_v47 = vunpack.c.h.s8.bf16 %v3980_v61  ;;  %v4228_v21 = vunpack.c.l.s8.bf16 %v3980_v61  ;;  %v4575_v49 = vrot.slane %v4242_v1, %v5048_v26 }
 0x9db   :  { %4440 = vmatmul.mubr.bf16.vlgmr.msra.gmra.mxu0 %v5381_v20  ;;  %v4199_v20 = vunpack.c.h.s8.bf16 %v3963_v17 }
 0x9dc   :  { %4481 = vmatmul.mubr.bf16.vlgmr.msra.gmra.mxu1 %v5385_v31  ;;  %4490 = vmatpush1.bf16.msra.mxu0 %v4143_v32  ;;  %v4132_v31 = vunpack.c.l.s8.bf16 %v3932_v42  ;;  %v3947_v32 = vld [vmem:[#allocation7 + $0x2d0] sm:$0xff]  ;;  %v4164_v42 = vunpack.c.l.s8.bf16 %v3948_v6 }
 0x9dd   :  { %4531 = vmatpush1.bf16.msra.mxu1 %v4207_v52  ;;  %4491 = vmatprep.subr.bf16.mxu0 %v4140_v34  ;;  %v3979_v52 = vld [vmem:[#allocation7 + $0x3d0] sm:$0xff]  ;;  %v4167_v34 = vunpack.c.h.s8.bf16 %v3947_v32 }
 0x9de   :  { %4532 = vmatprep.subr.bf16.mxu1 %v4204_v40  ;;  %4521 = vmatprep.mubr.bf16.mxu0 %v5391_v0  ;;  %v4192_v0 = vunpack.c.h.s8.bf16 %v3960_v39  ;;  %v4231_v40 = vunpack.c.h.s8.bf16 %v3979_v52 }
 0x9df   :  { %4562 = vmatprep.mubr.bf16.mxu1 %v5395_v27  ;;  %v3959_v27 = vld [vmem:[#allocation7 + $0x330] sm:$0xff] }
 0x9e0   :  { %4492 = vmatpush1.bf16.msra.mxu0 %v4139_v43  ;;  %v4191_v60 = vunpack.c.h.s8.bf16 %v3959_v27  ;;  %v4187_v62 = vunpack.c.l.s8.bf16 %v3959_v27  ;;  %v3944_v43 = vld [vmem:[#allocation7 + $0x2b8] sm:$0xff] }
 0x9e1   :  { %4533 = vmatpush1.bf16.msra.mxu1 %v4203_v22  ;;  %4493 = vmatprep.subr.bf16.mxu0 %v4136_v44  ;;  %v3976_v22 = vld [vmem:[#allocation7 + $0x3b8] sm:$0xff]  ;;  %v4163_v44 = vunpack.c.l.s8.bf16 %v3947_v32  ;;  %v4160_v23 = vunpack.c.h.s8.bf16 %v3944_v43  ;;  %v4156_v35 = vunpack.c.l.s8.bf16 %v3944_v43 }
 0x9e2   :  { %4534 = vmatprep.subr.bf16.mxu1 %v4200_v30  ;;  %v4227_v30 = vunpack.c.l.s8.bf16 %v3979_v52  ;;  %v4224_v17 = vunpack.c.h.s8.bf16 %v3976_v22  ;;  %v4220_v39 = vunpack.c.l.s8.bf16 %v3976_v22 }
 0x9e4   :  { %4494 = vmatpush1.bf16.msra.mxu0 %v4135_v45  ;;  %v3943_v45 = vld [vmem:[#allocation7 + $0x2b0] sm:$0xff] }
 0x9e5   :  { %4535 = vmatpush1.bf16.msra.mxu1 %v4199_v20  ;;  %4495 = vmatprep.subr.bf16.mxu0 %v4132_v31  ;;  %v3975_v20 = vld [vmem:[#allocation7 + $0x3b0] sm:$0xff]  ;;  %v4159_v31 = vunpack.c.h.s8.bf16 %v3943_v45 }
 0x9e6   :  { %4536 = vmatprep.subr.bf16.mxu1 %v4196_v8  ;;  %v4223_v8 = vunpack.c.h.s8.bf16 %v3975_v20 }
 0x9e8   :  { %4496 = vmatpush1.bf16.msra.mxu0 %v4131_v48  ;;  %v3940_v48 = vld [vmem:[#allocation7 + $0x298] sm:$0xff] }
 0x9e9   :  { %4537 = vmatpush1.bf16.msra.mxu1 %v4195_v41  ;;  %4497 = vmatprep.subr.bf16.mxu0 %v4128_v37  ;;  %v3972_v41 = vld [vmem:[#allocation7 + $0x398] sm:$0xff]  ;;  %v4155_v37 = vunpack.c.l.s8.bf16 %v3943_v45  ;;  %v4152_v24 = vunpack.c.h.s8.bf16 %v3940_v48  ;;  %v4148_v59 = vunpack.c.l.s8.bf16 %v3940_v48 }
 0x9ea   :  { %4538 = vmatprep.subr.bf16.mxu1 %v4192_v0  ;;  %v4219_v0 = vunpack.c.l.s8.bf16 %v3975_v20  ;;  %v4216_v27 = vunpack.c.h.s8.bf16 %v3972_v41  ;;  %v4212_v33 = vunpack.c.l.s8.bf16 %v3972_v41 }
 0x9ec   :  { %4498 = vmatpush1.bf16.msra.mxu0 %v4127_v3  ;;  %v3939_v3 = vld [vmem:[#allocation7 + $0x290] sm:$0xff] }
 0x9ed   :  { %4539 = vmatpush1.bf16.msra.mxu1 %v4191_v60  ;;  %4499 = vmatprep.subr.bf16.mxu0 %v4124_v56  ;;  %v3971_v60 = vld [vmem:[#allocation7 + $0x390] sm:$0xff]  ;;  %v4151_v56 = vunpack.c.h.s8.bf16 %v3939_v3 }
 0x9ee   :  { %4540 = vmatprep.subr.bf16.mxu1 %v4188_v29  ;;  %v4215_v29 = vunpack.c.h.s8.bf16 %v3971_v60 }
 0x9f0   :  { %4500 = vmatpush1.bf16.msra.mxu0 %v4123_v54  ;;  %v4147_v54 = vunpack.c.l.s8.bf16 %v3939_v3 }
 0x9f1   :  { %4541 = vmatpush1.bf16.msra.mxu1 %v4187_v62  ;;  %4501 = vmatprep.subr.bf16.mxu0 %v4120_v4  ;;  %v4211_v62 = vunpack.c.l.s8.bf16 %v3971_v60 }
 0x9f2   :  { %4542 = vmatprep.subr.bf16.mxu1 %v4184_v5 }
 0x9f4   :  { %4502 = vmatpush1.bf16.msra.mxu0 %v4119_v7 }
 0x9f5   :  { %4543 = vmatpush1.bf16.msra.mxu1 %v4183_v15  ;;  %4503 = vmatprep.subr.bf16.mxu0 %v4116_v9 }
 0x9f6   :  { %4544 = vmatprep.subr.bf16.mxu1 %v4180_v12 }
 0x9f8   :  { %4504 = vmatpush1.bf16.msra.mxu0 %v4115_v53 }
 0x9f9   :  { %4545 = vmatpush1.bf16.msra.mxu1 %v4179_v25  ;;  %4505 = vmatprep.subr.bf16.mxu0 %v4176_v10  ;;  %v4597_v10 = vld [vmem:[#allocation9 + $0x6b] ss:$4 sm:$0xf] }
 0x9fa   :  { %4546 = vmatprep.subr.bf16.mxu1 %v4240_v63  ;;  %v4610_v41 = vrot.slane %v4597_v10, %v5073_v18 }
 0x9fc   :  { %4506 = vmatpush2.bf16.msra.mxu0 %v4175_v14 }
 0x9fd   :  { %4547 = vmatpush2.bf16.msra.mxu1 %v4239_v50  ;;  %4507 = vmatprep.subr.bf16.mxu0 %v4172_v11 }
 0x9fe   :  { %4548 = vmatprep.subr.bf16.mxu1 %v4236_v16  ;;  %v4579_v16 = vrot.slane %v4242_v1, %v5053_v28 }
 0xa00   :  { %4508 = vmatpush2.bf16.msra.mxu0 %v4171_v19 }
 0xa01   :  { %4549 = vmatpush2.bf16.msra.mxu1 %v4235_v13  ;;  %4509 = vmatprep.subr.bf16.mxu0 %v4168_v57  ;;  %v4606_v57 = vrot.slane %v4597_v10, %v5053_v28 }
 0xa02   :  { %4550 = vmatprep.subr.bf16.mxu1 %v4232_v47 }
 0xa04   :  { %4510 = vmatpush2.bf16.msra.mxu0 %v4167_v34 }
 0xa05   :  { %4551 = vmatpush2.bf16.msra.mxu1 %v4231_v40  ;;  %4511 = vmatprep.subr.bf16.mxu0 %v4164_v42 }
 0xa06   :  { %4552 = vmatprep.subr.bf16.mxu1 %v4228_v21 }
 0xa08   :  { %4512 = vmatpush2.bf16.msra.mxu0 %v4163_v44 }
 0xa09   :  { %4553 = vmatpush2.bf16.msra.mxu1 %v4227_v30  ;;  %4513 = vmatprep.subr.bf16.mxu0 %v4160_v23 }
 0xa0a   :  { %4554 = vmatprep.subr.bf16.mxu1 %v4224_v17 }
 0xa0c   :  { %4514 = vmatpush2.bf16.msra.mxu0 %v4159_v31 }
 0xa0d   :  { %4555 = vmatpush2.bf16.msra.mxu1 %v4223_v8  ;;  %4515 = vmatprep.subr.bf16.mxu0 %v4156_v35  ;;  %v4583_v8 = vrot.slane %v4242_v1, %v5073_v18 }
 0xa0e   :  { %4556 = vmatprep.subr.bf16.mxu1 %v4220_v39 }
 0xa10   :  { %4516 = vmatpush2.bf16.msra.mxu0 %v4155_v37 }
 0xa11   :  { %4557 = vmatpush2.bf16.msra.mxu1 %v4219_v0  ;;  %4517 = vmatprep.subr.bf16.mxu0 %v4152_v24  ;;  %v4587_v0 = vrot.slane %v4242_v1, %v5076_v2 }
 0xa12   :  { %4558 = vmatprep.subr.bf16.mxu1 %v4216_v27 }
 0xa14   :  { %4518 = vmatpush2.bf16.msra.mxu0 %v4151_v56  ;;  %v4614_v56 = vrot.slane %v4597_v10, %v5076_v2 }
 0xa15   :  { %4559 = vmatpush2.bf16.msra.mxu1 %v4215_v29  ;;  %4519 = vmatprep.subr.bf16.mxu0 %v4148_v59 }
 0xa16   :  { %4560 = vmatprep.subr.bf16.mxu1 %v4212_v33 }
 0xa18   :  { %4520 = vmatpush2.bf16.msra.mxu0 %v4147_v54 }
 0xa19   :  { %4561 = vmatpush2.bf16.msra.mxu1 %v4211_v62 }
 0xa1b   :  { %v4277_v4 = vpop.f32.mrf.mxu0  ;;  %4522 = vmatmul.mubr.bf16.vlgmr.msra.gmra.mxu0 %v5389_v51 }
 0xa1c   :  { %v4318_v5 = vpop.f32.mrf.mxu1  ;;  %4563 = vmatmul.mubr.bf16.vlgmr.msra.gmra.mxu1 %v5393_v55  ;;  %v4602_v55 = vrot.slane %v4597_v10, %v5048_v26 }
 0xa1d   :  { %v4279_v36 = vpop.f32.mrf.mxu0  ;;  %v4319_v58 = vadd.f32 %v4318_v5, %v4277_v4 }
 0xa1e   :  { %v4320_v38 = vpop.f32.mrf.mxu1 }
 0xa1f   :  { %v4281_v7 = vpop.f32.mrf.mxu0  ;;  %v4321_v63 = vadd.f32 %v4320_v38, %v4279_v36 }
 0xa20   :  { %v4322_v15 = vpop.f32.mrf.mxu1 }
 0xa21   :  { %v4282_v9 = vpop.f32.mrf.mxu0 }
 0xa22   :  { %v4323_v12 = vpop.f32.mrf.mxu1 }
 0xa5b   :  { %v4359_v53 = vpop.f32.mrf.mxu0 }
 0xa5c   :  { %v4400_v25 = vpop.f32.mrf.mxu1  ;;  %v4360_v46 = vadd.f32 %v4359_v53, %v4319_v58 }
 0xa5d   :  { %v4361_v14 = vpop.f32.mrf.mxu0 }
 0xa5e   :  { %v4402_v50 = vpop.f32.mrf.mxu1  ;;  %v4401_v51 = vadd.f32 %v4400_v25, %v4360_v46  ;;  %v4362_v11 = vadd.f32 %v4361_v14, %v4321_v63 }
 0xa5f   :  { %v4363_v6 = vpop.f32.mrf.mxu0 }
 0xa60   :  { %v4404_v61 = vpop.f32.mrf.mxu1  ;;  %v4592_v19 = vmul.f32 %v4575_v49, %v4401_v51  ;;  %v4403_v13 = vadd.f32 %v4402_v50, %v4362_v11 }
 0xa61   :  { %v4364_v47 = vpop.f32.mrf.mxu0 }
 0xa62   :  { %v4405_v32 = vpop.f32.mrf.mxu1  ;;  %v4619_v52 = vadd.f32 %v4602_v55, %v4592_v19  ;;  %v4593_v34 = vmul.f32 %v4579_v16, %v4403_v13 }
 0xa64   :  { %4623 = vst [vmem:[#allocation12] sm:$0xff] %v4619_v52  ;;  %v4620_v40 = vadd.f32 %v4606_v57, %v4593_v34 }
 0xa66   :  { %4624 = vst [vmem:[#allocation12 + $0x8] sm:$0xff] %v4620_v40 }
 0xa9b   :  { %v4441_v42 = vpop.f32.mrf.mxu0 }
 0xa9c   :  { %v4482_v21 = vpop.f32.mrf.mxu1 }
 0xa9d   :  { %v4443_v43 = vpop.f32.mrf.mxu0  ;;  %v4483_v17 = vadd.f32 %v4482_v21, %v4441_v42 }
 0xa9e   :  { %v4484_v26 = vpop.f32.mrf.mxu1 }
 0xa9f   :  { %v4445_v22 = vpop.f32.mrf.mxu0  ;;  %v4485_v31 = vadd.f32 %v4484_v26, %v4443_v43 }
 0xaa0   :  { %v4486_v44 = vpop.f32.mrf.mxu1 }
 0xaa1   :  { %v4446_v30 = vpop.f32.mrf.mxu0 }
 0xaa2   :  { %v4487_v23 = vpop.f32.mrf.mxu1 }
 0xadb   :  { %v4523_v45 = vpop.f32.mrf.mxu0 }
 0xadc   :  { %v4564_v20 = vpop.f32.mrf.mxu1  ;;  %v4524_v28 = vadd.f32 %v4523_v45, %v4483_v17 }
 0xadd   :  { %v4525_v35 = vpop.f32.mrf.mxu0 }
 0xade   :  { %v4566_v39 = vpop.f32.mrf.mxu1  ;;  %v4565_v48 = vadd.f32 %v4564_v20, %v4524_v28  ;;  %v4526_v37 = vadd.f32 %v4525_v35, %v4485_v31 }
 0xadf   :  { %v4527_v24 = vpop.f32.mrf.mxu0 }
 0xae0   :  { %v4568_v27 = vpop.f32.mrf.mxu1  ;;  %v4594_v3 = vmul.f32 %v4583_v8, %v4565_v48  ;;  %v4567_v60 = vadd.f32 %v4566_v39, %v4526_v37 }
 0xae1   :  { %v4528_v29 = vpop.f32.mrf.mxu0 }
 0xae2   :  { %v4569_v59 = vpop.f32.mrf.mxu1  ;;  %v4621_v33 = vadd.f32 %v4610_v41, %v4594_v3  ;;  %v4595_v54 = vmul.f32 %v4587_v0, %v4567_v60 }
 0xae4   :  { %4625 = vst [vmem:[#allocation12 + $0x10] sm:$0xff] %v4621_v33  ;;  %v4622_v62 = vadd.f32 %v4614_v56, %v4595_v54 }
 0xae6   :  { %4626 = vst [vmem:[#allocation12 + $0x18] sm:$0xff] %v4622_v62 }
 0xae7   :  { %4905 = shalt.err (!%p4902_p11)
}
 0xae8   :  { %4636 = dma.vmem_to_hbm [thread:$0]  %s4634_s7, 512, %s5432_s8, [#allocation11]  }
 0xae9   :  { %4928 = dma.done.wait [#allocation11], 512  }
 0xaea   :  { %4929 = vsyncadd [#allocation11], 4294966784 }
 0xaeb   :  { %4640 = vsyncpa [#allocation10], 1 }
 0xaec   :  { %4641 = vsyncpa [#allocation11], 1 }
 0xaed   :  { %4642 = vsyncmov [#allocation8] }
 0xaf0   :  { %s4643_s18 = vpop.sfrf %4642 }
 0xaf1   :  { %p4687_p12 = scmp.ne.s32.totalorder %s4643_s18, 0 }
 0xaf3   :  { %4647 = shalt.err (%p4687_p12)  }
 0xaf4   :  { %4649 = vsyncmov [#allocation8 + $0x1] }
 0xaf7   :  { %s4650_s19 = vpop.sfrf %4649 }
 0xaf8   :  { %p4688_p13 = scmp.ne.s32.totalorder %s4650_s19, 0 }
 0xafa   :  { %4654 = shalt.err (%p4688_p13)  }
 0xafb   :  { %4656 = vsyncmov [#allocation8 + $0x2] }
 0xafe   :  { %s4657_s20 = vpop.sfrf %4656 }
 0xaff   :  { %p4689_p0 = scmp.ne.s32.totalorder %s4657_s20, 0 }
 0xb01   :  { %4661 = shalt.err (%p4689_p0)  }
 0xb02   :  { %4663 = vsyncmov [#allocation8 + $0x3] }
 0xb05   :  { %s4664_s21 = vpop.sfrf %4663 }
 0xb06   :  { %p4690_p1 = scmp.ne.s32.totalorder %s4664_s21, 0 }
 0xb08   :  { %4668 = shalt.err (%p4690_p1)  }
 0xb09   :  { %4670 = vsyncmov [#allocation8 + $0x4] }
 0xb0c   :  { %s4671_s8 = vpop.sfrf %4670 }
 0xb0d   :  { %p4691_p2 = scmp.ne.s32.totalorder %s4671_s8, 0 }
 0xb0f   :  { %4675 = shalt.err (%p4691_p2)  }
 0xb10   :  { %4677 = vsyncmov [#allocation8 + $0x5] }
 0xb13   :  { %s4678_s22 = vpop.sfrf %4677 }
 0xb14   :  { %p4692_p3 = scmp.ne.s32.totalorder %s4678_s22, 0 }
 0xb16   :  { %4682 = shalt.err (%p4692_p3)  }

</bundles_post_ra>
